<compile_context>
chip_gen: v5e
topology: v5e:2x2
jax: 0.10.0
libtpu: 0.0.40
codegen_flags: <defaults>
</compile_context>

<pallas_src>
import functools
import numpy as np
import jax
import jax.numpy as jnp
from jax import lax
from jax.experimental import pallas as pl
from jax.experimental.pallas import tpu as pltpu

_VMEM_LIMIT = 32 * 1024 * 1024   # explicit scoped-VMEM budget (raises v5e 16MiB)


def _round_up(x, m):
    return (x + m - 1) // m * m


def _pad_gates_cols(w, h, hp):
    """Pad each of the 4 gate column-groups of a (..., 4*h) array to hp."""
    parts = []
    for g in range(4):
        p = w[:, g * h:(g + 1) * h]
        parts.append(jnp.pad(p, ((0, 0), (0, hp - h))))
    return jnp.concatenate(parts, axis=-1)


def _pick_tile(dim, candidates, align):
    """Largest candidate tile keeping >=2 blocks along the (parallel) axis when
    the problem is big enough (feeds both v7x TensorCores); otherwise a single
    aligned block covering the small dim."""
    for t in candidates:
        if dim >= 2 * t:
            return t
    return min(_round_up(dim, align), candidates[-1])


# ---------------------------------------------------------------------------
# Tiled matmul + bias (vocab projection).  Two paths:
#   * K <= 512 : K collapsed into one block, 2-D parallel grid, direct store.
#   * K  > 512 : classic 3-D grid with f32 accumulator scratch.
# Returns the PADDED (Mp, Np) result; callers slice once at the very end.
# ---------------------------------------------------------------------------
def _matmul_bias_kernel_nok(x_ref, w_ref, b_ref, o_ref):
    o_ref[...] = (jnp.dot(x_ref[...], w_ref[...],
                          preferred_element_type=jnp.float32)
                  + b_ref[...]).astype(o_ref.dtype)


def _matmul_bias_kernel_ktiled(x_ref, w_ref, b_ref, o_ref, acc_ref):
    k = pl.program_id(2)

    @pl.when(k == 0)
    def _():
        acc_ref[...] = jnp.zeros_like(acc_ref)

    acc_ref[...] += jnp.dot(x_ref[...], w_ref[...],
                            preferred_element_type=jnp.float32)

    @pl.when(k == pl.num_programs(2) - 1)
    def _():
        o_ref[...] = (acc_ref[...] + b_ref[...]).astype(o_ref.dtype)


def matmul_bias(x, w, b, *, out_dtype=jnp.float32):
    m, k = x.shape
    k2, n = w.shape
    assert k == k2
    tm = _pick_tile(m, (512, 256, 128), 8)
    tn = _pick_tile(n, (512, 256, 128), 128)
    mp, np_ = _round_up(m, tm), _round_up(n, tn)

    if k <= 512:
        # Reduction axis collapsed: no accumulator revisits, no init/finalize.
        xp = x if mp == m else jnp.pad(x, ((0, mp - m), (0, 0)))
        wp = w if np_ == n else jnp.pad(w, ((0, 0), (0, np_ - n)))
        bpad = b if np_ == n else jnp.pad(b, ((0, 0), (0, np_ - n)))
        return pl.pallas_call(
            _matmul_bias_kernel_nok,
            out_shape=jax.ShapeDtypeStruct((mp, np_), out_dtype),
            grid_spec=pltpu.PrefetchScalarGridSpec(
                num_scalar_prefetch=0,
                grid=(mp // tm, np_ // tn),
                in_specs=[
                    pl.BlockSpec((tm, k), lambda i, j: (i, 0)),
                    pl.BlockSpec((k, tn), lambda i, j: (0, j)),
                    pl.BlockSpec((1, tn), lambda i, j: (0, j)),
                ],
                out_specs=pl.BlockSpec((tm, tn), lambda i, j: (i, j)),
            ),
            compiler_params=pltpu.CompilerParams(
                dimension_semantics=("parallel", "parallel"),
                vmem_limit_bytes=_VMEM_LIMIT),
        )(xp, wp, bpad)

    tk = 512
    kp = _round_up(k, tk)
    xp = jnp.pad(x, ((0, mp - m), (0, kp - k)))
    wp = jnp.pad(w, ((0, kp - k), (0, np_ - n)))
    bpad = jnp.pad(b, ((0, 0), (0, np_ - n)))
    return pl.pallas_call(
        _matmul_bias_kernel_ktiled,
        out_shape=jax.ShapeDtypeStruct((mp, np_), out_dtype),
        grid_spec=pltpu.PrefetchScalarGridSpec(
            num_scalar_prefetch=0,
            grid=(mp // tm, np_ // tn, kp // tk),
            in_specs=[
                pl.BlockSpec((tm, tk), lambda i, j, kk: (i, kk)),
                pl.BlockSpec((tk, tn), lambda i, j, kk: (kk, j)),
                pl.BlockSpec((1, tn), lambda i, j, kk: (0, j)),
            ],
            out_specs=pl.BlockSpec((tm, tn), lambda i, j, kk: (i, j)),
            scratch_shapes=[pltpu.VMEM((tm, tn), jnp.float32)],
        ),
        compiler_params=pltpu.CompilerParams(
            dimension_semantics=("parallel", "parallel", "arbitrary"),
            vmem_limit_bytes=_VMEM_LIMIT),
    )(xp, wp, bpad)


# ---------------------------------------------------------------------------
# Fused LSTM kernel: per grid step (t_block time steps)
#   1. (first step only) DMA the grid-invariant W_ih / W_hh into single-
#      buffered VMEM scratch; zero the h/c carry.
#   2. One big-M MXU matmul: gates = x_block @ W_ih + bias  (all t_block steps)
#   3. Unrolled serial recurrence: per step only h @ W_hh on the MXU.
# ---------------------------------------------------------------------------
def _lstm_fused_kernel(x_ref, bias_ref, w_ih_hbm, w_hh_hbm, h_out_ref,
                       w_ih_scr, w_hh_scr, gates_scr, h_scr, c_scr, dma_sem,
                       *, hidden_pad, t_block, b_pad):
    """
    x_ref     : (t_block*Bp, Ep)   bf16   input block (time-major, flat rows)
    bias_ref  : (1, 4Hp)           f32
    w_ih_hbm  : (Ep, 4Hp)          bf16   raw HBM ref (memory_space=ANY)
    w_hh_hbm  : (Hp, 4Hp)          bf16   raw HBM ref (memory_space=ANY)
    h_out_ref : (t_block*Bp, Hp)   bf16   hidden states for this block
    scratch   : resident weights, gates block, f32 h/c carry, DMA sems
    """
    hp = hidden_pad

    @pl.when(pl.program_id(0) == 0)
    def _():
        # Grid-invariant weights: copy once, keep resident (single-buffered).
        cp_ih = pltpu.make_async_copy(w_ih_hbm, w_ih_scr, dma_sem.at[0])
        cp_hh = pltpu.make_async_copy(w_hh_hbm, w_hh_scr, dma_sem.at[1])
        cp_ih.start()
        cp_hh.start()
        cp_ih.wait()
        cp_hh.wait()
        h_scr[...] = jnp.zeros_like(h_scr)
        c_scr[...] = jnp.zeros_like(c_scr)

    # Block-entry input projection for all t_block steps at once
    # (M = t_block*Bp uses the MXU far better than the per-step M = Bp matmul)
    gates_scr[...] = (jnp.dot(x_ref[...], w_ih_scr[...],
                              preferred_element_type=jnp.float32)
                      + bias_ref[...])

    def step(tt, carry):
        h, c = carry
        off = pl.multiple_of(tt * b_pad, b_pad)
        # W_hh is referenced directly inside the dot (streams from VMEM).
        g = gates_scr[pl.ds(off, b_pad), :] + jnp.dot(
            h.astype(w_hh_scr.dtype), w_hh_scr[...],
            preferred_element_type=jnp.float32)
        # Hp is a multiple of 128 -> 128-lane-aligned gate slices.
        i_g = jax.nn.sigmoid(g[:, 0 * hp:1 * hp])
        f_g = jax.nn.sigmoid(g[:, 1 * hp:2 * hp])
        g_g = jnp.tanh(g[:, 2 * hp:3 * hp])
        o_g = jax.nn.sigmoid(g[:, 3 * hp:4 * hp])
        c_new = f_g * c + i_g * g_g
        h_new = o_g * jnp.tanh(c_new)
        h_out_ref[pl.ds(off, b_pad), :] = h_new.astype(h_out_ref.dtype)
        return h_new, c_new

    h, c = lax.fori_loop(0, t_block, step, (h_scr[...], c_scr[...]),
                         unroll=True)
    h_scr[...] = h
    c_scr[...] = c


def lstm_fused_pallas(x_flat, bias_p, w_ih_p, w_hh_p, *,
                      t_block, b_pad, hidden_pad):
    total_rows, ep = x_flat.shape
    hp = hidden_pad
    g4 = 4 * hp
    tb_rows = t_block * b_pad
    n_blocks = total_rows // tb_rows

    kernel = functools.partial(_lstm_fused_kernel, hidden_pad=hp,
                               t_block=t_block, b_pad=b_pad)
    return pl.pallas_call(
        kernel,
        out_shape=jax.ShapeDtypeStruct((total_rows, hp), jnp.bfloat16),
        grid_spec=pltpu.PrefetchScalarGridSpec(
            num_scalar_prefetch=0,
            grid=(n_blocks,),
            in_specs=[
                pl.BlockSpec((tb_rows, ep), lambda tb: (tb, 0)),   # x block
                pl.BlockSpec((1, g4), lambda tb: (0, 0)),          # bias
                pl.BlockSpec(memory_space=pl.ANY),                 # W_ih (HBM)
                pl.BlockSpec(memory_space=pl.ANY),                 # W_hh (HBM)
            ],
            out_specs=pl.BlockSpec((tb_rows, hp), lambda tb: (tb, 0)),
            scratch_shapes=[
                pltpu.VMEM((ep, g4), jnp.bfloat16),     # resident W_ih
                pltpu.VMEM((hp, g4), jnp.bfloat16),     # resident W_hh
                pltpu.VMEM((tb_rows, g4), jnp.float32),  # gates for this block
                pltpu.VMEM((b_pad, hp), jnp.float32),    # h carry
                pltpu.VMEM((b_pad, hp), jnp.float32),    # c carry
                pltpu.SemaphoreType.DMA((2,)),
            ],
        ),
        compiler_params=pltpu.CompilerParams(
            dimension_semantics=("arbitrary",),          # time is recurrent
            vmem_limit_bytes=_VMEM_LIMIT),
    )(x_flat, bias_p, w_ih_p, w_hh_p)


# ---------------------------------------------------------------------------
# Full Decoder.forward (rnn_type='lstm')
# ---------------------------------------------------------------------------
def decoder_forward(params, image_embedding, sequence, lengths, *, t_block=16):
    """
    image_embedding : (B, E) float32
    sequence        : (B, T) int32 token ids
    lengths         : python list of ints, sorted descending
    returns         : (sum(lengths), vocab_size) float32 packed-order logits
    """
    lengths_np = np.asarray(lengths)
    b = int(sequence.shape[0])
    vocab, e = params["embedding"].shape
    h = params["w_hh"].shape[0]

    # ---- glue: embedding lookup + image prepend (plain JAX gather) ----
    seq_emb = params["embedding"][sequence]                       # (B, T, E)
    inputs = jnp.concatenate([image_embedding[:, None, :], seq_emb], axis=1)
    t_run = int(lengths_np.max())                                 # clamp grid
    inputs_tbe = jnp.transpose(inputs[:, :t_run, :], (1, 0, 2))   # (T_run,B,E)

    # ---- padded layout sizes (16 sublanes for bf16 packing, 128 lanes) ----
    bp = _round_up(b, 16)
    ep = _round_up(e, 128)
    hp = _round_up(h, 128)
    vp = _round_up(vocab, 128)
    t_pad = _round_up(t_run, t_block)

    # ---- pad / re-layout parameters (gate-grouped, bf16 for MXU) ----
    w_ih_p = jnp.pad(_pad_gates_cols(params["w_ih"], h, hp),
                     ((0, ep - e), (0, 0))).astype(jnp.bfloat16)  # (Ep, 4Hp)
    bias_p = _pad_gates_cols(params["bias"], h, hp)               # (1, 4Hp) f32
    w_hh_p = jnp.pad(_pad_gates_cols(params["w_hh"], h, hp),
                     ((0, hp - h), (0, 0))).astype(jnp.bfloat16)  # (Hp, 4Hp)
    w_out_p = jnp.pad(params["w_out"],
                      ((0, hp - h), (0, vp - vocab))).astype(jnp.bfloat16)
    b_out_p = jnp.pad(params["b_out"], ((0, 0), (0, vp - vocab)))  # (1, Vp)

    # ---- inputs as one flat (T_pad*Bp, Ep) bf16 slab ----
    x_flat = jnp.pad(inputs_tbe,
                     ((0, t_pad - t_run), (0, bp - b), (0, ep - e))
                     ).astype(jnp.bfloat16).reshape(t_pad * bp, ep)

    # ---- fused input projection + serial LSTM recurrence ----
    h_all = lstm_fused_pallas(x_flat, bias_p, w_ih_p, w_hh_p,
                              t_block=t_block, b_pad=bp, hidden_pad=hp)
    # h_all: (T_pad*Bp, Hp) bf16, row index = t*Bp + batch

    # ---- pack_padded_sequence ordering: one flat gather ----
    packed_idx = []
    for t in range(t_run):
        bs = int(np.sum(lengths_np > t))
        packed_idx.extend(t * bp + bb for bb in range(bs))
    packed_idx = jnp.asarray(np.asarray(packed_idx, dtype=np.int32))
    h_packed = jnp.take(h_all, packed_idx, axis=0)                # (P, Hp) bf16

    # ---- vocab projection over packed rows only (K-collapsed matmul) ----
    logits_padded = matmul_bias(h_packed, w_out_p, b_out_p,
                                out_dtype=jnp.float32)            # (Mp, Vp)
    p = int(packed_idx.shape[0])
    # Single trailing slice back to the module's (P, vocab) shape
    # (no-op along rows when P is already tile-aligned).
    return logits_padded[:p, :vocab]


# ---------------------------------------------------------------------------
# Pure-JAX f32 reference (matches PyTorch LSTM semantics for packed rows).
# ---------------------------------------------------------------------------
def decoder_forward_ref(params, image_embedding, sequence, lengths):
    lengths_np = np.asarray(lengths)
    emb = params["embedding"][sequence]
    inputs = jnp.concatenate([image_embedding[:, None, :], emb], axis=1)
    b = inputs.shape[0]
    hsz = params["w_hh"].shape[0]
    h = jnp.zeros((b, hsz), jnp.float32)
    c = jnp.zeros((b, hsz), jnp.float32)
    outs = []
    for t in range(int(lengths_np.max())):
        xt = inputs[:, t, :]
        g = xt @ params["w_ih"] + h @ params["w_hh"] + params["bias"]
        i_g = jax.nn.sigmoid(g[:, 0 * hsz:1 * hsz])
        f_g = jax.nn.sigmoid(g[:, 1 * hsz:2 * hsz])
        g_g = jnp.tanh(g[:, 2 * hsz:3 * hsz])
        o_g = jax.nn.sigmoid(g[:, 3 * hsz:4 * hsz])
        c = f_g * c + i_g * g_g
        h = o_g * jnp.tanh(c)
        bs = int(np.sum(lengths_np > t))
        outs.append(h[:bs] @ params["w_out"] + params["b_out"])
    return jnp.concatenate(outs, axis=0)


def init_params(key, vocab_size, embed_size, hidden_size):
    k = jax.random.split(key, 7)
    s = 0.1
    return {
        # nn.Embedding(vocab_size, embed_size)
        "embedding": s * jax.random.normal(k[0], (vocab_size, embed_size), jnp.float32),
        # nn.LSTM(embed_size, hidden_size): weight_ih (4H, E) -> stored transposed
        "w_ih": s * jax.random.normal(k[1], (embed_size, 4 * hidden_size), jnp.float32),
        "w_hh": s * jax.random.normal(k[2], (hidden_size, 4 * hidden_size), jnp.float32),
        # bias_ih + bias_hh folded together, kept 2-D for TPU layout
        "bias": s * jax.random.normal(k[3], (1, 4 * hidden_size), jnp.float32),
        # nn.Linear(hidden_size, vocab_size): weight (V, H) -> stored transposed
        "w_out": s * jax.random.normal(k[4], (hidden_size, vocab_size), jnp.float32),
        "b_out": s * jax.random.normal(k[5], (1, vocab_size), jnp.float32),
    }


if __name__ == "__main__":
    # Small, deterministic example shapes.
    batch = 2
    seq_len = 8            # caption tokens (before prepending the image)
    embed_size = 32
    hidden_size = 32
    vocab_size = 40

    key = jax.random.PRNGKey(0)
    k_par, k_img, k_seq = jax.random.split(key, 3)

    params = init_params(k_par, vocab_size, embed_size, hidden_size)

    image_embedding = jax.random.normal(k_img, (batch, embed_size), jnp.float32)
    sequence = jax.random.randint(k_seq, (batch, seq_len), 0, vocab_size, jnp.int32)
    # lengths must be descending and <= seq_len + 1 (pack_padded_sequence).
    lengths = [9, 7]

    out = decoder_forward(params, image_embedding, sequence, lengths)
    out = jax.block_until_ready(out)

    expected_rows = int(sum(lengths))
    assert out.shape == (expected_rows, vocab_size), out.shape
    assert out.dtype == jnp.float32
    assert bool(jnp.all(jnp.isfinite(out)))

    # Loose check vs f32 reference (kernel uses bf16 matmuls w/ f32 accumulate).
    ref = jax.block_until_ready(
        decoder_forward_ref(params, image_embedding, sequence, lengths))
    max_err = float(jnp.max(jnp.abs(out - ref)))
    assert max_err < 0.1, f"max abs error vs reference: {max_err}"

    print("KERNEL_OK")
</pallas_src>

<mosaic_0001>
module attributes {stable_mosaic.version = 11 : i64} {
  func.func @_lstm_fused_kernel(%arg0: i32, %arg1: memref<256x128xbf16, #tpu.memory_space<vmem>>, %arg2: memref<1x512xf32, #tpu.memory_space<vmem>>, %arg3: memref<128x512xbf16, #tpu.memory_space<any>>, %arg4: memref<128x512xbf16, #tpu.memory_space<any>>, %arg5: memref<256x128xbf16, #tpu.memory_space<vmem>>, %arg6: memref<128x512xbf16, #tpu.memory_space<vmem>>, %arg7: memref<128x512xbf16, #tpu.memory_space<vmem>>, %arg8: memref<256x512xf32, #tpu.memory_space<vmem>>, %arg9: memref<16x128xf32, #tpu.memory_space<vmem>>, %arg10: memref<16x128xf32, #tpu.memory_space<vmem>>, %arg11: memref<2x!tpu.dma_semaphore, #tpu.memory_space<semaphore_mem>>) attributes {dimension_semantics = [#tpu.dimension_semantics<arbitrary>], iteration_bounds = array<i64: 1>, scalar_prefetch = 0 : i64, scratch_operands = 6 : i64, tpu.core_type = #tpu.core_type<tc>, window_params = [{transform_indices = @transform_0, window_bounds = array<i64: 256, 128>}, {pipeline_mode = #tpu.pipeline_mode<synchronous>, transform_indices = @transform_1, window_bounds = array<i64: 1, 512>}, {}, {}, {transform_indices = @transform_4, window_bounds = array<i64: 256, 128>}]} {
    %c0_i32 = arith.constant 0 : i32
    %0 = arith.cmpi eq, %arg0, %c0_i32 : i32
    %1 = arith.extui %0 : i1 to i32
    %c0_i32_0 = arith.constant 0 : i32
    %2 = arith.cmpi ne, %1, %c0_i32_0 : i32
    scf.if %2 {
      %c0_i32_161 = arith.constant 0 : i32
      %590 = tpu.memref_slice %arg11[%c0_i32_161] : memref<2x!tpu.dma_semaphore, #tpu.memory_space<semaphore_mem>> -> memref<1x!tpu.dma_semaphore, #tpu.memory_space<semaphore_mem>>
      %591 = tpu.memref_squeeze %590 : memref<1x!tpu.dma_semaphore, #tpu.memory_space<semaphore_mem>> -> memref<!tpu.dma_semaphore, #tpu.memory_space<semaphore_mem>>
      tpu.enqueue_dma source(%arg3 : memref<128x512xbf16, #tpu.memory_space<any>>) target(%arg6 : memref<128x512xbf16, #tpu.memory_space<vmem>>) target_semaphore(%591 : memref<!tpu.dma_semaphore, #tpu.memory_space<semaphore_mem>>)
      %c1_i32_162 = arith.constant 1 : i32
      %592 = tpu.memref_slice %arg11[%c1_i32_162] : memref<2x!tpu.dma_semaphore, #tpu.memory_space<semaphore_mem>> -> memref<1x!tpu.dma_semaphore, #tpu.memory_space<semaphore_mem>>
      %593 = tpu.memref_squeeze %592 : memref<1x!tpu.dma_semaphore, #tpu.memory_space<semaphore_mem>> -> memref<!tpu.dma_semaphore, #tpu.memory_space<semaphore_mem>>
      tpu.enqueue_dma source(%arg4 : memref<128x512xbf16, #tpu.memory_space<any>>) target(%arg7 : memref<128x512xbf16, #tpu.memory_space<vmem>>) target_semaphore(%593 : memref<!tpu.dma_semaphore, #tpu.memory_space<semaphore_mem>>)
      %c0_i32_163 = arith.constant 0 : i32
      %594 = tpu.memref_slice %arg11[%c0_i32_163] : memref<2x!tpu.dma_semaphore, #tpu.memory_space<semaphore_mem>> -> memref<1x!tpu.dma_semaphore, #tpu.memory_space<semaphore_mem>>
      %595 = tpu.memref_squeeze %594 : memref<1x!tpu.dma_semaphore, #tpu.memory_space<semaphore_mem>> -> memref<!tpu.dma_semaphore, #tpu.memory_space<semaphore_mem>>
      tpu.wait_dma2 semaphore(%595 : memref<!tpu.dma_semaphore, #tpu.memory_space<semaphore_mem>>) src(%arg3 : memref<128x512xbf16, #tpu.memory_space<any>>) dst(%arg6 : memref<128x512xbf16, #tpu.memory_space<vmem>>)
      %c1_i32_164 = arith.constant 1 : i32
      %596 = tpu.memref_slice %arg11[%c1_i32_164] : memref<2x!tpu.dma_semaphore, #tpu.memory_space<semaphore_mem>> -> memref<1x!tpu.dma_semaphore, #tpu.memory_space<semaphore_mem>>
      %597 = tpu.memref_squeeze %596 : memref<1x!tpu.dma_semaphore, #tpu.memory_space<semaphore_mem>> -> memref<!tpu.dma_semaphore, #tpu.memory_space<semaphore_mem>>
      tpu.wait_dma2 semaphore(%597 : memref<!tpu.dma_semaphore, #tpu.memory_space<semaphore_mem>>) src(%arg4 : memref<128x512xbf16, #tpu.memory_space<any>>) dst(%arg7 : memref<128x512xbf16, #tpu.memory_space<vmem>>)
      %cst_165 = arith.constant 0.000000e+00 : f32
      %598 = vector.broadcast %cst_165 : f32 to vector<16x128xf32>
      %c0_166 = arith.constant 0 : index
      %c0_167 = arith.constant 0 : index
      %599 = vector.load %arg9[%c0_166, %c0_167] : memref<16x128xf32, #tpu.memory_space<vmem>>, vector<16x128xf32>
      tpu.vector_store %arg9[%c0_166, %c0_167], %598 {strides = array<i32>} : memref<16x128xf32, #tpu.memory_space<vmem>>, vector<16x128xf32>,
      %cst_168 = arith.constant 0.000000e+00 : f32
      %600 = vector.broadcast %cst_168 : f32 to vector<16x128xf32>
      %c0_169 = arith.constant 0 : index
      %c0_170 = arith.constant 0 : index
      %601 = vector.load %arg10[%c0_169, %c0_170] : memref<16x128xf32, #tpu.memory_space<vmem>>, vector<16x128xf32>
      tpu.vector_store %arg10[%c0_169, %c0_170], %600 {strides = array<i32>} : memref<16x128xf32, #tpu.memory_space<vmem>>, vector<16x128xf32>,
    } else {
    }
    %c0 = arith.constant 0 : index
    %c0_1 = arith.constant 0 : index
    %3 = vector.load %arg1[%c0, %c0_1] : memref<256x128xbf16, #tpu.memory_space<vmem>>, vector<256x128xbf16>
    %c0_2 = arith.constant 0 : index
    %c0_3 = arith.constant 0 : index
    %4 = vector.load %arg6[%c0_2, %c0_3] : memref<128x512xbf16, #tpu.memory_space<vmem>>, vector<128x512xbf16>
    %cst = arith.constant dense<0.000000e+00> : vector<256x512xf32>
    %5 = tpu.matmul %3, %4, %cst {dimension_numbers = #tpu.dot_dimension_numbers<[1], [0], [0], [1], [0, 0, 1, 1], [], []>} : vector<256x128xbf16>, vector<128x512xbf16>, vector<256x512xf32> -> vector<256x512xf32>
    %c0_4 = arith.constant 0 : index
    %c0_5 = arith.constant 0 : index
    %6 = vector.load %arg2[%c0_4, %c0_5] : memref<1x512xf32, #tpu.memory_space<vmem>>, vector<1x512xf32>
    %7 = vector.broadcast %6 : vector<1x512xf32> to vector<256x512xf32>
    %8 = arith.addf %5, %7 : vector<256x512xf32>
    %c0_6 = arith.constant 0 : index
    %c0_7 = arith.constant 0 : index
    %9 = vector.load %arg8[%c0_6, %c0_7] : memref<256x512xf32, #tpu.memory_space<vmem>>, vector<256x512xf32>
    tpu.vector_store %arg8[%c0_6, %c0_7], %8 {strides = array<i32>} : memref<256x512xf32, #tpu.memory_space<vmem>>, vector<256x512xf32>,
    %c0_8 = arith.constant 0 : index
    %c0_9 = arith.constant 0 : index
    %10 = vector.load %arg9[%c0_8, %c0_9] : memref<16x128xf32, #tpu.memory_space<vmem>>, vector<16x128xf32>
    %c0_10 = arith.constant 0 : index
    %c0_11 = arith.constant 0 : index
    %11 = vector.load %arg10[%c0_10, %c0_11] : memref<16x128xf32, #tpu.memory_space<vmem>>, vector<16x128xf32>
    %c0_i32_12 = arith.constant 0 : i32
    %c16_i32 = arith.constant 16 : i32
    %12 = arith.muli %c0_i32_12, %c16_i32 : i32
    %13 = tpu.assume_multiple %12, 16 : i32
    %14 = arith.index_cast %13 : i32 to index
    %c0_13 = arith.constant 0 : index
    %15 = vector.load %arg8[%14, %c0_13] : memref<256x512xf32, #tpu.memory_space<vmem>>, vector<16x512xf32>
    %16 = arith.truncf %10 : vector<16x128xf32> to vector<16x128xbf16>
    %c0_14 = arith.constant 0 : index
    %c0_15 = arith.constant 0 : index
    %17 = vector.load %arg7[%c0_14, %c0_15] : memref<128x512xbf16, #tpu.memory_space<vmem>>, vector<128x512xbf16>
    %cst_16 = arith.constant dense<0.000000e+00> : vector<16x512xf32>
    %18 = tpu.matmul %16, %17, %cst_16 {dimension_numbers = #tpu.dot_dimension_numbers<[1], [0], [0], [1], [0, 0, 1, 1], [], []>} : vector<16x128xbf16>, vector<128x512xbf16>, vector<16x512xf32> -> vector<16x512xf32>
    %19 = arith.addf %15, %18 : vector<16x512xf32>
    %20 = vector.extract_strided_slice %19 {offsets = [0, 0], sizes = [16, 128], strides = [1, 1]} : vector<16x512xf32> to vector<16x128xf32>
    %21 = arith.negf %20 : vector<16x128xf32>
    %22 = math.exp %21 : vector<16x128xf32>
    %cst_17 = arith.constant 1.000000e+00 : f32
    %23 = vector.broadcast %cst_17 : f32 to vector<16x128xf32>
    %24 = arith.addf %23, %22 : vector<16x128xf32>
    %25 = arith.divf %23, %24 : vector<16x128xf32>
    %26 = vector.extract_strided_slice %19 {offsets = [0, 128], sizes = [16, 128], strides = [1, 1]} : vector<16x512xf32> to vector<16x128xf32>
    %27 = arith.negf %26 : vector<16x128xf32>
    %28 = math.exp %27 : vector<16x128xf32>
    %cst_18 = arith.constant 1.000000e+00 : f32
    %29 = vector.broadcast %cst_18 : f32 to vector<16x128xf32>
    %30 = arith.addf %29, %28 : vector<16x128xf32>
    %31 = arith.divf %29, %30 : vector<16x128xf32>
    %32 = vector.extract_strided_slice %19 {offsets = [0, 256], sizes = [16, 128], strides = [1, 1]} : vector<16x512xf32> to vector<16x128xf32>
    %33 = math.tanh %32 : vector<16x128xf32>
    %34 = vector.extract_strided_slice %19 {offsets = [0, 384], sizes = [16, 128], strides = [1, 1]} : vector<16x512xf32> to vector<16x128xf32>
    %35 = arith.negf %34 : vector<16x128xf32>
    %36 = math.exp %35 : vector<16x128xf32>
    %cst_19 = arith.constant 1.000000e+00 : f32
    %37 = vector.broadcast %cst_19 : f32 to vector<16x128xf32>
    %38 = arith.addf %37, %36 : vector<16x128xf32>
    %39 = arith.divf %37, %38 : vector<16x128xf32>
    %40 = arith.mulf %31, %11 : vector<16x128xf32>
    %41 = arith.mulf %25, %33 : vector<16x128xf32>
    %42 = arith.addf %40, %41 : vector<16x128xf32>
    %43 = math.tanh %42 : vector<16x128xf32>
    %44 = arith.mulf %39, %43 : vector<16x128xf32>
    %45 = arith.truncf %44 : vector<16x128xf32> to vector<16x128xbf16>
    %46 = arith.index_cast %13 : i32 to index
    %c0_20 = arith.constant 0 : index
    %47 = vector.load %arg5[%46, %c0_20] : memref<256x128xbf16, #tpu.memory_space<vmem>>, vector<16x128xbf16>
    tpu.vector_store %arg5[%46, %c0_20], %45 {strides = array<i32>} : memref<256x128xbf16, #tpu.memory_space<vmem>>, vector<16x128xbf16>,
    %c1_i32 = arith.constant 1 : i32
    %c16_i32_21 = arith.constant 16 : i32
    %48 = arith.muli %c1_i32, %c16_i32_21 : i32
    %49 = tpu.assume_multiple %48, 16 : i32
    %50 = arith.index_cast %49 : i32 to index
    %c0_22 = arith.constant 0 : index
    %51 = vector.load %arg8[%50, %c0_22] : memref<256x512xf32, #tpu.memory_space<vmem>>, vector<16x512xf32>
    %52 = arith.truncf %44 : vector<16x128xf32> to vector<16x128xbf16>
    %c0_23 = arith.constant 0 : index
    %c0_24 = arith.constant 0 : index
    %53 = vector.load %arg7[%c0_23, %c0_24] : memref<128x512xbf16, #tpu.memory_space<vmem>>, vector<128x512xbf16>
    %cst_25 = arith.constant dense<0.000000e+00> : vector<16x512xf32>
    %54 = tpu.matmul %52, %53, %cst_25 {dimension_numbers = #tpu.dot_dimension_numbers<[1], [0], [0], [1], [0, 0, 1, 1], [], []>} : vector<16x128xbf16>, vector<128x512xbf16>, vector<16x512xf32> -> vector<16x512xf32>
    %55 = arith.addf %51, %54 : vector<16x512xf32>
    %56 = vector.extract_strided_slice %55 {offsets = [0, 0], sizes = [16, 128], strides = [1, 1]} : vector<16x512xf32> to vector<16x128xf32>
    %57 = arith.negf %56 : vector<16x128xf32>
    %58 = math.exp %57 : vector<16x128xf32>
    %cst_26 = arith.constant 1.000000e+00 : f32
    %59 = vector.broadcast %cst_26 : f32 to vector<16x128xf32>
    %60 = arith.addf %59, %58 : vector<16x128xf32>
    %61 = arith.divf %59, %60 : vector<16x128xf32>
    %62 = vector.extract_strided_slice %55 {offsets = [0, 128], sizes = [16, 128], strides = [1, 1]} : vector<16x512xf32> to vector<16x128xf32>
    %63 = arith.negf %62 : vector<16x128xf32>
    %64 = math.exp %63 : vector<16x128xf32>
    %cst_27 = arith.constant 1.000000e+00 : f32
    %65 = vector.broadcast %cst_27 : f32 to vector<16x128xf32>
    %66 = arith.addf %65, %64 : vector<16x128xf32>
    %67 = arith.divf %65, %66 : vector<16x128xf32>
    %68 = vector.extract_strided_slice %55 {offsets = [0, 256], sizes = [16, 128], strides = [1, 1]} : vector<16x512xf32> to vector<16x128xf32>
    %69 = math.tanh %68 : vector<16x128xf32>
    %70 = vector.extract_strided_slice %55 {offsets = [0, 384], sizes = [16, 128], strides = [1, 1]} : vector<16x512xf32> to vector<16x128xf32>
    %71 = arith.negf %70 : vector<16x128xf32>
    %72 = math.exp %71 : vector<16x128xf32>
    %cst_28 = arith.constant 1.000000e+00 : f32
    %73 = vector.broadcast %cst_28 : f32 to vector<16x128xf32>
    %74 = arith.addf %73, %72 : vector<16x128xf32>
    %75 = arith.divf %73, %74 : vector<16x128xf32>
    %76 = arith.mulf %67, %42 : vector<16x128xf32>
    %77 = arith.mulf %61, %69 : vector<16x128xf32>
    %78 = arith.addf %76, %77 : vector<16x128xf32>
    %79 = math.tanh %78 : vector<16x128xf32>
    %80 = arith.mulf %75, %79 : vector<16x128xf32>
    %81 = arith.truncf %80 : vector<16x128xf32> to vector<16x128xbf16>
    %82 = arith.index_cast %49 : i32 to index
    %c0_29 = arith.constant 0 : index
    %83 = vector.load %arg5[%82, %c0_29] : memref<256x128xbf16, #tpu.memory_space<vmem>>, vector<16x128xbf16>
    tpu.vector_store %arg5[%82, %c0_29], %81 {strides = array<i32>} : memref<256x128xbf16, #tpu.memory_space<vmem>>, vector<16x128xbf16>,
    %c2_i32 = arith.constant 2 : i32
    %c16_i32_30 = arith.constant 16 : i32
    %84 = arith.muli %c2_i32, %c16_i32_30 : i32
    %85 = tpu.assume_multiple %84, 16 : i32
    %86 = arith.index_cast %85 : i32 to index
    %c0_31 = arith.constant 0 : index
    %87 = vector.load %arg8[%86, %c0_31] : memref<256x512xf32, #tpu.memory_space<vmem>>, vector<16x512xf32>
    %88 = arith.truncf %80 : vector<16x128xf32> to vector<16x128xbf16>
    %c0_32 = arith.constant 0 : index
    %c0_33 = arith.constant 0 : index
    %89 = vector.load %arg7[%c0_32, %c0_33] : memref<128x512xbf16, #tpu.memory_space<vmem>>, vector<128x512xbf16>
    %cst_34 = arith.constant dense<0.000000e+00> : vector<16x512xf32>
    %90 = tpu.matmul %88, %89, %cst_34 {dimension_numbers = #tpu.dot_dimension_numbers<[1], [0], [0], [1], [0, 0, 1, 1], [], []>} : vector<16x128xbf16>, vector<128x512xbf16>, vector<16x512xf32> -> vector<16x512xf32>
    %91 = arith.addf %87, %90 : vector<16x512xf32>
    %92 = vector.extract_strided_slice %91 {offsets = [0, 0], sizes = [16, 128], strides = [1, 1]} : vector<16x512xf32> to vector<16x128xf32>
    %93 = arith.negf %92 : vector<16x128xf32>
    %94 = math.exp %93 : vector<16x128xf32>
    %cst_35 = arith.constant 1.000000e+00 : f32
    %95 = vector.broadcast %cst_35 : f32 to vector<16x128xf32>
    %96 = arith.addf %95, %94 : vector<16x128xf32>
    %97 = arith.divf %95, %96 : vector<16x128xf32>
    %98 = vector.extract_strided_slice %91 {offsets = [0, 128], sizes = [16, 128], strides = [1, 1]} : vector<16x512xf32> to vector<16x128xf32>
    %99 = arith.negf %98 : vector<16x128xf32>
    %100 = math.exp %99 : vector<16x128xf32>
    %cst_36 = arith.constant 1.000000e+00 : f32
    %101 = vector.broadcast %cst_36 : f32 to vector<16x128xf32>
    %102 = arith.addf %101, %100 : vector<16x128xf32>
    %103 = arith.divf %101, %102 : vector<16x128xf32>
    %104 = vector.extract_strided_slice %91 {offsets = [0, 256], sizes = [16, 128], strides = [1, 1]} : vector<16x512xf32> to vector<16x128xf32>
    %105 = math.tanh %104 : vector<16x128xf32>
    %106 = vector.extract_strided_slice %91 {offsets = [0, 384], sizes = [16, 128], strides = [1, 1]} : vector<16x512xf32> to vector<16x128xf32>
    %107 = arith.negf %106 : vector<16x128xf32>
    %108 = math.exp %107 : vector<16x128xf32>
    %cst_37 = arith.constant 1.000000e+00 : f32
    %109 = vector.broadcast %cst_37 : f32 to vector<16x128xf32>
    %110 = arith.addf %109, %108 : vector<16x128xf32>
    %111 = arith.divf %109, %110 : vector<16x128xf32>
    %112 = arith.mulf %103, %78 : vector<16x128xf32>
    %113 = arith.mulf %97, %105 : vector<16x128xf32>
    %114 = arith.addf %112, %113 : vector<16x128xf32>
    %115 = math.tanh %114 : vector<16x128xf32>
    %116 = arith.mulf %111, %115 : vector<16x128xf32>
    %117 = arith.truncf %116 : vector<16x128xf32> to vector<16x128xbf16>
    %118 = arith.index_cast %85 : i32 to index
    %c0_38 = arith.constant 0 : index
    %119 = vector.load %arg5[%118, %c0_38] : memref<256x128xbf16, #tpu.memory_space<vmem>>, vector<16x128xbf16>
    tpu.vector_store %arg5[%118, %c0_38], %117 {strides = array<i32>} : memref<256x128xbf16, #tpu.memory_space<vmem>>, vector<16x128xbf16>,
    %c3_i32 = arith.constant 3 : i32
    %c16_i32_39 = arith.constant 16 : i32
    %120 = arith.muli %c3_i32, %c16_i32_39 : i32
    %121 = tpu.assume_multiple %120, 16 : i32
    %122 = arith.index_cast %121 : i32 to index
    %c0_40 = arith.constant 0 : index
    %123 = vector.load %arg8[%122, %c0_40] : memref<256x512xf32, #tpu.memory_space<vmem>>, vector<16x512xf32>
    %124 = arith.truncf %116 : vector<16x128xf32> to vector<16x128xbf16>
    %c0_41 = arith.constant 0 : index
    %c0_42 = arith.constant 0 : index
    %125 = vector.load %arg7[%c0_41, %c0_42] : memref<128x512xbf16, #tpu.memory_space<vmem>>, vector<128x512xbf16>
    %cst_43 = arith.constant dense<0.000000e+00> : vector<16x512xf32>
    %126 = tpu.matmul %124, %125, %cst_43 {dimension_numbers = #tpu.dot_dimension_numbers<[1], [0], [0], [1], [0, 0, 1, 1], [], []>} : vector<16x128xbf16>, vector<128x512xbf16>, vector<16x512xf32> -> vector<16x512xf32>
    %127 = arith.addf %123, %126 : vector<16x512xf32>
    %128 = vector.extract_strided_slice %127 {offsets = [0, 0], sizes = [16, 128], strides = [1, 1]} : vector<16x512xf32> to vector<16x128xf32>
    %129 = arith.negf %128 : vector<16x128xf32>
    %130 = math.exp %129 : vector<16x128xf32>
    %cst_44 = arith.constant 1.000000e+00 : f32
    %131 = vector.broadcast %cst_44 : f32 to vector<16x128xf32>
    %132 = arith.addf %131, %130 : vector<16x128xf32>
    %133 = arith.divf %131, %132 : vector<16x128xf32>
    %134 = vector.extract_strided_slice %127 {offsets = [0, 128], sizes = [16, 128], strides = [1, 1]} : vector<16x512xf32> to vector<16x128xf32>
    %135 = arith.negf %134 : vector<16x128xf32>
    %136 = math.exp %135 : vector<16x128xf32>
    %cst_45 = arith.constant 1.000000e+00 : f32
    %137 = vector.broadcast %cst_45 : f32 to vector<16x128xf32>
    %138 = arith.addf %137, %136 : vector<16x128xf32>
    %139 = arith.divf %137, %138 : vector<16x128xf32>
    %140 = vector.extract_strided_slice %127 {offsets = [0, 256], sizes = [16, 128], strides = [1, 1]} : vector<16x512xf32> to vector<16x128xf32>
    %141 = math.tanh %140 : vector<16x128xf32>
    %142 = vector.extract_strided_slice %127 {offsets = [0, 384], sizes = [16, 128], strides = [1, 1]} : vector<16x512xf32> to vector<16x128xf32>
    %143 = arith.negf %142 : vector<16x128xf32>
    %144 = math.exp %143 : vector<16x128xf32>
    %cst_46 = arith.constant 1.000000e+00 : f32
    %145 = vector.broadcast %cst_46 : f32 to vector<16x128xf32>
    %146 = arith.addf %145, %144 : vector<16x128xf32>
    %147 = arith.divf %145, %146 : vector<16x128xf32>
    %148 = arith.mulf %139, %114 : vector<16x128xf32>
    %149 = arith.mulf %133, %141 : vector<16x128xf32>
    %150 = arith.addf %148, %149 : vector<16x128xf32>
    %151 = math.tanh %150 : vector<16x128xf32>
    %152 = arith.mulf %147, %151 : vector<16x128xf32>
    %153 = arith.truncf %152 : vector<16x128xf32> to vector<16x128xbf16>
    %154 = arith.index_cast %121 : i32 to index
    %c0_47 = arith.constant 0 : index
    %155 = vector.load %arg5[%154, %c0_47] : memref<256x128xbf16, #tpu.memory_space<vmem>>, vector<16x128xbf16>
    tpu.vector_store %arg5[%154, %c0_47], %153 {strides = array<i32>} : memref<256x128xbf16, #tpu.memory_space<vmem>>, vector<16x128xbf16>,
    %c4_i32 = arith.constant 4 : i32
    %c16_i32_48 = arith.constant 16 : i32
    %156 = arith.muli %c4_i32, %c16_i32_48 : i32
    %157 = tpu.assume_multiple %156, 16 : i32
    %158 = arith.index_cast %157 : i32 to index
    %c0_49 = arith.constant 0 : index
    %159 = vector.load %arg8[%158, %c0_49] : memref<256x512xf32, #tpu.memory_space<vmem>>, vector<16x512xf32>
    %160 = arith.truncf %152 : vector<16x128xf32> to vector<16x128xbf16>
    %c0_50 = arith.constant 0 : index
    %c0_51 = arith.constant 0 : index
    %161 = vector.load %arg7[%c0_50, %c0_51] : memref<128x512xbf16, #tpu.memory_space<vmem>>, vector<128x512xbf16>
    %cst_52 = arith.constant dense<0.000000e+00> : vector<16x512xf32>
    %162 = tpu.matmul %160, %161, %cst_52 {dimension_numbers = #tpu.dot_dimension_numbers<[1], [0], [0], [1], [0, 0, 1, 1], [], []>} : vector<16x128xbf16>, vector<128x512xbf16>, vector<16x512xf32> -> vector<16x512xf32>
    %163 = arith.addf %159, %162 : vector<16x512xf32>
    %164 = vector.extract_strided_slice %163 {offsets = [0, 0], sizes = [16, 128], strides = [1, 1]} : vector<16x512xf32> to vector<16x128xf32>
    %165 = arith.negf %164 : vector<16x128xf32>
    %166 = math.exp %165 : vector<16x128xf32>
    %cst_53 = arith.constant 1.000000e+00 : f32
    %167 = vector.broadcast %cst_53 : f32 to vector<16x128xf32>
    %168 = arith.addf %167, %166 : vector<16x128xf32>
    %169 = arith.divf %167, %168 : vector<16x128xf32>
    %170 = vector.extract_strided_slice %163 {offsets = [0, 128], sizes = [16, 128], strides = [1, 1]} : vector<16x512xf32> to vector<16x128xf32>
    %171 = arith.negf %170 : vector<16x128xf32>
    %172 = math.exp %171 : vector<16x128xf32>
    %cst_54 = arith.constant 1.000000e+00 : f32
    %173 = vector.broadcast %cst_54 : f32 to vector<16x128xf32>
    %174 = arith.addf %173, %172 : vector<16x128xf32>
    %175 = arith.divf %173, %174 : vector<16x128xf32>
    %176 = vector.extract_strided_slice %163 {offsets = [0, 256], sizes = [16, 128], strides = [1, 1]} : vector<16x512xf32> to vector<16x128xf32>
    %177 = math.tanh %176 : vector<16x128xf32>
    %178 = vector.extract_strided_slice %163 {offsets = [0, 384], sizes = [16, 128], strides = [1, 1]} : vector<16x512xf32> to vector<16x128xf32>
    %179 = arith.negf %178 : vector<16x128xf32>
    %180 = math.exp %179 : vector<16x128xf32>
    %cst_55 = arith.constant 1.000000e+00 : f32
    %181 = vector.broadcast %cst_55 : f32 to vector<16x128xf32>
    %182 = arith.addf %181, %180 : vector<16x128xf32>
    %183 = arith.divf %181, %182 : vector<16x128xf32>
    %184 = arith.mulf %175, %150 : vector<16x128xf32>
    %185 = arith.mulf %169, %177 : vector<16x128xf32>
    %186 = arith.addf %184, %185 : vector<16x128xf32>
    %187 = math.tanh %186 : vector<16x128xf32>
    %188 = arith.mulf %183, %187 : vector<16x128xf32>
    %189 = arith.truncf %188 : vector<16x128xf32> to vector<16x128xbf16>
    %190 = arith.index_cast %157 : i32 to index
    %c0_56 = arith.constant 0 : index
    %191 = vector.load %arg5[%190, %c0_56] : memref<256x128xbf16, #tpu.memory_space<vmem>>, vector<16x128xbf16>
    tpu.vector_store %arg5[%190, %c0_56], %189 {strides = array<i32>} : memref<256x128xbf16, #tpu.memory_space<vmem>>, vector<16x128xbf16>,
    %c5_i32 = arith.constant 5 : i32
    %c16_i32_57 = arith.constant 16 : i32
    %192 = arith.muli %c5_i32, %c16_i32_57 : i32
    %193 = tpu.assume_multiple %192, 16 : i32
    %194 = arith.index_cast %193 : i32 to index
    %c0_58 = arith.constant 0 : index
    %195 = vector.load %arg8[%194, %c0_58] : memref<256x512xf32, #tpu.memory_space<vmem>>, vector<16x512xf32>
    %196 = arith.truncf %188 : vector<16x128xf32> to vector<16x128xbf16>
    %c0_59 = arith.constant 0 : index
    %c0_60 = arith.constant 0 : index
    %197 = vector.load %arg7[%c0_59, %c0_60] : memref<128x512xbf16, #tpu.memory_space<vmem>>, vector<128x512xbf16>
    %cst_61 = arith.constant dense<0.000000e+00> : vector<16x512xf32>
    %198 = tpu.matmul %196, %197, %cst_61 {dimension_numbers = #tpu.dot_dimension_numbers<[1], [0], [0], [1], [0, 0, 1, 1], [], []>} : vector<16x128xbf16>, vector<128x512xbf16>, vector<16x512xf32> -> vector<16x512xf32>
    %199 = arith.addf %195, %198 : vector<16x512xf32>
    %200 = vector.extract_strided_slice %199 {offsets = [0, 0], sizes = [16, 128], strides = [1, 1]} : vector<16x512xf32> to vector<16x128xf32>
    %201 = arith.negf %200 : vector<16x128xf32>
    %202 = math.exp %201 : vector<16x128xf32>
    %cst_62 = arith.constant 1.000000e+00 : f32
    %203 = vector.broadcast %cst_62 : f32 to vector<16x128xf32>
    %204 = arith.addf %203, %202 : vector<16x128xf32>
    %205 = arith.divf %203, %204 : vector<16x128xf32>
    %206 = vector.extract_strided_slice %199 {offsets = [0, 128], sizes = [16, 128], strides = [1, 1]} : vector<16x512xf32> to vector<16x128xf32>
    %207 = arith.negf %206 : vector<16x128xf32>
    %208 = math.exp %207 : vector<16x128xf32>
    %cst_63 = arith.constant 1.000000e+00 : f32
    %209 = vector.broadcast %cst_63 : f32 to vector<16x128xf32>
    %210 = arith.addf %209, %208 : vector<16x128xf32>
    %211 = arith.divf %209, %210 : vector<16x128xf32>
    %212 = vector.extract_strided_slice %199 {offsets = [0, 256], sizes = [16, 128], strides = [1, 1]} : vector<16x512xf32> to vector<16x128xf32>
    %213 = math.tanh %212 : vector<16x128xf32>
    %214 = vector.extract_strided_slice %199 {offsets = [0, 384], sizes = [16, 128], strides = [1, 1]} : vector<16x512xf32> to vector<16x128xf32>
    %215 = arith.negf %214 : vector<16x128xf32>
    %216 = math.exp %215 : vector<16x128xf32>
    %cst_64 = arith.constant 1.000000e+00 : f32
    %217 = vector.broadcast %cst_64 : f32 to vector<16x128xf32>
    %218 = arith.addf %217, %216 : vector<16x128xf32>
    %219 = arith.divf %217, %218 : vector<16x128xf32>
    %220 = arith.mulf %211, %186 : vector<16x128xf32>
    %221 = arith.mulf %205, %213 : vector<16x128xf32>
    %222 = arith.addf %220, %221 : vector<16x128xf32>
    %223 = math.tanh %222 : vector<16x128xf32>
    %224 = arith.mulf %219, %223 : vector<16x128xf32>
    %225 = arith.truncf %224 : vector<16x128xf32> to vector<16x128xbf16>
    %226 = arith.index_cast %193 : i32 to index
    %c0_65 = arith.constant 0 : index
    %227 = vector.load %arg5[%226, %c0_65] : memref<256x128xbf16, #tpu.memory_space<vmem>>, vector<16x128xbf16>
    tpu.vector_store %arg5[%226, %c0_65], %225 {strides = array<i32>} : memref<256x128xbf16, #tpu.memory_space<vmem>>, vector<16x128xbf16>,
    %c6_i32 = arith.constant 6 : i32
    %c16_i32_66 = arith.constant 16 : i32
    %228 = arith.muli %c6_i32, %c16_i32_66 : i32
    %229 = tpu.assume_multiple %228, 16 : i32
    %230 = arith.index_cast %229 : i32 to index
    %c0_67 = arith.constant 0 : index
    %231 = vector.load %arg8[%230, %c0_67] : memref<256x512xf32, #tpu.memory_space<vmem>>, vector<16x512xf32>
    %232 = arith.truncf %224 : vector<16x128xf32> to vector<16x128xbf16>
    %c0_68 = arith.constant 0 : index
    %c0_69 = arith.constant 0 : index
    %233 = vector.load %arg7[%c0_68, %c0_69] : memref<128x512xbf16, #tpu.memory_space<vmem>>, vector<128x512xbf16>
    %cst_70 = arith.constant dense<0.000000e+00> : vector<16x512xf32>
    %234 = tpu.matmul %232, %233, %cst_70 {dimension_numbers = #tpu.dot_dimension_numbers<[1], [0], [0], [1], [0, 0, 1, 1], [], []>} : vector<16x128xbf16>, vector<128x512xbf16>, vector<16x512xf32> -> vector<16x512xf32>
    %235 = arith.addf %231, %234 : vector<16x512xf32>
    %236 = vector.extract_strided_slice %235 {offsets = [0, 0], sizes = [16, 128], strides = [1, 1]} : vector<16x512xf32> to vector<16x128xf32>
    %237 = arith.negf %236 : vector<16x128xf32>
    %238 = math.exp %237 : vector<16x128xf32>
    %cst_71 = arith.constant 1.000000e+00 : f32
    %239 = vector.broadcast %cst_71 : f32 to vector<16x128xf32>
    %240 = arith.addf %239, %238 : vector<16x128xf32>
    %241 = arith.divf %239, %240 : vector<16x128xf32>
    %242 = vector.extract_strided_slice %235 {offsets = [0, 128], sizes = [16, 128], strides = [1, 1]} : vector<16x512xf32> to vector<16x128xf32>
    %243 = arith.negf %242 : vector<16x128xf32>
    %244 = math.exp %243 : vector<16x128xf32>
    %cst_72 = arith.constant 1.000000e+00 : f32
    %245 = vector.broadcast %cst_72 : f32 to vector<16x128xf32>
    %246 = arith.addf %245, %244 : vector<16x128xf32>
    %247 = arith.divf %245, %246 : vector<16x128xf32>
    %248 = vector.extract_strided_slice %235 {offsets = [0, 256], sizes = [16, 128], strides = [1, 1]} : vector<16x512xf32> to vector<16x128xf32>
    %249 = math.tanh %248 : vector<16x128xf32>
    %250 = vector.extract_strided_slice %235 {offsets = [0, 384], sizes = [16, 128], strides = [1, 1]} : vector<16x512xf32> to vector<16x128xf32>
    %251 = arith.negf %250 : vector<16x128xf32>
    %252 = math.exp %251 : vector<16x128xf32>
    %cst_73 = arith.constant 1.000000e+00 : f32
    %253 = vector.broadcast %cst_73 : f32 to vector<16x128xf32>
    %254 = arith.addf %253, %252 : vector<16x128xf32>
    %255 = arith.divf %253, %254 : vector<16x128xf32>
    %256 = arith.mulf %247, %222 : vector<16x128xf32>
    %257 = arith.mulf %241, %249 : vector<16x128xf32>
    %258 = arith.addf %256, %257 : vector<16x128xf32>
    %259 = math.tanh %258 : vector<16x128xf32>
    %260 = arith.mulf %255, %259 : vector<16x128xf32>
    %261 = arith.truncf %260 : vector<16x128xf32> to vector<16x128xbf16>
    %262 = arith.index_cast %229 : i32 to index
    %c0_74 = arith.constant 0 : index
    %263 = vector.load %arg5[%262, %c0_74] : memref<256x128xbf16, #tpu.memory_space<vmem>>, vector<16x128xbf16>
    tpu.vector_store %arg5[%262, %c0_74], %261 {strides = array<i32>} : memref<256x128xbf16, #tpu.memory_space<vmem>>, vector<16x128xbf16>,
    %c7_i32 = arith.constant 7 : i32
    %c16_i32_75 = arith.constant 16 : i32
    %264 = arith.muli %c7_i32, %c16_i32_75 : i32
    %265 = tpu.assume_multiple %264, 16 : i32
    %266 = arith.index_cast %265 : i32 to index
    %c0_76 = arith.constant 0 : index
    %267 = vector.load %arg8[%266, %c0_76] : memref<256x512xf32, #tpu.memory_space<vmem>>, vector<16x512xf32>
    %268 = arith.truncf %260 : vector<16x128xf32> to vector<16x128xbf16>
    %c0_77 = arith.constant 0 : index
    %c0_78 = arith.constant 0 : index
    %269 = vector.load %arg7[%c0_77, %c0_78] : memref<128x512xbf16, #tpu.memory_space<vmem>>, vector<128x512xbf16>
    %cst_79 = arith.constant dense<0.000000e+00> : vector<16x512xf32>
    %270 = tpu.matmul %268, %269, %cst_79 {dimension_numbers = #tpu.dot_dimension_numbers<[1], [0], [0], [1], [0, 0, 1, 1], [], []>} : vector<16x128xbf16>, vector<128x512xbf16>, vector<16x512xf32> -> vector<16x512xf32>
    %271 = arith.addf %267, %270 : vector<16x512xf32>
    %272 = vector.extract_strided_slice %271 {offsets = [0, 0], sizes = [16, 128], strides = [1, 1]} : vector<16x512xf32> to vector<16x128xf32>
    %273 = arith.negf %272 : vector<16x128xf32>
    %274 = math.exp %273 : vector<16x128xf32>
    %cst_80 = arith.constant 1.000000e+00 : f32
    %275 = vector.broadcast %cst_80 : f32 to vector<16x128xf32>
    %276 = arith.addf %275, %274 : vector<16x128xf32>
    %277 = arith.divf %275, %276 : vector<16x128xf32>
    %278 = vector.extract_strided_slice %271 {offsets = [0, 128], sizes = [16, 128], strides = [1, 1]} : vector<16x512xf32> to vector<16x128xf32>
    %279 = arith.negf %278 : vector<16x128xf32>
    %280 = math.exp %279 : vector<16x128xf32>
    %cst_81 = arith.constant 1.000000e+00 : f32
    %281 = vector.broadcast %cst_81 : f32 to vector<16x128xf32>
    %282 = arith.addf %281, %280 : vector<16x128xf32>
    %283 = arith.divf %281, %282 : vector<16x128xf32>
    %284 = vector.extract_strided_slice %271 {offsets = [0, 256], sizes = [16, 128], strides = [1, 1]} : vector<16x512xf32> to vector<16x128xf32>
    %285 = math.tanh %284 : vector<16x128xf32>
    %286 = vector.extract_strided_slice %271 {offsets = [0, 384], sizes = [16, 128], strides = [1, 1]} : vector<16x512xf32> to vector<16x128xf32>
    %287 = arith.negf %286 : vector<16x128xf32>
    %288 = math.exp %287 : vector<16x128xf32>
    %cst_82 = arith.constant 1.000000e+00 : f32
    %289 = vector.broadcast %cst_82 : f32 to vector<16x128xf32>
    %290 = arith.addf %289, %288 : vector<16x128xf32>
    %291 = arith.divf %289, %290 : vector<16x128xf32>
    %292 = arith.mulf %283, %258 : vector<16x128xf32>
    %293 = arith.mulf %277, %285 : vector<16x128xf32>
    %294 = arith.addf %292, %293 : vector<16x128xf32>
    %295 = math.tanh %294 : vector<16x128xf32>
    %296 = arith.mulf %291, %295 : vector<16x128xf32>
    %297 = arith.truncf %296 : vector<16x128xf32> to vector<16x128xbf16>
    %298 = arith.index_cast %265 : i32 to index
    %c0_83 = arith.constant 0 : index
    %299 = vector.load %arg5[%298, %c0_83] : memref<256x128xbf16, #tpu.memory_space<vmem>>, vector<16x128xbf16>
    tpu.vector_store %arg5[%298, %c0_83], %297 {strides = array<i32>} : memref<256x128xbf16, #tpu.memory_space<vmem>>, vector<16x128xbf16>,
    %c8_i32 = arith.constant 8 : i32
    %c16_i32_84 = arith.constant 16 : i32
    %300 = arith.muli %c8_i32, %c16_i32_84 : i32
    %301 = tpu.assume_multiple %300, 16 : i32
    %302 = arith.index_cast %301 : i32 to index
    %c0_85 = arith.constant 0 : index
    %303 = vector.load %arg8[%302, %c0_85] : memref<256x512xf32, #tpu.memory_space<vmem>>, vector<16x512xf32>
    %304 = arith.truncf %296 : vector<16x128xf32> to vector<16x128xbf16>
    %c0_86 = arith.constant 0 : index
    %c0_87 = arith.constant 0 : index
    %305 = vector.load %arg7[%c0_86, %c0_87] : memref<128x512xbf16, #tpu.memory_space<vmem>>, vector<128x512xbf16>
    %cst_88 = arith.constant dense<0.000000e+00> : vector<16x512xf32>
    %306 = tpu.matmul %304, %305, %cst_88 {dimension_numbers = #tpu.dot_dimension_numbers<[1], [0], [0], [1], [0, 0, 1, 1], [], []>} : vector<16x128xbf16>, vector<128x512xbf16>, vector<16x512xf32> -> vector<16x512xf32>
    %307 = arith.addf %303, %306 : vector<16x512xf32>
    %308 = vector.extract_strided_slice %307 {offsets = [0, 0], sizes = [16, 128], strides = [1, 1]} : vector<16x512xf32> to vector<16x128xf32>
    %309 = arith.negf %308 : vector<16x128xf32>
    %310 = math.exp %309 : vector<16x128xf32>
    %cst_89 = arith.constant 1.000000e+00 : f32
    %311 = vector.broadcast %cst_89 : f32 to vector<16x128xf32>
    %312 = arith.addf %311, %310 : vector<16x128xf32>
    %313 = arith.divf %311, %312 : vector<16x128xf32>
    %314 = vector.extract_strided_slice %307 {offsets = [0, 128], sizes = [16, 128], strides = [1, 1]} : vector<16x512xf32> to vector<16x128xf32>
    %315 = arith.negf %314 : vector<16x128xf32>
    %316 = math.exp %315 : vector<16x128xf32>
    %cst_90 = arith.constant 1.000000e+00 : f32
    %317 = vector.broadcast %cst_90 : f32 to vector<16x128xf32>
    %318 = arith.addf %317, %316 : vector<16x128xf32>
    %319 = arith.divf %317, %318 : vector<16x128xf32>
    %320 = vector.extract_strided_slice %307 {offsets = [0, 256], sizes = [16, 128], strides = [1, 1]} : vector<16x512xf32> to vector<16x128xf32>
    %321 = math.tanh %320 : vector<16x128xf32>
    %322 = vector.extract_strided_slice %307 {offsets = [0, 384], sizes = [16, 128], strides = [1, 1]} : vector<16x512xf32> to vector<16x128xf32>
    %323 = arith.negf %322 : vector<16x128xf32>
    %324 = math.exp %323 : vector<16x128xf32>
    %cst_91 = arith.constant 1.000000e+00 : f32
    %325 = vector.broadcast %cst_91 : f32 to vector<16x128xf32>
    %326 = arith.addf %325, %324 : vector<16x128xf32>
    %327 = arith.divf %325, %326 : vector<16x128xf32>
    %328 = arith.mulf %319, %294 : vector<16x128xf32>
    %329 = arith.mulf %313, %321 : vector<16x128xf32>
    %330 = arith.addf %328, %329 : vector<16x128xf32>
    %331 = math.tanh %330 : vector<16x128xf32>
    %332 = arith.mulf %327, %331 : vector<16x128xf32>
    %333 = arith.truncf %332 : vector<16x128xf32> to vector<16x128xbf16>
    %334 = arith.index_cast %301 : i32 to index
    %c0_92 = arith.constant 0 : index
    %335 = vector.load %arg5[%334, %c0_92] : memref<256x128xbf16, #tpu.memory_space<vmem>>, vector<16x128xbf16>
    tpu.vector_store %arg5[%334, %c0_92], %333 {strides = array<i32>} : memref<256x128xbf16, #tpu.memory_space<vmem>>, vector<16x128xbf16>,
    %c9_i32 = arith.constant 9 : i32
    %c16_i32_93 = arith.constant 16 : i32
    %336 = arith.muli %c9_i32, %c16_i32_93 : i32
    %337 = tpu.assume_multiple %336, 16 : i32
    %338 = arith.index_cast %337 : i32 to index
    %c0_94 = arith.constant 0 : index
    %339 = vector.load %arg8[%338, %c0_94] : memref<256x512xf32, #tpu.memory_space<vmem>>, vector<16x512xf32>
    %340 = arith.truncf %332 : vector<16x128xf32> to vector<16x128xbf16>
    %c0_95 = arith.constant 0 : index
    %c0_96 = arith.constant 0 : index
    %341 = vector.load %arg7[%c0_95, %c0_96] : memref<128x512xbf16, #tpu.memory_space<vmem>>, vector<128x512xbf16>
    %cst_97 = arith.constant dense<0.000000e+00> : vector<16x512xf32>
    %342 = tpu.matmul %340, %341, %cst_97 {dimension_numbers = #tpu.dot_dimension_numbers<[1], [0], [0], [1], [0, 0, 1, 1], [], []>} : vector<16x128xbf16>, vector<128x512xbf16>, vector<16x512xf32> -> vector<16x512xf32>
    %343 = arith.addf %339, %342 : vector<16x512xf32>
    %344 = vector.extract_strided_slice %343 {offsets = [0, 0], sizes = [16, 128], strides = [1, 1]} : vector<16x512xf32> to vector<16x128xf32>
    %345 = arith.negf %344 : vector<16x128xf32>
    %346 = math.exp %345 : vector<16x128xf32>
    %cst_98 = arith.constant 1.000000e+00 : f32
    %347 = vector.broadcast %cst_98 : f32 to vector<16x128xf32>
    %348 = arith.addf %347, %346 : vector<16x128xf32>
    %349 = arith.divf %347, %348 : vector<16x128xf32>
    %350 = vector.extract_strided_slice %343 {offsets = [0, 128], sizes = [16, 128], strides = [1, 1]} : vector<16x512xf32> to vector<16x128xf32>
    %351 = arith.negf %350 : vector<16x128xf32>
    %352 = math.exp %351 : vector<16x128xf32>
    %cst_99 = arith.constant 1.000000e+00 : f32
    %353 = vector.broadcast %cst_99 : f32 to vector<16x128xf32>
    %354 = arith.addf %353, %352 : vector<16x128xf32>
    %355 = arith.divf %353, %354 : vector<16x128xf32>
    %356 = vector.extract_strided_slice %343 {offsets = [0, 256], sizes = [16, 128], strides = [1, 1]} : vector<16x512xf32> to vector<16x128xf32>
    %357 = math.tanh %356 : vector<16x128xf32>
    %358 = vector.extract_strided_slice %343 {offsets = [0, 384], sizes = [16, 128], strides = [1, 1]} : vector<16x512xf32> to vector<16x128xf32>
    %359 = arith.negf %358 : vector<16x128xf32>
    %360 = math.exp %359 : vector<16x128xf32>
    %cst_100 = arith.constant 1.000000e+00 : f32
    %361 = vector.broadcast %cst_100 : f32 to vector<16x128xf32>
    %362 = arith.addf %361, %360 : vector<16x128xf32>
    %363 = arith.divf %361, %362 : vector<16x128xf32>
    %364 = arith.mulf %355, %330 : vector<16x128xf32>
    %365 = arith.mulf %349, %357 : vector<16x128xf32>
    %366 = arith.addf %364, %365 : vector<16x128xf32>
    %367 = math.tanh %366 : vector<16x128xf32>
    %368 = arith.mulf %363, %367 : vector<16x128xf32>
    %369 = arith.truncf %368 : vector<16x128xf32> to vector<16x128xbf16>
    %370 = arith.index_cast %337 : i32 to index
    %c0_101 = arith.constant 0 : index
    %371 = vector.load %arg5[%370, %c0_101] : memref<256x128xbf16, #tpu.memory_space<vmem>>, vector<16x128xbf16>
    tpu.vector_store %arg5[%370, %c0_101], %369 {strides = array<i32>} : memref<256x128xbf16, #tpu.memory_space<vmem>>, vector<16x128xbf16>,
    %c10_i32 = arith.constant 10 : i32
    %c16_i32_102 = arith.constant 16 : i32
    %372 = arith.muli %c10_i32, %c16_i32_102 : i32
    %373 = tpu.assume_multiple %372, 16 : i32
    %374 = arith.index_cast %373 : i32 to index
    %c0_103 = arith.constant 0 : index
    %375 = vector.load %arg8[%374, %c0_103] : memref<256x512xf32, #tpu.memory_space<vmem>>, vector<16x512xf32>
    %376 = arith.truncf %368 : vector<16x128xf32> to vector<16x128xbf16>
    %c0_104 = arith.constant 0 : index
    %c0_105 = arith.constant 0 : index
    %377 = vector.load %arg7[%c0_104, %c0_105] : memref<128x512xbf16, #tpu.memory_space<vmem>>, vector<128x512xbf16>
    %cst_106 = arith.constant dense<0.000000e+00> : vector<16x512xf32>
    %378 = tpu.matmul %376, %377, %cst_106 {dimension_numbers = #tpu.dot_dimension_numbers<[1], [0], [0], [1], [0, 0, 1, 1], [], []>} : vector<16x128xbf16>, vector<128x512xbf16>, vector<16x512xf32> -> vector<16x512xf32>
    %379 = arith.addf %375, %378 : vector<16x512xf32>
    %380 = vector.extract_strided_slice %379 {offsets = [0, 0], sizes = [16, 128], strides = [1, 1]} : vector<16x512xf32> to vector<16x128xf32>
    %381 = arith.negf %380 : vector<16x128xf32>
    %382 = math.exp %381 : vector<16x128xf32>
    %cst_107 = arith.constant 1.000000e+00 : f32
    %383 = vector.broadcast %cst_107 : f32 to vector<16x128xf32>
    %384 = arith.addf %383, %382 : vector<16x128xf32>
    %385 = arith.divf %383, %384 : vector<16x128xf32>
    %386 = vector.extract_strided_slice %379 {offsets = [0, 128], sizes = [16, 128], strides = [1, 1]} : vector<16x512xf32> to vector<16x128xf32>
    %387 = arith.negf %386 : vector<16x128xf32>
    %388 = math.exp %387 : vector<16x128xf32>
    %cst_108 = arith.constant 1.000000e+00 : f32
    %389 = vector.broadcast %cst_108 : f32 to vector<16x128xf32>
    %390 = arith.addf %389, %388 : vector<16x128xf32>
    %391 = arith.divf %389, %390 : vector<16x128xf32>
    %392 = vector.extract_strided_slice %379 {offsets = [0, 256], sizes = [16, 128], strides = [1, 1]} : vector<16x512xf32> to vector<16x128xf32>
    %393 = math.tanh %392 : vector<16x128xf32>
    %394 = vector.extract_strided_slice %379 {offsets = [0, 384], sizes = [16, 128], strides = [1, 1]} : vector<16x512xf32> to vector<16x128xf32>
    %395 = arith.negf %394 : vector<16x128xf32>
    %396 = math.exp %395 : vector<16x128xf32>
    %cst_109 = arith.constant 1.000000e+00 : f32
    %397 = vector.broadcast %cst_109 : f32 to vector<16x128xf32>
    %398 = arith.addf %397, %396 : vector<16x128xf32>
    %399 = arith.divf %397, %398 : vector<16x128xf32>
    %400 = arith.mulf %391, %366 : vector<16x128xf32>
    %401 = arith.mulf %385, %393 : vector<16x128xf32>
    %402 = arith.addf %400, %401 : vector<16x128xf32>
    %403 = math.tanh %402 : vector<16x128xf32>
    %404 = arith.mulf %399, %403 : vector<16x128xf32>
    %405 = arith.truncf %404 : vector<16x128xf32> to vector<16x128xbf16>
    %406 = arith.index_cast %373 : i32 to index
    %c0_110 = arith.constant 0 : index
    %407 = vector.load %arg5[%406, %c0_110] : memref<256x128xbf16, #tpu.memory_space<vmem>>, vector<16x128xbf16>
    tpu.vector_store %arg5[%406, %c0_110], %405 {strides = array<i32>} : memref<256x128xbf16, #tpu.memory_space<vmem>>, vector<16x128xbf16>,
    %c11_i32 = arith.constant 11 : i32
    %c16_i32_111 = arith.constant 16 : i32
    %408 = arith.muli %c11_i32, %c16_i32_111 : i32
    %409 = tpu.assume_multiple %408, 16 : i32
    %410 = arith.index_cast %409 : i32 to index
    %c0_112 = arith.constant 0 : index
    %411 = vector.load %arg8[%410, %c0_112] : memref<256x512xf32, #tpu.memory_space<vmem>>, vector<16x512xf32>
    %412 = arith.truncf %404 : vector<16x128xf32> to vector<16x128xbf16>
    %c0_113 = arith.constant 0 : index
    %c0_114 = arith.constant 0 : index
    %413 = vector.load %arg7[%c0_113, %c0_114] : memref<128x512xbf16, #tpu.memory_space<vmem>>, vector<128x512xbf16>
    %cst_115 = arith.constant dense<0.000000e+00> : vector<16x512xf32>
    %414 = tpu.matmul %412, %413, %cst_115 {dimension_numbers = #tpu.dot_dimension_numbers<[1], [0], [0], [1], [0, 0, 1, 1], [], []>} : vector<16x128xbf16>, vector<128x512xbf16>, vector<16x512xf32> -> vector<16x512xf32>
    %415 = arith.addf %411, %414 : vector<16x512xf32>
    %416 = vector.extract_strided_slice %415 {offsets = [0, 0], sizes = [16, 128], strides = [1, 1]} : vector<16x512xf32> to vector<16x128xf32>
    %417 = arith.negf %416 : vector<16x128xf32>
    %418 = math.exp %417 : vector<16x128xf32>
    %cst_116 = arith.constant 1.000000e+00 : f32
    %419 = vector.broadcast %cst_116 : f32 to vector<16x128xf32>
    %420 = arith.addf %419, %418 : vector<16x128xf32>
    %421 = arith.divf %419, %420 : vector<16x128xf32>
    %422 = vector.extract_strided_slice %415 {offsets = [0, 128], sizes = [16, 128], strides = [1, 1]} : vector<16x512xf32> to vector<16x128xf32>
    %423 = arith.negf %422 : vector<16x128xf32>
    %424 = math.exp %423 : vector<16x128xf32>
    %cst_117 = arith.constant 1.000000e+00 : f32
    %425 = vector.broadcast %cst_117 : f32 to vector<16x128xf32>
    %426 = arith.addf %425, %424 : vector<16x128xf32>
    %427 = arith.divf %425, %426 : vector<16x128xf32>
    %428 = vector.extract_strided_slice %415 {offsets = [0, 256], sizes = [16, 128], strides = [1, 1]} : vector<16x512xf32> to vector<16x128xf32>
    %429 = math.tanh %428 : vector<16x128xf32>
    %430 = vector.extract_strided_slice %415 {offsets = [0, 384], sizes = [16, 128], strides = [1, 1]} : vector<16x512xf32> to vector<16x128xf32>
    %431 = arith.negf %430 : vector<16x128xf32>
    %432 = math.exp %431 : vector<16x128xf32>
    %cst_118 = arith.constant 1.000000e+00 : f32
    %433 = vector.broadcast %cst_118 : f32 to vector<16x128xf32>
    %434 = arith.addf %433, %432 : vector<16x128xf32>
    %435 = arith.divf %433, %434 : vector<16x128xf32>
    %436 = arith.mulf %427, %402 : vector<16x128xf32>
    %437 = arith.mulf %421, %429 : vector<16x128xf32>
    %438 = arith.addf %436, %437 : vector<16x128xf32>
    %439 = math.tanh %438 : vector<16x128xf32>
    %440 = arith.mulf %435, %439 : vector<16x128xf32>
    %441 = arith.truncf %440 : vector<16x128xf32> to vector<16x128xbf16>
    %442 = arith.index_cast %409 : i32 to index
    %c0_119 = arith.constant 0 : index
    %443 = vector.load %arg5[%442, %c0_119] : memref<256x128xbf16, #tpu.memory_space<vmem>>, vector<16x128xbf16>
    tpu.vector_store %arg5[%442, %c0_119], %441 {strides = array<i32>} : memref<256x128xbf16, #tpu.memory_space<vmem>>, vector<16x128xbf16>,
    %c12_i32 = arith.constant 12 : i32
    %c16_i32_120 = arith.constant 16 : i32
    %444 = arith.muli %c12_i32, %c16_i32_120 : i32
    %445 = tpu.assume_multiple %444, 16 : i32
    %446 = arith.index_cast %445 : i32 to index
    %c0_121 = arith.constant 0 : index
    %447 = vector.load %arg8[%446, %c0_121] : memref<256x512xf32, #tpu.memory_space<vmem>>, vector<16x512xf32>
    %448 = arith.truncf %440 : vector<16x128xf32> to vector<16x128xbf16>
    %c0_122 = arith.constant 0 : index
    %c0_123 = arith.constant 0 : index
    %449 = vector.load %arg7[%c0_122, %c0_123] : memref<128x512xbf16, #tpu.memory_space<vmem>>, vector<128x512xbf16>
    %cst_124 = arith.constant dense<0.000000e+00> : vector<16x512xf32>
    %450 = tpu.matmul %448, %449, %cst_124 {dimension_numbers = #tpu.dot_dimension_numbers<[1], [0], [0], [1], [0, 0, 1, 1], [], []>} : vector<16x128xbf16>, vector<128x512xbf16>, vector<16x512xf32> -> vector<16x512xf32>
    %451 = arith.addf %447, %450 : vector<16x512xf32>
    %452 = vector.extract_strided_slice %451 {offsets = [0, 0], sizes = [16, 128], strides = [1, 1]} : vector<16x512xf32> to vector<16x128xf32>
    %453 = arith.negf %452 : vector<16x128xf32>
    %454 = math.exp %453 : vector<16x128xf32>
    %cst_125 = arith.constant 1.000000e+00 : f32
    %455 = vector.broadcast %cst_125 : f32 to vector<16x128xf32>
    %456 = arith.addf %455, %454 : vector<16x128xf32>
    %457 = arith.divf %455, %456 : vector<16x128xf32>
    %458 = vector.extract_strided_slice %451 {offsets = [0, 128], sizes = [16, 128], strides = [1, 1]} : vector<16x512xf32> to vector<16x128xf32>
    %459 = arith.negf %458 : vector<16x128xf32>
    %460 = math.exp %459 : vector<16x128xf32>
    %cst_126 = arith.constant 1.000000e+00 : f32
    %461 = vector.broadcast %cst_126 : f32 to vector<16x128xf32>
    %462 = arith.addf %461, %460 : vector<16x128xf32>
    %463 = arith.divf %461, %462 : vector<16x128xf32>
    %464 = vector.extract_strided_slice %451 {offsets = [0, 256], sizes = [16, 128], strides = [1, 1]} : vector<16x512xf32> to vector<16x128xf32>
    %465 = math.tanh %464 : vector<16x128xf32>
    %466 = vector.extract_strided_slice %451 {offsets = [0, 384], sizes = [16, 128], strides = [1, 1]} : vector<16x512xf32> to vector<16x128xf32>
    %467 = arith.negf %466 : vector<16x128xf32>
    %468 = math.exp %467 : vector<16x128xf32>
    %cst_127 = arith.constant 1.000000e+00 : f32
    %469 = vector.broadcast %cst_127 : f32 to vector<16x128xf32>
    %470 = arith.addf %469, %468 : vector<16x128xf32>
    %471 = arith.divf %469, %470 : vector<16x128xf32>
    %472 = arith.mulf %463, %438 : vector<16x128xf32>
    %473 = arith.mulf %457, %465 : vector<16x128xf32>
    %474 = arith.addf %472, %473 : vector<16x128xf32>
    %475 = math.tanh %474 : vector<16x128xf32>
    %476 = arith.mulf %471, %475 : vector<16x128xf32>
    %477 = arith.truncf %476 : vector<16x128xf32> to vector<16x128xbf16>
    %478 = arith.index_cast %445 : i32 to index
    %c0_128 = arith.constant 0 : index
    %479 = vector.load %arg5[%478, %c0_128] : memref<256x128xbf16, #tpu.memory_space<vmem>>, vector<16x128xbf16>
    tpu.vector_store %arg5[%478, %c0_128], %477 {strides = array<i32>} : memref<256x128xbf16, #tpu.memory_space<vmem>>, vector<16x128xbf16>,
    %c13_i32 = arith.constant 13 : i32
    %c16_i32_129 = arith.constant 16 : i32
    %480 = arith.muli %c13_i32, %c16_i32_129 : i32
    %481 = tpu.assume_multiple %480, 16 : i32
    %482 = arith.index_cast %481 : i32 to index
    %c0_130 = arith.constant 0 : index
    %483 = vector.load %arg8[%482, %c0_130] : memref<256x512xf32, #tpu.memory_space<vmem>>, vector<16x512xf32>
    %484 = arith.truncf %476 : vector<16x128xf32> to vector<16x128xbf16>
    %c0_131 = arith.constant 0 : index
    %c0_132 = arith.constant 0 : index
    %485 = vector.load %arg7[%c0_131, %c0_132] : memref<128x512xbf16, #tpu.memory_space<vmem>>, vector<128x512xbf16>
    %cst_133 = arith.constant dense<0.000000e+00> : vector<16x512xf32>
    %486 = tpu.matmul %484, %485, %cst_133 {dimension_numbers = #tpu.dot_dimension_numbers<[1], [0], [0], [1], [0, 0, 1, 1], [], []>} : vector<16x128xbf16>, vector<128x512xbf16>, vector<16x512xf32> -> vector<16x512xf32>
    %487 = arith.addf %483, %486 : vector<16x512xf32>
    %488 = vector.extract_strided_slice %487 {offsets = [0, 0], sizes = [16, 128], strides = [1, 1]} : vector<16x512xf32> to vector<16x128xf32>
    %489 = arith.negf %488 : vector<16x128xf32>
    %490 = math.exp %489 : vector<16x128xf32>
    %cst_134 = arith.constant 1.000000e+00 : f32
    %491 = vector.broadcast %cst_134 : f32 to vector<16x128xf32>
    %492 = arith.addf %491, %490 : vector<16x128xf32>
    %493 = arith.divf %491, %492 : vector<16x128xf32>
    %494 = vector.extract_strided_slice %487 {offsets = [0, 128], sizes = [16, 128], strides = [1, 1]} : vector<16x512xf32> to vector<16x128xf32>
    %495 = arith.negf %494 : vector<16x128xf32>
    %496 = math.exp %495 : vector<16x128xf32>
    %cst_135 = arith.constant 1.000000e+00 : f32
    %497 = vector.broadcast %cst_135 : f32 to vector<16x128xf32>
    %498 = arith.addf %497, %496 : vector<16x128xf32>
    %499 = arith.divf %497, %498 : vector<16x128xf32>
    %500 = vector.extract_strided_slice %487 {offsets = [0, 256], sizes = [16, 128], strides = [1, 1]} : vector<16x512xf32> to vector<16x128xf32>
    %501 = math.tanh %500 : vector<16x128xf32>
    %502 = vector.extract_strided_slice %487 {offsets = [0, 384], sizes = [16, 128], strides = [1, 1]} : vector<16x512xf32> to vector<16x128xf32>
    %503 = arith.negf %502 : vector<16x128xf32>
    %504 = math.exp %503 : vector<16x128xf32>
    %cst_136 = arith.constant 1.000000e+00 : f32
    %505 = vector.broadcast %cst_136 : f32 to vector<16x128xf32>
    %506 = arith.addf %505, %504 : vector<16x128xf32>
    %507 = arith.divf %505, %506 : vector<16x128xf32>
    %508 = arith.mulf %499, %474 : vector<16x128xf32>
    %509 = arith.mulf %493, %501 : vector<16x128xf32>
    %510 = arith.addf %508, %509 : vector<16x128xf32>
    %511 = math.tanh %510 : vector<16x128xf32>
    %512 = arith.mulf %507, %511 : vector<16x128xf32>
    %513 = arith.truncf %512 : vector<16x128xf32> to vector<16x128xbf16>
    %514 = arith.index_cast %481 : i32 to index
    %c0_137 = arith.constant 0 : index
    %515 = vector.load %arg5[%514, %c0_137] : memref<256x128xbf16, #tpu.memory_space<vmem>>, vector<16x128xbf16>
    tpu.vector_store %arg5[%514, %c0_137], %513 {strides = array<i32>} : memref<256x128xbf16, #tpu.memory_space<vmem>>, vector<16x128xbf16>,
    %c14_i32 = arith.constant 14 : i32
    %c16_i32_138 = arith.constant 16 : i32
    %516 = arith.muli %c14_i32, %c16_i32_138 : i32
    %517 = tpu.assume_multiple %516, 16 : i32
    %518 = arith.index_cast %517 : i32 to index
    %c0_139 = arith.constant 0 : index
    %519 = vector.load %arg8[%518, %c0_139] : memref<256x512xf32, #tpu.memory_space<vmem>>, vector<16x512xf32>
    %520 = arith.truncf %512 : vector<16x128xf32> to vector<16x128xbf16>
    %c0_140 = arith.constant 0 : index
    %c0_141 = arith.constant 0 : index
    %521 = vector.load %arg7[%c0_140, %c0_141] : memref<128x512xbf16, #tpu.memory_space<vmem>>, vector<128x512xbf16>
    %cst_142 = arith.constant dense<0.000000e+00> : vector<16x512xf32>
    %522 = tpu.matmul %520, %521, %cst_142 {dimension_numbers = #tpu.dot_dimension_numbers<[1], [0], [0], [1], [0, 0, 1, 1], [], []>} : vector<16x128xbf16>, vector<128x512xbf16>, vector<16x512xf32> -> vector<16x512xf32>
    %523 = arith.addf %519, %522 : vector<16x512xf32>
    %524 = vector.extract_strided_slice %523 {offsets = [0, 0], sizes = [16, 128], strides = [1, 1]} : vector<16x512xf32> to vector<16x128xf32>
    %525 = arith.negf %524 : vector<16x128xf32>
    %526 = math.exp %525 : vector<16x128xf32>
    %cst_143 = arith.constant 1.000000e+00 : f32
    %527 = vector.broadcast %cst_143 : f32 to vector<16x128xf32>
    %528 = arith.addf %527, %526 : vector<16x128xf32>
    %529 = arith.divf %527, %528 : vector<16x128xf32>
    %530 = vector.extract_strided_slice %523 {offsets = [0, 128], sizes = [16, 128], strides = [1, 1]} : vector<16x512xf32> to vector<16x128xf32>
    %531 = arith.negf %530 : vector<16x128xf32>
    %532 = math.exp %531 : vector<16x128xf32>
    %cst_144 = arith.constant 1.000000e+00 : f32
    %533 = vector.broadcast %cst_144 : f32 to vector<16x128xf32>
    %534 = arith.addf %533, %532 : vector<16x128xf32>
    %535 = arith.divf %533, %534 : vector<16x128xf32>
    %536 = vector.extract_strided_slice %523 {offsets = [0, 256], sizes = [16, 128], strides = [1, 1]} : vector<16x512xf32> to vector<16x128xf32>
    %537 = math.tanh %536 : vector<16x128xf32>
    %538 = vector.extract_strided_slice %523 {offsets = [0, 384], sizes = [16, 128], strides = [1, 1]} : vector<16x512xf32> to vector<16x128xf32>
    %539 = arith.negf %538 : vector<16x128xf32>
    %540 = math.exp %539 : vector<16x128xf32>
    %cst_145 = arith.constant 1.000000e+00 : f32
    %541 = vector.broadcast %cst_145 : f32 to vector<16x128xf32>
    %542 = arith.addf %541, %540 : vector<16x128xf32>
    %543 = arith.divf %541, %542 : vector<16x128xf32>
    %544 = arith.mulf %535, %510 : vector<16x128xf32>
    %545 = arith.mulf %529, %537 : vector<16x128xf32>
    %546 = arith.addf %544, %545 : vector<16x128xf32>
    %547 = math.tanh %546 : vector<16x128xf32>
    %548 = arith.mulf %543, %547 : vector<16x128xf32>
    %549 = arith.truncf %548 : vector<16x128xf32> to vector<16x128xbf16>
    %550 = arith.index_cast %517 : i32 to index
    %c0_146 = arith.constant 0 : index
    %551 = vector.load %arg5[%550, %c0_146] : memref<256x128xbf16, #tpu.memory_space<vmem>>, vector<16x128xbf16>
    tpu.vector_store %arg5[%550, %c0_146], %549 {strides = array<i32>} : memref<256x128xbf16, #tpu.memory_space<vmem>>, vector<16x128xbf16>,
    %c15_i32 = arith.constant 15 : i32
    %c16_i32_147 = arith.constant 16 : i32
    %552 = arith.muli %c15_i32, %c16_i32_147 : i32
    %553 = tpu.assume_multiple %552, 16 : i32
    %554 = arith.index_cast %553 : i32 to index
    %c0_148 = arith.constant 0 : index
    %555 = vector.load %arg8[%554, %c0_148] : memref<256x512xf32, #tpu.memory_space<vmem>>, vector<16x512xf32>
    %556 = arith.truncf %548 : vector<16x128xf32> to vector<16x128xbf16>
    %c0_149 = arith.constant 0 : index
    %c0_150 = arith.constant 0 : index
    %557 = vector.load %arg7[%c0_149, %c0_150] : memref<128x512xbf16, #tpu.memory_space<vmem>>, vector<128x512xbf16>
    %cst_151 = arith.constant dense<0.000000e+00> : vector<16x512xf32>
    %558 = tpu.matmul %556, %557, %cst_151 {dimension_numbers = #tpu.dot_dimension_numbers<[1], [0], [0], [1], [0, 0, 1, 1], [], []>} : vector<16x128xbf16>, vector<128x512xbf16>, vector<16x512xf32> -> vector<16x512xf32>
    %559 = arith.addf %555, %558 : vector<16x512xf32>
    %560 = vector.extract_strided_slice %559 {offsets = [0, 0], sizes = [16, 128], strides = [1, 1]} : vector<16x512xf32> to vector<16x128xf32>
    %561 = arith.negf %560 : vector<16x128xf32>
    %562 = math.exp %561 : vector<16x128xf32>
    %cst_152 = arith.constant 1.000000e+00 : f32
    %563 = vector.broadcast %cst_152 : f32 to vector<16x128xf32>
    %564 = arith.addf %563, %562 : vector<16x128xf32>
    %565 = arith.divf %563, %564 : vector<16x128xf32>
    %566 = vector.extract_strided_slice %559 {offsets = [0, 128], sizes = [16, 128], strides = [1, 1]} : vector<16x512xf32> to vector<16x128xf32>
    %567 = arith.negf %566 : vector<16x128xf32>
    %568 = math.exp %567 : vector<16x128xf32>
    %cst_153 = arith.constant 1.000000e+00 : f32
    %569 = vector.broadcast %cst_153 : f32 to vector<16x128xf32>
    %570 = arith.addf %569, %568 : vector<16x128xf32>
    %571 = arith.divf %569, %570 : vector<16x128xf32>
    %572 = vector.extract_strided_slice %559 {offsets = [0, 256], sizes = [16, 128], strides = [1, 1]} : vector<16x512xf32> to vector<16x128xf32>
    %573 = math.tanh %572 : vector<16x128xf32>
    %574 = vector.extract_strided_slice %559 {offsets = [0, 384], sizes = [16, 128], strides = [1, 1]} : vector<16x512xf32> to vector<16x128xf32>
    %575 = arith.negf %574 : vector<16x128xf32>
    %576 = math.exp %575 : vector<16x128xf32>
    %cst_154 = arith.constant 1.000000e+00 : f32
    %577 = vector.broadcast %cst_154 : f32 to vector<16x128xf32>
    %578 = arith.addf %577, %576 : vector<16x128xf32>
    %579 = arith.divf %577, %578 : vector<16x128xf32>
    %580 = arith.mulf %571, %546 : vector<16x128xf32>
    %581 = arith.mulf %565, %573 : vector<16x128xf32>
    %582 = arith.addf %580, %581 : vector<16x128xf32>
    %583 = math.tanh %582 : vector<16x128xf32>
    %584 = arith.mulf %579, %583 : vector<16x128xf32>
    %585 = arith.truncf %584 : vector<16x128xf32> to vector<16x128xbf16>
    %586 = arith.index_cast %553 : i32 to index
    %c0_155 = arith.constant 0 : index
    %587 = vector.load %arg5[%586, %c0_155] : memref<256x128xbf16, #tpu.memory_space<vmem>>, vector<16x128xbf16>
    tpu.vector_store %arg5[%586, %c0_155], %585 {strides = array<i32>} : memref<256x128xbf16, #tpu.memory_space<vmem>>, vector<16x128xbf16>,
    %c16_i32_156 = arith.constant 16 : i32
    %c0_157 = arith.constant 0 : index
    %c0_158 = arith.constant 0 : index
    %588 = vector.load %arg9[%c0_157, %c0_158] : memref<16x128xf32, #tpu.memory_space<vmem>>, vector<16x128xf32>
    tpu.vector_store %arg9[%c0_157, %c0_158], %584 {strides = array<i32>} : memref<16x128xf32, #tpu.memory_space<vmem>>, vector<16x128xf32>,
    %c0_159 = arith.constant 0 : index
    %c0_160 = arith.constant 0 : index
    %589 = vector.load %arg10[%c0_159, %c0_160] : memref<16x128xf32, #tpu.memory_space<vmem>>, vector<16x128xf32>
    tpu.vector_store %arg10[%c0_159, %c0_160], %582 {strides = array<i32>} : memref<16x128xf32, #tpu.memory_space<vmem>>, vector<16x128xf32>,
    return
  }
  func.func @transform_0(%arg0: i32) -> (i32, i32) {
    %c0_i32 = arith.constant 0 : i32
    %c0_i32_0 = arith.constant 0 : i32
    return %arg0, %c0_i32 : i32, i32
  }
  func.func @transform_1(%arg0: i32) -> (i32, i32) {
    %c0_i32 = arith.constant 0 : i32
    %c0_i32_0 = arith.constant 0 : i32
    %c0_i32_1 = arith.constant 0 : i32
    return %c0_i32, %c0_i32_0 : i32, i32
  }
  func.func @transform_4(%arg0: i32) -> (i32, i32) {
    %c0_i32 = arith.constant 0 : i32
    %c0_i32_0 = arith.constant 0 : i32
    return %arg0, %c0_i32 : i32, i32
  }
}

</mosaic_0001>

<bundles_post_ra>
// kernel: tpu_custom_call.1
= control target key start
LH: loop header
LB: loop body
LE: loop exit
PB: predicated region body
PF: predicated region fallthrough
CT: control target
= control target key end

     0   :  { %9 = vsyncpa [#allocation9], 0  ;;  %s13506_s0 = inlined_call_operand.hbm [shape: bf16[256,128], index: 0, kind: input, shape index: {}]   ;;  %s13507_s1 = inlined_call_operand.hbm [shape: f32[1,512], index: 1, kind: input, shape index: {}]   ;;  %s13508_s2 = inlined_call_operand.hbm [shape: bf16[128,512], index: 2, kind: input, shape index: {}]   ;;  %s13509_s3 = inlined_call_operand.hbm [shape: bf16[128,512], index: 3, kind: input, shape index: {}]   ;;  %s13510_s4 = inlined_call_operand.hbm [shape: bf16[256,128], index: 4, kind: output, shape index: {}]  }
   0x1   :  { %10 = vsyncpa [#allocation12], 0 }
   0x2   :  { %11 = vsyncpa [#allocation10], 0  ;;  %s16_s17 = sshll.u32 %s13506_s0, 4  ;;  %s11041_s18 = smov [#allocation8]   ;;  %s17_s17 = int_to_ptr.hbm [resolvable:$true] %s16_s17 }
   0x3   :  { %s18_s19 = sshll.u32 %s11041_s18, 4  ;;  %s30_s22 = sshll.u32 %s13507_s1, 4  ;;  %s19_s19 = int_to_ptr.vmem [resolvable:$true] %s18_s19  ;;  %s31_s22 = int_to_ptr.hbm [resolvable:$true] %s30_s22 }
   0x4   :  { %s11042_s23 = smov 64   ;;  %s11043_s24 = smov 4  }
   0x5   :  { %24 = dma.hbm_to_vmem [thread:$0]  %s17_s17, 2048, %s19_s19, [#allocation9], %s11042_s23, %s11042_s23, %s11043_s24  }
   0x6   :  { %s11044_s25 = smov [#allocation11]  }
   0x7   :  { %s32_s26 = sshll.u32 %s11044_s25, 4  ;;  %s33_s26 = int_to_ptr.vmem [resolvable:$true] %s32_s26 }
   0x8   :  { %35 = dma.hbm_to_vmem [thread:$0]  %s31_s22, 64, %s33_s26, [#allocation12]  }
   0x9   :  { %11031 = dma.done.wait [#allocation9], 2048  }
   0xa   :  { %11032 = vsyncadd [#allocation9], 4294965248 }
   0xb   :  { %11033 = dma.done.wait [#allocation12], 64  }
   0xc   :  { %11034 = vsyncadd [#allocation12], 4294967232  ;;  %s55_s28 = sshll.u32 %s13508_s2, 4  ;;  %s11045_s1 = smov [#allocation2]   ;;  %s56_s28 = int_to_ptr.hbm [resolvable:$true] %s55_s28 }
   0xd   :  { %s57_s29 = sshll.u32 %s11045_s1, 4  ;;  %s69_s6 = sshll.u32 %s13509_s3, 4  ;;  %s58_s29 = int_to_ptr.vmem [resolvable:$true] %s57_s29  ;;  %s70_s6 = int_to_ptr.hbm [resolvable:$true] %s69_s6 }
   0xe   :  { %60 = dma.hbm_to_vmem [thread:$0]  %s56_s28, 4096, %s58_s29, [#allocation7] }
   0xf   :  { %s11046_s7 = smov [#allocation3]  }
  0x10   :  { %s71_s8 = sshll.u32 %s11046_s7, 4  ;;  %s72_s8 = int_to_ptr.vmem [resolvable:$true] %s71_s8 }
  0x11   :  { %74 = dma.hbm_to_vmem [thread:$0]  %s70_s6, 4096, %s72_s8, [#allocation7 + $0x1] }
  0x12   :  { %11035 = dma.done.wait [#allocation7], 4096 }
  0x13   :  { %11036 = vsyncadd [#allocation7], 4294963200 }
  0x14   :  { %11037 = dma.done.wait [#allocation7 + $0x1], 4096 }
  0x15   :  { %11038 = vsyncadd [#allocation7 + $0x1], 4294963200  ;;  %v7591_v0 = vld [vmem:[#allocation2 + $0xe0] sm:$0xf]  ;;  %v9797_v1 = vld [vmem:[#allocation2 + $0xec] sm:$0xf0] }
  0x16   :  { %v9795_v2 = vld [vmem:[#allocation2 + $0xe4] sm:$0xf]  ;;  %v7592_v3 = vor.u32 %v9797_v1, %v7591_v0  ;;  %v7593_v4 = vld [vmem:[#allocation2 + $0xf0] sm:$0xf0]  ;;  %v7599_v5 = vld [vmem:[#allocation2 + $0xe8] sm:$0xf] }
  0x17   :  { %v9798_v6 = vld [vmem:[#allocation2 + $0xf4] sm:$0xf0]  ;;  %v7596_v7 = vor.u32 %v9795_v2, %v7593_v4  ;;  %v9796_v9 = vld [vmem:[#allocation2 + $0xec] sm:$0xf]  ;;  %v7601_v10 = vld [vmem:[#allocation2 + $0xf8] sm:$0xf0] }
  0x18   :  { %v7600_v8 = vor.u32 %v9798_v6, %v7599_v5  ;;  %v7575_v11 = vld [vmem:[#allocation2 + $0xc0] sm:$0xf]  ;;  %415 = vmatpush.bf16.msra.mxu0 %v7592_v3  ;;  %v7604_v12 = vor.u32 %v9796_v9, %v7601_v10  ;;  %v9793_v13 = vld [vmem:[#allocation2 + $0xcc] sm:$0xf0]  ;;  %v9791_v14 = vld [vmem:[#allocation2 + $0xc4] sm:$0xf] }
  0x19   :  { %v7577_v15 = vld [vmem:[#allocation2 + $0xd0] sm:$0xf0]  ;;  %504 = vmatpush.bf16.msra.mxu1 %v7596_v7  ;;  %v7576_v16 = vor.u32 %v9793_v13, %v7575_v11  ;;  %v7583_v18 = vld [vmem:[#allocation2 + $0xc8] sm:$0xf]  ;;  %v9794_v19 = vld [vmem:[#allocation2 + $0xd4] sm:$0xf0] }
  0x1a   :  { %593 = vmatpush.bf16.msra.mxu2 %v7600_v8  ;;  %v7580_v17 = vor.u32 %v9791_v14, %v7577_v15  ;;  %v9792_v20 = vld [vmem:[#allocation2 + $0xcc] sm:$0xf]  ;;  %682 = vmatpush.bf16.msra.mxu3 %v7604_v12  ;;  %v7584_v21 = vor.u32 %v9794_v19, %v7583_v18  ;;  %v7585_v22 = vld [vmem:[#allocation2 + $0xd8] sm:$0xf0]  ;;  %v7559_v23 = vld [vmem:[#allocation2 + $0xa0] sm:$0xf] }
  0x1b   :  { %v9789_v24 = vld [vmem:[#allocation2 + $0xac] sm:$0xf0]  ;;  %v7588_v25 = vor.u32 %v9792_v20, %v7585_v22  ;;  %v9787_v26 = vld [vmem:[#allocation2 + $0xa4] sm:$0xf]  ;;  %v7561_v27 = vld [vmem:[#allocation2 + $0xb0] sm:$0xf0] }
  0x1c   :  { %v7567_v28 = vld [vmem:[#allocation2 + $0xa8] sm:$0xf]  ;;  %416 = vmatpush.bf16.msra.mxu0 %v7576_v16  ;;  %v7560_v29 = vor.u32 %v9789_v24, %v7559_v23  ;;  %v9790_v30 = vld [vmem:[#allocation2 + $0xb4] sm:$0xf0]  ;;  %v9788_v31 = vld [vmem:[#allocation2 + $0xac] sm:$0xf]  ;;  %v7564_v33 = vor.u32 %v9787_v26, %v7561_v27 }
  0x1d   :  { %v7569_v32 = vld [vmem:[#allocation2 + $0xb8] sm:$0xf0]  ;;  %505 = vmatpush.bf16.msra.mxu1 %v7580_v17  ;;  %v7568_v34 = vor.u32 %v9790_v30, %v7567_v28  ;;  %v7543_v35 = vld [vmem:[#allocation2 + $0x80] sm:$0xf]  ;;  %v9785_v36 = vld [vmem:[#allocation2 + $0x8c] sm:$0xf0] }
  0x1e   :  { %594 = vmatpush.bf16.msra.mxu2 %v7584_v21  ;;  %v9783_v37 = vld [vmem:[#allocation2 + $0x84] sm:$0xf]  ;;  %683 = vmatpush.bf16.msra.mxu3 %v7588_v25  ;;  %v7572_v38 = vor.u32 %v9788_v31, %v7569_v32  ;;  %v7545_v39 = vld [vmem:[#allocation2 + $0x90] sm:$0xf0]  ;;  %v7551_v40 = vld [vmem:[#allocation2 + $0x88] sm:$0xf]  ;;  %v7544_v44 = vor.u32 %v9785_v36, %v7543_v35 }
  0x1f   :  { %v9786_v41 = vld [vmem:[#allocation2 + $0x94] sm:$0xf0]  ;;  %v9784_v42 = vld [vmem:[#allocation2 + $0x8c] sm:$0xf]  ;;  %v7553_v43 = vld [vmem:[#allocation2 + $0x98] sm:$0xf0]  ;;  %v7548_v45 = vor.u32 %v9783_v37, %v7545_v39 }
  0x20   :  { %417 = vmatpush.bf16.msra.mxu0 %v7560_v29  ;;  %v7552_v46 = vor.u32 %v9786_v41, %v7551_v40  ;;  %v7527_v47 = vld [vmem:[#allocation2 + $0x60] sm:$0xf]  ;;  %v9781_v48 = vld [vmem:[#allocation2 + $0x6c] sm:$0xf0]  ;;  %v9779_v49 = vld [vmem:[#allocation2 + $0x64] sm:$0xf]  ;;  %v7556_v50 = vor.u32 %v9784_v42, %v7553_v43 }
  0x21   :  { %506 = vmatpush.bf16.msra.mxu1 %v7564_v33  ;;  %v7529_v51 = vld [vmem:[#allocation2 + $0x70] sm:$0xf0]  ;;  %v7535_v52 = vld [vmem:[#allocation2 + $0x68] sm:$0xf]  ;;  %v9782_v53 = vld [vmem:[#allocation2 + $0x74] sm:$0xf0]  ;;  %v7528_v56 = vor.u32 %v9781_v48, %v7527_v47 }
  0x22   :  { %595 = vmatpush.bf16.msra.mxu2 %v7568_v34  ;;  %684 = vmatpush.bf16.msra.mxu3 %v7572_v38  ;;  %v9780_v54 = vld [vmem:[#allocation2 + $0x6c] sm:$0xf]  ;;  %v7537_v55 = vld [vmem:[#allocation2 + $0x78] sm:$0xf0]  ;;  %v7532_v57 = vor.u32 %v9779_v49, %v7529_v51  ;;  %v7536_v58 = vor.u32 %v9782_v53, %v7535_v52  ;;  %v7511_v59 = vld [vmem:[#allocation2 + $0x40] sm:$0xf] }
  0x23   :  { %v9777_v60 = vld [vmem:[#allocation2 + $0x4c] sm:$0xf0]  ;;  %v9775_v61 = vld [vmem:[#allocation2 + $0x44] sm:$0xf]  ;;  %v7540_v62 = vor.u32 %v9780_v54, %v7537_v55  ;;  %v7513_v63 = vld [vmem:[#allocation2 + $0x50] sm:$0xf0] }
  0x24   :  { %418 = vmatpush.bf16.msra.mxu0 %v7544_v44  ;;  %v7519_v0 = vld [vmem:[#allocation2 + $0x48] sm:$0xf]  ;;  %v9778_v1 = vld [vmem:[#allocation2 + $0x54] sm:$0xf0]  ;;  %v9776_v2 = vld [vmem:[#allocation2 + $0x4c] sm:$0xf]  ;;  %v7512_v4 = vor.u32 %v9777_v60, %v7511_v59  ;;  %v7516_v5 = vor.u32 %v9775_v61, %v7513_v63 }
  0x25   :  { %507 = vmatpush.bf16.msra.mxu1 %v7548_v45  ;;  %v7521_v3 = vld [vmem:[#allocation2 + $0x58] sm:$0xf0]  ;;  %v7520_v6 = vor.u32 %v9778_v1, %v7519_v0  ;;  %v7495_v7 = vld [vmem:[#allocation2 + $0x20] sm:$0xf]  ;;  %v9773_v8 = vld [vmem:[#allocation2 + $0x2c] sm:$0xf0] }
  0x26   :  { %596 = vmatpush.bf16.msra.mxu2 %v7552_v46  ;;  %685 = vmatpush.bf16.msra.mxu3 %v7556_v50  ;;  %v9771_v9 = vld [vmem:[#allocation2 + $0x24] sm:$0xf]  ;;  %v7524_v10 = vor.u32 %v9776_v2, %v7521_v3  ;;  %v7497_v11 = vld [vmem:[#allocation2 + $0x30] sm:$0xf0]  ;;  %v7503_v12 = vld [vmem:[#allocation2 + $0x28] sm:$0xf]  ;;  %v7496_v16 = vor.u32 %v9773_v8, %v7495_v7 }
  0x27   :  { %v9774_v13 = vld [vmem:[#allocation2 + $0x34] sm:$0xf0]  ;;  %v9772_v14 = vld [vmem:[#allocation2 + $0x2c] sm:$0xf]  ;;  %v7505_v15 = vld [vmem:[#allocation2 + $0x38] sm:$0xf0]  ;;  %v7500_v18 = vor.u32 %v9771_v9, %v7497_v11 }
  0x28   :  { %419 = vmatpush.bf16.msra.mxu0 %v7528_v56  ;;  %v7479_v17 = vld [vmem:[#allocation2] sm:$0xf]  ;;  %v7504_v19 = vor.u32 %v9774_v13, %v7503_v12  ;;  %v9769_v20 = vld [vmem:[#allocation2 + $0xc] sm:$0xf0]  ;;  %v9767_v21 = vld [vmem:[#allocation2 + $0x4] sm:$0xf]  ;;  %v7508_v23 = vor.u32 %v9772_v14, %v7505_v15 }
  0x29   :  { %508 = vmatpush.bf16.msra.mxu1 %v7532_v57  ;;  %v7481_v22 = vld [vmem:[#allocation2 + $0x10] sm:$0xf0]  ;;  %v7487_v24 = vld [vmem:[#allocation2 + $0x8] sm:$0xf]  ;;  %v9770_v25 = vld [vmem:[#allocation2 + $0x14] sm:$0xf0]  ;;  %v7480_v30 = vor.u32 %v9769_v20, %v7479_v17 }
  0x2a   :  { %597 = vmatpush.bf16.msra.mxu2 %v7536_v58  ;;  %686 = vmatpush.bf16.msra.mxu3 %v7540_v62  ;;  %v9768_v26 = vld [vmem:[#allocation2 + $0xc] sm:$0xf]  ;;  %v7489_v27 = vld [vmem:[#allocation2 + $0x18] sm:$0xf0]  ;;  %v7719_v28 = vld [vmem:[#allocation3 + $0xe0] sm:$0xf]  ;;  %v7484_v33 = vor.u32 %v9767_v21, %v7481_v22  ;;  %v7488_v34 = vor.u32 %v9770_v25, %v7487_v24 }
  0x2b   :  { %v9829_v29 = vld [vmem:[#allocation3 + $0xec] sm:$0xf0]  ;;  %v9827_v31 = vld [vmem:[#allocation3 + $0xe4] sm:$0xf]  ;;  %v7721_v32 = vld [vmem:[#allocation3 + $0xf0] sm:$0xf0]  ;;  %v7492_v35 = vor.u32 %v9768_v26, %v7489_v27 }
  0x2c   :  { %420 = vmatpush.bf16.msra.mxu0 %v7512_v4  ;;  %v7720_v36 = vor.u32 %v9829_v29, %v7719_v28  ;;  %v7727_v37 = vld [vmem:[#allocation3 + $0xe8] sm:$0xf]  ;;  %v9830_v38 = vld [vmem:[#allocation3 + $0xf4] sm:$0xf0]  ;;  %v9751_v39 = vld [vmem:[#allocation8] sm:$0xff]  ;;  %v7724_v40 = vor.u32 %v9827_v31, %v7721_v32  ;;  %s11048_s2 = smov [#allocation13]  }
  0x2d   :  { %509 = vmatpush.bf16.msra.mxu1 %v7516_v5  ;;  %v9828_v41 = vld [vmem:[#allocation3 + $0xec] sm:$0xf]  ;;  %v7729_v42 = vld [vmem:[#allocation3 + $0xf8] sm:$0xf0]  ;;  %v7728_v43 = vor.u32 %v9830_v38, %v7727_v37  ;;  %v7703_v45 = vld [vmem:[#allocation3 + $0xc0] sm:$0xf] }
  0x2e   :  { %598 = vmatpush.bf16.msra.mxu2 %v7520_v6  ;;  %687 = vmatpush.bf16.msra.mxu3 %v7524_v10  ;;  %v7732_v44 = vor.u32 %v9828_v41, %v7729_v42  ;;  %v9825_v46 = vld [vmem:[#allocation3 + $0xcc] sm:$0xf0]  ;;  %v9823_v47 = vld [vmem:[#allocation3 + $0xc4] sm:$0xf]  ;;  %v7705_v49 = vld [vmem:[#allocation3 + $0xd0] sm:$0xf0] }
  0x2f   :  { %v7704_v48 = vor.u32 %v9825_v46, %v7703_v45  ;;  %v9824_v50 = vld [vmem:[#allocation3 + $0xcc] sm:$0xf]  ;;  %v7713_v51 = vld [vmem:[#allocation3 + $0xd8] sm:$0xf0]  ;;  %v7708_v52 = vor.u32 %v9823_v47, %v7705_v49  ;;  %v7711_v54 = vld [vmem:[#allocation3 + $0xc8] sm:$0xf] }
  0x30   :  { %421 = vmatpush.bf16.msra.mxu0 %v7496_v16  ;;  %v7716_v53 = vor.u32 %v9824_v50, %v7713_v51  ;;  %v9826_v55 = vld [vmem:[#allocation3 + $0xd4] sm:$0xf0]  ;;  %v9752_v57 = vld [vmem:[#allocation8 + $0x8] sm:$0xff]  ;;  %v9753_v58 = vld [vmem:[#allocation8 + $0x10] sm:$0xff]  ;;  %s7369_s3 = sshll.u32 %s11048_s2, 4  ;;  %s7371_s11 = sshll.u32 %s13510_s4, 4  ;;  %s7370_s3 = int_to_ptr.vmem [resolvable:$true] %s7369_s3  ;;  %s7372_s11 = int_to_ptr.hbm [resolvable:$true] %s7371_s11 }
  0x31   :  { %510 = vmatpush.bf16.msra.mxu1 %v7500_v18  ;;  %v7712_v56 = vor.u32 %v9826_v55, %v7711_v54  ;;  %v7687_v59 = vld [vmem:[#allocation3 + $0xa0] sm:$0xf]  ;;  %v9821_v60 = vld [vmem:[#allocation3 + $0xac] sm:$0xf0]  ;;  %v9819_v61 = vld [vmem:[#allocation3 + $0xa4] sm:$0xf] }
  0x32   :  { %599 = vmatpush.bf16.msra.mxu2 %v7504_v19  ;;  %688 = vmatpush.bf16.msra.mxu3 %v7508_v23  ;;  %v7688_v62 = vor.u32 %v9821_v60, %v7687_v59  ;;  %v7689_v63 = vld [vmem:[#allocation3 + $0xb0] sm:$0xf0]  ;;  %v9820_v0 = vld [vmem:[#allocation3 + $0xac] sm:$0xf]  ;;  %v7697_v1 = vld [vmem:[#allocation3 + $0xb8] sm:$0xf0] }
  0x33   :  { %v7692_v2 = vor.u32 %v9819_v61, %v7689_v63  ;;  %v7700_v3 = vor.u32 %v9820_v0, %v7697_v1  ;;  %v7695_v4 = vld [vmem:[#allocation3 + $0xa8] sm:$0xf]  ;;  %v9822_v5 = vld [vmem:[#allocation3 + $0xb4] sm:$0xf0]  ;;  %v9755_v8 = vld [vmem:[#allocation8 + $0x20] sm:$0xff] }
  0x34   :  { %422 = vmatpush.bf16.msra.mxu0 %v7480_v30  ;;  %v7696_v6 = vor.u32 %v9822_v5, %v7695_v4  ;;  %v9754_v7 = vld [vmem:[#allocation8 + $0x18] sm:$0xff]  ;;  %v7671_v9 = vld [vmem:[#allocation3 + $0x80] sm:$0xf]  ;;  %v9817_v10 = vld [vmem:[#allocation3 + $0x8c] sm:$0xf0] }
  0x35   :  { %511 = vmatpush.bf16.msra.mxu1 %v7484_v33  ;;  %v9815_v11 = vld [vmem:[#allocation3 + $0x84] sm:$0xf]  ;;  %v7672_v12 = vor.u32 %v9817_v10, %v7671_v9  ;;  %v7673_v13 = vld [vmem:[#allocation3 + $0x90] sm:$0xf0]  ;;  %v9816_v14 = vld [vmem:[#allocation3 + $0x8c] sm:$0xf] }
  0x36   :  { %600 = vmatpush.bf16.msra.mxu2 %v7488_v34  ;;  %689 = vmatpush.bf16.msra.mxu3 %v7492_v35  ;;  %v7681_v15 = vld [vmem:[#allocation3 + $0x98] sm:$0xf0]  ;;  %v7676_v16 = vor.u32 %v9815_v11, %v7673_v13  ;;  %v7679_v18 = vld [vmem:[#allocation3 + $0x88] sm:$0xf]  ;;  %v9818_v19 = vld [vmem:[#allocation3 + $0x94] sm:$0xf0] }
  0x37   :  { %423 = vmatmul.bf16.vlgmr.msra.gmra.mxu0 %v9751_v39  ;;  %v7684_v17 = vor.u32 %v9816_v14, %v7681_v15  ;;  %v7680_v20 = vor.u32 %v9818_v19, %v7679_v18  ;;  %v9756_v21 = vld [vmem:[#allocation8 + $0x28] sm:$0xff]  ;;  %v9757_v22 = vld [vmem:[#allocation8 + $0x30] sm:$0xff]  ;;  %v7655_v23 = vld [vmem:[#allocation3 + $0x60] sm:$0xf] }
  0x38   :  { %1107 = vmatpush.bf16.msrb.mxu0 %v7720_v36  ;;  %512 = vmatmul.bf16.vlgmr.msra.gmra.mxu1 %v9751_v39  ;;  %v9813_v24 = vld [vmem:[#allocation3 + $0x6c] sm:$0xf0]  ;;  %v9811_v25 = vld [vmem:[#allocation3 + $0x64] sm:$0xf]  ;;  %v7657_v27 = vld [vmem:[#allocation3 + $0x70] sm:$0xf0] }
  0x39   :  { %1121 = vmatpush.bf16.msrb.mxu1 %v7724_v40  ;;  %601 = vmatmul.bf16.vlgmr.msra.gmra.mxu2 %v9751_v39  ;;  %v7656_v26 = vor.u32 %v9813_v24, %v7655_v23  ;;  %v7660_v28 = vor.u32 %v9811_v25, %v7657_v27  ;;  %v9812_v29 = vld [vmem:[#allocation3 + $0x6c] sm:$0xf]  ;;  %v7665_v30 = vld [vmem:[#allocation3 + $0x78] sm:$0xf0]  ;;  %v7663_v33 = vld [vmem:[#allocation3 + $0x68] sm:$0xf] }
  0x3a   :  { %690 = vmatmul.bf16.vlgmr.msra.gmra.mxu3 %v9751_v39  ;;  %1135 = vmatpush.bf16.msrb.mxu2 %v7728_v43  ;;  %v7668_v31 = vor.u32 %v9812_v29, %v7665_v30  ;;  %v9758_v32 = vld [vmem:[#allocation8 + $0x38] sm:$0xff]  ;;  %v9759_v36 = vld [vmem:[#allocation8 + $0x40] sm:$0xff]  ;;  %v9809_v40 = vld [vmem:[#allocation3 + $0x4c] sm:$0xf0] }
  0x3b   :  { %1149 = vmatpush.bf16.msrb.mxu3 %v7732_v44  ;;  %v9814_v34 = vld [vmem:[#allocation3 + $0x74] sm:$0xf0]  ;;  %v7639_v39 = vld [vmem:[#allocation3 + $0x40] sm:$0xf]  ;;  %v9807_v41 = vld [vmem:[#allocation3 + $0x44] sm:$0xf] }
  0x3c   :  { %1108 = vmatpush.bf16.msrb.mxu0 %v7704_v48  ;;  %v7664_v35 = vor.u32 %v9814_v34, %v7663_v33  ;;  %v7640_v42 = vor.u32 %v9809_v40, %v7639_v39  ;;  %v7641_v43 = vld [vmem:[#allocation3 + $0x50] sm:$0xf0]  ;;  %v9808_v49 = vld [vmem:[#allocation3 + $0x4c] sm:$0xf]  ;;  %v7649_v50 = vld [vmem:[#allocation3 + $0x58] sm:$0xf0] }
  0x3d   :  { %1122 = vmatpush.bf16.msrb.mxu1 %v7708_v52  ;;  %v7644_v45 = vor.u32 %v9807_v41, %v7641_v43  ;;  %v7652_v51 = vor.u32 %v9808_v49, %v7649_v50  ;;  %v9761_v1 = vld [vmem:[#allocation8 + $0x50] sm:$0xff]  ;;  %v7623_v5 = vld [vmem:[#allocation3 + $0x20] sm:$0xf]  ;;  %v9804_v15 = vld [vmem:[#allocation3 + $0x2c] sm:$0xf] }
  0x3e   :  { %1136 = vmatpush.bf16.msrb.mxu2 %v7712_v56  ;;  %v7625_v9 = vld [vmem:[#allocation3 + $0x30] sm:$0xf0]  ;;  %v9762_v19 = vld [vmem:[#allocation8 + $0x58] sm:$0xff]  ;;  %v7631_v23 = vld [vmem:[#allocation3 + $0x28] sm:$0xf] }
  0x3f   :  { %1150 = vmatpush.bf16.msrb.mxu3 %v7716_v53  ;;  %v9760_v53 = vld [vmem:[#allocation8 + $0x48] sm:$0xff]  ;;  %v9806_v24 = vld [vmem:[#allocation3 + $0x34] sm:$0xf0]  ;;  %v9799_v39 = vld [vmem:[#allocation3 + $0x4] sm:$0xf] }
  0x40   :  { %1109 = vmatpush.bf16.msrb.mxu0 %v7688_v62  ;;  %v7632_v25 = vor.u32 %v9806_v24, %v7631_v23  ;;  %v7609_v41 = vld [vmem:[#allocation3 + $0x10] sm:$0xf0] }
  0x41   :  { %1123 = vmatpush.bf16.msrb.mxu1 %v7692_v2  ;;  %v7612_v43 = vor.u32 %v9799_v39, %v7609_v41  ;;  %v9765_v23 = vld [vmem:[#allocation8 + $0x70] sm:$0xff] }
  0x42   :  { %1137 = vmatpush.bf16.msrb.mxu2 %v7696_v6  ;;  %v9805_v6 = vld [vmem:[#allocation3 + $0x2c] sm:$0xf0] }
  0x43   :  { %1151 = vmatpush.bf16.msrb.mxu3 %v7700_v3 }
  0x44   :  { %1110 = vmatpush.bf16.msrb.mxu0 %v7672_v12 }
  0x45   :  { %1124 = vmatpush.bf16.msrb.mxu1 %v7676_v16  ;;  %v7633_v16 = vld [vmem:[#allocation3 + $0x38] sm:$0xf0] }
  0x46   :  { %1138 = vmatpush.bf16.msrb.mxu2 %v7680_v20 }
  0x47   :  { %428 = vmatmul.bf16.gmra.mxu0 %v9752_v57  ;;  %1152 = vmatpush.bf16.msrb.mxu3 %v7684_v17  ;;  %v7636_v17 = vor.u32 %v9804_v15, %v7633_v16 }
  0x48   :  { %517 = vmatmul.bf16.gmra.mxu1 %v9752_v57  ;;  %1111 = vmatpush.bf16.msrb.mxu0 %v7656_v26 }
  0x49   :  { %606 = vmatmul.bf16.gmra.mxu2 %v9752_v57  ;;  %1125 = vmatpush.bf16.msrb.mxu1 %v7660_v28 }
  0x4a   :  { %695 = vmatmul.bf16.gmra.mxu3 %v9752_v57  ;;  %1139 = vmatpush.bf16.msrb.mxu2 %v7664_v35  ;;  %v7647_v57 = vld [vmem:[#allocation3 + $0x48] sm:$0xf]  ;;  %v7607_v35 = vld [vmem:[#allocation3] sm:$0xf] }
  0x4b   :  { %1153 = vmatpush.bf16.msrb.mxu3 %v7668_v31  ;;  %v9763_v31 = vld [vmem:[#allocation8 + $0x60] sm:$0xff] }
  0x4c   :  { %1112 = vmatpush.bf16.msrb.mxu0 %v7640_v42 }
  0x4d   :  { %1126 = vmatpush.bf16.msrb.mxu1 %v7644_v45 }
  0x4f   :  { %1154 = vmatpush.bf16.msrb.mxu3 %v7652_v51  ;;  %v9800_v51 = vld [vmem:[#allocation3 + $0xc] sm:$0xf] }
  0x53   :  { %1155 = vmatpush.bf16.msrb.mxu3 %v7636_v17 }
  0x57   :  { %433 = vmatmul.bf16.gmra.mxu0 %v9753_v58 }
  0x58   :  { %522 = vmatmul.bf16.gmra.mxu1 %v9753_v58 }
  0x59   :  { %611 = vmatmul.bf16.gmra.mxu2 %v9753_v58 }
  0x5a   :  { %700 = vmatmul.bf16.gmra.mxu3 %v9753_v58  ;;  %v9810_v58 = vld [vmem:[#allocation3 + $0x54] sm:$0xf0] }
  0x5b   :  { %v7648_v59 = vor.u32 %v9810_v58, %v7647_v57 }
  0x5d   :  { %1140 = vmatpush.bf16.msrb.mxu2 %v7648_v59  ;;  %v9764_v59 = vld [vmem:[#allocation8 + $0x68] sm:$0xff] }
  0x61   :  { %1141 = vmatpush.bf16.msrb.mxu2 %v7632_v25 }
  0x67   :  { %438 = vmatmul.bf16.gmra.mxu0 %v9754_v7 }
  0x68   :  { %527 = vmatmul.bf16.gmra.mxu1 %v9754_v7 }
  0x69   :  { %616 = vmatmul.bf16.gmra.mxu2 %v9754_v7 }
  0x6a   :  { %705 = vmatmul.bf16.gmra.mxu3 %v9754_v7  ;;  %v9803_v7 = vld [vmem:[#allocation3 + $0x24] sm:$0xf] }
  0x6b   :  { %v7628_v11 = vor.u32 %v9803_v7, %v7625_v9  ;;  %v7615_v7 = vld [vmem:[#allocation3 + $0x8] sm:$0xf] }
  0x6d   :  { %1127 = vmatpush.bf16.msrb.mxu1 %v7628_v11 }
  0x71   :  { %1128 = vmatpush.bf16.msrb.mxu1 %v7612_v43  ;;  %v9766_v43 = vld [vmem:[#allocation8 + $0x78] sm:$0xff] }
  0x77   :  { %443 = vmatmul.bf16.gmra.mxu0 %v9755_v8 }
  0x78   :  { %532 = vmatmul.bf16.gmra.mxu1 %v9755_v8 }
  0x79   :  { %621 = vmatmul.bf16.gmra.mxu2 %v9755_v8 }
  0x7a   :  { %710 = vmatmul.bf16.gmra.mxu3 %v9755_v8  ;;  %v7624_v8 = vor.u32 %v9805_v6, %v7623_v5 }
  0x7c   :  { %1113 = vmatpush.bf16.msrb.mxu0 %v7624_v8  ;;  %v9802_v8 = vld [vmem:[#allocation3 + $0x14] sm:$0xf0] }
  0x7d   :  { %v7616_v9 = vor.u32 %v9802_v8, %v7615_v7 }
  0x7f   :  { %1142 = vmatpush.bf16.msrb.mxu2 %v7616_v9 }
  0x87   :  { %448 = vmatmul.bf16.gmra.mxu0 %v9756_v21 }
  0x88   :  { %537 = vmatmul.bf16.gmra.mxu1 %v9756_v21 }
  0x89   :  { %626 = vmatmul.bf16.gmra.mxu2 %v9756_v21 }
  0x8a   :  { %715 = vmatmul.bf16.gmra.mxu3 %v9756_v21 }
  0x97   :  { %453 = vmatmul.bf16.gmra.mxu0 %v9757_v22 }
  0x98   :  { %542 = vmatmul.bf16.gmra.mxu1 %v9757_v22 }
  0x99   :  { %631 = vmatmul.bf16.gmra.mxu2 %v9757_v22 }
  0x9a   :  { %720 = vmatmul.bf16.gmra.mxu3 %v9757_v22 }
  0xa7   :  { %458 = vmatmul.bf16.gmra.mxu0 %v9758_v32 }
  0xa8   :  { %547 = vmatmul.bf16.gmra.mxu1 %v9758_v32 }
  0xa9   :  { %636 = vmatmul.bf16.gmra.mxu2 %v9758_v32 }
  0xaa   :  { %725 = vmatmul.bf16.gmra.mxu3 %v9758_v32 }
  0xb4   :  { %v11089_v37 = vpop.f32.mrf.mxu0 }
  0xb5   :  { %v11091_v38 = vpop.f32.mrf.mxu1 }
  0xb7   :  { %463 = vmatmul.bf16.gmra.mxu0 %v9759_v36 }
  0xb8   :  { %552 = vmatmul.bf16.gmra.mxu1 %v9759_v36 }
  0xb9   :  { %641 = vmatmul.bf16.gmra.mxu2 %v9759_v36 }
  0xba   :  { %730 = vmatmul.bf16.gmra.mxu3 %v9759_v36  ;;  %v9801_v36 = vld [vmem:[#allocation3 + $0xc] sm:$0xf0] }
  0xbb   :  { %v7608_v40 = vor.u32 %v9801_v36, %v7607_v35 }
  0xbc   :  { %v11093_v44 = vpop.f32.mrf.mxu2  ;;  %v11097_v47 = vpop.f32.mrf.mxu0 }
  0xbd   :  { %v11095_v46 = vpop.f32.mrf.mxu3  ;;  %v11099_v48 = vpop.f32.mrf.mxu1  ;;  %1114 = vmatpush.bf16.msrb.mxu0 %v7608_v40 }
  0xc4   :  { %v11101_v52 = vpop.f32.mrf.mxu2  ;;  %v11105_v55 = vpop.f32.mrf.mxu0 }
  0xc5   :  { %v11103_v54 = vpop.f32.mrf.mxu3  ;;  %v11107_v56 = vpop.f32.mrf.mxu1 }
  0xc7   :  { %468 = vmatmul.bf16.gmra.mxu0 %v9760_v53 }
  0xc8   :  { %557 = vmatmul.bf16.gmra.mxu1 %v9760_v53 }
  0xc9   :  { %646 = vmatmul.bf16.gmra.mxu2 %v9760_v53 }
  0xca   :  { %735 = vmatmul.bf16.gmra.mxu3 %v9760_v53  ;;  %v7617_v53 = vld [vmem:[#allocation3 + $0x18] sm:$0xf0] }
  0xcb   :  { %v7620_v57 = vor.u32 %v9800_v51, %v7617_v53 }
  0xcc   :  { %v11109_v60 = vpop.f32.mrf.mxu2  ;;  %v11113_v62 = vpop.f32.mrf.mxu0 }
  0xcd   :  { %v11111_v61 = vpop.f32.mrf.mxu3  ;;  %v11115_v63 = vpop.f32.mrf.mxu1  ;;  %1156 = vmatpush.bf16.msrb.mxu3 %v7620_v57 }
  0xd4   :  { %v11117_v0 = vpop.f32.mrf.mxu2  ;;  %v11121_v3 = vpop.f32.mrf.mxu0 }
  0xd5   :  { %v11119_v2 = vpop.f32.mrf.mxu3  ;;  %v11123_v4 = vpop.f32.mrf.mxu1 }
  0xd7   :  { %473 = vmatmul.bf16.gmra.mxu0 %v9761_v1 }
  0xd8   :  { %562 = vmatmul.bf16.gmra.mxu1 %v9761_v1 }
  0xd9   :  { %651 = vmatmul.bf16.gmra.mxu2 %v9761_v1 }
  0xda   :  { %740 = vmatmul.bf16.gmra.mxu3 %v9761_v1 }
  0xdc   :  { %v11125_v10 = vpop.f32.mrf.mxu2  ;;  %v11129_v13 = vpop.f32.mrf.mxu0 }
  0xdd   :  { %v11127_v12 = vpop.f32.mrf.mxu3  ;;  %v11131_v14 = vpop.f32.mrf.mxu1 }
  0xe4   :  { %v11133_v18 = vpop.f32.mrf.mxu2  ;;  %v11137_v21 = vpop.f32.mrf.mxu0 }
  0xe5   :  { %v11135_v20 = vpop.f32.mrf.mxu3  ;;  %v11139_v22 = vpop.f32.mrf.mxu1 }
  0xe7   :  { %478 = vmatmul.bf16.gmra.mxu0 %v9762_v19 }
  0xe8   :  { %567 = vmatmul.bf16.gmra.mxu1 %v9762_v19 }
  0xe9   :  { %656 = vmatmul.bf16.gmra.mxu2 %v9762_v19 }
  0xea   :  { %745 = vmatmul.bf16.gmra.mxu3 %v9762_v19 }
  0xec   :  { %v11141_v26 = vpop.f32.mrf.mxu2  ;;  %v11145_v28 = vpop.f32.mrf.mxu0 }
  0xed   :  { %v11143_v27 = vpop.f32.mrf.mxu3  ;;  %v11147_v29 = vpop.f32.mrf.mxu1 }
  0xf4   :  { %v11149_v30 = vpop.f32.mrf.mxu2  ;;  %v11153_v33 = vpop.f32.mrf.mxu0 }
  0xf5   :  { %13511 = vst [vmem:[#allocation25_spill] sm:$0xff] %v11149_v30  ;;  %v11151_v32 = vpop.f32.mrf.mxu3  ;;  %v11155_v34 = vpop.f32.mrf.mxu1  ;;  %v7749_v30 = vld [vmem:[#allocation3 + $0x8] sm:$0xf] }
  0xf6   :  { %13512 = vst [vmem:[#allocation26_spill] sm:$0xff] %v11151_v32 }
  0xf7   :  { %13513 = vst [vmem:[#allocation27_spill] sm:$0xff] %v11153_v33  ;;  %483 = vmatmul.bf16.gmra.mxu0 %v9763_v31  ;;  %v7743_v33 = vld [vmem:[#allocation3 + $0x10] sm:$0xf0] }
  0xf8   :  { %13514 = vst [vmem:[#allocation28_spill] sm:$0xff] %v11155_v34  ;;  %572 = vmatmul.bf16.gmra.mxu1 %v9763_v31 }
  0xf9   :  { %661 = vmatmul.bf16.gmra.mxu2 %v9763_v31 }
  0xfa   :  { %750 = vmatmul.bf16.gmra.mxu3 %v9763_v31 }
  0xfc   :  { %v11157_v42 = vpop.f32.mrf.mxu2  ;;  %v11161_v49 = vpop.f32.mrf.mxu0 }
  0xfd   :  { %13515 = vst [vmem:[#allocation29_spill] sm:$0xff] %v11157_v42  ;;  %v11159_v45 = vpop.f32.mrf.mxu3  ;;  %v11163_v50 = vpop.f32.mrf.mxu1  ;;  %v9841_v42 = vld [vmem:[#allocation3 + $0x4c] sm:$0xf0] }
  0xfe   :  { %13516 = vst [vmem:[#allocation30_spill] sm:$0xff] %v11159_v45 }
  0xff   :  { %13517 = vst [vmem:[#allocation31_spill] sm:$0xff] %v11161_v49 }
 0x100   :  { %13518 = vst [vmem:[#allocation32_spill] sm:$0xff] %v11163_v50  ;;  %v9831_v50 = vld [vmem:[#allocation3 + $0x4] sm:$0xf] }
 0x104   :  { %v11165_v58 = vpop.f32.mrf.mxu2  ;;  %v11169_v5 = vpop.f32.mrf.mxu0 }
 0x105   :  { %13519 = vst [vmem:[#allocation33_spill] sm:$0xff] %v11165_v58  ;;  %v11167_v1 = vpop.f32.mrf.mxu3  ;;  %v11171_v6 = vpop.f32.mrf.mxu1  ;;  %v9858_v58 = vld [vmem:[#allocation3 + $0xd4] sm:$0xf0] }
 0x106   :  { %13520 = vst [vmem:[#allocation34_spill] sm:$0xff] %v11167_v1  ;;  %v7773_v1 = vld [vmem:[#allocation3 + $0x40] sm:$0xf] }
 0x107   :  { %13521 = vst [vmem:[#allocation35_spill] sm:$0xff] %v11169_v5  ;;  %488 = vmatmul.bf16.gmra.mxu0 %v9764_v59 }
 0x108   :  { %13522 = vst [vmem:[#allocation36_spill] sm:$0xff] %v11171_v6  ;;  %577 = vmatmul.bf16.gmra.mxu1 %v9764_v59 }
 0x109   :  { %666 = vmatmul.bf16.gmra.mxu2 %v9764_v59 }
 0x10a   :  { %755 = vmatmul.bf16.gmra.mxu3 %v9764_v59 }
 0x10c   :  { %v11173_v11 = vpop.f32.mrf.mxu2  ;;  %v11177_v16 = vpop.f32.mrf.mxu0 }
 0x10d   :  { %13523 = vst [vmem:[#allocation37_spill] sm:$0xff] %v11173_v11  ;;  %v11175_v15 = vpop.f32.mrf.mxu3  ;;  %v11179_v17 = vpop.f32.mrf.mxu1 }
 0x10e   :  { %13524 = vst [vmem:[#allocation38_spill] sm:$0xff] %v11175_v15  ;;  %v9857_v15 = vld [vmem:[#allocation3 + $0xcc] sm:$0xf0] }
 0x10f   :  { %13525 = vst [vmem:[#allocation39_spill] sm:$0xff] %v11177_v16 }
 0x110   :  { %13526 = vst [vmem:[#allocation40_spill] sm:$0xff] %v11179_v17 }
 0x114   :  { %v11181_v19 = vpop.f32.mrf.mxu2  ;;  %v11185_v25 = vpop.f32.mrf.mxu0 }
 0x115   :  { %13527 = vst [vmem:[#allocation41_spill] sm:$0xff] %v11181_v19  ;;  %v11183_v24 = vpop.f32.mrf.mxu3  ;;  %v11187_v31 = vpop.f32.mrf.mxu1  ;;  %v9860_v19 = vld [vmem:[#allocation3 + $0xec] sm:$0xf] }
 0x116   :  { %13528 = vst [vmem:[#allocation42_spill] sm:$0xff] %v11183_v24  ;;  %v7863_v24 = vld [vmem:[#allocation3 + $0xf8] sm:$0xf0] }
 0x117   :  { %13529 = vst [vmem:[#allocation43_spill] sm:$0xff] %v11185_v25  ;;  %493 = vmatmul.bf16.gmra.mxu0 %v9765_v23 }
 0x118   :  { %13530 = vst [vmem:[#allocation44_spill] sm:$0xff] %v11187_v31  ;;  %582 = vmatmul.bf16.gmra.mxu1 %v9765_v23 }
 0x119   :  { %671 = vmatmul.bf16.gmra.mxu2 %v9765_v23 }
 0x11a   :  { %760 = vmatmul.bf16.gmra.mxu3 %v9765_v23 }
 0x11c   :  { %v11189_v35 = vpop.f32.mrf.mxu2  ;;  %v11193_v39 = vpop.f32.mrf.mxu0 }
 0x11d   :  { %13531 = vst [vmem:[#allocation45_spill] sm:$0xff] %v11189_v35  ;;  %v11191_v36 = vpop.f32.mrf.mxu3  ;;  %v11195_v40 = vpop.f32.mrf.mxu1 }
 0x11e   :  { %13532 = vst [vmem:[#allocation46_spill] sm:$0xff] %v11191_v36 }
 0x11f   :  { %13533 = vst [vmem:[#allocation47_spill] sm:$0xff] %v11193_v39  ;;  %v7861_v39 = vld [vmem:[#allocation3 + $0xe8] sm:$0xf] }
 0x120   :  { %13534 = vst [vmem:[#allocation48_spill] sm:$0xff] %v11195_v40 }
 0x124   :  { %v11197_v41 = vpop.f32.mrf.mxu2  ;;  %v11201_v53 = vpop.f32.mrf.mxu0 }
 0x125   :  { %13535 = vst [vmem:[#allocation49_spill] sm:$0xff] %v11197_v41  ;;  %v11199_v51 = vpop.f32.mrf.mxu3  ;;  %v11203_v57 = vpop.f32.mrf.mxu1 }
 0x126   :  { %13536 = vst [vmem:[#allocation50_spill] sm:$0xff] %v11199_v51 }
 0x127   :  { %13537 = vst [vmem:[#allocation51_spill] sm:$0xff] %v11201_v53  ;;  %498 = vmatmul.bf16.gmra.mxu0 %v9766_v43 }
 0x128   :  { %13538 = vst [vmem:[#allocation52_spill] sm:$0xff] %v11203_v57  ;;  %587 = vmatmul.bf16.gmra.mxu1 %v9766_v43  ;;  %v11047_v57 = vmov 0.0|0.0  }
 0x129   :  { %676 = vmatmul.bf16.gmra.mxu2 %v9766_v43 }
 0x12a   :  { %765 = vmatmul.bf16.gmra.mxu3 %v9766_v43 }
 0x12c   :  { %v11205_v59 = vpop.f32.mrf.mxu2  ;;  %v11209_v8 = vpop.f32.mrf.mxu0 }
 0x12d   :  { %13539 = vst [vmem:[#allocation53_spill] sm:$0xff] %v11205_v59  ;;  %v11207_v7 = vpop.f32.mrf.mxu3  ;;  %v11211_v9 = vpop.f32.mrf.mxu1 }
 0x12e   :  { %13540 = vst [vmem:[#allocation54_spill] sm:$0xff] %v11207_v7 }
 0x12f   :  { %13541 = vst [vmem:[#allocation55_spill] sm:$0xff] %v11209_v8 }
 0x130   :  { %13542 = vst [vmem:[#allocation56_spill] sm:$0xff] %v11211_v9 }
 0x134   :  { %v11213_v23 = vpop.f32.mrf.mxu2  ;;  %v11217_v51 = vpop.f32.mrf.mxu0 }
 0x135   :  { %13543 = vst [vmem:[#allocation57_spill] sm:$0xff] %v11213_v23  ;;  %v11215_v41 = vpop.f32.mrf.mxu3  ;;  %v11219_v53 = vpop.f32.mrf.mxu1 }
 0x136   :  { %13544 = vst [vmem:[#allocation58_spill] sm:$0xff] %v11215_v41 }
 0x137   :  { %13545 = vst [vmem:[#allocation59_spill] sm:$0xff] %v11217_v51  ;;  %1115 = vmatmul.bf16.vlgmr.msrb.gmra.mxu0 %v11047_v57 }
 0x138   :  { %13546 = vst [vmem:[#allocation60_spill] sm:$0xff] %v11219_v53  ;;  %1129 = vmatmul.bf16.vlgmr.msrb.gmra.mxu1 %v11047_v57 }
 0x139   :  { %1143 = vmatmul.bf16.vlgmr.msrb.gmra.mxu2 %v11047_v57 }
 0x13a   :  { %1157 = vmatmul.bf16.vlgmr.msrb.gmra.mxu3 %v11047_v57 }
 0x13c   :  { %v11221_v43 = vpop.f32.mrf.mxu2  ;;  %v11225_v8 = vpop.f32.mrf.mxu0 }
 0x13d   :  { %13547 = vst [vmem:[#allocation61_spill] sm:$0xff] %v11221_v43  ;;  %v11223_v59 = vpop.f32.mrf.mxu3  ;;  %v11227_v9 = vpop.f32.mrf.mxu1 }
 0x13e   :  { %13548 = vst [vmem:[#allocation62_spill] sm:$0xff] %v11223_v59 }
 0x13f   :  { %13549 = vst [vmem:[#allocation63_spill] sm:$0xff] %v11225_v8 }
 0x140   :  { %13550 = vst [vmem:[#allocation64_spill] sm:$0xff] %v11227_v9 }
 0x144   :  { %v11229_v23 = vpop.f32.mrf.mxu2  ;;  %v11233_v51 = vpop.f32.mrf.mxu0 }
 0x145   :  { %13551 = vst [vmem:[#allocation65_spill] sm:$0xff] %v11229_v23  ;;  %v11231_v41 = vpop.f32.mrf.mxu3  ;;  %v11235_v53 = vpop.f32.mrf.mxu1 }
 0x146   :  { %13552 = vst [vmem:[#allocation66_spill] sm:$0xff] %v11231_v41 }
 0x147   :  { %13553 = vst [vmem:[#allocation67_spill] sm:$0xff] %v11233_v51 }
 0x148   :  { %13554 = vst [vmem:[#allocation68_spill] sm:$0xff] %v11235_v53 }
 0x14c   :  { %v11237_v7 = vpop.f32.mrf.mxu2  ;;  %v11241_v57 = vpop.f32.mrf.mxu0 }
 0x14d   :  { %13555 = vst [vmem:[#allocation69_spill] sm:$0xff] %v11237_v7  ;;  %v11239_v35 = vpop.f32.mrf.mxu3  ;;  %v11243_v43 = vpop.f32.mrf.mxu1 }
 0x14e   :  { %13556 = vst [vmem:[#allocation70_spill] sm:$0xff] %v11239_v35 }
 0x14f   :  { %13557 = vst [vmem:[#allocation71_spill] sm:$0xff] %v11241_v57 }
 0x150   :  { %13558 = vst [vmem:[#allocation72_spill] sm:$0xff] %v11243_v43 }
 0x154   :  { %v11245_v59 = vpop.f32.mrf.mxu2  ;;  %v11249_v9 = vpop.f32.mrf.mxu0 }
 0x155   :  { %13559 = vst [vmem:[#allocation73_spill] sm:$0xff] %v11245_v59  ;;  %v11247_v8 = vpop.f32.mrf.mxu3  ;;  %v11251_v23 = vpop.f32.mrf.mxu1 }
 0x156   :  { %13560 = vst [vmem:[#allocation74_spill] sm:$0xff] %v11247_v8 }
 0x157   :  { %13561 = vst [vmem:[#allocation75_spill] sm:$0xff] %v11249_v9 }
 0x158   :  { %13562 = vst [vmem:[#allocation76_spill] sm:$0xff] %v11251_v23 }
 0x15c   :  { %v11253_v41 = vpop.f32.mrf.mxu2  ;;  %v11257_v53 = vpop.f32.mrf.mxu0 }
 0x15d   :  { %13563 = vst [vmem:[#allocation77_spill] sm:$0xff] %v11253_v41  ;;  %v11255_v51 = vpop.f32.mrf.mxu3  ;;  %v11259_v7 = vpop.f32.mrf.mxu1 }
 0x15e   :  { %13564 = vst [vmem:[#allocation78_spill] sm:$0xff] %v11255_v51 }
 0x15f   :  { %13565 = vst [vmem:[#allocation79_spill] sm:$0xff] %v11257_v53 }
 0x160   :  { %13566 = vst [vmem:[#allocation80_spill] sm:$0xff] %v11259_v7 }
 0x164   :  { %v11261_v35 = vpop.f32.mrf.mxu2  ;;  %v11265_v43 = vpop.f32.mrf.mxu0 }
 0x165   :  { %13567 = vst [vmem:[#allocation81_spill] sm:$0xff] %v11261_v35  ;;  %v11263_v57 = vpop.f32.mrf.mxu3  ;;  %v11267_v59 = vpop.f32.mrf.mxu1 }
 0x166   :  { %13568 = vst [vmem:[#allocation82_spill] sm:$0xff] %v11263_v57 }
 0x167   :  { %13569 = vst [vmem:[#allocation83_spill] sm:$0xff] %v11265_v43 }
 0x168   :  { %13570 = vst [vmem:[#allocation84_spill] sm:$0xff] %v11267_v59 }
 0x16c   :  { %v11269_v8 = vpop.f32.mrf.mxu2  ;;  %v11273_v23 = vpop.f32.mrf.mxu0 }
 0x16d   :  { %13571 = vst [vmem:[#allocation85_spill] sm:$0xff] %v11269_v8  ;;  %v11271_v9 = vpop.f32.mrf.mxu3  ;;  %v11275_v41 = vpop.f32.mrf.mxu1 }
 0x16e   :  { %13572 = vst [vmem:[#allocation86_spill] sm:$0xff] %v11271_v9 }
 0x16f   :  { %13573 = vst [vmem:[#allocation87_spill] sm:$0xff] %v11273_v23 }
 0x170   :  { %13574 = vst [vmem:[#allocation88_spill] sm:$0xff] %v11275_v41 }
 0x174   :  { %v11277_v51 = vpop.f32.mrf.mxu2  ;;  %v11281_v7 = vpop.f32.mrf.mxu0 }
 0x175   :  { %13575 = vst [vmem:[#allocation89_spill] sm:$0xff] %v11277_v51  ;;  %v11279_v53 = vpop.f32.mrf.mxu3  ;;  %v11283_v35 = vpop.f32.mrf.mxu1 }
 0x176   :  { %13576 = vst [vmem:[#allocation90_spill] sm:$0xff] %v11279_v53 }
 0x177   :  { %13577 = vst [vmem:[#allocation91_spill] sm:$0xff] %v11281_v7 }
 0x178   :  { %13578 = vst [vmem:[#allocation92_spill] sm:$0xff] %v11283_v35 }
 0x17c   :  { %v11285_v57 = vpop.f32.mrf.mxu2  ;;  %v11289_v59 = vpop.f32.mrf.mxu0 }
 0x17d   :  { %13579 = vst [vmem:[#allocation93_spill] sm:$0xff] %v11285_v57  ;;  %v11287_v43 = vpop.f32.mrf.mxu3  ;;  %v11291_v8 = vpop.f32.mrf.mxu1 }
 0x17e   :  { %13580 = vst [vmem:[#allocation94_spill] sm:$0xff] %v11287_v43 }
 0x17f   :  { %13581 = vst [vmem:[#allocation95_spill] sm:$0xff] %v11289_v59 }
 0x180   :  { %13582 = vst [vmem:[#allocation96_spill] sm:$0xff] %v11291_v8 }
 0x184   :  { %v11293_v9 = vpop.f32.mrf.mxu2  ;;  %v11297_v41 = vpop.f32.mrf.mxu0 }
 0x185   :  { %13583 = vst [vmem:[#allocation97_spill] sm:$0xff] %v11293_v9  ;;  %v11295_v23 = vpop.f32.mrf.mxu3  ;;  %v11299_v51 = vpop.f32.mrf.mxu1 }
 0x186   :  { %13584 = vst [vmem:[#allocation98_spill] sm:$0xff] %v11295_v23 }
 0x187   :  { %13585 = vst [vmem:[#allocation99_spill] sm:$0xff] %v11297_v41 }
 0x188   :  { %13586 = vst [vmem:[#allocation100_spill] sm:$0xff] %v11299_v51 }
 0x18c   :  { %v11301_v53 = vpop.f32.mrf.mxu2  ;;  %v11305_v35 = vpop.f32.mrf.mxu0 }
 0x18d   :  { %13587 = vst [vmem:[#allocation101_spill] sm:$0xff] %v11301_v53  ;;  %v11303_v7 = vpop.f32.mrf.mxu3  ;;  %v11307_v57 = vpop.f32.mrf.mxu1 }
 0x18e   :  { %13588 = vst [vmem:[#allocation102_spill] sm:$0xff] %v11303_v7 }
 0x18f   :  { %13589 = vst [vmem:[#allocation103_spill] sm:$0xff] %v11305_v35 }
 0x190   :  { %13590 = vst [vmem:[#allocation104_spill] sm:$0xff] %v11307_v57 }
 0x194   :  { %v11309_v43 = vpop.f32.mrf.mxu2  ;;  %v11313_v8 = vpop.f32.mrf.mxu0 }
 0x195   :  { %13591 = vst [vmem:[#allocation105_spill] sm:$0xff] %v11309_v43  ;;  %v11311_v59 = vpop.f32.mrf.mxu3  ;;  %v11315_v9 = vpop.f32.mrf.mxu1 }
 0x196   :  { %13592 = vst [vmem:[#allocation106_spill] sm:$0xff] %v11311_v59  ;;  %v11333_v59 = vld [vmem:[#allocation11] sm:$0xf] }
 0x197   :  { %13593 = vst [vmem:[#allocation107_spill] sm:$0xff] %v11313_v8  ;;  %v11356_v11 = vperm.slane %v11333_v59, 3 }
 0x198   :  { %13594 = vst [vmem:[#allocation108_spill] sm:$0xff] %v11315_v9 }
 0x19c   :  { %v11317_v23 = vpop.f32.mrf.mxu2  ;;  %v11321_v51 = vpop.f32.mrf.mxu0 }
 0x19d   :  { %13595 = vst [vmem:[#allocation109_spill] sm:$0xff] %v11317_v23  ;;  %v11319_v41 = vpop.f32.mrf.mxu3  ;;  %v11323_v53 = vpop.f32.mrf.mxu1 }
 0x19e   :  { %13596 = vst [vmem:[#allocation110_spill] sm:$0xff] %v11319_v41 }
 0x19f   :  { %13597 = vst [vmem:[#allocation111_spill] sm:$0xff] %v11321_v51  ;;  %v9859_v51 = vld [vmem:[#allocation3 + $0xe4] sm:$0xf] }
 0x1a0   :  { %13598 = vst [vmem:[#allocation112_spill] sm:$0xff] %v11323_v53  ;;  %v11344_v53 = vperm.slane %v11333_v59, 0 }
 0x1a4   :  { %v11325_v7 = vpop.f32.mrf.mxu2  ;;  %v11329_v57 = vpop.f32.mrf.mxu0 }
 0x1a5   :  { %13599 = vst [vmem:[#allocation113_spill] sm:$0xff] %v11325_v7  ;;  %v11327_v35 = vpop.f32.mrf.mxu3  ;;  %v11331_v43 = vpop.f32.mrf.mxu1  ;;  %v11347_v7 = vperm.slane %v11333_v59, 1 }
 0x1a6   :  { %13600 = vst [vmem:[#allocation114_spill] sm:$0xff] %v11327_v35  ;;  %v7853_v35 = vld [vmem:[#allocation3 + $0xe0] sm:$0xf] }
 0x1a7   :  { %13601 = vst [vmem:[#allocation115_spill] sm:$0xff] %v11329_v57  ;;  %v9861_v57 = vld [vmem:[#allocation3 + $0xec] sm:$0xf0] }
 0x1a8   :  { %13602 = vst [vmem:[#allocation116_spill] sm:$0xff] %v11331_v43  ;;  %v425_v43 = vadd.f32 %v11089_v37, %v11344_v53  ;;  %v7854_v40 = vor.u32 %v9861_v57, %v7853_v35  ;;  %v7866_v37 = vor.u32 %v9860_v19, %v7863_v24  ;;  %v7837_v57 = vld [vmem:[#allocation3 + $0xc0] sm:$0xf] }
 0x1aa   :  { %1510 = vmatpush.bf16.msra.mxu0 %v7854_v40  ;;  %1552 = vmatpush.bf16.msra.mxu3 %v7866_v37  ;;  %v9851_v40 = vld [vmem:[#allocation3 + $0xa4] sm:$0xf]  ;;  %v7829_v37 = vld [vmem:[#allocation3 + $0xa8] sm:$0xf] }
 0x1ac   :  { %v11337_v9 = vpop.f32.mrf.mxu0  ;;  %v11339_v23 = vpop.f32.mrf.mxu2 }
 0x1ad   :  { %v11335_v8 = vpop.f32.mrf.mxu3  ;;  %13604 = vst [vmem:[#allocation118_spill] sm:$0xff] %v11337_v9  ;;  %v11341_v41 = vpop.f32.mrf.mxu1  ;;  %v9862_v9 = vld [vmem:[#allocation3 + $0xf4] sm:$0xf0] }
 0x1ae   :  { %13603 = vst [vmem:[#allocation117_spill] sm:$0xff] %v11335_v8  ;;  %v7855_v8 = vld [vmem:[#allocation3 + $0xf0] sm:$0xf0]  ;;  %v7862_v25 = vor.u32 %v9862_v9, %v7861_v39  ;;  %v7838_v39 = vor.u32 %v9857_v15, %v7837_v57  ;;  %v427_v15 = vadd.f32 %v11097_v47, %v11344_v53 }
 0x1af   :  { %13605 = vst [vmem:[#allocation119_spill] sm:$0xff] %v11339_v23  ;;  %v514_v23 = vadd.f32 %v11091_v38, %v11347_v7  ;;  %v7858_v31 = vor.u32 %v9859_v51, %v7855_v8  ;;  %v9855_v38 = vld [vmem:[#allocation3 + $0xc4] sm:$0xf]  ;;  %v7839_v51 = vld [vmem:[#allocation3 + $0xd0] sm:$0xf0] }
 0x1b0   :  { %13606 = vst [vmem:[#allocation120_spill] sm:$0xff] %v11341_v41  ;;  %1538 = vmatpush.bf16.msra.mxu2 %v7862_v25  ;;  %v7845_v8 = vld [vmem:[#allocation3 + $0xc8] sm:$0xf]  ;;  %v7842_v5 = vor.u32 %v9855_v38, %v7839_v51  ;;  %1511 = vmatpush.bf16.msra.mxu0 %v7838_v39  ;;  %v7821_v25 = vld [vmem:[#allocation3 + $0xa0] sm:$0xf] }
 0x1b1   :  { %1524 = vmatpush.bf16.msra.mxu1 %v7858_v31  ;;  %v7846_v19 = vor.u32 %v9858_v58, %v7845_v8  ;;  %v9853_v31 = vld [vmem:[#allocation3 + $0xac] sm:$0xf0]  ;;  %v516_v58 = vadd.f32 %v11099_v48, %v11347_v7  ;;  %v9852_v39 = vld [vmem:[#allocation3 + $0xac] sm:$0xf]  ;;  %v7831_v51 = vld [vmem:[#allocation3 + $0xb8] sm:$0xf0] }
 0x1b2   :  { %v9847_v48 = vld [vmem:[#allocation3 + $0x84] sm:$0xf] }
 0x1b4   :  { %v1116_v36 = vpop.f32.mrf.mxu0  ;;  %v11358_v6 = vpop.f32.mrf.mxu2  ;;  %1539 = vmatpush.bf16.msra.mxu2 %v7846_v19 }
 0x1b5   :  { %v11353_v41 = vpop.f32.mrf.mxu3  ;;  %v1163_v17 = vadd.f32 %v1116_v36, %v425_v43  ;;  %v1130_v16 = vpop.f32.mrf.mxu1  ;;  %13608 = vst [vmem:[#allocation122_spill] sm:$0xff] %v11358_v6  ;;  %v9856_v36 = vld [vmem:[#allocation3 + $0xcc] sm:$0xf]  ;;  %1525 = vmatpush.bf16.msra.mxu1 %v7842_v5  ;;  %v7823_v43 = vld [vmem:[#allocation3 + $0xb0] sm:$0xf0] }
 0x1b6   :  { %13607 = vst [vmem:[#allocation121_spill] sm:$0xff] %v11353_v41  ;;  %v1164_v35 = vadd.f32 %v1130_v16, %v514_v23  ;;  %v7847_v16 = vld [vmem:[#allocation3 + $0xd8] sm:$0xf0]  ;;  %v7822_v23 = vor.u32 %v9853_v31, %v7821_v25  ;;  %v7826_v57 = vor.u32 %v9851_v40, %v7823_v43  ;;  %v9849_v25 = vld [vmem:[#allocation3 + $0x8c] sm:$0xf0] }
 0x1b7   :  { %v7733_v41 = vmul.f32 -1.442695, %v1163_v17  ;;  %v7850_v24 = vor.u32 %v9856_v36, %v7847_v16  ;;  %v692_v17 = vadd.f32 %v11095_v46, %v11356_v11  ;;  %v11367_v46 = vperm.slane %v11333_v59, 2  ;;  %v7805_v16 = vld [vmem:[#allocation3 + $0x80] sm:$0xf] }
 0x1b8   :  { %v7735_v9 = vmul.f32 -1.442695, %v1164_v35  ;;  %1512 = vmatpush.bf16.msra.mxu0 %v7822_v23  ;;  %v7834_v36 = vor.u32 %v9852_v39, %v7831_v51  ;;  %v7807_v40 = vld [vmem:[#allocation3 + $0x90] sm:$0xf0]  ;;  %v7815_v39 = vld [vmem:[#allocation3 + $0x98] sm:$0xf0] }
 0x1b9   :  { %10399 = vpow2.f32 %v7733_v41  ;;  %v9854_v41 = vld [vmem:[#allocation3 + $0xb4] sm:$0xf0]  ;;  %1553 = vmatpush.bf16.msra.mxu3 %v7850_v24  ;;  %1526 = vmatpush.bf16.msra.mxu1 %v7826_v57  ;;  %v7806_v24 = vor.u32 %v9849_v25, %v7805_v16  ;;  %v694_v57 = vadd.f32 %v11103_v54, %v11356_v11  ;;  %v7789_v51 = vld [vmem:[#allocation3 + $0x60] sm:$0xf]  ;;  %v7799_v54 = vld [vmem:[#allocation3 + $0x78] sm:$0xf0] }
 0x1ba   :  { %10401 = vpow2.f32 %v7735_v9  ;;  %v7830_v38 = vor.u32 %v9854_v41, %v7829_v37 }
 0x1bc   :  { %v1118_v5 = vpop.f32.mrf.mxu0  ;;  %1540 = vmatpush.bf16.msra.mxu2 %v7830_v38  ;;  %v1144_v23 = vpop.f32.mrf.mxu2  ;;  %1513 = vmatpush.bf16.msra.mxu0 %v7806_v24  ;;  %v9848_v38 = vld [vmem:[#allocation3 + $0x8c] sm:$0xf] }
 0x1bd   :  { %v1158_v35 = vpop.f32.mrf.mxu3  ;;  %v1167_v47 = vadd.f32 %v1118_v5, %v427_v15  ;;  %v1132_v9 = vpop.f32.mrf.mxu1  ;;  %1554 = vmatpush.bf16.msra.mxu3 %v7834_v36  ;;  %v9850_v5 = vld [vmem:[#allocation3 + $0x94] sm:$0xf0]  ;;  %v7791_v36 = vld [vmem:[#allocation3 + $0x70] sm:$0xf0]  ;;  %v7818_v25 = vor.u32 %v9848_v38, %v7815_v39  ;;  %v9844_v24 = vld [vmem:[#allocation3 + $0x6c] sm:$0xf]  ;;  %v7774_v39 = vor.u32 %v9841_v42, %v7773_v1 }
 0x1be   :  { %v1166_v8 = vadd.f32 %v1158_v35, %v692_v17  ;;  %v1168_v19 = vadd.f32 %v1132_v9, %v516_v58  ;;  %v7810_v17 = vor.u32 %v9847_v48, %v7807_v40  ;;  %v603_v58 = vadd.f32 %v11093_v44, %v11367_v46  ;;  %v7813_v35 = vld [vmem:[#allocation3 + $0x88] sm:$0xf]  ;;  %v9843_v9 = vld [vmem:[#allocation3 + $0x64] sm:$0xf] }
 0x1bf   :  { %v10400_v31 = vpop.eup %10399  ;;  %v7734_v59 = vmul.f32 -1.442695, %v1167_v47  ;;  %v9845_v47 = vld [vmem:[#allocation3 + $0x6c] sm:$0xf0]  ;;  %v7814_v16 = vor.u32 %v9850_v5, %v7813_v35  ;;  %v9839_v35 = vld [vmem:[#allocation3 + $0x44] sm:$0xf] }
 0x1c0   :  { %v7737_v6 = vmul.f32 -1.442695, %v1166_v8  ;;  %v10402_v43 = vpop.eup %10401  ;;  %v11369_v37 = vadd.f32 1.0, %v10400_v31  ;;  %v7736_v41 = vmul.f32 -1.442695, %v1168_v19  ;;  %1527 = vmatpush.bf16.msra.mxu1 %v7810_v17  ;;  %v1165_v8 = vadd.f32 %v1144_v23, %v603_v58 }
 0x1c1   :  { %v11371_v15 = vadd.f32 1.0, %v10402_v43  ;;  %v7797_v19 = vld [vmem:[#allocation3 + $0x68] sm:$0xf]  ;;  %v7790_v48 = vor.u32 %v9845_v47, %v7789_v51  ;;  %v9846_v31 = vld [vmem:[#allocation3 + $0x74] sm:$0xf0]  ;;  %v7794_v17 = vor.u32 %v9843_v9, %v7791_v36  ;;  %1541 = vmatpush.bf16.msra.mxu2 %v7814_v16  ;;  %1555 = vmatpush.bf16.msra.mxu3 %v7818_v25  ;;  %v7802_v58 = vor.u32 %v9844_v24, %v7799_v54 }
 0x1c2   :  { %10403 = vpow2.f32 %v7737_v6  ;;  %v7775_v5 = vld [vmem:[#allocation3 + $0x50] sm:$0xf0]  ;;  %v9840_v47 = vld [vmem:[#allocation3 + $0x4c] sm:$0xf]  ;;  %v1188_v36 = vand.u32 2147483647, %v11369_v37  ;;  %vm1184_vm3 = vweird.f32 %v11369_v37 }
 0x1c3   :  { %10405 = vrcp.f32 %v11369_v37  ;;  %1514 = vmatpush.bf16.msra.mxu0 %v7790_v48  ;;  %v7778_v51 = vor.u32 %v9839_v35, %v7775_v5  ;;  %v1190_v48 = vand.u32 2147483648, %v11369_v37  ;;  %vm1222_vm2 = vweird.f32 %v11371_v15 }
 0x1c4   :  { %10407 = vrcp.f32 %v11371_v15  ;;  %1528 = vmatpush.bf16.msra.mxu1 %v7794_v17  ;;  %v1226_v17 = vand.u32 2147483647, %v11371_v15  ;;  %vm1189_vm5 = vcmp.eq.f32.partialorder %v1188_v36, 8.507059e+37 }
 0x1c5   :  { %10409 = vpow2.f32 %v7734_v59  ;;  %v1160_v6 = vpop.f32.mrf.mxu3  ;;  %1556 = vmatpush.bf16.msra.mxu3 %v7802_v58 }
 0x1c6   :  { %10411 = vpow2.f32 %v7736_v41  ;;  %v1170_v44 = vadd.f32 %v1160_v6, %v694_v57  ;;  %v7798_v41 = vor.u32 %v9846_v31, %v7797_v19  ;;  %v7781_v6 = vld [vmem:[#allocation3 + $0x48] sm:$0xf]  ;;  %v7783_v19 = vld [vmem:[#allocation3 + $0x58] sm:$0xf0]  ;;  %v1228_v31 = vand.u32 2147483648, %v11371_v15 }
 0x1c7   :  { %10413 = vtanh.f32 %v1165_v8  ;;  %v9842_v8 = vld [vmem:[#allocation3 + $0x54] sm:$0xf0]  ;;  %1515 = vmatpush.bf16.msra.mxu0 %v7774_v39  ;;  %vm1227_vm7 = vcmp.eq.f32.partialorder %v1226_v17, 8.507059e+37 }
 0x1c8   :  { %v10404_v40 = vpop.eup %10403  ;;  %v7738_v43 = vmul.f32 -1.442695, %v1170_v44  ;;  %1542 = vmatpush.bf16.msra.mxu2 %v7798_v41  ;;  %v7782_v54 = vor.u32 %v9842_v8, %v7781_v6  ;;  %1529 = vmatpush.bf16.msra.mxu1 %v7778_v51  ;;  %v1146_v41 = vpop.f32.mrf.mxu2  ;;  %v1191_v51 = vor.u32 1.1754944e-38, %v1190_v48  ;;  %v7759_v48 = vld [vmem:[#allocation3 + $0x30] sm:$0xf0] }
 0x1c9   :  { %v11379_v23 = vpop.eup %10405  ;;  %v11381_v59 = vadd.f32 1.0, %v10404_v40  ;;  %v7786_v40 = vor.u32 %v9840_v47, %v7783_v19 }
 0x1ca   :  { %v11383_v57 = vpop.eup %10407  ;;  %v1180_v38 = vmul.f32 %v11379_v23, %v11369_v37  ;;  %10415 = vpow2.f32 %v7738_v43  ;;  %vm1185_vm0 = vweird.f32 %v11379_v23 }
 0x1cb   :  { %v10410_v9 = vpop.eup %10409  ;;  %v1218_v44 = vmul.f32 %v11383_v57, %v11371_v15  ;;  %10417 = vrcp.f32 %v11381_v59  ;;  %vm1223_vm1 = vweird.f32 %v11383_v57  ;;  %vm1186_vm4 = vmor %vm1184_vm3, %vm1185_vm0  ;;  %1557 = vmatpush.bf16.msra.mxu3 %v7786_v40  ;;  %v7765_v40 = vld [vmem:[#allocation3 + $0x28] sm:$0xf] }
 0x1cc   :  { %v10412_v16 = vpop.eup %10411  ;;  %v1181_v25 = vsub.f32 1.0, %v1180_v38  ;;  %v11393_v42 = vadd.f32 1.0, %v10410_v9  ;;  %v605_v38 = vadd.f32 %v11101_v52, %v11367_v46  ;;  %1543 = vmatpush.bf16.msra.mxu2 %v7782_v54  ;;  %v1229_v52 = vor.u32 1.1754944e-38, %v1228_v31  ;;  %vm1224_vm6 = vmor %vm1222_vm2, %vm1223_vm1  ;;  %v7757_v9 = vld [vmem:[#allocation3 + $0x20] sm:$0xf] }
 0x1cd   :  { %v1219_v1 = vsub.f32 1.0, %v1218_v44  ;;  %v11395_v24 = vadd.f32 1.0, %v10412_v16  ;;  %v10414_v35 = vpop.eup %10413  ;;  %v9837_v16 = vld [vmem:[#allocation3 + $0x2c] sm:$0xf0]  ;;  %vm1262_vm1 = vweird.f32 %v11381_v59 }
 0x1ce   :  { %v1182_v43 = vmul.f32 %v11379_v23, %v1181_v25  ;;  %10419 = vrcp.f32 %v11393_v42  ;;  %v1169_v37 = vadd.f32 %v1146_v41, %v605_v38  ;;  %v9835_v25 = vld [vmem:[#allocation3 + $0x24] sm:$0xf]  ;;  %v1203_v41 = vand.u32 2147483647, %v11393_v42  ;;  %v9836_v38 = vld [vmem:[#allocation3 + $0x2c] sm:$0xf] }
 0x1cf   :  { %v1220_v5 = vmul.f32 %v11383_v57, %v1219_v1  ;;  %10421 = vrcp.f32 %v11395_v24  ;;  %vm1237_vm8 = vweird.f32 %v11395_v24  ;;  %v7762_v34 = vor.u32 %v9835_v25, %v7759_v48 }
 0x1d0   :  { %v10416_v58 = vpop.eup %10415  ;;  %v1183_v6 = vadd.f32 %v11379_v23, %v1182_v43  ;;  %v9838_v43 = vld [vmem:[#allocation3 + $0x34] sm:$0xf0]  ;;  %vm1199_vm9 = vweird.f32 %v11393_v42  ;;  %vm1204_vm14 = vcmp.eq.f32.partialorder %v1203_v41, 8.507059e+37  ;;  %v1268_v41 = vand.u32 2147483648, %v11381_v59 }
 0x1d1   :  { %v11409_v39 = vpop.eup %10417  ;;  %v1221_v8 = vadd.f32 %v11383_v57, %v1220_v5  ;;  %v11414_v47 = vadd.f32 1.0, %v10416_v58  ;;  %v1205_v58 = vand.u32 2147483648, %v11393_v42  ;;  %1530 = vmatpush.bf16.msra.mxu1 %v7762_v34 }
 0x1d2   :  { %v1187_v15 = vsel %vm1186_vm4, %v11379_v23, %v1183_v6  ;;  %v1258_v36 = vmul.f32 %v11409_v39, %v11381_v59  ;;  %v1243_v23 = vand.u32 2147483648, %v11395_v24  ;;  %v1241_v6 = vand.u32 2147483647, %v11395_v24 }
 0x1d3   :  { %v1192_v44 = vsel %vm1189_vm5, %v1191_v51, %v1187_v15  ;;  %v1225_v19 = vsel %vm1224_vm6, %v11383_v57, %v1221_v8  ;;  %10423 = vrcp.f32 %v11414_v47  ;;  %v7767_v51 = vld [vmem:[#allocation3 + $0x38] sm:$0xf0]  ;;  %v7741_v8 = vld [vmem:[#allocation3] sm:$0xf]  ;;  %vm1263_vm13 = vweird.f32 %v11409_v39 }
 0x1d4   :  { %v11422_v1 = vpop.eup %10419  ;;  %v1230_v31 = vsel %vm1227_vm7, %v1229_v52, %v1225_v19  ;;  %v1289_v54 = vmul.f32 %v10414_v35, %v1192_v44  ;;  %10425 = vtanh.f32 %v1169_v37  ;;  %v1259_v15 = vsub.f32 1.0, %v1258_v36  ;;  %v9834_v36 = vld [vmem:[#allocation3 + $0x14] sm:$0xf0]  ;;  %vm1264_vm2 = vmor %vm1262_vm1, %vm1263_vm13 }
 0x1d5   :  { %v11426_v17 = vpop.eup %10421  ;;  %v1287_v5 = vmul.f32 0.0, %v1230_v31  ;;  %v1195_v57 = vmul.f32 %v11422_v1, %v11393_v42  ;;  %v7758_v19 = vor.u32 %v9837_v16, %v7757_v9  ;;  %v9833_v31 = vld [vmem:[#allocation3 + $0xc] sm:$0xf0]  ;;  %v1244_v45 = vor.u32 1.1754944e-38, %v1243_v23  ;;  %v7751_v9 = vld [vmem:[#allocation3 + $0x18] sm:$0xf0] }
 0x1d6   :  { %v1233_v35 = vmul.f32 %v11426_v17, %v11395_v24  ;;  %vm1200_vm10 = vweird.f32 %v11422_v1  ;;  %v7766_v37 = vor.u32 %v9838_v43, %v7765_v40  ;;  %vm1238_vm11 = vweird.f32 %v11426_v17 }
 0x1d7   :  { %v11435_v52 = vadd.f32 %v1289_v54, %v1287_v5  ;;  %v1196_v44 = vsub.f32 1.0, %v1195_v57  ;;  %1516 = vmatpush.bf16.msra.mxu0 %v7758_v19  ;;  %v9832_v54 = vld [vmem:[#allocation3 + $0xc] sm:$0xf]  ;;  %v7770_v25 = vor.u32 %v9836_v38, %v7767_v51  ;;  %v7742_v48 = vor.u32 %v9833_v31, %v7741_v8  ;;  %vm1201_vm12 = vmor %vm1199_vm9, %vm1200_vm10 }
 0x1d8   :  { %v1234_v49 = vsub.f32 1.0, %v1233_v35  ;;  %v1260_v23 = vmul.f32 %v11409_v39, %v1259_v15  ;;  %1544 = vmatpush.bf16.msra.mxu2 %v7766_v37  ;;  %v7750_v34 = vor.u32 %v9834_v36, %v7749_v30  ;;  %v7754_v38 = vor.u32 %v9832_v54, %v7751_v9  ;;  %vm1239_vm15 = vmor %vm1237_vm8, %vm1238_vm11 }
 0x1d9   :  { %v1197_v32 = vmul.f32 %v11422_v1, %v1196_v44  ;;  %v10424_v16 = vpop.eup %10423  ;;  %v7746_v44 = vor.u32 %v9831_v50, %v7743_v33  ;;  %1558 = vmatpush.bf16.msra.mxu3 %v7770_v25  ;;  %10427 = vtanh.f32 %v11435_v52  ;;  %vm1242_vm0 = vcmp.eq.f32.partialorder %v1241_v6, 8.507059e+37 }
 0x1da   :  { %v1235_v5 = vmul.f32 %v11426_v17, %v1234_v49  ;;  %v1273_v35 = vmul.f32 %v10424_v16, %v11414_v47  ;;  %v10426_v40 = vpop.eup %10425  ;;  %v1206_v49 = vor.u32 1.1754944e-38, %v1205_v58  ;;  %v1261_v30 = vadd.f32 %v11409_v39, %v1260_v23 }
 0x1db   :  { %v1198_v57 = vadd.f32 %v11422_v1, %v1197_v32  ;;  %1517 = vmatpush.bf16.msra.mxu0 %v7742_v48  ;;  %1531 = vmatpush.bf16.msra.mxu1 %v7746_v44  ;;  %v1266_v24 = vand.u32 2147483647, %v11381_v59  ;;  %vm1278_vm3 = vweird.f32 %v10424_v16  ;;  %v1269_v19 = vor.u32 1.1754944e-38, %v1268_v41 }
 0x1dc   :  { %v1236_v43 = vadd.f32 %v11426_v17, %v1235_v5  ;;  %v1274_v33 = vsub.f32 1.0, %v1273_v35  ;;  %1545 = vmatpush.bf16.msra.mxu2 %v7750_v34  ;;  %v1265_v6 = vsel %vm1264_vm2, %v11409_v39, %v1261_v30  ;;  %v1283_v31 = vand.u32 2147483648, %v11414_v47  ;;  %v7989_v30 = vld [vmem:[#allocation3 + $0xf0] sm:$0xf0] }
 0x1dd   :  { %v1202_v32 = vsel %vm1201_vm12, %v11422_v1, %v1198_v57  ;;  %1559 = vmatpush.bf16.msra.mxu3 %v7754_v38  ;;  %vm1267_vm4 = vcmp.eq.f32.partialorder %v1266_v24, 8.507059e+37  ;;  %vm1277_vm5 = vweird.f32 %v11414_v47  ;;  %v1281_v59 = vand.u32 2147483647, %v11414_v47 }
 0x1de   :  { %v1207_v50 = vsel %vm1204_vm14, %v1206_v49, %v1202_v32  ;;  %v1240_v42 = vsel %vm1239_vm15, %v11426_v17, %v1236_v43  ;;  %v1275_v1 = vmul.f32 %v10424_v16, %v1274_v33  ;;  %vm1279_vm6 = vmor %vm1277_vm5, %vm1278_vm3  ;;  %v1270_v37 = vsel %vm1267_vm4, %v1269_v19, %v1265_v6  ;;  %v7987_v32 = vld [vmem:[#allocation3 + $0xe0] sm:$0xf]  ;;  %v9893_v33 = vld [vmem:[#allocation3 + $0xec] sm:$0xf0] }
 0x1df   :  { %v1245_v58 = vsel %vm1242_vm0, %v1244_v45, %v1240_v42  ;;  %v1290_v51 = vmul.f32 %v10426_v40, %v1207_v50  ;;  %v10428_v45 = vpop.eup %10427  ;;  %v1284_v9 = vor.u32 1.1754944e-38, %v1283_v31  ;;  %vm1282_vm7 = vcmp.eq.f32.partialorder %v1281_v59, 8.507059e+37  ;;  %v9891_v50 = vld [vmem:[#allocation3 + $0xe4] sm:$0xf]  ;;  %v9892_v6 = vld [vmem:[#allocation3 + $0xec] sm:$0xf] }
 0x1e0   :  { %v1288_v8 = vmul.f32 0.0, %v1245_v58  ;;  %v1276_v15 = vadd.f32 %v10424_v16, %v1275_v1  ;;  %v1295_v54 = vmul.f32 %v10428_v45, %v1270_v37  ;;  %v430_v47 = vadd.f32 %v11105_v55, %v11344_v53  ;;  %v7995_v58 = vld [vmem:[#allocation3 + $0xe8] sm:$0xf]  ;;  %v7997_v55 = vld [vmem:[#allocation3 + $0xf8] sm:$0xf0] }
 0x1e1   :  { %v7988_v42 = vor.u32 %v9893_v33, %v7987_v32  ;;  %v9889_v45 = vld [vmem:[#allocation3 + $0xcc] sm:$0xf0]  ;;  %v9887_v19 = vld [vmem:[#allocation3 + $0xc4] sm:$0xf]  ;;  %v697_v31 = vadd.f32 %v11111_v61, %v11356_v11  ;;  %v7973_v37 = vld [vmem:[#allocation3 + $0xd0] sm:$0xf0] }
 0x1e2   :  { %v11465_v17 = vadd.f32 %v1290_v51, %v1288_v8  ;;  %v1280_v36 = vsel %vm1279_vm6, %v10424_v16, %v1276_v15  ;;  %v1297_v48 = vpack.c.bf16 %v1295_v54, %v1295_v54  ;;  %v519_v16 = vadd.f32 %v11107_v56, %v11347_v7  ;;  %v9894_v51 = vld [vmem:[#allocation3 + $0xf4] sm:$0xf0]  ;;  %v7971_v15 = vld [vmem:[#allocation3 + $0xc0] sm:$0xf]  ;;  %v7963_v32 = vld [vmem:[#allocation3 + $0xa8] sm:$0xf] }
 0x1e3   :  { %v1285_v5 = vsel %vm1282_vm7, %v1284_v9, %v1280_v36  ;;  %v7992_v8 = vor.u32 %v9891_v50, %v7989_v30  ;;  %v7996_v24 = vor.u32 %v9894_v51, %v7995_v58  ;;  %1914 = vmatpush.bf16.msrb.mxu0 %v7988_v42  ;;  %v8000_v56 = vor.u32 %v9892_v6, %v7997_v55  ;;  %v7979_v36 = vld [vmem:[#allocation3 + $0xc8] sm:$0xf]  ;;  %v9886_v51 = vld [vmem:[#allocation3 + $0xb4] sm:$0xf0]  ;;  %v7965_v6 = vld [vmem:[#allocation3 + $0xb8] sm:$0xf0] }
 0x1e4   :  { %10429 = vtanh.f32 %v11465_v17  ;;  %v1346_v35 = vunpack.c.l.b16 %v1297_v48  ;;  %v7972_v59 = vor.u32 %v9889_v45, %v7971_v15  ;;  %v432_v9 = vadd.f32 %v11113_v62, %v11344_v53  ;;  %v9885_v62 = vld [vmem:[#allocation3 + $0xac] sm:$0xf0]  ;;  %v7939_v15 = vld [vmem:[#allocation3 + $0x80] sm:$0xf] }
 0x1e5   :  { %1928 = vmatpush.bf16.msrb.mxu1 %v7992_v8  ;;  %1942 = vmatpush.bf16.msrb.mxu2 %v7996_v24  ;;  %v7964_v8 = vor.u32 %v9886_v51, %v7963_v32  ;;  %v9884_v24 = vld [vmem:[#allocation3 + $0xac] sm:$0xf]  ;;  %v9881_v45 = vld [vmem:[#allocation3 + $0x8c] sm:$0xf0] }
 0x1e6   :  { %1956 = vmatpush.bf16.msrb.mxu3 %v8000_v56  ;;  %v7968_v56 = vor.u32 %v9884_v24, %v7965_v6 }
 0x1e7   :  { %1915 = vmatpush.bf16.msrb.mxu0 %v7972_v59  ;;  %v608_v59 = vadd.f32 %v11109_v60, %v11367_v46  ;;  %v9875_v60 = vld [vmem:[#allocation3 + $0x64] sm:$0xf] }
 0x1ea   :  { %v10430_v39 = vpop.eup %10429 }
 0x1eb   :  { %v1296_v25 = vmul.f32 %v10430_v39, %v1285_v5  ;;  %v521_v39 = vadd.f32 %v11115_v63, %v11347_v7 }
 0x1ed   :  { %v1298_v23 = vpack.c.bf16 %v1296_v25, %v1296_v25  ;;  %v10314_v57 = vpack.c.bf16 %v1296_v25, %v1295_v54  ;;  %v9890_v54 = vld [vmem:[#allocation3 + $0xd4] sm:$0xf0]  ;;  %v7976_v25 = vor.u32 %v9887_v19, %v7973_v37  ;;  %v9879_v19 = vld [vmem:[#allocation3 + $0x84] sm:$0xf] }
 0x1ee   :  { %v7980_v48 = vor.u32 %v9890_v54, %v7979_v36  ;;  %v7947_v36 = vld [vmem:[#allocation3 + $0x88] sm:$0xf]  ;;  %v9882_v54 = vld [vmem:[#allocation3 + $0x94] sm:$0xf0] }
 0x1ef   :  { %10315 = vst [vmem:[#allocation13] sm:$0xff] %v10314_v57   ;;  %v1347_v44 = vunpack.c.l.b16 %v1298_v23  ;;  %v9888_v23 = vld [vmem:[#allocation3 + $0xcc] sm:$0xf]  ;;  %v7981_v57 = vld [vmem:[#allocation3 + $0xd8] sm:$0xf0]  ;;  %1929 = vmatpush.bf16.msrb.mxu1 %v7976_v25 }
 0x1f0   :  { %1943 = vmatpush.bf16.msrb.mxu2 %v7980_v48  ;;  %v9880_v25 = vld [vmem:[#allocation3 + $0x8c] sm:$0xf]  ;;  %v7949_v48 = vld [vmem:[#allocation3 + $0x98] sm:$0xf0] }
 0x1f1   :  { %v1348_v40 = vpack.c.b16 %v1347_v44, %v1346_v35 }
 0x1f3   :  { %1518 = vmatmul.bf16.vlgmr.msra.gmra.mxu0 %v1348_v40  ;;  %1532 = vmatmul.bf16.vlgmr.msra.gmra.mxu1 %v1348_v40 }
 0x1f4   :  { %1546 = vmatmul.bf16.vlgmr.msra.gmra.mxu2 %v1348_v40  ;;  %1560 = vmatmul.bf16.vlgmr.msra.gmra.mxu3 %v1348_v40  ;;  %v7984_v40 = vor.u32 %v9888_v23, %v7981_v57 }
 0x1f5   :  { %1944 = vmatpush.bf16.msrb.mxu2 %v7964_v8 }
 0x1f6   :  { %1957 = vmatpush.bf16.msrb.mxu3 %v7984_v40  ;;  %v7923_v40 = vld [vmem:[#allocation3 + $0x60] sm:$0xf] }
 0x1fa   :  { %1958 = vmatpush.bf16.msrb.mxu3 %v7968_v56 }
 0x270   :  { %v1519_v49 = vpop.f32.mrf.mxu0  ;;  %v1533_v43 = vpop.f32.mrf.mxu1 }
 0x271   :  { %v1566_v34 = vadd.f32 %v1519_v49, %v430_v47  ;;  %v1567_v38 = vadd.f32 %v1533_v43, %v519_v16  ;;  %v7955_v49 = vld [vmem:[#allocation3 + $0xa0] sm:$0xf]  ;;  %v9883_v43 = vld [vmem:[#allocation3 + $0xa4] sm:$0xf] }
 0x272   :  { %v7956_v63 = vor.u32 %v9885_v62, %v7955_v49 }
 0x273   :  { %v7867_v1 = vmul.f32 -1.442695, %v1566_v34  ;;  %v7869_v41 = vmul.f32 -1.442695, %v1567_v38  ;;  %v7957_v38 = vld [vmem:[#allocation3 + $0xb0] sm:$0xf0] }
 0x274   :  { %v7960_v58 = vor.u32 %v9883_v43, %v7957_v38  ;;  %1916 = vmatpush.bf16.msrb.mxu0 %v7956_v63 }
 0x275   :  { %10431 = vpow2.f32 %v7867_v1 }
 0x276   :  { %10433 = vpow2.f32 %v7869_v41  ;;  %1930 = vmatpush.bf16.msrb.mxu1 %v7960_v58 }
 0x277   :  { %v1561_v5 = vpop.f32.mrf.mxu3  ;;  %v1547_v50 = vpop.f32.mrf.mxu2 }
 0x278   :  { %v1569_v35 = vadd.f32 %v1561_v5, %v697_v31  ;;  %v1521_v44 = vpop.f32.mrf.mxu0  ;;  %v1535_v61 = vpop.f32.mrf.mxu1  ;;  %v7941_v31 = vld [vmem:[#allocation3 + $0x90] sm:$0xf0]  ;;  %v7940_v5 = vor.u32 %v9881_v45, %v7939_v15  ;;  %v1568_v57 = vadd.f32 %v1547_v50, %v608_v59  ;;  %v610_v50 = vadd.f32 %v11117_v0, %v11367_v46  ;;  %v9878_v59 = vld [vmem:[#allocation3 + $0x74] sm:$0xf0] }
 0x279   :  { %v1570_v47 = vadd.f32 %v1521_v44, %v432_v9  ;;  %v1571_v16 = vadd.f32 %v1535_v61, %v521_v39  ;;  %v699_v9 = vadd.f32 %v11119_v2, %v11356_v11  ;;  %v7948_v44 = vor.u32 %v9882_v54, %v7947_v36  ;;  %v7925_v2 = vld [vmem:[#allocation3 + $0x70] sm:$0xf0]  ;;  %v9876_v54 = vld [vmem:[#allocation3 + $0x6c] sm:$0xf] }
 0x27a   :  { %v7871_v34 = vmul.f32 -1.442695, %v1569_v35  ;;  %v7944_v35 = vor.u32 %v9879_v19, %v7941_v31  ;;  %v7952_v61 = vor.u32 %v9880_v25, %v7949_v48  ;;  %1917 = vmatpush.bf16.msrb.mxu0 %v7940_v5  ;;  %v7928_v32 = vor.u32 %v9875_v60, %v7925_v2  ;;  %v7931_v31 = vld [vmem:[#allocation3 + $0x68] sm:$0xf]  ;;  %v7907_v5 = vld [vmem:[#allocation3 + $0x40] sm:$0xf] }
 0x27b   :  { %v10432_v33 = vpop.eup %10431  ;;  %v7868_v42 = vmul.f32 -1.442695, %v1570_v47  ;;  %v7870_v30 = vmul.f32 -1.442695, %v1571_v16  ;;  %v9877_v47 = vld [vmem:[#allocation3 + $0x6c] sm:$0xf0]  ;;  %1945 = vmatpush.bf16.msrb.mxu2 %v7948_v44 }
 0x27c   :  { %v10434_v1 = vpop.eup %10433  ;;  %v11482_v41 = vadd.f32 1.0, %v10432_v33  ;;  %10435 = vpow2.f32 %v7871_v34  ;;  %v7924_v43 = vor.u32 %v9877_v47, %v7923_v40  ;;  %1931 = vmatpush.bf16.msrb.mxu1 %v7944_v35  ;;  %1959 = vmatpush.bf16.msrb.mxu3 %v7952_v61  ;;  %v9873_v25 = vld [vmem:[#allocation3 + $0x4c] sm:$0xf0]  ;;  %v7909_v44 = vld [vmem:[#allocation3 + $0x50] sm:$0xf0] }
 0x27d   :  { %v11484_v55 = vadd.f32 1.0, %v10434_v1  ;;  %10437 = vpow2.f32 %v7868_v42  ;;  %v7875_v40 = vld [vmem:[#allocation3] sm:$0xf] }
 0x27e   :  { %10439 = vrcp.f32 %v11482_v41  ;;  %v1591_v39 = vand.u32 2147483647, %v11482_v41  ;;  %v1593_v63 = vand.u32 2147483648, %v11482_v41  ;;  %1918 = vmatpush.bf16.msrb.mxu0 %v7924_v43  ;;  %vm1587_vm12 = vweird.f32 %v11482_v41 }
 0x27f   :  { %10441 = vrcp.f32 %v11484_v55  ;;  %v1563_v37 = vpop.f32.mrf.mxu3  ;;  %v1549_v58 = vpop.f32.mrf.mxu2  ;;  %v1629_v24 = vand.u32 2147483647, %v11484_v55  ;;  %vm1625_vm11 = vweird.f32 %v11484_v55 }
 0x280   :  { %10443 = vpow2.f32 %v7870_v30  ;;  %v1573_v62 = vadd.f32 %v1563_v37, %v699_v9  ;;  %v1631_v30 = vand.u32 2147483648, %v11484_v55  ;;  %vm11510_vm8 = vcmp.eq.f32.partialorder %v1591_v39, 8.507059e+37  ;;  %1932 = vmatpush.bf16.msrb.mxu1 %v7928_v32  ;;  %v7933_v39 = vld [vmem:[#allocation3 + $0x78] sm:$0xf0] }
 0x281   :  { %v1594_v45 = vor.u32 1.1754944e-38, %v1593_v63  ;;  %v1572_v19 = vadd.f32 %v1549_v58, %v610_v50  ;;  %vm11534_vm14 = vcmp.eq.f32.partialorder %v1629_v24, 8.507059e+37  ;;  %v7936_v32 = vor.u32 %v9876_v54, %v7933_v39  ;;  %v7917_v58 = vld [vmem:[#allocation3 + $0x58] sm:$0xf0] }
 0x282   :  { %v10436_v23 = vpop.eup %10435  ;;  %v7872_v56 = vmul.f32 -1.442695, %v1573_v62  ;;  %v1632_v37 = vor.u32 1.1754944e-38, %v1631_v30  ;;  %v7915_v62 = vld [vmem:[#allocation3 + $0x48] sm:$0xf]  ;;  %v7908_v50 = vor.u32 %v9873_v25, %v7907_v5 }
 0x283   :  { %v10438_v16 = vpop.eup %10437  ;;  %v11493_v49 = vadd.f32 1.0, %v10436_v23  ;;  %v9872_v30 = vld [vmem:[#allocation3 + $0x4c] sm:$0xf]  ;;  %1960 = vmatpush.bf16.msrb.mxu3 %v7936_v32  ;;  %v7901_v25 = vld [vmem:[#allocation3 + $0x38] sm:$0xf0] }
 0x284   :  { %v11495_v34 = vpop.eup %10439  ;;  %v11498_v38 = vadd.f32 1.0, %v10438_v16  ;;  %1919 = vmatpush.bf16.msrb.mxu0 %v7908_v50  ;;  %v9868_v5 = vld [vmem:[#allocation3 + $0x2c] sm:$0xf]  ;;  %v7920_v35 = vor.u32 %v9872_v30, %v7917_v58 }
 0x285   :  { %v11500_v33 = vpop.eup %10441  ;;  %v1583_v42 = vmul.f32 %v11495_v34, %v11482_v41  ;;  %10445 = vrcp.f32 %v11493_v49  ;;  %vm1588_vm9 = vweird.f32 %v11495_v34  ;;  %v9871_v41 = vld [vmem:[#allocation3 + $0x44] sm:$0xf]  ;;  %v7904_v50 = vor.u32 %v9868_v5, %v7901_v25 }
 0x286   :  { %v10444_v51 = vpop.eup %10443  ;;  %v1621_v1 = vmul.f32 %v11500_v33, %v11484_v55  ;;  %10447 = vtanh.f32 %v1568_v57  ;;  %vm1626_vm10 = vweird.f32 %v11500_v33  ;;  %vm11530_vm13 = vmor %vm1587_vm12, %vm1588_vm9  ;;  %v7932_v55 = vor.u32 %v9878_v59, %v7931_v31  ;;  %v9870_v59 = vld [vmem:[#allocation3 + $0x34] sm:$0xf0] }
 0x287   :  { %v1584_v0 = vsub.f32 1.0, %v1583_v42  ;;  %10449 = vrcp.f32 %v11498_v38  ;;  %v11516_v6 = vadd.f32 1.0, %v10444_v51  ;;  %vm11540_vm15 = vmor %vm1625_vm11, %vm1626_vm10  ;;  %v1606_v16 = vand.u32 2147483647, %v11498_v38  ;;  %v9874_v42 = vld [vmem:[#allocation3 + $0x54] sm:$0xf0]  ;;  %1961 = vmatpush.bf16.msrb.mxu3 %v7920_v35 }
 0x288   :  { %v1622_v15 = vsub.f32 1.0, %v1621_v1  ;;  %1946 = vmatpush.bf16.msrb.mxu2 %v7932_v55  ;;  %vm1602_vm0 = vweird.f32 %v11498_v38  ;;  %v7912_v8 = vor.u32 %v9871_v41, %v7909_v44  ;;  %v1608_v39 = vand.u32 2147483648, %v11498_v38 }
 0x289   :  { %v1585_v36 = vmul.f32 %v11495_v34, %v1584_v0  ;;  %10451 = vrcp.f32 %v11516_v6  ;;  %v1646_v60 = vand.u32 2147483648, %v11516_v6  ;;  %v9869_v0 = vld [vmem:[#allocation3 + $0x2c] sm:$0xf0]  ;;  %vm1640_vm1 = vweird.f32 %v11516_v6 }
 0x28a   :  { %v1623_v9 = vmul.f32 %v11500_v33, %v1622_v15  ;;  %10453 = vpow2.f32 %v7872_v56  ;;  %v9867_v56 = vld [vmem:[#allocation3 + $0x24] sm:$0xf]  ;;  %1933 = vmatpush.bf16.msrb.mxu1 %v7912_v8  ;;  %v7916_v57 = vor.u32 %v9874_v42, %v7915_v62  ;;  %v7877_v42 = vld [vmem:[#allocation3 + $0x10] sm:$0xf0]  ;;  %vm1607_vm5 = vcmp.eq.f32.partialorder %v1606_v16, 8.507059e+37 }
 0x28b   :  { %v11525_v48 = vpop.eup %10445  ;;  %v1586_v23 = vadd.f32 %v11495_v34, %v1585_v36  ;;  %10455 = vtanh.f32 %v1572_v19  ;;  %v9863_v62 = vld [vmem:[#allocation3 + $0x4] sm:$0xf]  ;;  %1962 = vmatpush.bf16.msrb.mxu3 %v7904_v50  ;;  %v1671_v5 = vand.u32 2147483648, %v11493_v49  ;;  %vm1665_vm9 = vweird.f32 %v11493_v49 }
 0x28c   :  { %v10448_v61 = vpop.eup %10447  ;;  %v1624_v47 = vadd.f32 %v11500_v33, %v1623_v9  ;;  %v1661_v63 = vmul.f32 %v11525_v48, %v11493_v49  ;;  %1947 = vmatpush.bf16.msrb.mxu2 %v7916_v57 }
 0x28d   :  { %v11547_v43 = vpop.eup %10449  ;;  %v1590_v2 = vsel %vm11530_vm13, %v11495_v34, %v1586_v23  ;;  %v7891_v34 = vld [vmem:[#allocation3 + $0x20] sm:$0xf]  ;;  %v1672_v35 = vor.u32 1.1754944e-38, %v1671_v5  ;;  %v9919_v5 = vld [vmem:[#allocation3 + $0xc4] sm:$0xf] }
 0x28e   :  { %v1595_v51 = vsel %vm11510_vm8, %v1594_v45, %v1590_v2  ;;  %v1628_v1 = vsel %vm11540_vm15, %v11500_v33, %v1624_v47  ;;  %v1598_v24 = vmul.f32 %v11547_v43, %v11498_v38  ;;  %v7893_v33 = vld [vmem:[#allocation3 + $0x30] sm:$0xf0]  ;;  %v7899_v45 = vld [vmem:[#allocation3 + $0x28] sm:$0xf]  ;;  %v1662_v23 = vsub.f32 1.0, %v1661_v63 }
 0x28f   :  { %v11562_v15 = vpop.eup %10451  ;;  %v1633_v19 = vsel %vm11534_vm14, %v1632_v37, %v1628_v1  ;;  %v1692_v31 = vmul.f32 %v10448_v61, %v1595_v51  ;;  %v7892_v55 = vor.u32 %v9869_v0, %v7891_v34  ;;  %vm1603_vm2 = vweird.f32 %v11547_v43  ;;  %v9865_v47 = vld [vmem:[#allocation3 + $0xc] sm:$0xf0]  ;;  %v7883_v1 = vld [vmem:[#allocation3 + $0x8] sm:$0xf] }
 0x290   :  { %v1690_v36 = vmul.f32 %v1633_v19, %v11435_v52  ;;  %v1599_v54 = vsub.f32 1.0, %v1598_v24  ;;  %v1636_v9 = vmul.f32 %v11562_v15, %v11516_v6  ;;  %v10454_v37 = vpop.eup %10453  ;;  %v7896_v32 = vor.u32 %v9867_v56, %v7893_v33  ;;  %v9866_v24 = vld [vmem:[#allocation3 + $0x14] sm:$0xf0]  ;;  %vm1604_vm4 = vmor %vm1602_vm0, %vm1603_vm2  ;;  %v9864_v56 = vld [vmem:[#allocation3 + $0xc] sm:$0xf] }
 0x291   :  { %v10456_v41 = vpop.eup %10455  ;;  %v11575_v2 = vadd.f32 1.0, %v10454_v37  ;;  %v7900_v63 = vor.u32 %v9870_v59, %v7899_v45  ;;  %vm1641_vm3 = vweird.f32 %v11562_v15  ;;  %v1644_v51 = vand.u32 2147483647, %v11516_v6  ;;  %1920 = vmatpush.bf16.msrb.mxu0 %v7892_v55  ;;  %v7885_v19 = vld [vmem:[#allocation3 + $0x18] sm:$0xf0] }
 0x292   :  { %v11571_v44 = vadd.f32 %v1692_v31, %v1690_v36  ;;  %v1637_v61 = vsub.f32 1.0, %v1636_v9  ;;  %v1600_v52 = vmul.f32 %v11547_v43, %v1599_v54  ;;  %v1663_v34 = vmul.f32 %v11525_v48, %v1662_v23  ;;  %1934 = vmatpush.bf16.msrb.mxu1 %v7896_v32  ;;  %vm1642_vm6 = vmor %vm1640_vm1, %vm1641_vm3 }
 0x293   :  { %v1609_v0 = vor.u32 1.1754944e-38, %v1608_v39  ;;  %10457 = vrcp.f32 %v11575_v2  ;;  %v7876_v33 = vor.u32 %v9865_v47, %v7875_v40  ;;  %v7880_v45 = vor.u32 %v9863_v62, %v7877_v42  ;;  %1948 = vmatpush.bf16.msrb.mxu2 %v7900_v63 }
 0x294   :  { %v1638_v30 = vmul.f32 %v11562_v15, %v1637_v61  ;;  %v1601_v58 = vadd.f32 %v11547_v43, %v1600_v52  ;;  %v1647_v38 = vor.u32 1.1754944e-38, %v1646_v60  ;;  %v7884_v59 = vor.u32 %v9866_v24, %v7883_v1 }
 0x295   :  { %vm1645_vm7 = vcmp.eq.f32.partialorder %v1644_v51, 8.507059e+37  ;;  %1921 = vmatpush.bf16.msrb.mxu0 %v7876_v33  ;;  %v7888_v54 = vor.u32 %v9864_v56, %v7885_v19  ;;  %10459 = vtanh.f32 %v11571_v44  ;;  %v1664_v39 = vadd.f32 %v11525_v48, %v1663_v34  ;;  %v9923_v33 = vld [vmem:[#allocation3 + $0xe4] sm:$0xf] }
 0x296   :  { %v1605_v31 = vsel %vm1604_vm4, %v11547_v43, %v1601_v58  ;;  %v1639_v8 = vadd.f32 %v11562_v15, %v1638_v30  ;;  %1935 = vmatpush.bf16.msrb.mxu1 %v7880_v45  ;;  %vm1666_vm8 = vweird.f32 %v11525_v48  ;;  %v1686_v55 = vand.u32 2147483648, %v11575_v2 }
 0x297   :  { %v1610_v16 = vsel %vm1607_vm5, %v1609_v0, %v1605_v31  ;;  %1949 = vmatpush.bf16.msrb.mxu2 %v7884_v59  ;;  %1963 = vmatpush.bf16.msrb.mxu3 %v7888_v54  ;;  %vm1667_vm10 = vmor %vm1665_vm9, %vm1666_vm8  ;;  %v1684_v61 = vand.u32 2147483647, %v11575_v2  ;;  %vm1680_vm13 = vweird.f32 %v11575_v2  ;;  %v524_v24 = vadd.f32 %v11123_v4, %v11347_v7  ;;  %v8121_v31 = vld [vmem:[#allocation3 + $0xe0] sm:$0xf]  ;;  %v9926_v59 = vld [vmem:[#allocation3 + $0xf4] sm:$0xf0] }
 0x298   :  { %v1643_v36 = vsel %vm1642_vm6, %v11562_v15, %v1639_v8  ;;  %v1693_v43 = vmul.f32 %v10456_v41, %v1610_v16  ;;  %v1669_v15 = vand.u32 2147483647, %v11493_v49  ;;  %v1668_v23 = vsel %vm1667_vm10, %v11525_v48, %v1664_v39  ;;  %v9925_v8 = vld [vmem:[#allocation3 + $0xec] sm:$0xf0]  ;;  %v8129_v16 = vld [vmem:[#allocation3 + $0xe8] sm:$0xf] }
 0x299   :  { %v1648_v9 = vsel %vm1645_vm7, %v1647_v38, %v1643_v36  ;;  %v10458_v60 = vpop.eup %10457  ;;  %v1687_v47 = vor.u32 1.1754944e-38, %v1686_v55  ;;  %vm1685_vm15 = vcmp.eq.f32.partialorder %v1684_v61, 8.507059e+37  ;;  %v8122_v45 = vor.u32 %v9925_v8, %v8121_v31  ;;  %v8123_v38 = vld [vmem:[#allocation3 + $0xf0] sm:$0xf0]  ;;  %v9924_v39 = vld [vmem:[#allocation3 + $0xec] sm:$0xf] }
 0x29a   :  { %v1691_v6 = vmul.f32 %v1648_v9, %v11465_v17  ;;  %v1676_v37 = vmul.f32 %v10458_v60, %v11575_v2  ;;  %vm1670_vm11 = vcmp.eq.f32.partialorder %v1669_v15, 8.507059e+37  ;;  %vm1681_vm12 = vweird.f32 %v10458_v60 }
 0x29b   :  { %v10460_v17 = vpop.eup %10459  ;;  %v1673_v49 = vsel %vm1670_vm11, %v1672_v35, %v1668_v23  ;;  %vm1682_vm14 = vmor %vm1680_vm13, %vm1681_vm12  ;;  %v435_v2 = vadd.f32 %v11121_v3, %v11344_v53  ;;  %v8126_v54 = vor.u32 %v9923_v33, %v8123_v38  ;;  %v8130_v9 = vor.u32 %v9926_v59, %v8129_v16  ;;  %2318 = vmatpush.bf16.msra.mxu0 %v8122_v45  ;;  %v8131_v3 = vld [vmem:[#allocation3 + $0xf8] sm:$0xf0]  ;;  %v8107_v23 = vld [vmem:[#allocation3 + $0xd0] sm:$0xf0] }
 0x29c   :  { %v11605_v25 = vadd.f32 %v1693_v43, %v1691_v6  ;;  %v1677_v57 = vsub.f32 1.0, %v1676_v37  ;;  %v1698_v40 = vmul.f32 %v10460_v17, %v1673_v49  ;;  %v8134_v4 = vor.u32 %v9924_v39, %v8131_v3  ;;  %v8105_v6 = vld [vmem:[#allocation3 + $0xc0] sm:$0xf]  ;;  %v9922_v17 = vld [vmem:[#allocation3 + $0xd4] sm:$0xf0] }
 0x29d   :  { %2332 = vmatpush.bf16.msra.mxu1 %v8126_v54  ;;  %2346 = vmatpush.bf16.msra.mxu2 %v8130_v9  ;;  %v702_v15 = vadd.f32 %v11127_v12, %v11356_v11  ;;  %v437_v35 = vadd.f32 %v11129_v13, %v11344_v53  ;;  %v526_v55 = vadd.f32 %v11131_v14, %v11347_v7  ;;  %v9917_v13 = vld [vmem:[#allocation3 + $0xac] sm:$0xf0]  ;;  %v9916_v33 = vld [vmem:[#allocation3 + $0xac] sm:$0xf]  ;;  %v8099_v45 = vld [vmem:[#allocation3 + $0xb8] sm:$0xf0] }
 0x29e   :  { %10461 = vtanh.f32 %v11605_v25  ;;  %v1678_v41 = vmul.f32 %v10458_v60, %v1677_v57  ;;  %v1700_v62 = vpack.c.bf16 %v1698_v40, %v1698_v40  ;;  %v8113_v57 = vld [vmem:[#allocation3 + $0xc8] sm:$0xf]  ;;  %2360 = vmatpush.bf16.msra.mxu3 %v8134_v4  ;;  %v8110_v61 = vor.u32 %v9919_v5, %v8107_v23  ;;  %v8073_v59 = vld [vmem:[#allocation3 + $0x80] sm:$0xf]  ;;  %v8075_v54 = vld [vmem:[#allocation3 + $0x90] sm:$0xf0] }
 0x29f   :  { %v8114_v49 = vor.u32 %v9922_v17, %v8113_v57  ;;  %v8102_v16 = vor.u32 %v9916_v33, %v8099_v45  ;;  %v613_v9 = vadd.f32 %v11125_v10, %v11367_v46  ;;  %v8081_v3 = vld [vmem:[#allocation3 + $0x88] sm:$0xf]  ;;  %v9914_v4 = vld [vmem:[#allocation3 + $0x94] sm:$0xf0]  ;;  %v9907_v10 = vld [vmem:[#allocation3 + $0x64] sm:$0xf] }
 0x2a0   :  { %v1679_v52 = vadd.f32 %v10458_v60, %v1678_v41  ;;  %v1750_v58 = vunpack.c.l.b16 %v1700_v62  ;;  %v8089_v62 = vld [vmem:[#allocation3 + $0xa0] sm:$0xf] }
 0x2a1   :  { %2333 = vmatpush.bf16.msra.mxu1 %v8110_v61  ;;  %2347 = vmatpush.bf16.msra.mxu2 %v8114_v49  ;;  %v8090_v14 = vor.u32 %v9917_v13, %v8089_v62  ;;  %v9909_v61 = vld [vmem:[#allocation3 + $0x6c] sm:$0xf0]  ;;  %v615_v62 = vadd.f32 %v11133_v18, %v11367_v46 }
 0x2a2   :  { %v1683_v32 = vsel %vm1682_vm14, %v10458_v60, %v1679_v52  ;;  %v9921_v60 = vld [vmem:[#allocation3 + $0xcc] sm:$0xf0]  ;;  %v9920_v52 = vld [vmem:[#allocation3 + $0xcc] sm:$0xf] }
 0x2a3   :  { %v1688_v63 = vsel %vm1685_vm15, %v1687_v47, %v1683_v32  ;;  %v8106_v37 = vor.u32 %v9921_v60, %v8105_v6  ;;  %v704_v6 = vadd.f32 %v11135_v20, %v11356_v11  ;;  %v8059_v20 = vld [vmem:[#allocation3 + $0x70] sm:$0xf0] }
 0x2a4   :  { %v10462_v48 = vpop.eup %10461 }
 0x2a5   :  { %v1699_v50 = vmul.f32 %v10462_v48, %v1688_v63  ;;  %2319 = vmatpush.bf16.msra.mxu0 %v8106_v37  ;;  %v8083_v37 = vld [vmem:[#allocation3 + $0x98] sm:$0xf0] }
 0x2a7   :  { %v1701_v42 = vpack.c.bf16 %v1699_v50, %v1699_v50  ;;  %v10319_v30 = vpack.c.bf16 %v1699_v50, %v1698_v40  ;;  %v8115_v40 = vld [vmem:[#allocation3 + $0xd8] sm:$0xf0] }
 0x2a8   :  { %v8118_v32 = vor.u32 %v9920_v52, %v8115_v40 }
 0x2a9   :  { %10320 = vst [vmem:[#allocation13 + $0x8] sm:$0xff] %v10319_v30   ;;  %v1751_v51 = vunpack.c.l.b16 %v1701_v42  ;;  %v9915_v42 = vld [vmem:[#allocation3 + $0xa4] sm:$0xf]  ;;  %2320 = vmatpush.bf16.msra.mxu0 %v8090_v14 }
 0x2aa   :  { %2361 = vmatpush.bf16.msra.mxu3 %v8118_v32 }
 0x2ab   :  { %v1752_v1 = vpack.c.b16 %v1751_v51, %v1750_v58  ;;  %v8091_v58 = vld [vmem:[#allocation3 + $0xb0] sm:$0xf0]  ;;  %v8097_v51 = vld [vmem:[#allocation3 + $0xa8] sm:$0xf] }
 0x2ad   :  { %1922 = vmatmul.bf16.vlgmr.msrb.gmra.mxu0 %v1752_v1  ;;  %1936 = vmatmul.bf16.vlgmr.msrb.gmra.mxu1 %v1752_v1 }
 0x2ae   :  { %1950 = vmatmul.bf16.vlgmr.msrb.gmra.mxu2 %v1752_v1  ;;  %1964 = vmatmul.bf16.vlgmr.msrb.gmra.mxu3 %v1752_v1 }
 0x2af   :  { %2362 = vmatpush.bf16.msra.mxu3 %v8102_v16  ;;  %v9908_v16 = vld [vmem:[#allocation3 + $0x6c] sm:$0xf] }
 0x32a   :  { %v1923_v34 = vpop.f32.mrf.mxu0  ;;  %v1937_v0 = vpop.f32.mrf.mxu1 }
 0x32b   :  { %v1970_v56 = vadd.f32 %v1923_v34, %v435_v2  ;;  %v1971_v19 = vadd.f32 %v1937_v0, %v524_v24  ;;  %v8094_v0 = vor.u32 %v9915_v42, %v8091_v58 }
 0x32d   :  { %v8001_v36 = vmul.f32 -1.442695, %v1970_v56  ;;  %v8003_v43 = vmul.f32 -1.442695, %v1971_v19  ;;  %v9918_v56 = vld [vmem:[#allocation3 + $0xb4] sm:$0xf0]  ;;  %2334 = vmatpush.bf16.msra.mxu1 %v8094_v0 }
 0x32e   :  { %v8098_v8 = vor.u32 %v9918_v56, %v8097_v51  ;;  %v9902_v51 = vld [vmem:[#allocation3 + $0x34] sm:$0xf0] }
 0x32f   :  { %10463 = vpow2.f32 %v8001_v36  ;;  %v9913_v36 = vld [vmem:[#allocation3 + $0x8c] sm:$0xf0] }
 0x330   :  { %10465 = vpow2.f32 %v8003_v43  ;;  %2348 = vmatpush.bf16.msra.mxu2 %v8098_v8  ;;  %v9911_v43 = vld [vmem:[#allocation3 + $0x84] sm:$0xf]  ;;  %v8074_v5 = vor.u32 %v9913_v36, %v8073_v59  ;;  %v9910_v8 = vld [vmem:[#allocation3 + $0x74] sm:$0xf0]  ;;  %v8067_v36 = vld [vmem:[#allocation3 + $0x78] sm:$0xf0] }
 0x331   :  { %v1965_v41 = vpop.f32.mrf.mxu3  ;;  %v1951_v2 = vpop.f32.mrf.mxu2  ;;  %v8078_v17 = vor.u32 %v9911_v43, %v8075_v54  ;;  %v8041_v43 = vld [vmem:[#allocation3 + $0x40] sm:$0xf]  ;;  %v9905_v54 = vld [vmem:[#allocation3 + $0x4c] sm:$0xf0] }
 0x332   :  { %v1973_v47 = vadd.f32 %v1965_v41, %v702_v15  ;;  %v1925_v48 = vpop.f32.mrf.mxu0  ;;  %v1939_v12 = vpop.f32.mrf.mxu1  ;;  %v9912_v15 = vld [vmem:[#allocation3 + $0x8c] sm:$0xf]  ;;  %v1972_v57 = vadd.f32 %v1951_v2, %v613_v9  ;;  %v8057_v41 = vld [vmem:[#allocation3 + $0x60] sm:$0xf]  ;;  %2321 = vmatpush.bf16.msra.mxu0 %v8074_v5 }
 0x333   :  { %v1974_v63 = vadd.f32 %v1925_v48, %v437_v35  ;;  %v1975_v50 = vadd.f32 %v1939_v12, %v526_v55  ;;  %v8082_v35 = vor.u32 %v9914_v4, %v8081_v3  ;;  %v8086_v55 = vor.u32 %v9912_v15, %v8083_v37  ;;  %2335 = vmatpush.bf16.msra.mxu1 %v8078_v17 }
 0x334   :  { %v8005_v30 = vmul.f32 -1.442695, %v1973_v47  ;;  %v8058_v47 = vor.u32 %v9909_v61, %v8057_v41  ;;  %v8070_v41 = vor.u32 %v9908_v16, %v8067_v36  ;;  %v8042_v61 = vor.u32 %v9905_v54, %v8041_v43  ;;  %v8009_v54 = vld [vmem:[#allocation3] sm:$0xf] }
 0x335   :  { %v10464_v1 = vpop.eup %10463  ;;  %v8002_v24 = vmul.f32 -1.442695, %v1974_v63  ;;  %v8004_v34 = vmul.f32 -1.442695, %v1975_v50  ;;  %2349 = vmatpush.bf16.msra.mxu2 %v8082_v35  ;;  %v8062_v63 = vor.u32 %v9907_v10, %v8059_v20  ;;  %2363 = vmatpush.bf16.msra.mxu3 %v8086_v55  ;;  %v9906_v10 = vld [vmem:[#allocation3 + $0x54] sm:$0xf0] }
 0x336   :  { %v10466_v19 = vpop.eup %10465  ;;  %v11623_v31 = vadd.f32 1.0, %v10464_v1  ;;  %10467 = vpow2.f32 %v8005_v30  ;;  %2322 = vmatpush.bf16.msra.mxu0 %v8058_v47 }
 0x337   :  { %v11625_v38 = vadd.f32 1.0, %v10466_v19  ;;  %10469 = vpow2.f32 %v8002_v24  ;;  %2336 = vmatpush.bf16.msra.mxu1 %v8062_v63  ;;  %v8065_v19 = vld [vmem:[#allocation3 + $0x68] sm:$0xf]  ;;  %v9901_v63 = vld [vmem:[#allocation3 + $0x2c] sm:$0xf0] }
 0x338   :  { %10471 = vrcp.f32 %v11623_v31  ;;  %v1995_v60 = vand.u32 2147483647, %v11623_v31  ;;  %v1997_v12 = vand.u32 2147483648, %v11623_v31  ;;  %vm1991_vm4 = vweird.f32 %v11623_v31 }
 0x339   :  { %10473 = vrcp.f32 %v11625_v38  ;;  %v1967_v39 = vpop.f32.mrf.mxu3  ;;  %v2035_v42 = vand.u32 2147483648, %v11625_v38  ;;  %v1953_v30 = vpop.f32.mrf.mxu2  ;;  %v2033_v1 = vand.u32 2147483647, %v11625_v38  ;;  %vm2029_vm3 = vweird.f32 %v11625_v38  ;;  %2364 = vmatpush.bf16.msra.mxu3 %v8070_v41 }
 0x33a   :  { %10475 = vpow2.f32 %v8004_v34  ;;  %v1977_v40 = vadd.f32 %v1967_v39, %v704_v6  ;;  %vm11651_vm0 = vcmp.eq.f32.partialorder %v1995_v60, 8.507059e+37  ;;  %v1998_v0 = vor.u32 1.1754944e-38, %v1997_v12  ;;  %v8043_v6 = vld [vmem:[#allocation3 + $0x50] sm:$0xf0]  ;;  %2323 = vmatpush.bf16.msra.mxu0 %v8042_v61 }
 0x33b   :  { %v1976_v56 = vadd.f32 %v1953_v30, %v615_v62  ;;  %v2036_v33 = vor.u32 1.1754944e-38, %v2035_v42  ;;  %vm11675_vm6 = vcmp.eq.f32.partialorder %v2033_v1, 8.507059e+37  ;;  %v9899_v62 = vld [vmem:[#allocation3 + $0x24] sm:$0xf] }
 0x33c   :  { %v10468_v23 = vpop.eup %10467  ;;  %v8006_v24 = vmul.f32 -1.442695, %v1977_v40  ;;  %v8051_v40 = vld [vmem:[#allocation3 + $0x58] sm:$0xf0] }
 0x33d   :  { %v10470_v49 = vpop.eup %10469  ;;  %v11634_v52 = vadd.f32 1.0, %v10468_v23 }
 0x33e   :  { %v11636_v48 = vpop.eup %10471  ;;  %v11639_v32 = vadd.f32 1.0, %v10470_v49  ;;  %v9904_v49 = vld [vmem:[#allocation3 + $0x4c] sm:$0xf] }
 0x33f   :  { %v11641_v50 = vpop.eup %10473  ;;  %v1987_v13 = vmul.f32 %v11636_v48, %v11623_v31  ;;  %10477 = vrcp.f32 %v11634_v52  ;;  %vm1992_vm1 = vweird.f32 %v11636_v48  ;;  %v9903_v31 = vld [vmem:[#allocation3 + $0x44] sm:$0xf] }
 0x340   :  { %v10476_v14 = vpop.eup %10475  ;;  %v2025_v58 = vmul.f32 %v11641_v50, %v11625_v38  ;;  %10479 = vtanh.f32 %v1972_v57  ;;  %vm2030_vm2 = vweird.f32 %v11641_v50  ;;  %vm11671_vm5 = vmor %vm1991_vm4, %vm1992_vm1  ;;  %v8066_v38 = vor.u32 %v9910_v8, %v8065_v19  ;;  %v8049_v57 = vld [vmem:[#allocation3 + $0x48] sm:$0xf] }
 0x341   :  { %v1988_v18 = vsub.f32 1.0, %v1987_v13  ;;  %10481 = vrcp.f32 %v11639_v32  ;;  %v11657_v2 = vadd.f32 1.0, %v10476_v14  ;;  %vm11681_vm7 = vmor %vm2029_vm3, %vm2030_vm2  ;;  %v2010_v23 = vand.u32 2147483647, %v11639_v32 }
 0x342   :  { %v2026_v34 = vsub.f32 1.0, %v2025_v58  ;;  %2350 = vmatpush.bf16.msra.mxu2 %v8066_v38  ;;  %vm2006_vm8 = vweird.f32 %v11639_v32  ;;  %v8046_v14 = vor.u32 %v9903_v31, %v8043_v6  ;;  %v8033_v58 = vld [vmem:[#allocation3 + $0x28] sm:$0xf]  ;;  %v9895_v6 = vld [vmem:[#allocation3 + $0x4] sm:$0xf]  ;;  %vm2069_vm1 = vweird.f32 %v11634_v52 }
 0x343   :  { %v1989_v45 = vmul.f32 %v11636_v48, %v1988_v18  ;;  %10483 = vrcp.f32 %v11657_v2  ;;  %v2050_v37 = vand.u32 2147483648, %v11657_v2  ;;  %vm2044_vm9 = vweird.f32 %v11657_v2 }
 0x344   :  { %v2027_v59 = vmul.f32 %v11641_v50, %v2026_v34  ;;  %10485 = vpow2.f32 %v8006_v24  ;;  %v2012_v34 = vand.u32 2147483648, %v11639_v32  ;;  %2337 = vmatpush.bf16.msra.mxu1 %v8046_v14  ;;  %v8034_v38 = vor.u32 %v9902_v51, %v8033_v58 }
 0x345   :  { %v11666_v9 = vpop.eup %10477  ;;  %v1990_v39 = vadd.f32 %v11636_v48, %v1989_v45  ;;  %10487 = vtanh.f32 %v1976_v56  ;;  %v8035_v56 = vld [vmem:[#allocation3 + $0x38] sm:$0xf0]  ;;  %v8054_v45 = vor.u32 %v9904_v49, %v8051_v40  ;;  %vm2011_vm13 = vcmp.eq.f32.partialorder %v2010_v23, 8.507059e+37 }
 0x346   :  { %v10480_v60 = vpop.eup %10479  ;;  %v2028_v15 = vadd.f32 %v11641_v50, %v2027_v59  ;;  %v2065_v55 = vmul.f32 %v11666_v9, %v11634_v52  ;;  %v2013_v61 = vor.u32 1.1754944e-38, %v2012_v34  ;;  %v8019_v49 = vld [vmem:[#allocation3 + $0x18] sm:$0xf0]  ;;  %v2075_v14 = vand.u32 2147483648, %v11634_v52 }
 0x347   :  { %v11688_v17 = vpop.eup %10481  ;;  %v1994_v35 = vsel %vm11671_vm5, %v11636_v48, %v1990_v39  ;;  %v8025_v48 = vld [vmem:[#allocation3 + $0x20] sm:$0xf]  ;;  %v9897_v39 = vld [vmem:[#allocation3 + $0xc] sm:$0xf0]  ;;  %2365 = vmatpush.bf16.msra.mxu3 %v8054_v45 }
 0x348   :  { %v1999_v47 = vsel %vm11651_vm0, %v1998_v0, %v1994_v35  ;;  %v2032_v20 = vsel %vm11681_vm7, %v11641_v50, %v2028_v15  ;;  %v2002_v12 = vmul.f32 %v11688_v17, %v11639_v32  ;;  %v8027_v50 = vld [vmem:[#allocation3 + $0x30] sm:$0xf0]  ;;  %v9900_v0 = vld [vmem:[#allocation3 + $0x2c] sm:$0xf]  ;;  %v2066_v8 = vsub.f32 1.0, %v2065_v55 }
 0x349   :  { %v11703_v13 = vpop.eup %10483  ;;  %v2037_v42 = vsel %vm11675_vm6, %v2036_v33, %v2032_v20  ;;  %v2096_v30 = vmul.f32 %v10480_v60, %v1999_v47  ;;  %v8050_v33 = vor.u32 %v9906_v10, %v8049_v57  ;;  %v8026_v16 = vor.u32 %v9901_v63, %v8025_v48  ;;  %v8011_v60 = vld [vmem:[#allocation3 + $0x10] sm:$0xf0]  ;;  %v8017_v35 = vld [vmem:[#allocation3 + $0x8] sm:$0xf]  ;;  %v9898_v55 = vld [vmem:[#allocation3 + $0x14] sm:$0xf0] }
 0x34a   :  { %v2094_v1 = vmul.f32 %v2037_v42, %v11571_v44  ;;  %v2003_v18 = vsub.f32 1.0, %v2002_v12  ;;  %v2040_v24 = vmul.f32 %v11703_v13, %v11657_v2  ;;  %v10486_v19 = vpop.eup %10485  ;;  %vm2007_vm10 = vweird.f32 %v11688_v17  ;;  %v9896_v10 = vld [vmem:[#allocation3 + $0xc] sm:$0xf] }
 0x34b   :  { %v10488_v59 = vpop.eup %10487  ;;  %v11716_v3 = vadd.f32 1.0, %v10486_v19  ;;  %2351 = vmatpush.bf16.msra.mxu2 %v8050_v33  ;;  %v8030_v4 = vor.u32 %v9899_v62, %v8027_v50  ;;  %v8038_v31 = vor.u32 %v9900_v0, %v8035_v56  ;;  %vm2045_vm11 = vweird.f32 %v11703_v13  ;;  %2324 = vmatpush.bf16.msra.mxu0 %v8026_v16  ;;  %vm2008_vm12 = vmor %vm2006_vm8, %vm2007_vm10 }
 0x34c   :  { %v11712_v36 = vadd.f32 %v2096_v30, %v2094_v1  ;;  %v2041_v43 = vsub.f32 1.0, %v2040_v24  ;;  %v2004_v44 = vmul.f32 %v11688_v17, %v2003_v18  ;;  %v2048_v57 = vand.u32 2147483647, %v11657_v2  ;;  %vm2046_vm14 = vmor %vm2044_vm9, %vm2045_vm11 }
 0x34d   :  { %v2067_v41 = vmul.f32 %v11666_v9, %v2066_v8  ;;  %10489 = vrcp.f32 %v11716_v3  ;;  %2338 = vmatpush.bf16.msra.mxu1 %v8030_v4  ;;  %v8010_v20 = vor.u32 %v9897_v39, %v8009_v54  ;;  %v8014_v12 = vor.u32 %v9895_v6, %v8011_v60  ;;  %2366 = vmatpush.bf16.msra.mxu3 %v8038_v31 }
 0x34e   :  { %v2042_v5 = vmul.f32 %v11703_v13, %v2041_v43  ;;  %v2005_v15 = vadd.f32 %v11688_v17, %v2004_v44  ;;  %v2051_v32 = vor.u32 1.1754944e-38, %v2050_v37  ;;  %v8018_v48 = vor.u32 %v9898_v55, %v8017_v35  ;;  %v9955_v35 = vld [vmem:[#allocation3 + $0xe4] sm:$0xf] }
 0x34f   :  { %2352 = vmatpush.bf16.msra.mxu2 %v8034_v38  ;;  %vm2049_vm15 = vcmp.eq.f32.partialorder %v2048_v57, 8.507059e+37  ;;  %2325 = vmatpush.bf16.msra.mxu0 %v8010_v20  ;;  %v8022_v62 = vor.u32 %v9896_v10, %v8019_v49  ;;  %10491 = vtanh.f32 %v11712_v36  ;;  %v2068_v30 = vadd.f32 %v11666_v9, %v2067_v41  ;;  %v9957_v57 = vld [vmem:[#allocation3 + $0xec] sm:$0xf0]  ;;  %v8257_v41 = vld [vmem:[#allocation3 + $0xf0] sm:$0xf0] }
 0x350   :  { %v2009_v40 = vsel %vm2008_vm12, %v11688_v17, %v2005_v15  ;;  %v2043_v47 = vadd.f32 %v11703_v13, %v2042_v5  ;;  %vm2070_vm0 = vweird.f32 %v11666_v9  ;;  %v2076_v18 = vor.u32 1.1754944e-38, %v2075_v14  ;;  %v8255_v15 = vld [vmem:[#allocation3 + $0xe0] sm:$0xf]  ;;  %v9958_v10 = vld [vmem:[#allocation3 + $0xf4] sm:$0xf0] }
 0x351   :  { %v2014_v23 = vsel %vm2011_vm13, %v2013_v61, %v2009_v40  ;;  %2339 = vmatpush.bf16.msra.mxu1 %v8014_v12  ;;  %2367 = vmatpush.bf16.msra.mxu3 %v8022_v62  ;;  %vm2071_vm2 = vmor %vm2069_vm1, %vm2070_vm0  ;;  %v2090_v24 = vand.u32 2147483648, %v11716_v3  ;;  %v2088_v0 = vand.u32 2147483647, %v11716_v3  ;;  %vm2084_vm5 = vweird.f32 %v11716_v3  ;;  %v8263_v61 = vld [vmem:[#allocation3 + $0xe8] sm:$0xf] }
 0x352   :  { %v2047_v63 = vsel %vm2046_vm14, %v11703_v13, %v2043_v47  ;;  %v2097_v17 = vmul.f32 %v10488_v59, %v2014_v23  ;;  %v2073_v13 = vand.u32 2147483647, %v11634_v52  ;;  %v2072_v51 = vsel %vm2071_vm2, %v11666_v9, %v2068_v30  ;;  %v9956_v12 = vld [vmem:[#allocation3 + $0xec] sm:$0xf]  ;;  %v9953_v23 = vld [vmem:[#allocation3 + $0xcc] sm:$0xf0] }
 0x353   :  { %v2052_v42 = vsel %vm2049_vm15, %v2051_v32, %v2047_v63  ;;  %v10490_v37 = vpop.eup %10489  ;;  %2353 = vmatpush.bf16.msra.mxu2 %v8018_v48  ;;  %v2091_v8 = vor.u32 1.1754944e-38, %v2090_v24  ;;  %vm2089_vm7 = vcmp.eq.f32.partialorder %v2088_v0, 8.507059e+37  ;;  %v529_v38 = vadd.f32 %v11139_v22, %v11347_v7  ;;  %v8239_v32 = vld [vmem:[#allocation3 + $0xc0] sm:$0xf]  ;;  %v9951_v48 = vld [vmem:[#allocation3 + $0xc4] sm:$0xf] }
 0x354   :  { %v2095_v2 = vmul.f32 %v2052_v42, %v11605_v25  ;;  %v2080_v58 = vmul.f32 %v10490_v37, %v11716_v3  ;;  %vm2074_vm3 = vcmp.eq.f32.partialorder %v2073_v13, 8.507059e+37  ;;  %vm2085_vm4 = vweird.f32 %v10490_v37  ;;  %v8241_v62 = vld [vmem:[#allocation3 + $0xd0] sm:$0xf0]  ;;  %v8247_v42 = vld [vmem:[#allocation3 + $0xc8] sm:$0xf] }
 0x355   :  { %v10492_v25 = vpop.eup %10491  ;;  %v2077_v52 = vsel %vm2074_vm3, %v2076_v18, %v2072_v51  ;;  %vm2086_vm6 = vmor %vm2084_vm5, %vm2085_vm4  ;;  %v440_v3 = vadd.f32 %v11137_v21, %v11344_v53  ;;  %v8256_v55 = vor.u32 %v9957_v57, %v8255_v15  ;;  %v8260_v47 = vor.u32 %v9955_v35, %v8257_v41  ;;  %v8265_v21 = vld [vmem:[#allocation3 + $0xf8] sm:$0xf0]  ;;  %v9954_v30 = vld [vmem:[#allocation3 + $0xd4] sm:$0xf0] }
 0x356   :  { %v11746_v50 = vadd.f32 %v2097_v17, %v2095_v2  ;;  %v2081_v1 = vsub.f32 1.0, %v2080_v58  ;;  %v2102_v19 = vmul.f32 %v10492_v25, %v2077_v52  ;;  %v8264_v20 = vor.u32 %v9958_v10, %v8263_v61  ;;  %v9952_v51 = vld [vmem:[#allocation3 + $0xcc] sm:$0xf]  ;;  %v8223_v52 = vld [vmem:[#allocation3 + $0xa0] sm:$0xf] }
 0x357   :  { %2722 = vmatpush.bf16.msrb.mxu0 %v8256_v55  ;;  %2736 = vmatpush.bf16.msrb.mxu1 %v8260_v47  ;;  %v8268_v22 = vor.u32 %v9956_v12, %v8265_v21  ;;  %v707_v63 = vadd.f32 %v11143_v27, %v11356_v11  ;;  %v8240_v17 = vor.u32 %v9953_v23, %v8239_v32  ;;  %v9943_v15 = vld [vmem:[#allocation3 + $0x84] sm:$0xf]  ;;  %v8209_v57 = vld [vmem:[#allocation3 + $0x90] sm:$0xf0]  ;;  %v8215_v41 = vld [vmem:[#allocation3 + $0x88] sm:$0xf] }
 0x358   :  { %10493 = vtanh.f32 %v11746_v50  ;;  %v2082_v34 = vmul.f32 %v10490_v37, %v2081_v1  ;;  %v2104_v59 = vpack.c.bf16 %v2102_v19, %v2102_v19  ;;  %2750 = vmatpush.bf16.msrb.mxu2 %v8264_v20  ;;  %v442_v2 = vadd.f32 %v11145_v28, %v11344_v53  ;;  %v8249_v1 = vld [vmem:[#allocation3 + $0xd8] sm:$0xf0]  ;;  %v9949_v28 = vld [vmem:[#allocation3 + $0xac] sm:$0xf0]  ;;  %v9946_v61 = vld [vmem:[#allocation3 + $0x94] sm:$0xf0] }
 0x359   :  { %2764 = vmatpush.bf16.msrb.mxu3 %v8268_v22  ;;  %v8244_v13 = vor.u32 %v9951_v48, %v8241_v62  ;;  %v8248_v58 = vor.u32 %v9954_v30, %v8247_v42  ;;  %v8252_v24 = vor.u32 %v9952_v51, %v8249_v1  ;;  %v618_v35 = vadd.f32 %v11141_v26, %v11367_v46  ;;  %v13625_v10 = vld [vmem:[#allocation26_spill] sm:$0xff]  ;;  %v8217_v12 = vld [vmem:[#allocation3 + $0x98] sm:$0xf0]  ;;  %v9939_v26 = vld [vmem:[#allocation3 + $0x64] sm:$0xf] }
 0x35a   :  { %v2083_v56 = vadd.f32 %v10490_v37, %v2082_v34  ;;  %v2154_v54 = vunpack.c.l.b16 %v2104_v59  ;;  %v9944_v20 = vld [vmem:[#allocation3 + $0x8c] sm:$0xf]  ;;  %v8212_v32 = vor.u32 %v9943_v15, %v8209_v57  ;;  %v8216_v23 = vor.u32 %v9946_v61, %v8215_v41 }
 0x35b   :  { %2723 = vmatpush.bf16.msrb.mxu0 %v8240_v17  ;;  %2737 = vmatpush.bf16.msrb.mxu1 %v8244_v13  ;;  %v8220_v48 = vor.u32 %v9944_v20, %v8217_v12  ;;  %v9941_v17 = vld [vmem:[#allocation3 + $0x6c] sm:$0xf0] }
 0x35c   :  { %v2087_v33 = vsel %vm2086_vm6, %v10490_v37, %v2083_v56  ;;  %v531_v37 = vadd.f32 %v11147_v29, %v11347_v7  ;;  %2751 = vmatpush.bf16.msrb.mxu2 %v8248_v58  ;;  %v9947_v56 = vld [vmem:[#allocation3 + $0xa4] sm:$0xf]  ;;  %v8224_v29 = vor.u32 %v9949_v28, %v8223_v52  ;;  %v8169_v28 = vld [vmem:[#allocation3 + $0x38] sm:$0xf0] }
 0x35d   :  { %v2092_v45 = vsel %vm2089_vm7, %v2091_v8, %v2087_v33  ;;  %v8225_v8 = vld [vmem:[#allocation3 + $0xb0] sm:$0xf0]  ;;  %2765 = vmatpush.bf16.msrb.mxu3 %v8252_v24 }
 0x35e   :  { %v10494_v9 = vpop.eup %10493 }
 0x35f   :  { %v2103_v16 = vmul.f32 %v10494_v9, %v2092_v45  ;;  %v8231_v9 = vld [vmem:[#allocation3 + $0xa8] sm:$0xf]  ;;  %2724 = vmatpush.bf16.msrb.mxu0 %v8224_v29 }
 0x361   :  { %v2105_v43 = vpack.c.bf16 %v2103_v16, %v2103_v16  ;;  %v10324_v44 = vpack.c.bf16 %v2103_v16, %v2102_v19 }
 0x363   :  { %10325 = vst [vmem:[#allocation13 + $0x10] sm:$0xff] %v10324_v44   ;;  %v2155_v39 = vunpack.c.l.b16 %v2105_v43  ;;  %v8228_v43 = vor.u32 %v9947_v56, %v8225_v8  ;;  %v9950_v44 = vld [vmem:[#allocation3 + $0xb4] sm:$0xf0] }
 0x365   :  { %v2156_v4 = vpack.c.b16 %v2155_v39, %v2154_v54  ;;  %2738 = vmatpush.bf16.msrb.mxu1 %v8228_v43 }
 0x367   :  { %2326 = vmatmul.bf16.vlgmr.msra.gmra.mxu0 %v2156_v4  ;;  %2340 = vmatmul.bf16.vlgmr.msra.gmra.mxu1 %v2156_v4 }
 0x368   :  { %2354 = vmatmul.bf16.vlgmr.msra.gmra.mxu2 %v2156_v4  ;;  %2368 = vmatmul.bf16.vlgmr.msra.gmra.mxu3 %v2156_v4  ;;  %v8232_v4 = vor.u32 %v9950_v44, %v8231_v9 }
 0x369   :  { %2739 = vmatpush.bf16.msrb.mxu1 %v8212_v32  ;;  %v9938_v32 = vld [vmem:[#allocation3 + $0x54] sm:$0xf0] }
 0x36a   :  { %2752 = vmatpush.bf16.msrb.mxu2 %v8232_v4 }
 0x36e   :  { %2753 = vmatpush.bf16.msrb.mxu2 %v8216_v23  ;;  %v9936_v23 = vld [vmem:[#allocation3 + $0x4c] sm:$0xf] }
 0x3e4   :  { %v2327_v31 = vpop.f32.mrf.mxu0  ;;  %v2341_v6 = vpop.f32.mrf.mxu1 }
 0x3e5   :  { %v2374_v60 = vadd.f32 %v2327_v31, %v440_v3  ;;  %v2375_v5 = vadd.f32 %v2341_v6, %v529_v38  ;;  %v9948_v3 = vld [vmem:[#allocation3 + $0xac] sm:$0xf]  ;;  %v8233_v38 = vld [vmem:[#allocation3 + $0xb8] sm:$0xf0] }
 0x3e6   :  { %v8236_v6 = vor.u32 %v9948_v3, %v8233_v38  ;;  %v8201_v3 = vld [vmem:[#allocation3 + $0x78] sm:$0xf0]  ;;  %v8175_v38 = vld [vmem:[#allocation3 + $0x40] sm:$0xf] }
 0x3e7   :  { %v8135_v49 = vmul.f32 -1.442695, %v2374_v60  ;;  %v8137_v40 = vmul.f32 -1.442695, %v2375_v5  ;;  %v8207_v60 = vld [vmem:[#allocation3 + $0x80] sm:$0xf] }
 0x3e8   :  { %v9945_v5 = vld [vmem:[#allocation3 + $0x8c] sm:$0xf0]  ;;  %2766 = vmatpush.bf16.msrb.mxu3 %v8236_v6 }
 0x3e9   :  { %10495 = vpow2.f32 %v8135_v49  ;;  %v709_v49 = vadd.f32 %v13625_v10, %v11356_v11  ;;  %v8208_v47 = vor.u32 %v9945_v5, %v8207_v60  ;;  %v9937_v6 = vld [vmem:[#allocation3 + $0x4c] sm:$0xf0] }
 0x3ea   :  { %10497 = vpow2.f32 %v8137_v40 }
 0x3eb   :  { %v2369_v14 = vpop.f32.mrf.mxu3  ;;  %v2355_v45 = vpop.f32.mrf.mxu2  ;;  %2725 = vmatpush.bf16.msrb.mxu0 %v8208_v47 }
 0x3ec   :  { %v2377_v25 = vadd.f32 %v2369_v14, %v707_v63  ;;  %v2329_v18 = vpop.f32.mrf.mxu0  ;;  %v2343_v27 = vpop.f32.mrf.mxu1  ;;  %v2376_v22 = vadd.f32 %v2355_v45, %v618_v35  ;;  %v8191_v63 = vld [vmem:[#allocation3 + $0x60] sm:$0xf]  ;;  %2767 = vmatpush.bf16.msrb.mxu3 %v8220_v48  ;;  %v8177_v35 = vld [vmem:[#allocation3 + $0x50] sm:$0xf0]  ;;  %v8185_v48 = vld [vmem:[#allocation3 + $0x58] sm:$0xf0] }
 0x3ed   :  { %v2378_v34 = vadd.f32 %v2329_v18, %v442_v2  ;;  %v2379_v0 = vadd.f32 %v2343_v27, %v531_v37  ;;  %v8192_v2 = vor.u32 %v9941_v17, %v8191_v63  ;;  %v8193_v37 = vld [vmem:[#allocation3 + $0x70] sm:$0xf0] }
 0x3ee   :  { %v8139_v19 = vmul.f32 -1.442695, %v2377_v25  ;;  %v8196_v51 = vor.u32 %v9939_v26, %v8193_v37  ;;  %v13626_v25 = vld [vmem:[#allocation25_spill] sm:$0xff] }
 0x3ef   :  { %v10496_v33 = vpop.eup %10495  ;;  %v8136_v16 = vmul.f32 -1.442695, %v2378_v34  ;;  %v8138_v59 = vmul.f32 -1.442695, %v2379_v0  ;;  %v620_v18 = vadd.f32 %v13626_v25, %v11367_v46  ;;  %2726 = vmatpush.bf16.msrb.mxu0 %v8192_v2  ;;  %v9931_v2 = vld [vmem:[#allocation3 + $0x24] sm:$0xf] }
 0x3f0   :  { %v10498_v54 = vpop.eup %10497  ;;  %v11764_v39 = vadd.f32 1.0, %v10496_v33  ;;  %10499 = vpow2.f32 %v8139_v19  ;;  %2740 = vmatpush.bf16.msrb.mxu1 %v8196_v51  ;;  %v8167_v25 = vld [vmem:[#allocation3 + $0x28] sm:$0xf] }
 0x3f1   :  { %v11766_v31 = vadd.f32 1.0, %v10498_v54  ;;  %10501 = vpow2.f32 %v8136_v16  ;;  %v8199_v16 = vld [vmem:[#allocation3 + $0x68] sm:$0xf]  ;;  %v9940_v54 = vld [vmem:[#allocation3 + $0x6c] sm:$0xf] }
 0x3f2   :  { %10503 = vrcp.f32 %v11764_v39  ;;  %v2399_v40 = vand.u32 2147483647, %v11764_v39  ;;  %v2401_v13 = vand.u32 2147483648, %v11764_v39  ;;  %vm2395_vm12 = vweird.f32 %v11764_v39 }
 0x3f3   :  { %10505 = vrcp.f32 %v11766_v31  ;;  %v2371_v55 = vpop.f32.mrf.mxu3  ;;  %v2439_v24 = vand.u32 2147483648, %v11766_v31  ;;  %v2357_v34 = vpop.f32.mrf.mxu2  ;;  %v2437_v56 = vand.u32 2147483647, %v11766_v31  ;;  %vm2433_vm11 = vweird.f32 %v11766_v31 }
 0x3f4   :  { %10507 = vpow2.f32 %v8138_v59  ;;  %v2381_v30 = vadd.f32 %v2371_v55, %v709_v49  ;;  %vm11792_vm8 = vcmp.eq.f32.partialorder %v2399_v40, 8.507059e+37  ;;  %v2402_v33 = vor.u32 1.1754944e-38, %v2401_v13  ;;  %v9942_v59 = vld [vmem:[#allocation3 + $0x74] sm:$0xf0]  ;;  %v8183_v40 = vld [vmem:[#allocation3 + $0x48] sm:$0xf] }
 0x3f5   :  { %v2380_v45 = vadd.f32 %v2357_v34, %v620_v18  ;;  %v2440_v43 = vor.u32 1.1754944e-38, %v2439_v24  ;;  %vm11816_vm14 = vcmp.eq.f32.partialorder %v2437_v56, 8.507059e+37  ;;  %v9934_v18 = vld [vmem:[#allocation3 + $0x34] sm:$0xf0] }
 0x3f6   :  { %v10500_v21 = vpop.eup %10499  ;;  %v8140_v8 = vmul.f32 -1.442695, %v2381_v30  ;;  %v9933_v30 = vld [vmem:[#allocation3 + $0x2c] sm:$0xf0] }
 0x3f7   :  { %v10502_v62 = vpop.eup %10501  ;;  %v11775_v42 = vadd.f32 1.0, %v10500_v21  ;;  %v8204_v21 = vor.u32 %v9940_v54, %v8201_v3  ;;  %v8168_v3 = vor.u32 %v9934_v18, %v8167_v25 }
 0x3f8   :  { %v11777_v14 = vpop.eup %10503  ;;  %v11780_v58 = vadd.f32 1.0, %v10502_v62  ;;  %v8159_v62 = vld [vmem:[#allocation3 + $0x20] sm:$0xf] }
 0x3f9   :  { %v11782_v1 = vpop.eup %10505  ;;  %v2391_v27 = vmul.f32 %v11777_v14, %v11764_v39  ;;  %10509 = vrcp.f32 %v11775_v42  ;;  %vm2396_vm9 = vweird.f32 %v11777_v14  ;;  %v9935_v39 = vld [vmem:[#allocation3 + $0x44] sm:$0xf]  ;;  %2768 = vmatpush.bf16.msrb.mxu3 %v8204_v21 }
 0x3fa   :  { %v10508_v0 = vpop.eup %10507  ;;  %v2429_v52 = vmul.f32 %v11782_v1, %v11766_v31  ;;  %10511 = vtanh.f32 %v2376_v22  ;;  %vm2434_vm10 = vweird.f32 %v11782_v1  ;;  %vm11812_vm13 = vmor %vm2395_vm12, %vm2396_vm9  ;;  %v8200_v31 = vor.u32 %v9942_v59, %v8199_v16 }
 0x3fb   :  { %v2392_v19 = vsub.f32 1.0, %v2391_v27  ;;  %10513 = vrcp.f32 %v11780_v58  ;;  %v11798_v29 = vadd.f32 1.0, %v10508_v0  ;;  %vm11822_vm15 = vmor %vm2433_vm11, %vm2434_vm10  ;;  %v2414_v49 = vand.u32 2147483647, %v11780_v58 }
 0x3fc   :  { %v2430_v9 = vsub.f32 1.0, %v2429_v52  ;;  %2754 = vmatpush.bf16.msrb.mxu2 %v8200_v31  ;;  %v8176_v22 = vor.u32 %v9937_v6, %v8175_v38  ;;  %vm2410_vm0 = vweird.f32 %v11780_v58  ;;  %v8180_v51 = vor.u32 %v9935_v39, %v8177_v35  ;;  %v9932_v52 = vld [vmem:[#allocation3 + $0x2c] sm:$0xf]  ;;  %v9927_v6 = vld [vmem:[#allocation3 + $0x4] sm:$0xf] }
 0x3fd   :  { %v2393_v44 = vmul.f32 %v11777_v14, %v2392_v19  ;;  %10515 = vrcp.f32 %v11798_v29  ;;  %v2454_v10 = vand.u32 2147483648, %v11798_v29  ;;  %vm2448_vm1 = vweird.f32 %v11798_v29  ;;  %v8151_v39 = vld [vmem:[#allocation3 + $0x8] sm:$0xf]  ;;  %v9930_v35 = vld [vmem:[#allocation3 + $0x14] sm:$0xf0] }
 0x3fe   :  { %v2431_v4 = vmul.f32 %v11782_v1, %v2430_v9  ;;  %10517 = vpow2.f32 %v8140_v8  ;;  %2727 = vmatpush.bf16.msrb.mxu0 %v8176_v22  ;;  %v2416_v0 = vand.u32 2147483648, %v11780_v58  ;;  %2741 = vmatpush.bf16.msrb.mxu1 %v8180_v51  ;;  %v8184_v8 = vor.u32 %v9938_v32, %v8183_v40  ;;  %v8153_v40 = vld [vmem:[#allocation3 + $0x18] sm:$0xf0] }
 0x3ff   :  { %v11807_v60 = vpop.eup %10509  ;;  %v2394_v5 = vadd.f32 %v11777_v14, %v2393_v44  ;;  %10519 = vtanh.f32 %v2380_v45  ;;  %v8188_v9 = vor.u32 %v9936_v23, %v8185_v48  ;;  %v9929_v44 = vld [vmem:[#allocation3 + $0xc] sm:$0xf0]  ;;  %v8172_v38 = vor.u32 %v9932_v52, %v8169_v28 }
 0x400   :  { %v10512_v55 = vpop.eup %10511  ;;  %v2432_v61 = vadd.f32 %v11782_v1, %v2431_v4  ;;  %v2469_v12 = vmul.f32 %v11807_v60, %v11775_v42  ;;  %2755 = vmatpush.bf16.msrb.mxu2 %v8184_v8  ;;  %v2452_v31 = vand.u32 2147483647, %v11798_v29  ;;  %vm2415_vm5 = vcmp.eq.f32.partialorder %v2414_v49, 8.507059e+37 }
 0x401   :  { %v11829_v47 = vpop.eup %10513  ;;  %v2398_v20 = vsel %vm11812_vm13, %v11777_v14, %v2394_v5  ;;  %2769 = vmatpush.bf16.msrb.mxu3 %v8188_v9  ;;  %v8145_v5 = vld [vmem:[#allocation3 + $0x10] sm:$0xf0]  ;;  %v2417_v41 = vor.u32 1.1754944e-38, %v2416_v0  ;;  %v8152_v32 = vor.u32 %v9930_v35, %v8151_v39  ;;  %vm2473_vm9 = vweird.f32 %v11775_v42  ;;  %v9990_v39 = vld [vmem:[#allocation3 + $0xf4] sm:$0xf0] }
 0x402   :  { %v2403_v63 = vsel %vm11792_vm8, %v2402_v33, %v2398_v20  ;;  %v2436_v17 = vsel %vm11822_vm15, %v11782_v1, %v2432_v61  ;;  %v2406_v26 = vmul.f32 %v11829_v47, %v11780_v58  ;;  %v8161_v1 = vld [vmem:[#allocation3 + $0x30] sm:$0xf0]  ;;  %v2470_v19 = vsub.f32 1.0, %v2469_v12  ;;  %v9928_v61 = vld [vmem:[#allocation3 + $0xc] sm:$0xf] }
 0x403   :  { %v11844_v37 = vpop.eup %10515  ;;  %v2441_v14 = vsel %vm11816_vm14, %v2440_v43, %v2436_v17  ;;  %v2500_v13 = vmul.f32 %v10512_v55, %v2403_v63  ;;  %v8160_v33 = vor.u32 %v9933_v30, %v8159_v62  ;;  %vm2411_vm2 = vweird.f32 %v11829_v47  ;;  %v8143_v43 = vld [vmem:[#allocation3] sm:$0xf] }
 0x404   :  { %v2498_v27 = vmul.f32 %v2441_v14, %v11712_v36  ;;  %v2407_v24 = vsub.f32 1.0, %v2406_v26  ;;  %v2444_v34 = vmul.f32 %v11844_v37, %v11798_v29  ;;  %v10518_v56 = vpop.eup %10517  ;;  %v8164_v4 = vor.u32 %v9931_v2, %v8161_v1  ;;  %vm2412_vm4 = vmor %vm2410_vm0, %vm2411_vm2  ;;  %2756 = vmatpush.bf16.msrb.mxu2 %v8168_v3 }
 0x405   :  { %v10520_v45 = vpop.eup %10519  ;;  %v11857_v54 = vadd.f32 1.0, %v10518_v56  ;;  %vm2449_vm3 = vweird.f32 %v11844_v37  ;;  %2728 = vmatpush.bf16.msrb.mxu0 %v8160_v33  ;;  %v2471_v55 = vmul.f32 %v11807_v60, %v2470_v19  ;;  %v8144_v21 = vor.u32 %v9929_v44, %v8143_v43  ;;  %2770 = vmatpush.bf16.msrb.mxu3 %v8172_v38  ;;  %v8389_v38 = vld [vmem:[#allocation3 + $0xe0] sm:$0xf] }
 0x406   :  { %v11853_v16 = vadd.f32 %v2500_v13, %v2498_v27  ;;  %v2445_v59 = vsub.f32 1.0, %v2444_v34  ;;  %v2408_v36 = vmul.f32 %v11829_v47, %v2407_v24  ;;  %2742 = vmatpush.bf16.msrb.mxu1 %v8164_v4  ;;  %v8148_v22 = vor.u32 %v9927_v6, %v8145_v5  ;;  %vm2450_vm6 = vmor %vm2448_vm1, %vm2449_vm3  ;;  %v9989_v6 = vld [vmem:[#allocation3 + $0xec] sm:$0xf0]  ;;  %v9987_v5 = vld [vmem:[#allocation3 + $0xe4] sm:$0xf] }
 0x407   :  { %10521 = vrcp.f32 %v11857_v54  ;;  %v2455_v58 = vor.u32 1.1754944e-38, %v2454_v10  ;;  %vm2453_vm7 = vcmp.eq.f32.partialorder %v2452_v31, 8.507059e+37  ;;  %v8156_v48 = vor.u32 %v9928_v61, %v8153_v40  ;;  %v8397_v31 = vld [vmem:[#allocation3 + $0xe8] sm:$0xf]  ;;  %v9988_v40 = vld [vmem:[#allocation3 + $0xec] sm:$0xf] }
 0x408   :  { %v2446_v15 = vmul.f32 %v11844_v37, %v2445_v59  ;;  %v2409_v57 = vadd.f32 %v11829_v47, %v2408_v36  ;;  %10523 = vtanh.f32 %v11853_v16  ;;  %v2472_v17 = vadd.f32 %v11807_v60, %v2471_v55  ;;  %2757 = vmatpush.bf16.msrb.mxu2 %v8152_v32  ;;  %v13636_v36 = vld [vmem:[#allocation28_spill] sm:$0xff] }
 0x409   :  { %2729 = vmatpush.bf16.msrb.mxu0 %v8144_v21  ;;  %vm2474_vm8 = vweird.f32 %v11807_v60  ;;  %v2479_v26 = vand.u32 2147483648, %v11775_v42  ;;  %2771 = vmatpush.bf16.msrb.mxu3 %v8156_v48  ;;  %v2477_v62 = vand.u32 2147483647, %v11775_v42  ;;  %v2494_v51 = vand.u32 2147483648, %v11857_v54  ;;  %v8373_v21 = vld [vmem:[#allocation3 + $0xc0] sm:$0xf] }
 0x40a   :  { %v2413_v20 = vsel %vm2412_vm4, %v11829_v47, %v2409_v57  ;;  %v2447_v12 = vadd.f32 %v11844_v37, %v2446_v15  ;;  %2743 = vmatpush.bf16.msrb.mxu1 %v8148_v22  ;;  %vm2475_vm10 = vmor %vm2473_vm9, %vm2474_vm8  ;;  %v2492_v25 = vand.u32 2147483647, %v11857_v54  ;;  %vm2488_vm13 = vweird.f32 %v11857_v54  ;;  %v8391_v57 = vld [vmem:[#allocation3 + $0xf0] sm:$0xf0]  ;;  %v9985_v22 = vld [vmem:[#allocation3 + $0xcc] sm:$0xf0] }
 0x40b   :  { %v2418_v49 = vsel %vm2415_vm5, %v2417_v41, %v2413_v20  ;;  %v2480_v13 = vor.u32 1.1754944e-38, %v2479_v26  ;;  %vm2478_vm11 = vcmp.eq.f32.partialorder %v2477_v62, 8.507059e+37  ;;  %v2495_v24 = vor.u32 1.1754944e-38, %v2494_v51  ;;  %v8399_v20 = vld [vmem:[#allocation3 + $0xf8] sm:$0xf0] }
 0x40c   :  { %v2451_v23 = vsel %vm2450_vm6, %v11844_v37, %v2447_v12  ;;  %v2501_v47 = vmul.f32 %v10520_v45, %v2418_v49  ;;  %v2476_v37 = vsel %vm2475_vm10, %v11807_v60, %v2472_v17  ;;  %vm2493_vm15 = vcmp.eq.f32.partialorder %v2492_v25, 8.507059e+37  ;;  %v13635_v45 = vld [vmem:[#allocation27_spill] sm:$0xff]  ;;  %v13637_v49 = vld [vmem:[#allocation30_spill] sm:$0xff]  ;;  %v8381_v48 = vld [vmem:[#allocation3 + $0xc8] sm:$0xf] }
 0x40d   :  { %v2456_v63 = vsel %vm2453_vm7, %v2455_v58, %v2451_v23  ;;  %v10522_v10 = vpop.eup %10521  ;;  %v2481_v42 = vsel %vm2478_vm11, %v2480_v13, %v2476_v37  ;;  %v445_v59 = vadd.f32 %v13635_v45, %v11344_v53  ;;  %v534_v43 = vadd.f32 %v13636_v36, %v11347_v7  ;;  %v9983_v58 = vld [vmem:[#allocation3 + $0xc4] sm:$0xf]  ;;  %v13638_v17 = vld [vmem:[#allocation31_spill] sm:$0xff] }
 0x40e   :  { %v2499_v29 = vmul.f32 %v2456_v63, %v11746_v50  ;;  %v2484_v2 = vmul.f32 %v10522_v10, %v11857_v54  ;;  %v10524_v50 = vpop.eup %10523  ;;  %vm2489_vm12 = vweird.f32 %v10522_v10  ;;  %v8390_v15 = vor.u32 %v9989_v6, %v8389_v38  ;;  %v9986_v63 = vld [vmem:[#allocation3 + $0xd4] sm:$0xf0]  ;;  %v8341_v38 = vld [vmem:[#allocation3 + $0x80] sm:$0xf]  ;;  %v9977_v6 = vld [vmem:[#allocation3 + $0x8c] sm:$0xf0] }
 0x40f   :  { %v2506_v27 = vmul.f32 %v10524_v50, %v2481_v42  ;;  %vm2490_vm14 = vmor %vm2488_vm13, %vm2489_vm12  ;;  %v8394_v41 = vor.u32 %v9987_v5, %v8391_v57  ;;  %v8398_v61 = vor.u32 %v9990_v39, %v8397_v31  ;;  %v8402_v12 = vor.u32 %v9988_v40, %v8399_v20  ;;  %v8383_v50 = vld [vmem:[#allocation3 + $0xd8] sm:$0xf0]  ;;  %v9982_v45 = vld [vmem:[#allocation3 + $0xb4] sm:$0xf0] }
 0x410   :  { %v11887_v30 = vadd.f32 %v2501_v47, %v2499_v29  ;;  %v2485_v14 = vsub.f32 1.0, %v2484_v2  ;;  %3126 = vmatpush.bf16.msra.mxu0 %v8390_v15  ;;  %v712_v32 = vadd.f32 %v13637_v49, %v11356_v11  ;;  %v8374_v23 = vor.u32 %v9985_v22, %v8373_v21  ;;  %v8375_v47 = vld [vmem:[#allocation3 + $0xd0] sm:$0xf0]  ;;  %v9975_v5 = vld [vmem:[#allocation3 + $0x84] sm:$0xf] }
 0x411   :  { %v2508_v28 = vpack.c.bf16 %v2506_v27, %v2506_v27  ;;  %3140 = vmatpush.bf16.msra.mxu1 %v8394_v41  ;;  %3154 = vmatpush.bf16.msra.mxu2 %v8398_v61  ;;  %v447_v29 = vadd.f32 %v13638_v17, %v11344_v53  ;;  %v8378_v2 = vor.u32 %v9983_v58, %v8375_v47  ;;  %v8343_v15 = vld [vmem:[#allocation3 + $0x90] sm:$0xf0]  ;;  %v13640_v57 = vld [vmem:[#allocation29_spill] sm:$0xff]  ;;  %v13641_v41 = vld [vmem:[#allocation34_spill] sm:$0xff] }
 0x412   :  { %10525 = vtanh.f32 %v11887_v30  ;;  %v2486_v1 = vmul.f32 %v10522_v10, %v2485_v14  ;;  %3168 = vmatpush.bf16.msra.mxu3 %v8402_v12  ;;  %v8382_v37 = vor.u32 %v9986_v63, %v8381_v48  ;;  %v9984_v14 = vld [vmem:[#allocation3 + $0xcc] sm:$0xf]  ;;  %v623_v31 = vadd.f32 %v13640_v57, %v11367_v46  ;;  %v8351_v21 = vld [vmem:[#allocation3 + $0x98] sm:$0xf0]  ;;  %v8325_v47 = vld [vmem:[#allocation3 + $0x60] sm:$0xf] }
 0x413   :  { %v2558_v8 = vunpack.c.l.b16 %v2508_v28  ;;  %v8386_v25 = vor.u32 %v9984_v14, %v8383_v50  ;;  %v8365_v28 = vld [vmem:[#allocation3 + $0xa8] sm:$0xf]  ;;  %v714_v61 = vadd.f32 %v13641_v41, %v11356_v11  ;;  %v8342_v20 = vor.u32 %v9977_v6, %v8341_v38  ;;  %v9976_v12 = vld [vmem:[#allocation3 + $0x8c] sm:$0xf]  ;;  %v9973_v48 = vld [vmem:[#allocation3 + $0x6c] sm:$0xf0] }
 0x414   :  { %v2487_v18 = vadd.f32 %v10522_v10, %v2486_v1  ;;  %3127 = vmatpush.bf16.msra.mxu0 %v8374_v23  ;;  %v8346_v49 = vor.u32 %v9975_v5, %v8343_v15  ;;  %v8354_v23 = vor.u32 %v9976_v12, %v8351_v21  ;;  %v9971_v63 = vld [vmem:[#allocation3 + $0x64] sm:$0xf]  ;;  %v9969_v38 = vld [vmem:[#allocation3 + $0x4c] sm:$0xf0] }
 0x415   :  { %3141 = vmatpush.bf16.msra.mxu1 %v8378_v2  ;;  %3155 = vmatpush.bf16.msra.mxu2 %v8382_v37 }
 0x416   :  { %v2491_v34 = vsel %vm2490_vm14, %v10522_v10, %v2487_v18  ;;  %v13639_v10 = vld [vmem:[#allocation32_spill] sm:$0xff]  ;;  %3169 = vmatpush.bf16.msra.mxu3 %v8386_v25 }
 0x417   :  { %v2496_v0 = vsel %vm2493_vm15, %v2495_v24, %v2491_v34  ;;  %v536_v26 = vadd.f32 %v13639_v10, %v11347_v7  ;;  %v9981_v24 = vld [vmem:[#allocation3 + $0xac] sm:$0xf0] }
 0x418   :  { %v10526_v60 = vpop.eup %10525 }
 0x419   :  { %v2507_v52 = vmul.f32 %v10526_v60, %v2496_v0  ;;  %v9979_v60 = vld [vmem:[#allocation3 + $0xa4] sm:$0xf] }
 0x41b   :  { %v2509_v56 = vpack.c.bf16 %v2507_v52, %v2507_v52  ;;  %v10329_v19 = vpack.c.bf16 %v2507_v52, %v2506_v27  ;;  %v8357_v27 = vld [vmem:[#allocation3 + $0xa0] sm:$0xf]  ;;  %v8359_v52 = vld [vmem:[#allocation3 + $0xb0] sm:$0xf0] }
 0x41c   :  { %v8358_v0 = vor.u32 %v9981_v24, %v8357_v27 }
 0x41d   :  { %10330 = vst [vmem:[#allocation13 + $0x18] sm:$0xff] %v10329_v19   ;;  %v2559_v9 = vunpack.c.l.b16 %v2509_v56 }
 0x41e   :  { %3128 = vmatpush.bf16.msra.mxu0 %v8358_v0 }
 0x41f   :  { %v2560_v33 = vpack.c.b16 %v2559_v9, %v2558_v8 }
 0x421   :  { %2730 = vmatmul.bf16.vlgmr.msrb.gmra.mxu0 %v2560_v33  ;;  %2744 = vmatmul.bf16.vlgmr.msrb.gmra.mxu1 %v2560_v33 }
 0x422   :  { %2758 = vmatmul.bf16.vlgmr.msrb.gmra.mxu2 %v2560_v33  ;;  %2772 = vmatmul.bf16.vlgmr.msrb.gmra.mxu3 %v2560_v33  ;;  %v8362_v33 = vor.u32 %v9979_v60, %v8359_v52  ;;  %v8303_v60 = vld [vmem:[#allocation3 + $0x38] sm:$0xf0] }
 0x423   :  { %3129 = vmatpush.bf16.msra.mxu0 %v8342_v20 }
 0x424   :  { %3142 = vmatpush.bf16.msra.mxu1 %v8362_v33  ;;  %v9974_v33 = vld [vmem:[#allocation3 + $0x74] sm:$0xf0] }
 0x428   :  { %3143 = vmatpush.bf16.msra.mxu1 %v8346_v49  ;;  %v9970_v49 = vld [vmem:[#allocation3 + $0x54] sm:$0xf0] }
 0x49e   :  { %v2731_v44 = vpop.f32.mrf.mxu0  ;;  %v2745_v54 = vpop.f32.mrf.mxu1 }
 0x49f   :  { %v2778_v4 = vadd.f32 %v2731_v44, %v445_v59  ;;  %v2779_v3 = vadd.f32 %v2745_v54, %v534_v43  ;;  %v8366_v43 = vor.u32 %v9982_v45, %v8365_v28  ;;  %v9980_v44 = vld [vmem:[#allocation3 + $0xac] sm:$0xf]  ;;  %v8367_v54 = vld [vmem:[#allocation3 + $0xb8] sm:$0xf0] }
 0x4a1   :  { %v8269_v35 = vmul.f32 -1.442695, %v2778_v4  ;;  %v8271_v55 = vmul.f32 -1.442695, %v2779_v3  ;;  %v8370_v3 = vor.u32 %v9980_v44, %v8367_v54  ;;  %3156 = vmatpush.bf16.msra.mxu2 %v8366_v43  ;;  %v9972_v43 = vld [vmem:[#allocation3 + $0x6c] sm:$0xf] }
 0x4a2   :  { %v8335_v54 = vld [vmem:[#allocation3 + $0x78] sm:$0xf0] }
 0x4a3   :  { %10527 = vpow2.f32 %v8269_v35  ;;  %3170 = vmatpush.bf16.msra.mxu3 %v8370_v3  ;;  %v8349_v35 = vld [vmem:[#allocation3 + $0x88] sm:$0xf]  ;;  %v8309_v3 = vld [vmem:[#allocation3 + $0x40] sm:$0xf] }
 0x4a4   :  { %10529 = vpow2.f32 %v8271_v55  ;;  %v9978_v55 = vld [vmem:[#allocation3 + $0x94] sm:$0xf0] }
 0x4a5   :  { %v2773_v62 = vpop.f32.mrf.mxu3  ;;  %v2759_v19 = vpop.f32.mrf.mxu2 }
 0x4a6   :  { %v2781_v13 = vadd.f32 %v2773_v62, %v712_v32  ;;  %v2733_v51 = vpop.f32.mrf.mxu0  ;;  %v2747_v1 = vpop.f32.mrf.mxu1  ;;  %v2780_v58 = vadd.f32 %v2759_v19, %v623_v31  ;;  %v8350_v32 = vor.u32 %v9978_v55, %v8349_v35  ;;  %v8327_v62 = vld [vmem:[#allocation3 + $0x70] sm:$0xf0] }
 0x4a7   :  { %v2782_v42 = vadd.f32 %v2733_v51, %v447_v29  ;;  %v2783_v18 = vadd.f32 %v2747_v1, %v536_v26  ;;  %v8326_v26 = vor.u32 %v9973_v48, %v8325_v47  ;;  %v8330_v50 = vor.u32 %v9971_v63, %v8327_v62  ;;  %v13642_v51 = vld [vmem:[#allocation33_spill] sm:$0xff]  ;;  %3171 = vmatpush.bf16.msra.mxu3 %v8354_v23  ;;  %v8311_v31 = vld [vmem:[#allocation3 + $0x50] sm:$0xf0]  ;;  %v8319_v23 = vld [vmem:[#allocation3 + $0x58] sm:$0xf0] }
 0x4a8   :  { %v8273_v34 = vmul.f32 -1.442695, %v2781_v13  ;;  %3157 = vmatpush.bf16.msra.mxu2 %v8350_v32  ;;  %v625_v1 = vadd.f32 %v13642_v51, %v11367_v46  ;;  %v9968_v32 = vld [vmem:[#allocation3 + $0x4c] sm:$0xf]  ;;  %v8301_v51 = vld [vmem:[#allocation3 + $0x28] sm:$0xf] }
 0x4a9   :  { %v10528_v56 = vpop.eup %10527  ;;  %v8270_v8 = vmul.f32 -1.442695, %v2782_v42  ;;  %v8272_v9 = vmul.f32 -1.442695, %v2783_v18  ;;  %3130 = vmatpush.bf16.msra.mxu0 %v8326_v26  ;;  %3144 = vmatpush.bf16.msra.mxu1 %v8330_v50  ;;  %v9963_v26 = vld [vmem:[#allocation3 + $0x24] sm:$0xf] }
 0x4aa   :  { %v10530_v59 = vpop.eup %10529  ;;  %v11905_v36 = vadd.f32 1.0, %v10528_v56  ;;  %10531 = vpow2.f32 %v8273_v34 }
 0x4ab   :  { %v11907_v4 = vadd.f32 1.0, %v10530_v59  ;;  %10533 = vpow2.f32 %v8270_v8 }
 0x4ac   :  { %10535 = vrcp.f32 %v11905_v36  ;;  %v2803_v40 = vand.u32 2147483647, %v11905_v36  ;;  %v2805_v37 = vand.u32 2147483648, %v11905_v36  ;;  %vm2799_vm4 = vweird.f32 %v11905_v36 }
 0x4ad   :  { %10537 = vrcp.f32 %v11907_v4  ;;  %v2775_v39 = vpop.f32.mrf.mxu3  ;;  %v2843_v42 = vand.u32 2147483648, %v11907_v4  ;;  %v2761_v18 = vpop.f32.mrf.mxu2  ;;  %v2841_v34 = vand.u32 2147483647, %v11907_v4  ;;  %vm2837_vm3 = vweird.f32 %v11907_v4 }
 0x4ae   :  { %10539 = vpow2.f32 %v8272_v9  ;;  %v2785_v10 = vadd.f32 %v2775_v39, %v714_v61  ;;  %vm11933_vm0 = vcmp.eq.f32.partialorder %v2803_v40, 8.507059e+37  ;;  %v2806_v19 = vor.u32 1.1754944e-38, %v2805_v37  ;;  %v8333_v9 = vld [vmem:[#allocation3 + $0x68] sm:$0xf] }
 0x4af   :  { %v2784_v8 = vadd.f32 %v2761_v18, %v625_v1  ;;  %v2844_v45 = vor.u32 1.1754944e-38, %v2843_v42  ;;  %vm11957_vm6 = vcmp.eq.f32.partialorder %v2841_v34, 8.507059e+37  ;;  %v8317_v40 = vld [vmem:[#allocation3 + $0x48] sm:$0xf]  ;;  %v9966_v1 = vld [vmem:[#allocation3 + $0x34] sm:$0xf0] }
 0x4b0   :  { %v10532_v22 = vpop.eup %10531  ;;  %v8274_v28 = vmul.f32 -1.442695, %v2785_v10  ;;  %v9965_v10 = vld [vmem:[#allocation3 + $0x2c] sm:$0xf0] }
 0x4b1   :  { %v10534_v17 = vpop.eup %10533  ;;  %v11916_v29 = vadd.f32 1.0, %v10532_v22  ;;  %v8338_v22 = vor.u32 %v9972_v43, %v8335_v54  ;;  %v8302_v54 = vor.u32 %v9966_v1, %v8301_v51 }
 0x4b2   :  { %v11918_v2 = vpop.eup %10535  ;;  %v11921_v14 = vadd.f32 1.0, %v10534_v17  ;;  %v8293_v17 = vld [vmem:[#allocation3 + $0x20] sm:$0xf] }
 0x4b3   :  { %v11923_v13 = vpop.eup %10537  ;;  %v2795_v25 = vmul.f32 %v11918_v2, %v11905_v36  ;;  %10541 = vrcp.f32 %v11916_v29  ;;  %vm2800_vm1 = vweird.f32 %v11918_v2  ;;  %v9967_v36 = vld [vmem:[#allocation3 + $0x44] sm:$0xf]  ;;  %3172 = vmatpush.bf16.msra.mxu3 %v8338_v22 }
 0x4b4   :  { %v10540_v27 = vpop.eup %10539  ;;  %v2833_v24 = vmul.f32 %v11923_v13, %v11907_v4  ;;  %10543 = vtanh.f32 %v2780_v58  ;;  %vm2838_vm2 = vweird.f32 %v11923_v13  ;;  %vm11953_vm5 = vmor %vm2799_vm4, %vm2800_vm1  ;;  %v8334_v4 = vor.u32 %v9974_v33, %v8333_v9 }
 0x4b5   :  { %v2796_v0 = vsub.f32 1.0, %v2795_v25  ;;  %10545 = vrcp.f32 %v11921_v14  ;;  %v11939_v52 = vadd.f32 1.0, %v10540_v27  ;;  %vm11963_vm7 = vmor %vm2837_vm3, %vm2838_vm2  ;;  %v2818_v61 = vand.u32 2147483647, %v11921_v14 }
 0x4b6   :  { %v2834_v56 = vsub.f32 1.0, %v2833_v24  ;;  %3158 = vmatpush.bf16.msra.mxu2 %v8334_v4  ;;  %v8310_v58 = vor.u32 %v9969_v38, %v8309_v3  ;;  %vm2814_vm8 = vweird.f32 %v11921_v14  ;;  %v8314_v50 = vor.u32 %v9967_v36, %v8311_v31  ;;  %v9964_v24 = vld [vmem:[#allocation3 + $0x2c] sm:$0xf]  ;;  %v9959_v38 = vld [vmem:[#allocation3 + $0x4] sm:$0xf] }
 0x4b7   :  { %v2797_v59 = vmul.f32 %v11918_v2, %v2796_v0  ;;  %10547 = vrcp.f32 %v11939_v52  ;;  %v2858_v41 = vand.u32 2147483648, %v11939_v52  ;;  %vm2852_vm9 = vweird.f32 %v11939_v52  ;;  %v8285_v36 = vld [vmem:[#allocation3 + $0x8] sm:$0xf]  ;;  %v9962_v31 = vld [vmem:[#allocation3 + $0x14] sm:$0xf0] }
 0x4b8   :  { %v2835_v44 = vmul.f32 %v11923_v13, %v2834_v56  ;;  %10549 = vpow2.f32 %v8274_v28  ;;  %3131 = vmatpush.bf16.msra.mxu0 %v8310_v58  ;;  %v2820_v27 = vand.u32 2147483648, %v11921_v14  ;;  %3145 = vmatpush.bf16.msra.mxu1 %v8314_v50  ;;  %v8318_v28 = vor.u32 %v9970_v49, %v8317_v40  ;;  %v8287_v40 = vld [vmem:[#allocation3 + $0x18] sm:$0xf0] }
 0x4b9   :  { %v11948_v6 = vpop.eup %10541  ;;  %v2798_v5 = vadd.f32 %v11918_v2, %v2797_v59  ;;  %10551 = vtanh.f32 %v2784_v8  ;;  %v8322_v56 = vor.u32 %v9968_v32, %v8319_v23  ;;  %v9961_v59 = vld [vmem:[#allocation3 + $0xc] sm:$0xf0]  ;;  %v8306_v3 = vor.u32 %v9964_v24, %v8303_v60 }
 0x4ba   :  { %v10544_v39 = vpop.eup %10543  ;;  %v2836_v55 = vadd.f32 %v11923_v13, %v2835_v44  ;;  %v2873_v21 = vmul.f32 %v11948_v6, %v11916_v29  ;;  %3159 = vmatpush.bf16.msra.mxu2 %v8318_v28  ;;  %v2856_v4 = vand.u32 2147483647, %v11939_v52  ;;  %vm2819_vm13 = vcmp.eq.f32.partialorder %v2818_v61, 8.507059e+37 }
 0x4bb   :  { %v11970_v20 = vpop.eup %10545  ;;  %v2802_v12 = vsel %vm11953_vm5, %v11918_v2, %v2798_v5  ;;  %3173 = vmatpush.bf16.msra.mxu3 %v8322_v56  ;;  %v8279_v5 = vld [vmem:[#allocation3 + $0x10] sm:$0xf0]  ;;  %v2821_v35 = vor.u32 1.1754944e-38, %v2820_v27  ;;  %v8286_v49 = vor.u32 %v9962_v31, %v8285_v36  ;;  %vm2877_vm1 = vweird.f32 %v11916_v29  ;;  %v10022_v36 = vld [vmem:[#allocation3 + $0xf4] sm:$0xf0] }
 0x4bc   :  { %v2807_v47 = vsel %vm11933_vm0, %v2806_v19, %v2802_v12  ;;  %v2840_v48 = vsel %vm11963_vm7, %v11923_v13, %v2836_v55  ;;  %v2810_v63 = vmul.f32 %v11970_v20, %v11921_v14  ;;  %v8295_v13 = vld [vmem:[#allocation3 + $0x30] sm:$0xf0]  ;;  %v2874_v0 = vsub.f32 1.0, %v2873_v21  ;;  %v9960_v55 = vld [vmem:[#allocation3 + $0xc] sm:$0xf] }
 0x4bd   :  { %v11985_v62 = vpop.eup %10547  ;;  %v2845_v2 = vsel %vm11957_vm6, %v2844_v45, %v2840_v48  ;;  %v2904_v37 = vmul.f32 %v10544_v39, %v2807_v47  ;;  %v8294_v19 = vor.u32 %v9965_v10, %v8293_v17  ;;  %vm2815_vm10 = vweird.f32 %v11970_v20  ;;  %v8277_v45 = vld [vmem:[#allocation3] sm:$0xf] }
 0x4be   :  { %v2902_v25 = vmul.f32 %v2845_v2, %v11853_v16  ;;  %v2811_v42 = vsub.f32 1.0, %v2810_v63  ;;  %v2848_v18 = vmul.f32 %v11985_v62, %v11939_v52  ;;  %v10550_v34 = vpop.eup %10549  ;;  %v8298_v44 = vor.u32 %v9963_v26, %v8295_v13  ;;  %vm2816_vm12 = vmor %vm2814_vm8, %vm2815_vm10  ;;  %3160 = vmatpush.bf16.msra.mxu2 %v8302_v54 }
 0x4bf   :  { %v10552_v8 = vpop.eup %10551  ;;  %v11998_v43 = vadd.f32 1.0, %v10550_v34  ;;  %vm2853_vm11 = vweird.f32 %v11985_v62  ;;  %3132 = vmatpush.bf16.msra.mxu0 %v8294_v19  ;;  %v2875_v39 = vmul.f32 %v11948_v6, %v2874_v0  ;;  %v8278_v22 = vor.u32 %v9961_v59, %v8277_v45  ;;  %3174 = vmatpush.bf16.msra.mxu3 %v8306_v3  ;;  %v8523_v3 = vld [vmem:[#allocation3 + $0xe0] sm:$0xf] }
 0x4c0   :  { %v11994_v9 = vadd.f32 %v2904_v37, %v2902_v25  ;;  %v2849_v33 = vsub.f32 1.0, %v2848_v18  ;;  %v2812_v16 = vmul.f32 %v11970_v20, %v2811_v42  ;;  %3146 = vmatpush.bf16.msra.mxu1 %v8298_v44  ;;  %v8282_v58 = vor.u32 %v9959_v38, %v8279_v5  ;;  %vm2854_vm14 = vmor %vm2852_vm9, %vm2853_vm11  ;;  %v10021_v38 = vld [vmem:[#allocation3 + $0xec] sm:$0xf0]  ;;  %v10019_v5 = vld [vmem:[#allocation3 + $0xe4] sm:$0xf] }
 0x4c1   :  { %10553 = vrcp.f32 %v11998_v43  ;;  %v2859_v14 = vor.u32 1.1754944e-38, %v2858_v41  ;;  %vm2857_vm15 = vcmp.eq.f32.partialorder %v2856_v4, 8.507059e+37  ;;  %v8290_v23 = vor.u32 %v9960_v55, %v8287_v40  ;;  %v8531_v4 = vld [vmem:[#allocation3 + $0xe8] sm:$0xf]  ;;  %v10020_v40 = vld [vmem:[#allocation3 + $0xec] sm:$0xf] }
 0x4c2   :  { %v2850_v15 = vmul.f32 %v11985_v62, %v2849_v33  ;;  %v2813_v57 = vadd.f32 %v11970_v20, %v2812_v16  ;;  %10555 = vtanh.f32 %v11994_v9  ;;  %v2876_v48 = vadd.f32 %v11948_v6, %v2875_v39  ;;  %3161 = vmatpush.bf16.msra.mxu2 %v8286_v49  ;;  %v13652_v16 = vld [vmem:[#allocation36_spill] sm:$0xff] }
 0x4c3   :  { %3133 = vmatpush.bf16.msra.mxu0 %v8278_v22  ;;  %vm2878_vm0 = vweird.f32 %v11948_v6  ;;  %v2883_v63 = vand.u32 2147483648, %v11916_v29  ;;  %3175 = vmatpush.bf16.msra.mxu3 %v8290_v23  ;;  %v2881_v17 = vand.u32 2147483647, %v11916_v29  ;;  %v2898_v50 = vand.u32 2147483648, %v11998_v43  ;;  %v8507_v22 = vld [vmem:[#allocation3 + $0xc0] sm:$0xf] }
 0x4c4   :  { %v2817_v12 = vsel %vm2816_vm12, %v11970_v20, %v2813_v57  ;;  %v2851_v21 = vadd.f32 %v11985_v62, %v2850_v15  ;;  %3147 = vmatpush.bf16.msra.mxu1 %v8282_v58  ;;  %vm2879_vm2 = vmor %vm2877_vm1, %vm2878_vm0  ;;  %v2896_v51 = vand.u32 2147483647, %v11998_v43  ;;  %vm2892_vm5 = vweird.f32 %v11998_v43  ;;  %v8525_v57 = vld [vmem:[#allocation3 + $0xf0] sm:$0xf0]  ;;  %v10017_v58 = vld [vmem:[#allocation3 + $0xcc] sm:$0xf0] }
 0x4c5   :  { %v2822_v61 = vsel %vm2819_vm13, %v2821_v35, %v2817_v12  ;;  %v2884_v37 = vor.u32 1.1754944e-38, %v2883_v63  ;;  %vm2882_vm3 = vcmp.eq.f32.partialorder %v2881_v17, 8.507059e+37  ;;  %v2899_v42 = vor.u32 1.1754944e-38, %v2898_v50  ;;  %v8533_v12 = vld [vmem:[#allocation3 + $0xf8] sm:$0xf0] }
 0x4c6   :  { %v2855_v32 = vsel %vm2854_vm14, %v11985_v62, %v2851_v21  ;;  %v2905_v20 = vmul.f32 %v10552_v8, %v2822_v61  ;;  %v2880_v62 = vsel %vm2879_vm2, %v11948_v6, %v2876_v48  ;;  %vm2897_vm7 = vcmp.eq.f32.partialorder %v2896_v51, 8.507059e+37  ;;  %v13651_v8 = vld [vmem:[#allocation35_spill] sm:$0xff]  ;;  %v13653_v61 = vld [vmem:[#allocation38_spill] sm:$0xff]  ;;  %v8515_v23 = vld [vmem:[#allocation3 + $0xc8] sm:$0xf] }
 0x4c7   :  { %v2860_v47 = vsel %vm2857_vm15, %v2859_v14, %v2855_v32  ;;  %v10554_v41 = vpop.eup %10553  ;;  %v2885_v29 = vsel %vm2882_vm3, %v2884_v37, %v2880_v62  ;;  %v450_v33 = vadd.f32 %v13651_v8, %v11344_v53  ;;  %v539_v45 = vadd.f32 %v13652_v16, %v11347_v7  ;;  %v10015_v14 = vld [vmem:[#allocation3 + $0xc4] sm:$0xf]  ;;  %v13654_v48 = vld [vmem:[#allocation39_spill] sm:$0xff] }
 0x4c8   :  { %v2903_v52 = vmul.f32 %v2860_v47, %v11887_v30  ;;  %v2888_v26 = vmul.f32 %v10554_v41, %v11998_v43  ;;  %v10556_v30 = vpop.eup %10555  ;;  %vm2893_vm4 = vweird.f32 %v10554_v41  ;;  %v8524_v15 = vor.u32 %v10021_v38, %v8523_v3  ;;  %v10018_v47 = vld [vmem:[#allocation3 + $0xd4] sm:$0xf0]  ;;  %v8475_v3 = vld [vmem:[#allocation3 + $0x80] sm:$0xf]  ;;  %v10009_v38 = vld [vmem:[#allocation3 + $0x8c] sm:$0xf0] }
 0x4c9   :  { %v2910_v25 = vmul.f32 %v10556_v30, %v2885_v29  ;;  %vm2894_vm6 = vmor %vm2892_vm5, %vm2893_vm4  ;;  %v8528_v35 = vor.u32 %v10019_v5, %v8525_v57  ;;  %v8532_v55 = vor.u32 %v10022_v36, %v8531_v4  ;;  %v8536_v21 = vor.u32 %v10020_v40, %v8533_v12  ;;  %v8517_v30 = vld [vmem:[#allocation3 + $0xd8] sm:$0xf0]  ;;  %v10014_v8 = vld [vmem:[#allocation3 + $0xb4] sm:$0xf0] }
 0x4ca   :  { %v12028_v10 = vadd.f32 %v2905_v20, %v2903_v52  ;;  %v2889_v2 = vsub.f32 1.0, %v2888_v26  ;;  %3530 = vmatpush.bf16.msrb.mxu0 %v8524_v15  ;;  %v717_v49 = vadd.f32 %v13653_v61, %v11356_v11  ;;  %v8508_v32 = vor.u32 %v10017_v58, %v8507_v22  ;;  %v8509_v20 = vld [vmem:[#allocation3 + $0xd0] sm:$0xf0]  ;;  %v10007_v5 = vld [vmem:[#allocation3 + $0x84] sm:$0xf] }
 0x4cb   :  { %v2912_v60 = vpack.c.bf16 %v2910_v25, %v2910_v25  ;;  %3544 = vmatpush.bf16.msrb.mxu1 %v8528_v35  ;;  %3558 = vmatpush.bf16.msrb.mxu2 %v8532_v55  ;;  %v452_v52 = vadd.f32 %v13654_v48, %v11344_v53  ;;  %v8512_v26 = vor.u32 %v10015_v14, %v8509_v20  ;;  %v8477_v15 = vld [vmem:[#allocation3 + $0x90] sm:$0xf0]  ;;  %v13656_v57 = vld [vmem:[#allocation37_spill] sm:$0xff]  ;;  %v13657_v35 = vld [vmem:[#allocation42_spill] sm:$0xff] }
 0x4cc   :  { %10557 = vtanh.f32 %v12028_v10  ;;  %v2890_v13 = vmul.f32 %v10554_v41, %v2889_v2  ;;  %3572 = vmatpush.bf16.msrb.mxu3 %v8536_v21  ;;  %v8516_v62 = vor.u32 %v10018_v47, %v8515_v23  ;;  %v10016_v2 = vld [vmem:[#allocation3 + $0xcc] sm:$0xf]  ;;  %v628_v4 = vadd.f32 %v13656_v57, %v11367_v46  ;;  %v8485_v22 = vld [vmem:[#allocation3 + $0x98] sm:$0xf0]  ;;  %v8459_v20 = vld [vmem:[#allocation3 + $0x60] sm:$0xf] }
 0x4cd   :  { %v2962_v28 = vunpack.c.l.b16 %v2912_v60  ;;  %v8520_v51 = vor.u32 %v10016_v2, %v8517_v30  ;;  %v8499_v60 = vld [vmem:[#allocation3 + $0xa8] sm:$0xf]  ;;  %v719_v55 = vadd.f32 %v13657_v35, %v11356_v11  ;;  %v8476_v12 = vor.u32 %v10009_v38, %v8475_v3  ;;  %v10008_v21 = vld [vmem:[#allocation3 + $0x8c] sm:$0xf]  ;;  %v10005_v23 = vld [vmem:[#allocation3 + $0x6c] sm:$0xf0] }
 0x4ce   :  { %v2891_v1 = vadd.f32 %v10554_v41, %v2890_v13  ;;  %3531 = vmatpush.bf16.msrb.mxu0 %v8508_v32  ;;  %v8480_v61 = vor.u32 %v10007_v5, %v8477_v15  ;;  %v8488_v32 = vor.u32 %v10008_v21, %v8485_v22  ;;  %v10003_v47 = vld [vmem:[#allocation3 + $0x64] sm:$0xf]  ;;  %v10001_v3 = vld [vmem:[#allocation3 + $0x4c] sm:$0xf0] }
 0x4cf   :  { %3545 = vmatpush.bf16.msrb.mxu1 %v8512_v26  ;;  %3559 = vmatpush.bf16.msrb.mxu2 %v8516_v62 }
 0x4d0   :  { %v2895_v18 = vsel %vm2894_vm6, %v10554_v41, %v2891_v1  ;;  %v13655_v41 = vld [vmem:[#allocation40_spill] sm:$0xff]  ;;  %3573 = vmatpush.bf16.msrb.mxu3 %v8520_v51 }
 0x4d1   :  { %v2900_v27 = vsel %vm2897_vm7, %v2899_v42, %v2895_v18  ;;  %v541_v63 = vadd.f32 %v13655_v41, %v11347_v7  ;;  %v10013_v42 = vld [vmem:[#allocation3 + $0xac] sm:$0xf0] }
 0x4d2   :  { %v10558_v6 = vpop.eup %10557 }
 0x4d3   :  { %v2911_v24 = vmul.f32 %v10558_v6, %v2900_v27  ;;  %v10011_v6 = vld [vmem:[#allocation3 + $0xa4] sm:$0xf] }
 0x4d5   :  { %v2913_v34 = vpack.c.bf16 %v2911_v24, %v2911_v24  ;;  %v10334_v0 = vpack.c.bf16 %v2911_v24, %v2910_v25  ;;  %v8491_v25 = vld [vmem:[#allocation3 + $0xa0] sm:$0xf]  ;;  %v8493_v24 = vld [vmem:[#allocation3 + $0xb0] sm:$0xf0] }
 0x4d6   :  { %v8492_v27 = vor.u32 %v10013_v42, %v8491_v25 }
 0x4d7   :  { %10335 = vst [vmem:[#allocation13 + $0x20] sm:$0xff] %v10334_v0   ;;  %v2963_v56 = vunpack.c.l.b16 %v2913_v34 }
 0x4d8   :  { %3532 = vmatpush.bf16.msrb.mxu0 %v8492_v27 }
 0x4d9   :  { %v2964_v19 = vpack.c.b16 %v2963_v56, %v2962_v28 }
 0x4db   :  { %3134 = vmatmul.bf16.vlgmr.msra.gmra.mxu0 %v2964_v19  ;;  %3148 = vmatmul.bf16.vlgmr.msra.gmra.mxu1 %v2964_v19 }
 0x4dc   :  { %3162 = vmatmul.bf16.vlgmr.msra.gmra.mxu2 %v2964_v19  ;;  %3176 = vmatmul.bf16.vlgmr.msra.gmra.mxu3 %v2964_v19  ;;  %v8496_v19 = vor.u32 %v10011_v6, %v8493_v24  ;;  %v8437_v6 = vld [vmem:[#allocation3 + $0x38] sm:$0xf0] }
 0x4dd   :  { %3533 = vmatpush.bf16.msrb.mxu0 %v8476_v12 }
 0x4de   :  { %3546 = vmatpush.bf16.msrb.mxu1 %v8496_v19  ;;  %v10006_v19 = vld [vmem:[#allocation3 + $0x74] sm:$0xf0] }
 0x4e2   :  { %3547 = vmatpush.bf16.msrb.mxu1 %v8480_v61  ;;  %v10002_v61 = vld [vmem:[#allocation3 + $0x54] sm:$0xf0] }
 0x558   :  { %v3135_v59 = vpop.f32.mrf.mxu0  ;;  %v3149_v43 = vpop.f32.mrf.mxu1 }
 0x559   :  { %v3182_v44 = vadd.f32 %v3135_v59, %v450_v33  ;;  %v3183_v54 = vadd.f32 %v3149_v43, %v539_v45  ;;  %v8500_v45 = vor.u32 %v10014_v8, %v8499_v60  ;;  %v10012_v59 = vld [vmem:[#allocation3 + $0xac] sm:$0xf]  ;;  %v8501_v43 = vld [vmem:[#allocation3 + $0xb8] sm:$0xf0] }
 0x55b   :  { %v8403_v31 = vmul.f32 -1.442695, %v3182_v44  ;;  %v8405_v39 = vmul.f32 -1.442695, %v3183_v54  ;;  %v8504_v54 = vor.u32 %v10012_v59, %v8501_v43  ;;  %3560 = vmatpush.bf16.msrb.mxu2 %v8500_v45  ;;  %v10004_v45 = vld [vmem:[#allocation3 + $0x6c] sm:$0xf] }
 0x55c   :  { %v8469_v43 = vld [vmem:[#allocation3 + $0x78] sm:$0xf0] }
 0x55d   :  { %10559 = vpow2.f32 %v8403_v31  ;;  %3574 = vmatpush.bf16.msrb.mxu3 %v8504_v54  ;;  %v8483_v31 = vld [vmem:[#allocation3 + $0x88] sm:$0xf]  ;;  %v8443_v54 = vld [vmem:[#allocation3 + $0x40] sm:$0xf] }
 0x55e   :  { %10561 = vpow2.f32 %v8405_v39  ;;  %v10010_v39 = vld [vmem:[#allocation3 + $0x94] sm:$0xf0] }
 0x55f   :  { %v3177_v17 = vpop.f32.mrf.mxu3  ;;  %v3163_v0 = vpop.f32.mrf.mxu2 }
 0x560   :  { %v3185_v37 = vadd.f32 %v3177_v17, %v717_v49  ;;  %v3137_v50 = vpop.f32.mrf.mxu0  ;;  %v3151_v13 = vpop.f32.mrf.mxu1  ;;  %v3184_v14 = vadd.f32 %v3163_v0, %v628_v4  ;;  %v8484_v49 = vor.u32 %v10010_v39, %v8483_v31  ;;  %v8461_v17 = vld [vmem:[#allocation3 + $0x70] sm:$0xf0] }
 0x561   :  { %v3186_v29 = vadd.f32 %v3137_v50, %v452_v52  ;;  %v3187_v1 = vadd.f32 %v3151_v13, %v541_v63  ;;  %v8460_v63 = vor.u32 %v10005_v23, %v8459_v20  ;;  %v8464_v30 = vor.u32 %v10003_v47, %v8461_v17  ;;  %v13658_v50 = vld [vmem:[#allocation41_spill] sm:$0xff]  ;;  %3575 = vmatpush.bf16.msrb.mxu3 %v8488_v32  ;;  %v8445_v4 = vld [vmem:[#allocation3 + $0x50] sm:$0xf0]  ;;  %v8453_v32 = vld [vmem:[#allocation3 + $0x58] sm:$0xf0] }
 0x562   :  { %v8407_v18 = vmul.f32 -1.442695, %v3185_v37  ;;  %3561 = vmatpush.bf16.msrb.mxu2 %v8484_v49  ;;  %v630_v13 = vadd.f32 %v13658_v50, %v11367_v46  ;;  %v10000_v49 = vld [vmem:[#allocation3 + $0x4c] sm:$0xf]  ;;  %v8435_v50 = vld [vmem:[#allocation3 + $0x28] sm:$0xf] }
 0x563   :  { %v10560_v34 = vpop.eup %10559  ;;  %v8404_v28 = vmul.f32 -1.442695, %v3186_v29  ;;  %v8406_v56 = vmul.f32 -1.442695, %v3187_v1  ;;  %3534 = vmatpush.bf16.msrb.mxu0 %v8460_v63  ;;  %3548 = vmatpush.bf16.msrb.mxu1 %v8464_v30  ;;  %v9995_v63 = vld [vmem:[#allocation3 + $0x24] sm:$0xf] }
 0x564   :  { %v10562_v33 = vpop.eup %10561  ;;  %v12046_v16 = vadd.f32 1.0, %v10560_v34  ;;  %10563 = vpow2.f32 %v8407_v18 }
 0x565   :  { %v12048_v44 = vadd.f32 1.0, %v10562_v33  ;;  %10565 = vpow2.f32 %v8404_v28 }
 0x566   :  { %10567 = vrcp.f32 %v12046_v16  ;;  %v3207_v40 = vand.u32 2147483647, %v12046_v16  ;;  %v3209_v62 = vand.u32 2147483648, %v12046_v16  ;;  %vm3203_vm12 = vweird.f32 %v12046_v16 }
 0x567   :  { %10569 = vrcp.f32 %v12048_v44  ;;  %v3179_v36 = vpop.f32.mrf.mxu3  ;;  %v3247_v29 = vand.u32 2147483648, %v12048_v44  ;;  %v3165_v1 = vpop.f32.mrf.mxu2  ;;  %v3245_v18 = vand.u32 2147483647, %v12048_v44  ;;  %vm3241_vm11 = vweird.f32 %v12048_v44 }
 0x568   :  { %10571 = vpow2.f32 %v8406_v56  ;;  %v3189_v41 = vadd.f32 %v3179_v36, %v719_v55  ;;  %vm12074_vm8 = vcmp.eq.f32.partialorder %v3207_v40, 8.507059e+37  ;;  %v3210_v0 = vor.u32 1.1754944e-38, %v3209_v62  ;;  %v8467_v56 = vld [vmem:[#allocation3 + $0x68] sm:$0xf] }
 0x569   :  { %v3188_v28 = vadd.f32 %v3165_v1, %v630_v13  ;;  %v3248_v8 = vor.u32 1.1754944e-38, %v3247_v29  ;;  %vm12098_vm14 = vcmp.eq.f32.partialorder %v3245_v18, 8.507059e+37  ;;  %v8451_v40 = vld [vmem:[#allocation3 + $0x48] sm:$0xf]  ;;  %v9998_v13 = vld [vmem:[#allocation3 + $0x34] sm:$0xf0] }
 0x56a   :  { %v10564_v58 = vpop.eup %10563  ;;  %v8408_v60 = vmul.f32 -1.442695, %v3189_v41  ;;  %v9997_v41 = vld [vmem:[#allocation3 + $0x2c] sm:$0xf0] }
 0x56b   :  { %v10566_v48 = vpop.eup %10565  ;;  %v12057_v52 = vadd.f32 1.0, %v10564_v58  ;;  %v8472_v58 = vor.u32 %v10004_v45, %v8469_v43  ;;  %v8436_v43 = vor.u32 %v9998_v13, %v8435_v50 }
 0x56c   :  { %v12059_v26 = vpop.eup %10567  ;;  %v12062_v2 = vadd.f32 1.0, %v10566_v48  ;;  %v8427_v48 = vld [vmem:[#allocation3 + $0x20] sm:$0xf] }
 0x56d   :  { %v12064_v37 = vpop.eup %10569  ;;  %v3199_v51 = vmul.f32 %v12059_v26, %v12046_v16  ;;  %10573 = vrcp.f32 %v12057_v52  ;;  %vm3204_vm9 = vweird.f32 %v12059_v26  ;;  %v9999_v16 = vld [vmem:[#allocation3 + $0x44] sm:$0xf]  ;;  %3576 = vmatpush.bf16.msrb.mxu3 %v8472_v58 }
 0x56e   :  { %v10572_v25 = vpop.eup %10571  ;;  %v3237_v42 = vmul.f32 %v12064_v37, %v12048_v44  ;;  %10575 = vtanh.f32 %v3184_v14  ;;  %vm3242_vm10 = vweird.f32 %v12064_v37  ;;  %vm12094_vm13 = vmor %vm3203_vm12, %vm3204_vm9  ;;  %v8468_v44 = vor.u32 %v10006_v19, %v8467_v56 }
 0x56f   :  { %v3200_v27 = vsub.f32 1.0, %v3199_v51  ;;  %10577 = vrcp.f32 %v12062_v2  ;;  %v12080_v24 = vadd.f32 1.0, %v10572_v25  ;;  %vm12104_vm15 = vmor %vm3241_vm11, %vm3242_vm10  ;;  %v3222_v55 = vand.u32 2147483647, %v12062_v2 }
 0x570   :  { %v3238_v34 = vsub.f32 1.0, %v3237_v42  ;;  %3562 = vmatpush.bf16.msrb.mxu2 %v8468_v44  ;;  %v8444_v14 = vor.u32 %v10001_v3, %v8443_v54  ;;  %vm3218_vm0 = vweird.f32 %v12062_v2  ;;  %v8448_v30 = vor.u32 %v9999_v16, %v8445_v4  ;;  %v9996_v42 = vld [vmem:[#allocation3 + $0x2c] sm:$0xf]  ;;  %v9991_v3 = vld [vmem:[#allocation3 + $0x4] sm:$0xf] }
 0x571   :  { %v3201_v33 = vmul.f32 %v12059_v26, %v3200_v27  ;;  %10579 = vrcp.f32 %v12080_v24  ;;  %v3262_v35 = vand.u32 2147483648, %v12080_v24  ;;  %vm3256_vm1 = vweird.f32 %v12080_v24  ;;  %v8419_v16 = vld [vmem:[#allocation3 + $0x8] sm:$0xf]  ;;  %v9994_v4 = vld [vmem:[#allocation3 + $0x14] sm:$0xf0] }
 0x572   :  { %v3239_v59 = vmul.f32 %v12064_v37, %v3238_v34  ;;  %10581 = vpow2.f32 %v8408_v60  ;;  %3535 = vmatpush.bf16.msrb.mxu0 %v8444_v14  ;;  %v3224_v25 = vand.u32 2147483648, %v12062_v2  ;;  %3549 = vmatpush.bf16.msrb.mxu1 %v8448_v30  ;;  %v8452_v60 = vor.u32 %v10002_v61, %v8451_v40  ;;  %v8421_v40 = vld [vmem:[#allocation3 + $0x18] sm:$0xf0] }
 0x573   :  { %v12089_v38 = vpop.eup %10573  ;;  %v3202_v5 = vadd.f32 %v12059_v26, %v3201_v33  ;;  %10583 = vtanh.f32 %v3188_v28  ;;  %v8456_v34 = vor.u32 %v10000_v49, %v8453_v32  ;;  %v9993_v33 = vld [vmem:[#allocation3 + $0xc] sm:$0xf0]  ;;  %v8440_v54 = vor.u32 %v9996_v42, %v8437_v6 }
 0x574   :  { %v10576_v36 = vpop.eup %10575  ;;  %v3240_v39 = vadd.f32 %v12064_v37, %v3239_v59  ;;  %v3277_v22 = vmul.f32 %v12089_v38, %v12057_v52  ;;  %3563 = vmatpush.bf16.msrb.mxu2 %v8452_v60  ;;  %v3260_v44 = vand.u32 2147483647, %v12080_v24  ;;  %vm3223_vm5 = vcmp.eq.f32.partialorder %v3222_v55, 8.507059e+37 }
 0x575   :  { %v12111_v12 = vpop.eup %10577  ;;  %v3206_v21 = vsel %vm12094_vm13, %v12059_v26, %v3202_v5  ;;  %3577 = vmatpush.bf16.msrb.mxu3 %v8456_v34  ;;  %v8413_v5 = vld [vmem:[#allocation3 + $0x10] sm:$0xf0]  ;;  %v3225_v31 = vor.u32 1.1754944e-38, %v3224_v25  ;;  %v8420_v61 = vor.u32 %v9994_v4, %v8419_v16  ;;  %vm3281_vm9 = vweird.f32 %v12057_v52  ;;  %v10054_v16 = vld [vmem:[#allocation3 + $0xf4] sm:$0xf0] }
 0x576   :  { %v3211_v20 = vsel %vm12074_vm8, %v3210_v0, %v3206_v21  ;;  %v3244_v23 = vsel %vm12104_vm15, %v12064_v37, %v3240_v39  ;;  %v3214_v47 = vmul.f32 %v12111_v12, %v12062_v2  ;;  %v8429_v37 = vld [vmem:[#allocation3 + $0x30] sm:$0xf0]  ;;  %v3278_v27 = vsub.f32 1.0, %v3277_v22  ;;  %v9992_v39 = vld [vmem:[#allocation3 + $0xc] sm:$0xf] }
 0x577   :  { %v12126_v17 = vpop.eup %10579  ;;  %v3249_v26 = vsel %vm12098_vm14, %v3248_v8, %v3244_v23  ;;  %v3308_v62 = vmul.f32 %v10576_v36, %v3211_v20  ;;  %v8428_v0 = vor.u32 %v9997_v41, %v8427_v48  ;;  %vm3219_vm2 = vweird.f32 %v12111_v12  ;;  %v8411_v8 = vld [vmem:[#allocation3] sm:$0xf] }
 0x578   :  { %v3306_v51 = vmul.f32 %v3249_v26, %v11994_v9  ;;  %v3215_v29 = vsub.f32 1.0, %v3214_v47  ;;  %v3252_v1 = vmul.f32 %v12126_v17, %v12080_v24  ;;  %v10582_v18 = vpop.eup %10581  ;;  %v8432_v59 = vor.u32 %v9995_v63, %v8429_v37  ;;  %vm3220_vm4 = vmor %vm3218_vm0, %vm3219_vm2  ;;  %3564 = vmatpush.bf16.msrb.mxu2 %v8436_v43 }
 0x579   :  { %v10584_v28 = vpop.eup %10583  ;;  %v12139_v45 = vadd.f32 1.0, %v10582_v18  ;;  %vm3257_vm3 = vweird.f32 %v12126_v17  ;;  %3536 = vmatpush.bf16.msrb.mxu0 %v8428_v0  ;;  %v3279_v36 = vmul.f32 %v12089_v38, %v3278_v27  ;;  %v8412_v58 = vor.u32 %v9993_v33, %v8411_v8  ;;  %3578 = vmatpush.bf16.msrb.mxu3 %v8440_v54  ;;  %v8657_v54 = vld [vmem:[#allocation3 + $0xe0] sm:$0xf] }
 0x57a   :  { %v12135_v56 = vadd.f32 %v3308_v62, %v3306_v51  ;;  %v3253_v19 = vsub.f32 1.0, %v3252_v1  ;;  %v3216_v9 = vmul.f32 %v12111_v12, %v3215_v29  ;;  %3550 = vmatpush.bf16.msrb.mxu1 %v8432_v59  ;;  %v8416_v14 = vor.u32 %v9991_v3, %v8413_v5  ;;  %vm3258_vm6 = vmor %vm3256_vm1, %vm3257_vm3  ;;  %v10053_v3 = vld [vmem:[#allocation3 + $0xec] sm:$0xf0]  ;;  %v10051_v5 = vld [vmem:[#allocation3 + $0xe4] sm:$0xf] }
 0x57b   :  { %10585 = vrcp.f32 %v12139_v45  ;;  %v3263_v2 = vor.u32 1.1754944e-38, %v3262_v35  ;;  %vm3261_vm7 = vcmp.eq.f32.partialorder %v3260_v44, 8.507059e+37  ;;  %v8424_v32 = vor.u32 %v9992_v39, %v8421_v40  ;;  %v8665_v44 = vld [vmem:[#allocation3 + $0xe8] sm:$0xf]  ;;  %v10052_v40 = vld [vmem:[#allocation3 + $0xec] sm:$0xf] }
 0x57c   :  { %v3254_v15 = vmul.f32 %v12126_v17, %v3253_v19  ;;  %v3217_v57 = vadd.f32 %v12111_v12, %v3216_v9  ;;  %10587 = vtanh.f32 %v12135_v56  ;;  %v3280_v23 = vadd.f32 %v12089_v38, %v3279_v36  ;;  %3565 = vmatpush.bf16.msrb.mxu2 %v8420_v61  ;;  %v13668_v9 = vld [vmem:[#allocation44_spill] sm:$0xff] }
 0x57d   :  { %3537 = vmatpush.bf16.msrb.mxu0 %v8412_v58  ;;  %vm3282_vm8 = vweird.f32 %v12089_v38  ;;  %v3287_v47 = vand.u32 2147483648, %v12057_v52  ;;  %3579 = vmatpush.bf16.msrb.mxu3 %v8424_v32  ;;  %v3285_v48 = vand.u32 2147483647, %v12057_v52  ;;  %v3302_v30 = vand.u32 2147483648, %v12139_v45  ;;  %v8641_v58 = vld [vmem:[#allocation3 + $0xc0] sm:$0xf] }
 0x57e   :  { %v3221_v21 = vsel %vm3220_vm4, %v12111_v12, %v3217_v57  ;;  %v3255_v22 = vadd.f32 %v12126_v17, %v3254_v15  ;;  %3551 = vmatpush.bf16.msrb.mxu1 %v8416_v14  ;;  %vm3283_vm10 = vmor %vm3281_vm9, %vm3282_vm8  ;;  %v3300_v50 = vand.u32 2147483647, %v12139_v45  ;;  %vm3296_vm13 = vweird.f32 %v12139_v45  ;;  %v8659_v57 = vld [vmem:[#allocation3 + $0xf0] sm:$0xf0]  ;;  %v10049_v14 = vld [vmem:[#allocation3 + $0xcc] sm:$0xf0] }
 0x57f   :  { %v3226_v55 = vsel %vm3223_vm5, %v3225_v31, %v3221_v21  ;;  %v3288_v62 = vor.u32 1.1754944e-38, %v3287_v47  ;;  %vm3286_vm11 = vcmp.eq.f32.partialorder %v3285_v48, 8.507059e+37  ;;  %v3303_v29 = vor.u32 1.1754944e-38, %v3302_v30  ;;  %v8667_v21 = vld [vmem:[#allocation3 + $0xf8] sm:$0xf0] }
 0x580   :  { %v3259_v49 = vsel %vm3258_vm6, %v12126_v17, %v3255_v22  ;;  %v3309_v12 = vmul.f32 %v10584_v28, %v3226_v55  ;;  %v3284_v17 = vsel %vm3283_vm10, %v12089_v38, %v3280_v23  ;;  %vm3301_vm15 = vcmp.eq.f32.partialorder %v3300_v50, 8.507059e+37  ;;  %v13667_v28 = vld [vmem:[#allocation43_spill] sm:$0xff]  ;;  %v13669_v55 = vld [vmem:[#allocation46_spill] sm:$0xff]  ;;  %v8649_v32 = vld [vmem:[#allocation3 + $0xc8] sm:$0xf] }
 0x581   :  { %v3264_v20 = vsel %vm3261_vm7, %v3263_v2, %v3259_v49  ;;  %v10586_v35 = vpop.eup %10585  ;;  %v3289_v52 = vsel %vm3286_vm11, %v3288_v62, %v3284_v17  ;;  %v455_v19 = vadd.f32 %v13667_v28, %v11344_v53  ;;  %v544_v8 = vadd.f32 %v13668_v9, %v11347_v7  ;;  %v10047_v2 = vld [vmem:[#allocation3 + $0xc4] sm:$0xf]  ;;  %v13670_v23 = vld [vmem:[#allocation47_spill] sm:$0xff] }
 0x582   :  { %v3307_v24 = vmul.f32 %v3264_v20, %v12028_v10  ;;  %v3292_v63 = vmul.f32 %v10586_v35, %v12139_v45  ;;  %v10588_v10 = vpop.eup %10587  ;;  %vm3297_vm12 = vweird.f32 %v10586_v35  ;;  %v8658_v15 = vor.u32 %v10053_v3, %v8657_v54  ;;  %v10050_v20 = vld [vmem:[#allocation3 + $0xd4] sm:$0xf0]  ;;  %v8609_v54 = vld [vmem:[#allocation3 + $0x80] sm:$0xf]  ;;  %v10041_v3 = vld [vmem:[#allocation3 + $0x8c] sm:$0xf0] }
 0x583   :  { %v3314_v51 = vmul.f32 %v10588_v10, %v3289_v52  ;;  %vm3298_vm14 = vmor %vm3296_vm13, %vm3297_vm12  ;;  %v8662_v31 = vor.u32 %v10051_v5, %v8659_v57  ;;  %v8666_v39 = vor.u32 %v10054_v16, %v8665_v44  ;;  %v8670_v22 = vor.u32 %v10052_v40, %v8667_v21  ;;  %v8651_v10 = vld [vmem:[#allocation3 + $0xd8] sm:$0xf0]  ;;  %v10046_v28 = vld [vmem:[#allocation3 + $0xb4] sm:$0xf0] }
 0x584   :  { %v12169_v41 = vadd.f32 %v3309_v12, %v3307_v24  ;;  %v3293_v26 = vsub.f32 1.0, %v3292_v63  ;;  %3934 = vmatpush.bf16.msra.mxu0 %v8658_v15  ;;  %v722_v61 = vadd.f32 %v13669_v55, %v11356_v11  ;;  %v8642_v49 = vor.u32 %v10049_v14, %v8641_v58  ;;  %v8643_v12 = vld [vmem:[#allocation3 + $0xd0] sm:$0xf0]  ;;  %v10039_v5 = vld [vmem:[#allocation3 + $0x84] sm:$0xf] }
 0x585   :  { %v3316_v6 = vpack.c.bf16 %v3314_v51, %v3314_v51  ;;  %3948 = vmatpush.bf16.msra.mxu1 %v8662_v31  ;;  %3962 = vmatpush.bf16.msra.mxu2 %v8666_v39  ;;  %v457_v24 = vadd.f32 %v13670_v23, %v11344_v53  ;;  %v8646_v63 = vor.u32 %v10047_v2, %v8643_v12  ;;  %v8611_v15 = vld [vmem:[#allocation3 + $0x90] sm:$0xf0]  ;;  %v13672_v57 = vld [vmem:[#allocation45_spill] sm:$0xff]  ;;  %v13673_v31 = vld [vmem:[#allocation50_spill] sm:$0xff] }
 0x586   :  { %10589 = vtanh.f32 %v12169_v41  ;;  %v3294_v37 = vmul.f32 %v10586_v35, %v3293_v26  ;;  %3976 = vmatpush.bf16.msra.mxu3 %v8670_v22  ;;  %v8650_v17 = vor.u32 %v10050_v20, %v8649_v32  ;;  %v10048_v26 = vld [vmem:[#allocation3 + $0xcc] sm:$0xf]  ;;  %v633_v44 = vadd.f32 %v13672_v57, %v11367_v46  ;;  %v8619_v58 = vld [vmem:[#allocation3 + $0x98] sm:$0xf0]  ;;  %v8593_v12 = vld [vmem:[#allocation3 + $0x60] sm:$0xf] }
 0x587   :  { %v3366_v60 = vunpack.c.l.b16 %v3316_v6  ;;  %v8654_v50 = vor.u32 %v10048_v26, %v8651_v10  ;;  %v8633_v6 = vld [vmem:[#allocation3 + $0xa8] sm:$0xf]  ;;  %v724_v39 = vadd.f32 %v13673_v31, %v11356_v11  ;;  %v8610_v21 = vor.u32 %v10041_v3, %v8609_v54  ;;  %v10040_v22 = vld [vmem:[#allocation3 + $0x8c] sm:$0xf]  ;;  %v10037_v32 = vld [vmem:[#allocation3 + $0x6c] sm:$0xf0] }
 0x588   :  { %v3295_v13 = vadd.f32 %v10586_v35, %v3294_v37  ;;  %3935 = vmatpush.bf16.msra.mxu0 %v8642_v49  ;;  %v8614_v55 = vor.u32 %v10039_v5, %v8611_v15  ;;  %v8622_v49 = vor.u32 %v10040_v22, %v8619_v58  ;;  %v10035_v20 = vld [vmem:[#allocation3 + $0x64] sm:$0xf]  ;;  %v10033_v54 = vld [vmem:[#allocation3 + $0x4c] sm:$0xf0] }
 0x589   :  { %3949 = vmatpush.bf16.msra.mxu1 %v8646_v63  ;;  %3963 = vmatpush.bf16.msra.mxu2 %v8650_v17 }
 0x58a   :  { %v3299_v1 = vsel %vm3298_vm14, %v10586_v35, %v3295_v13  ;;  %v13671_v35 = vld [vmem:[#allocation48_spill] sm:$0xff]  ;;  %3977 = vmatpush.bf16.msra.mxu3 %v8654_v50 }
 0x58b   :  { %v3304_v25 = vsel %vm3301_vm15, %v3303_v29, %v3299_v1  ;;  %v546_v47 = vadd.f32 %v13671_v35, %v11347_v7  ;;  %v10045_v29 = vld [vmem:[#allocation3 + $0xac] sm:$0xf0] }
 0x58c   :  { %v10590_v38 = vpop.eup %10589 }
 0x58d   :  { %v3315_v42 = vmul.f32 %v10590_v38, %v3304_v25  ;;  %v10043_v38 = vld [vmem:[#allocation3 + $0xa4] sm:$0xf] }
 0x58f   :  { %v3317_v18 = vpack.c.bf16 %v3315_v42, %v3315_v42  ;;  %v10339_v27 = vpack.c.bf16 %v3315_v42, %v3314_v51  ;;  %v8625_v51 = vld [vmem:[#allocation3 + $0xa0] sm:$0xf]  ;;  %v8627_v42 = vld [vmem:[#allocation3 + $0xb0] sm:$0xf0] }
 0x590   :  { %v8626_v25 = vor.u32 %v10045_v29, %v8625_v51 }
 0x591   :  { %10340 = vst [vmem:[#allocation13 + $0x28] sm:$0xff] %v10339_v27   ;;  %v3367_v34 = vunpack.c.l.b16 %v3317_v18 }
 0x592   :  { %3936 = vmatpush.bf16.msra.mxu0 %v8626_v25 }
 0x593   :  { %v3368_v0 = vpack.c.b16 %v3367_v34, %v3366_v60 }
 0x595   :  { %3538 = vmatmul.bf16.vlgmr.msrb.gmra.mxu0 %v3368_v0  ;;  %3552 = vmatmul.bf16.vlgmr.msrb.gmra.mxu1 %v3368_v0 }
 0x596   :  { %3566 = vmatmul.bf16.vlgmr.msrb.gmra.mxu2 %v3368_v0  ;;  %3580 = vmatmul.bf16.vlgmr.msrb.gmra.mxu3 %v3368_v0  ;;  %v8630_v0 = vor.u32 %v10043_v38, %v8627_v42  ;;  %v8571_v38 = vld [vmem:[#allocation3 + $0x38] sm:$0xf0] }
 0x597   :  { %3937 = vmatpush.bf16.msra.mxu0 %v8610_v21 }
 0x598   :  { %3950 = vmatpush.bf16.msra.mxu1 %v8630_v0  ;;  %v10038_v0 = vld [vmem:[#allocation3 + $0x74] sm:$0xf0] }
 0x59c   :  { %3951 = vmatpush.bf16.msra.mxu1 %v8614_v55  ;;  %v10034_v55 = vld [vmem:[#allocation3 + $0x54] sm:$0xf0] }
 0x612   :  { %v3539_v33 = vpop.f32.mrf.mxu0  ;;  %v3553_v45 = vpop.f32.mrf.mxu1 }
 0x613   :  { %v3586_v59 = vadd.f32 %v3539_v33, %v455_v19  ;;  %v3587_v43 = vadd.f32 %v3553_v45, %v544_v8  ;;  %v8634_v8 = vor.u32 %v10046_v28, %v8633_v6  ;;  %v10044_v33 = vld [vmem:[#allocation3 + $0xac] sm:$0xf]  ;;  %v8635_v45 = vld [vmem:[#allocation3 + $0xb8] sm:$0xf0] }
 0x615   :  { %v8537_v4 = vmul.f32 -1.442695, %v3586_v59  ;;  %v8539_v36 = vmul.f32 -1.442695, %v3587_v43  ;;  %v8638_v43 = vor.u32 %v10044_v33, %v8635_v45  ;;  %3964 = vmatpush.bf16.msra.mxu2 %v8634_v8  ;;  %v10036_v8 = vld [vmem:[#allocation3 + $0x6c] sm:$0xf] }
 0x616   :  { %v8603_v45 = vld [vmem:[#allocation3 + $0x78] sm:$0xf0] }
 0x617   :  { %10591 = vpow2.f32 %v8537_v4  ;;  %3978 = vmatpush.bf16.msra.mxu3 %v8638_v43  ;;  %v8617_v4 = vld [vmem:[#allocation3 + $0x88] sm:$0xf]  ;;  %v8577_v43 = vld [vmem:[#allocation3 + $0x40] sm:$0xf] }
 0x618   :  { %10593 = vpow2.f32 %v8539_v36  ;;  %v10042_v36 = vld [vmem:[#allocation3 + $0x94] sm:$0xf0] }
 0x619   :  { %v3581_v48 = vpop.f32.mrf.mxu3  ;;  %v3567_v27 = vpop.f32.mrf.mxu2 }
 0x61a   :  { %v3589_v62 = vadd.f32 %v3581_v48, %v722_v61  ;;  %v3541_v30 = vpop.f32.mrf.mxu0  ;;  %v3555_v37 = vpop.f32.mrf.mxu1  ;;  %v3588_v2 = vadd.f32 %v3567_v27, %v633_v44  ;;  %v8618_v61 = vor.u32 %v10042_v36, %v8617_v4  ;;  %v8595_v48 = vld [vmem:[#allocation3 + $0x70] sm:$0xf0] }
 0x61b   :  { %v3590_v52 = vadd.f32 %v3541_v30, %v457_v24  ;;  %v3591_v13 = vadd.f32 %v3555_v37, %v546_v47  ;;  %v8594_v47 = vor.u32 %v10037_v32, %v8593_v12  ;;  %v8598_v10 = vor.u32 %v10035_v20, %v8595_v48  ;;  %v13674_v30 = vld [vmem:[#allocation49_spill] sm:$0xff]  ;;  %3979 = vmatpush.bf16.msra.mxu3 %v8622_v49  ;;  %v8579_v44 = vld [vmem:[#allocation3 + $0x50] sm:$0xf0]  ;;  %v8587_v49 = vld [vmem:[#allocation3 + $0x58] sm:$0xf0] }
 0x61c   :  { %v8541_v1 = vmul.f32 -1.442695, %v3589_v62  ;;  %3965 = vmatpush.bf16.msra.mxu2 %v8618_v61  ;;  %v635_v37 = vadd.f32 %v13674_v30, %v11367_v46  ;;  %v10032_v61 = vld [vmem:[#allocation3 + $0x4c] sm:$0xf]  ;;  %v8569_v30 = vld [vmem:[#allocation3 + $0x28] sm:$0xf] }
 0x61d   :  { %v10592_v18 = vpop.eup %10591  ;;  %v8538_v60 = vmul.f32 -1.442695, %v3590_v52  ;;  %v8540_v34 = vmul.f32 -1.442695, %v3591_v13  ;;  %3938 = vmatpush.bf16.msra.mxu0 %v8594_v47  ;;  %3952 = vmatpush.bf16.msra.mxu1 %v8598_v10  ;;  %v10027_v47 = vld [vmem:[#allocation3 + $0x24] sm:$0xf] }
 0x61e   :  { %v10594_v19 = vpop.eup %10593  ;;  %v12187_v9 = vadd.f32 1.0, %v10592_v18  ;;  %10595 = vpow2.f32 %v8541_v1 }
 0x61f   :  { %v12189_v59 = vadd.f32 1.0, %v10594_v19  ;;  %10597 = vpow2.f32 %v8538_v60 }
 0x620   :  { %10599 = vrcp.f32 %v12187_v9  ;;  %v3611_v40 = vand.u32 2147483647, %v12187_v9  ;;  %v3613_v17 = vand.u32 2147483648, %v12187_v9  ;;  %vm3607_vm4 = vweird.f32 %v12187_v9 }
 0x621   :  { %10601 = vrcp.f32 %v12189_v59  ;;  %v3583_v16 = vpop.f32.mrf.mxu3  ;;  %v3651_v52 = vand.u32 2147483648, %v12189_v59  ;;  %v3569_v13 = vpop.f32.mrf.mxu2  ;;  %v3649_v1 = vand.u32 2147483647, %v12189_v59  ;;  %vm3645_vm3 = vweird.f32 %v12189_v59 }
 0x622   :  { %10603 = vpow2.f32 %v8540_v34  ;;  %v3593_v35 = vadd.f32 %v3583_v16, %v724_v39  ;;  %vm12215_vm0 = vcmp.eq.f32.partialorder %v3611_v40, 8.507059e+37  ;;  %v3614_v27 = vor.u32 1.1754944e-38, %v3613_v17  ;;  %v8601_v34 = vld [vmem:[#allocation3 + $0x68] sm:$0xf] }
 0x623   :  { %v3592_v60 = vadd.f32 %v3569_v13, %v635_v37  ;;  %v3652_v28 = vor.u32 1.1754944e-38, %v3651_v52  ;;  %vm12239_vm6 = vcmp.eq.f32.partialorder %v3649_v1, 8.507059e+37  ;;  %v8585_v40 = vld [vmem:[#allocation3 + $0x48] sm:$0xf]  ;;  %v10030_v37 = vld [vmem:[#allocation3 + $0x34] sm:$0xf0] }
 0x624   :  { %v10596_v14 = vpop.eup %10595  ;;  %v8542_v6 = vmul.f32 -1.442695, %v3593_v35  ;;  %v10029_v35 = vld [vmem:[#allocation3 + $0x2c] sm:$0xf0] }
 0x625   :  { %v10598_v23 = vpop.eup %10597  ;;  %v12198_v24 = vadd.f32 1.0, %v10596_v14  ;;  %v8606_v14 = vor.u32 %v10036_v8, %v8603_v45  ;;  %v8570_v45 = vor.u32 %v10030_v37, %v8569_v30 }
 0x626   :  { %v12200_v63 = vpop.eup %10599  ;;  %v12203_v26 = vadd.f32 1.0, %v10598_v23  ;;  %v8561_v23 = vld [vmem:[#allocation3 + $0x20] sm:$0xf] }
 0x627   :  { %v12205_v62 = vpop.eup %10601  ;;  %v3603_v50 = vmul.f32 %v12200_v63, %v12187_v9  ;;  %10605 = vrcp.f32 %v12198_v24  ;;  %vm3608_vm1 = vweird.f32 %v12200_v63  ;;  %v10031_v9 = vld [vmem:[#allocation3 + $0x44] sm:$0xf]  ;;  %3980 = vmatpush.bf16.msra.mxu3 %v8606_v14 }
 0x628   :  { %v10604_v51 = vpop.eup %10603  ;;  %v3641_v29 = vmul.f32 %v12205_v62, %v12189_v59  ;;  %10607 = vtanh.f32 %v3588_v2  ;;  %vm3646_vm2 = vweird.f32 %v12205_v62  ;;  %vm12235_vm5 = vmor %vm3607_vm4, %vm3608_vm1  ;;  %v8602_v59 = vor.u32 %v10038_v0, %v8601_v34 }
 0x629   :  { %v3604_v25 = vsub.f32 1.0, %v3603_v50  ;;  %10609 = vrcp.f32 %v12203_v26  ;;  %v12221_v42 = vadd.f32 1.0, %v10604_v51  ;;  %vm12245_vm7 = vmor %vm3645_vm3, %vm3646_vm2  ;;  %v3626_v39 = vand.u32 2147483647, %v12203_v26 }
 0x62a   :  { %v3642_v18 = vsub.f32 1.0, %v3641_v29  ;;  %3966 = vmatpush.bf16.msra.mxu2 %v8602_v59  ;;  %v8578_v2 = vor.u32 %v10033_v54, %v8577_v43  ;;  %vm3622_vm8 = vweird.f32 %v12203_v26  ;;  %v8582_v10 = vor.u32 %v10031_v9, %v8579_v44  ;;  %v10028_v29 = vld [vmem:[#allocation3 + $0x2c] sm:$0xf]  ;;  %v10023_v54 = vld [vmem:[#allocation3 + $0x4] sm:$0xf] }
 0x62b   :  { %v3605_v19 = vmul.f32 %v12200_v63, %v3604_v25  ;;  %10611 = vrcp.f32 %v12221_v42  ;;  %v3666_v31 = vand.u32 2147483648, %v12221_v42  ;;  %vm3660_vm9 = vweird.f32 %v12221_v42  ;;  %v8553_v9 = vld [vmem:[#allocation3 + $0x8] sm:$0xf]  ;;  %v10026_v44 = vld [vmem:[#allocation3 + $0x14] sm:$0xf0] }
 0x62c   :  { %v3643_v33 = vmul.f32 %v12205_v62, %v3642_v18  ;;  %10613 = vpow2.f32 %v8542_v6  ;;  %3939 = vmatpush.bf16.msra.mxu0 %v8578_v2  ;;  %v3628_v51 = vand.u32 2147483648, %v12203_v26  ;;  %3953 = vmatpush.bf16.msra.mxu1 %v8582_v10  ;;  %v8586_v6 = vor.u32 %v10034_v55, %v8585_v40  ;;  %v8555_v40 = vld [vmem:[#allocation3 + $0x18] sm:$0xf0] }
 0x62d   :  { %v12230_v3 = vpop.eup %10605  ;;  %v3606_v5 = vadd.f32 %v12200_v63, %v3605_v19  ;;  %10615 = vtanh.f32 %v3592_v60  ;;  %v8590_v18 = vor.u32 %v10032_v61, %v8587_v49  ;;  %v10025_v19 = vld [vmem:[#allocation3 + $0xc] sm:$0xf0]  ;;  %v8574_v43 = vor.u32 %v10028_v29, %v8571_v38 }
 0x62e   :  { %v10608_v16 = vpop.eup %10607  ;;  %v3644_v36 = vadd.f32 %v12205_v62, %v3643_v33  ;;  %v3681_v58 = vmul.f32 %v12230_v3, %v12198_v24  ;;  %3967 = vmatpush.bf16.msra.mxu2 %v8586_v6  ;;  %v3664_v59 = vand.u32 2147483647, %v12221_v42  ;;  %vm3627_vm13 = vcmp.eq.f32.partialorder %v3626_v39, 8.507059e+37 }
 0x62f   :  { %v12252_v21 = vpop.eup %10609  ;;  %v3610_v22 = vsel %vm12235_vm5, %v12200_v63, %v3606_v5  ;;  %3981 = vmatpush.bf16.msra.mxu3 %v8590_v18  ;;  %v8547_v5 = vld [vmem:[#allocation3 + $0x10] sm:$0xf0]  ;;  %v3629_v4 = vor.u32 1.1754944e-38, %v3628_v51  ;;  %v8554_v55 = vor.u32 %v10026_v44, %v8553_v9  ;;  %vm3685_vm1 = vweird.f32 %v12198_v24  ;;  %v10086_v9 = vld [vmem:[#allocation3 + $0xf4] sm:$0xf0] }
 0x630   :  { %v3615_v12 = vsel %vm12215_vm0, %v3614_v27, %v3610_v22  ;;  %v3648_v32 = vsel %vm12245_vm7, %v12205_v62, %v3644_v36  ;;  %v3618_v20 = vmul.f32 %v12252_v21, %v12203_v26  ;;  %v8563_v62 = vld [vmem:[#allocation3 + $0x30] sm:$0xf0]  ;;  %v3682_v25 = vsub.f32 1.0, %v3681_v58  ;;  %v10024_v36 = vld [vmem:[#allocation3 + $0xc] sm:$0xf] }
 0x631   :  { %v12267_v48 = vpop.eup %10611  ;;  %v3653_v63 = vsel %vm12239_vm6, %v3652_v28, %v3648_v32  ;;  %v3712_v17 = vmul.f32 %v10608_v16, %v3615_v12  ;;  %v8562_v27 = vor.u32 %v10029_v35, %v8561_v23  ;;  %vm3623_vm10 = vweird.f32 %v12252_v21  ;;  %v8545_v28 = vld [vmem:[#allocation3] sm:$0xf] }
 0x632   :  { %v3710_v50 = vmul.f32 %v3653_v63, %v12135_v56  ;;  %v3619_v52 = vsub.f32 1.0, %v3618_v20  ;;  %v3656_v13 = vmul.f32 %v12267_v48, %v12221_v42  ;;  %v10614_v1 = vpop.eup %10613  ;;  %v8566_v33 = vor.u32 %v10027_v47, %v8563_v62  ;;  %vm3624_vm12 = vmor %vm3622_vm8, %vm3623_vm10  ;;  %3968 = vmatpush.bf16.msra.mxu2 %v8570_v45 }
 0x633   :  { %v10616_v60 = vpop.eup %10615  ;;  %v12280_v8 = vadd.f32 1.0, %v10614_v1  ;;  %vm3661_vm11 = vweird.f32 %v12267_v48  ;;  %3940 = vmatpush.bf16.msra.mxu0 %v8562_v27  ;;  %v3683_v16 = vmul.f32 %v12230_v3, %v3682_v25  ;;  %v8546_v14 = vor.u32 %v10025_v19, %v8545_v28  ;;  %3982 = vmatpush.bf16.msra.mxu3 %v8574_v43  ;;  %v8791_v43 = vld [vmem:[#allocation3 + $0xe0] sm:$0xf] }
 0x634   :  { %v12276_v34 = vadd.f32 %v3712_v17, %v3710_v50  ;;  %v3657_v0 = vsub.f32 1.0, %v3656_v13  ;;  %v3620_v56 = vmul.f32 %v12252_v21, %v3619_v52  ;;  %3954 = vmatpush.bf16.msra.mxu1 %v8566_v33  ;;  %v8550_v2 = vor.u32 %v10023_v54, %v8547_v5  ;;  %vm3662_vm14 = vmor %vm3660_vm9, %vm3661_vm11  ;;  %v10085_v54 = vld [vmem:[#allocation3 + $0xec] sm:$0xf0]  ;;  %v10083_v5 = vld [vmem:[#allocation3 + $0xe4] sm:$0xf] }
 0x635   :  { %10617 = vrcp.f32 %v12280_v8  ;;  %v3667_v26 = vor.u32 1.1754944e-38, %v3666_v31  ;;  %vm3665_vm15 = vcmp.eq.f32.partialorder %v3664_v59, 8.507059e+37  ;;  %v8558_v49 = vor.u32 %v10024_v36, %v8555_v40  ;;  %v8799_v59 = vld [vmem:[#allocation3 + $0xe8] sm:$0xf]  ;;  %v10084_v40 = vld [vmem:[#allocation3 + $0xec] sm:$0xf] }
 0x636   :  { %v3658_v15 = vmul.f32 %v12267_v48, %v3657_v0  ;;  %v3621_v57 = vadd.f32 %v12252_v21, %v3620_v56  ;;  %10619 = vtanh.f32 %v12276_v34  ;;  %v3684_v32 = vadd.f32 %v12230_v3, %v3683_v16  ;;  %3969 = vmatpush.bf16.msra.mxu2 %v8554_v55  ;;  %v13684_v56 = vld [vmem:[#allocation52_spill] sm:$0xff] }
 0x637   :  { %3941 = vmatpush.bf16.msra.mxu0 %v8546_v14  ;;  %vm3686_vm0 = vweird.f32 %v12230_v3  ;;  %v3691_v20 = vand.u32 2147483648, %v12198_v24  ;;  %3983 = vmatpush.bf16.msra.mxu3 %v8558_v49  ;;  %v3689_v23 = vand.u32 2147483647, %v12198_v24  ;;  %v3706_v10 = vand.u32 2147483648, %v12280_v8  ;;  %v8775_v14 = vld [vmem:[#allocation3 + $0xc0] sm:$0xf] }
 0x638   :  { %v3625_v22 = vsel %vm3624_vm12, %v12252_v21, %v3621_v57  ;;  %v3659_v58 = vadd.f32 %v12267_v48, %v3658_v15  ;;  %3955 = vmatpush.bf16.msra.mxu1 %v8550_v2  ;;  %vm3687_vm2 = vmor %vm3685_vm1, %vm3686_vm0  ;;  %v3704_v30 = vand.u32 2147483647, %v12280_v8  ;;  %vm3700_vm5 = vweird.f32 %v12280_v8  ;;  %v8793_v57 = vld [vmem:[#allocation3 + $0xf0] sm:$0xf0]  ;;  %v10081_v2 = vld [vmem:[#allocation3 + $0xcc] sm:$0xf0] }
 0x639   :  { %v3630_v39 = vsel %vm3627_vm13, %v3629_v4, %v3625_v22  ;;  %v3692_v17 = vor.u32 1.1754944e-38, %v3691_v20  ;;  %vm3690_vm3 = vcmp.eq.f32.partialorder %v3689_v23, 8.507059e+37  ;;  %v3707_v52 = vor.u32 1.1754944e-38, %v3706_v10  ;;  %v8801_v22 = vld [vmem:[#allocation3 + $0xf8] sm:$0xf0] }
 0x63a   :  { %v3663_v61 = vsel %vm3662_vm14, %v12267_v48, %v3659_v58  ;;  %v3713_v21 = vmul.f32 %v10616_v60, %v3630_v39  ;;  %v3688_v48 = vsel %vm3687_vm2, %v12230_v3, %v3684_v32  ;;  %vm3705_vm7 = vcmp.eq.f32.partialorder %v3704_v30, 8.507059e+37  ;;  %v13683_v60 = vld [vmem:[#allocation51_spill] sm:$0xff]  ;;  %v13685_v39 = vld [vmem:[#allocation54_spill] sm:$0xff]  ;;  %v8783_v49 = vld [vmem:[#allocation3 + $0xc8] sm:$0xf] }
 0x63b   :  { %v3668_v12 = vsel %vm3665_vm15, %v3667_v26, %v3663_v61  ;;  %v10618_v31 = vpop.eup %10617  ;;  %v3693_v24 = vsel %vm3690_vm3, %v3692_v17, %v3688_v48  ;;  %v460_v0 = vadd.f32 %v13683_v60, %v11344_v53  ;;  %v549_v28 = vadd.f32 %v13684_v56, %v11347_v7  ;;  %v10079_v26 = vld [vmem:[#allocation3 + $0xc4] sm:$0xf]  ;;  %v13686_v32 = vld [vmem:[#allocation55_spill] sm:$0xff] }
 0x63c   :  { %v3711_v42 = vmul.f32 %v3668_v12, %v12169_v41  ;;  %v3696_v47 = vmul.f32 %v10618_v31, %v12280_v8  ;;  %v10620_v41 = vpop.eup %10619  ;;  %vm3701_vm4 = vweird.f32 %v10618_v31  ;;  %v8792_v15 = vor.u32 %v10085_v54, %v8791_v43  ;;  %v10082_v12 = vld [vmem:[#allocation3 + $0xd4] sm:$0xf0]  ;;  %v8743_v43 = vld [vmem:[#allocation3 + $0x80] sm:$0xf]  ;;  %v10073_v54 = vld [vmem:[#allocation3 + $0x8c] sm:$0xf0] }
 0x63d   :  { %v3718_v50 = vmul.f32 %v10620_v41, %v3693_v24  ;;  %vm3702_vm6 = vmor %vm3700_vm5, %vm3701_vm4  ;;  %v8796_v4 = vor.u32 %v10083_v5, %v8793_v57  ;;  %v8800_v36 = vor.u32 %v10086_v9, %v8799_v59  ;;  %v8804_v58 = vor.u32 %v10084_v40, %v8801_v22  ;;  %v8785_v41 = vld [vmem:[#allocation3 + $0xd8] sm:$0xf0]  ;;  %v10078_v60 = vld [vmem:[#allocation3 + $0xb4] sm:$0xf0] }
 0x63e   :  { %v12310_v35 = vadd.f32 %v3713_v21, %v3711_v42  ;;  %v3697_v63 = vsub.f32 1.0, %v3696_v47  ;;  %4338 = vmatpush.bf16.msrb.mxu0 %v8792_v15  ;;  %v727_v55 = vadd.f32 %v13685_v39, %v11356_v11  ;;  %v8776_v61 = vor.u32 %v10081_v2, %v8775_v14  ;;  %v8777_v21 = vld [vmem:[#allocation3 + $0xd0] sm:$0xf0]  ;;  %v10071_v5 = vld [vmem:[#allocation3 + $0x84] sm:$0xf] }
 0x63f   :  { %v3720_v38 = vpack.c.bf16 %v3718_v50, %v3718_v50  ;;  %4352 = vmatpush.bf16.msrb.mxu1 %v8796_v4  ;;  %4366 = vmatpush.bf16.msrb.mxu2 %v8800_v36  ;;  %v462_v42 = vadd.f32 %v13686_v32, %v11344_v53  ;;  %v8780_v47 = vor.u32 %v10079_v26, %v8777_v21  ;;  %v8745_v15 = vld [vmem:[#allocation3 + $0x90] sm:$0xf0]  ;;  %v13688_v57 = vld [vmem:[#allocation53_spill] sm:$0xff]  ;;  %v13689_v4 = vld [vmem:[#allocation58_spill] sm:$0xff] }
 0x640   :  { %10621 = vtanh.f32 %v12310_v35  ;;  %v3698_v62 = vmul.f32 %v10618_v31, %v3697_v63  ;;  %4380 = vmatpush.bf16.msrb.mxu3 %v8804_v58  ;;  %v8784_v48 = vor.u32 %v10082_v12, %v8783_v49  ;;  %v10080_v63 = vld [vmem:[#allocation3 + $0xcc] sm:$0xf]  ;;  %v638_v59 = vadd.f32 %v13688_v57, %v11367_v46  ;;  %v8753_v14 = vld [vmem:[#allocation3 + $0x98] sm:$0xf0]  ;;  %v8727_v21 = vld [vmem:[#allocation3 + $0x60] sm:$0xf] }
 0x641   :  { %v3770_v6 = vunpack.c.l.b16 %v3720_v38  ;;  %v8788_v30 = vor.u32 %v10080_v63, %v8785_v41  ;;  %v8767_v38 = vld [vmem:[#allocation3 + $0xa8] sm:$0xf]  ;;  %v729_v36 = vadd.f32 %v13689_v4, %v11356_v11  ;;  %v8744_v22 = vor.u32 %v10073_v54, %v8743_v43  ;;  %v10072_v58 = vld [vmem:[#allocation3 + $0x8c] sm:$0xf]  ;;  %v10069_v49 = vld [vmem:[#allocation3 + $0x6c] sm:$0xf0] }
 0x642   :  { %v3699_v37 = vadd.f32 %v10618_v31, %v3698_v62  ;;  %4339 = vmatpush.bf16.msrb.mxu0 %v8776_v61  ;;  %v8748_v39 = vor.u32 %v10071_v5, %v8745_v15  ;;  %v8756_v61 = vor.u32 %v10072_v58, %v8753_v14  ;;  %v10067_v12 = vld [vmem:[#allocation3 + $0x64] sm:$0xf]  ;;  %v10065_v43 = vld [vmem:[#allocation3 + $0x4c] sm:$0xf0] }
 0x643   :  { %4353 = vmatpush.bf16.msrb.mxu1 %v8780_v47  ;;  %4367 = vmatpush.bf16.msrb.mxu2 %v8784_v48 }
 0x644   :  { %v3703_v13 = vsel %vm3702_vm6, %v10618_v31, %v3699_v37  ;;  %v13687_v31 = vld [vmem:[#allocation56_spill] sm:$0xff]  ;;  %4381 = vmatpush.bf16.msrb.mxu3 %v8788_v30 }
 0x645   :  { %v3708_v51 = vsel %vm3705_vm7, %v3707_v52, %v3703_v13  ;;  %v551_v20 = vadd.f32 %v13687_v31, %v11347_v7  ;;  %v10077_v52 = vld [vmem:[#allocation3 + $0xac] sm:$0xf0] }
 0x646   :  { %v10622_v3 = vpop.eup %10621 }
 0x647   :  { %v3719_v29 = vmul.f32 %v10622_v3, %v3708_v51  ;;  %v10075_v3 = vld [vmem:[#allocation3 + $0xa4] sm:$0xf] }
 0x649   :  { %v3721_v1 = vpack.c.bf16 %v3719_v29, %v3719_v29  ;;  %v10344_v25 = vpack.c.bf16 %v3719_v29, %v3718_v50  ;;  %v8759_v50 = vld [vmem:[#allocation3 + $0xa0] sm:$0xf]  ;;  %v8761_v29 = vld [vmem:[#allocation3 + $0xb0] sm:$0xf0] }
 0x64a   :  { %v8760_v51 = vor.u32 %v10077_v52, %v8759_v50 }
 0x64b   :  { %10345 = vst [vmem:[#allocation13 + $0x30] sm:$0xff] %v10344_v25   ;;  %v3771_v18 = vunpack.c.l.b16 %v3721_v1 }
 0x64c   :  { %4340 = vmatpush.bf16.msrb.mxu0 %v8760_v51 }
 0x64d   :  { %v3772_v27 = vpack.c.b16 %v3771_v18, %v3770_v6 }
 0x64f   :  { %3942 = vmatmul.bf16.vlgmr.msra.gmra.mxu0 %v3772_v27  ;;  %3956 = vmatmul.bf16.vlgmr.msra.gmra.mxu1 %v3772_v27 }
 0x650   :  { %3970 = vmatmul.bf16.vlgmr.msra.gmra.mxu2 %v3772_v27  ;;  %3984 = vmatmul.bf16.vlgmr.msra.gmra.mxu3 %v3772_v27  ;;  %v8764_v27 = vor.u32 %v10075_v3, %v8761_v29  ;;  %v8705_v3 = vld [vmem:[#allocation3 + $0x38] sm:$0xf0] }
 0x651   :  { %4341 = vmatpush.bf16.msrb.mxu0 %v8744_v22 }
 0x652   :  { %4354 = vmatpush.bf16.msrb.mxu1 %v8764_v27  ;;  %v10070_v27 = vld [vmem:[#allocation3 + $0x74] sm:$0xf0] }
 0x656   :  { %4355 = vmatpush.bf16.msrb.mxu1 %v8748_v39  ;;  %v10066_v39 = vld [vmem:[#allocation3 + $0x54] sm:$0xf0] }
 0x6cc   :  { %v3943_v19 = vpop.f32.mrf.mxu0  ;;  %v3957_v8 = vpop.f32.mrf.mxu1 }
 0x6cd   :  { %v3990_v33 = vadd.f32 %v3943_v19, %v460_v0  ;;  %v3991_v45 = vadd.f32 %v3957_v8, %v549_v28  ;;  %v8768_v28 = vor.u32 %v10078_v60, %v8767_v38  ;;  %v10076_v19 = vld [vmem:[#allocation3 + $0xac] sm:$0xf]  ;;  %v8769_v8 = vld [vmem:[#allocation3 + $0xb8] sm:$0xf0] }
 0x6cf   :  { %v8671_v44 = vmul.f32 -1.442695, %v3990_v33  ;;  %v8673_v16 = vmul.f32 -1.442695, %v3991_v45  ;;  %v8772_v45 = vor.u32 %v10076_v19, %v8769_v8  ;;  %4368 = vmatpush.bf16.msrb.mxu2 %v8768_v28  ;;  %v10068_v28 = vld [vmem:[#allocation3 + $0x6c] sm:$0xf] }
 0x6d0   :  { %v8737_v8 = vld [vmem:[#allocation3 + $0x78] sm:$0xf0] }
 0x6d1   :  { %10623 = vpow2.f32 %v8671_v44  ;;  %4382 = vmatpush.bf16.msrb.mxu3 %v8772_v45  ;;  %v8751_v44 = vld [vmem:[#allocation3 + $0x88] sm:$0xf]  ;;  %v8711_v45 = vld [vmem:[#allocation3 + $0x40] sm:$0xf] }
 0x6d2   :  { %10625 = vpow2.f32 %v8673_v16  ;;  %v10074_v16 = vld [vmem:[#allocation3 + $0x94] sm:$0xf0] }
 0x6d3   :  { %v3985_v23 = vpop.f32.mrf.mxu3  ;;  %v3971_v25 = vpop.f32.mrf.mxu2 }
 0x6d4   :  { %v3993_v17 = vadd.f32 %v3985_v23, %v727_v55  ;;  %v3945_v10 = vpop.f32.mrf.mxu0  ;;  %v3959_v62 = vpop.f32.mrf.mxu1  ;;  %v3992_v26 = vadd.f32 %v3971_v25, %v638_v59  ;;  %v8752_v55 = vor.u32 %v10074_v16, %v8751_v44  ;;  %v8729_v23 = vld [vmem:[#allocation3 + $0x70] sm:$0xf0] }
 0x6d5   :  { %v3994_v24 = vadd.f32 %v3945_v10, %v462_v42  ;;  %v3995_v37 = vadd.f32 %v3959_v62, %v551_v20  ;;  %v8728_v20 = vor.u32 %v10069_v49, %v8727_v21  ;;  %v8732_v41 = vor.u32 %v10067_v12, %v8729_v23  ;;  %v13690_v10 = vld [vmem:[#allocation57_spill] sm:$0xff]  ;;  %4383 = vmatpush.bf16.msrb.mxu3 %v8756_v61  ;;  %v8713_v59 = vld [vmem:[#allocation3 + $0x50] sm:$0xf0]  ;;  %v8721_v61 = vld [vmem:[#allocation3 + $0x58] sm:$0xf0] }
 0x6d6   :  { %v8675_v13 = vmul.f32 -1.442695, %v3993_v17  ;;  %4369 = vmatpush.bf16.msrb.mxu2 %v8752_v55  ;;  %v640_v62 = vadd.f32 %v13690_v10, %v11367_v46  ;;  %v10064_v55 = vld [vmem:[#allocation3 + $0x4c] sm:$0xf]  ;;  %v8703_v10 = vld [vmem:[#allocation3 + $0x28] sm:$0xf] }
 0x6d7   :  { %v10624_v1 = vpop.eup %10623  ;;  %v8672_v6 = vmul.f32 -1.442695, %v3994_v24  ;;  %v8674_v18 = vmul.f32 -1.442695, %v3995_v37  ;;  %4342 = vmatpush.bf16.msrb.mxu0 %v8728_v20  ;;  %4356 = vmatpush.bf16.msrb.mxu1 %v8732_v41  ;;  %v10059_v20 = vld [vmem:[#allocation3 + $0x24] sm:$0xf] }
 0x6d8   :  { %v10626_v0 = vpop.eup %10625  ;;  %v12328_v56 = vadd.f32 1.0, %v10624_v1  ;;  %10627 = vpow2.f32 %v8675_v13 }
 0x6d9   :  { %v12330_v33 = vadd.f32 1.0, %v10626_v0  ;;  %10629 = vpow2.f32 %v8672_v6 }
 0x6da   :  { %10631 = vrcp.f32 %v12328_v56  ;;  %v4015_v40 = vand.u32 2147483647, %v12328_v56  ;;  %v4017_v48 = vand.u32 2147483648, %v12328_v56  ;;  %vm4011_vm12 = vweird.f32 %v12328_v56 }
 0x6db   :  { %10633 = vrcp.f32 %v12330_v33  ;;  %v3987_v9 = vpop.f32.mrf.mxu3  ;;  %v4055_v24 = vand.u32 2147483648, %v12330_v33  ;;  %v3973_v37 = vpop.f32.mrf.mxu2  ;;  %v4053_v13 = vand.u32 2147483647, %v12330_v33  ;;  %vm4049_vm11 = vweird.f32 %v12330_v33 }
 0x6dc   :  { %10635 = vpow2.f32 %v8674_v18  ;;  %v3997_v31 = vadd.f32 %v3987_v9, %v729_v36  ;;  %vm12356_vm8 = vcmp.eq.f32.partialorder %v4015_v40, 8.507059e+37  ;;  %v4018_v25 = vor.u32 1.1754944e-38, %v4017_v48  ;;  %v8735_v18 = vld [vmem:[#allocation3 + $0x68] sm:$0xf] }
 0x6dd   :  { %v3996_v6 = vadd.f32 %v3973_v37, %v640_v62  ;;  %v4056_v60 = vor.u32 1.1754944e-38, %v4055_v24  ;;  %vm12380_vm14 = vcmp.eq.f32.partialorder %v4053_v13, 8.507059e+37  ;;  %v8719_v40 = vld [vmem:[#allocation3 + $0x48] sm:$0xf]  ;;  %v10062_v62 = vld [vmem:[#allocation3 + $0x34] sm:$0xf0] }
 0x6de   :  { %v10628_v2 = vpop.eup %10627  ;;  %v8676_v38 = vmul.f32 -1.442695, %v3997_v31  ;;  %v10061_v31 = vld [vmem:[#allocation3 + $0x2c] sm:$0xf0] }
 0x6df   :  { %v10630_v32 = vpop.eup %10629  ;;  %v12339_v42 = vadd.f32 1.0, %v10628_v2  ;;  %v8740_v2 = vor.u32 %v10068_v28, %v8737_v8  ;;  %v8704_v8 = vor.u32 %v10062_v62, %v8703_v10 }
 0x6e0   :  { %v12341_v47 = vpop.eup %10631  ;;  %v12344_v63 = vadd.f32 1.0, %v10630_v32  ;;  %v8695_v32 = vld [vmem:[#allocation3 + $0x20] sm:$0xf] }
 0x6e1   :  { %v12346_v17 = vpop.eup %10633  ;;  %v4007_v30 = vmul.f32 %v12341_v47, %v12328_v56  ;;  %10637 = vrcp.f32 %v12339_v42  ;;  %vm4012_vm9 = vweird.f32 %v12341_v47  ;;  %v10063_v56 = vld [vmem:[#allocation3 + $0x44] sm:$0xf]  ;;  %4384 = vmatpush.bf16.msrb.mxu3 %v8740_v2 }
 0x6e2   :  { %v10636_v50 = vpop.eup %10635  ;;  %v4045_v52 = vmul.f32 %v12346_v17, %v12330_v33  ;;  %10639 = vtanh.f32 %v3992_v26  ;;  %vm4050_vm10 = vweird.f32 %v12346_v17  ;;  %vm12376_vm13 = vmor %vm4011_vm12, %vm4012_vm9  ;;  %v8736_v33 = vor.u32 %v10070_v27, %v8735_v18 }
 0x6e3   :  { %v4008_v51 = vsub.f32 1.0, %v4007_v30  ;;  %10641 = vrcp.f32 %v12344_v63  ;;  %v12362_v29 = vadd.f32 1.0, %v10636_v50  ;;  %vm12386_vm15 = vmor %vm4049_vm11, %vm4050_vm10  ;;  %v4030_v36 = vand.u32 2147483647, %v12344_v63 }
 0x6e4   :  { %v4046_v1 = vsub.f32 1.0, %v4045_v52  ;;  %4370 = vmatpush.bf16.msrb.mxu2 %v8736_v33  ;;  %v8712_v26 = vor.u32 %v10065_v43, %v8711_v45  ;;  %vm4026_vm0 = vweird.f32 %v12344_v63  ;;  %v8716_v41 = vor.u32 %v10063_v56, %v8713_v59  ;;  %v10060_v52 = vld [vmem:[#allocation3 + $0x2c] sm:$0xf]  ;;  %v10055_v43 = vld [vmem:[#allocation3 + $0x4] sm:$0xf] }
 0x6e5   :  { %v4009_v0 = vmul.f32 %v12341_v47, %v4008_v51  ;;  %10643 = vrcp.f32 %v12362_v29  ;;  %v4070_v4 = vand.u32 2147483648, %v12362_v29  ;;  %vm4064_vm1 = vweird.f32 %v12362_v29  ;;  %v8687_v56 = vld [vmem:[#allocation3 + $0x8] sm:$0xf]  ;;  %v10058_v59 = vld [vmem:[#allocation3 + $0x14] sm:$0xf0] }
 0x6e6   :  { %v4047_v19 = vmul.f32 %v12346_v17, %v4046_v1  ;;  %10645 = vpow2.f32 %v8676_v38  ;;  %4343 = vmatpush.bf16.msrb.mxu0 %v8712_v26  ;;  %v4032_v50 = vand.u32 2147483648, %v12344_v63  ;;  %4357 = vmatpush.bf16.msrb.mxu1 %v8716_v41  ;;  %v8720_v38 = vor.u32 %v10066_v39, %v8719_v40  ;;  %v8689_v40 = vld [vmem:[#allocation3 + $0x18] sm:$0xf0] }
 0x6e7   :  { %v12371_v54 = vpop.eup %10637  ;;  %v4010_v5 = vadd.f32 %v12341_v47, %v4009_v0  ;;  %10647 = vtanh.f32 %v3996_v6  ;;  %v8724_v1 = vor.u32 %v10064_v55, %v8721_v61  ;;  %v10057_v0 = vld [vmem:[#allocation3 + $0xc] sm:$0xf0]  ;;  %v8708_v45 = vor.u32 %v10060_v52, %v8705_v3 }
 0x6e8   :  { %v10640_v9 = vpop.eup %10639  ;;  %v4048_v16 = vadd.f32 %v12346_v17, %v4047_v19  ;;  %v4085_v14 = vmul.f32 %v12371_v54, %v12339_v42  ;;  %4371 = vmatpush.bf16.msrb.mxu2 %v8720_v38  ;;  %v4068_v33 = vand.u32 2147483647, %v12362_v29  ;;  %vm4031_vm5 = vcmp.eq.f32.partialorder %v4030_v36, 8.507059e+37 }
 0x6e9   :  { %v12393_v22 = vpop.eup %10641  ;;  %v4014_v58 = vsel %vm12376_vm13, %v12341_v47, %v4010_v5  ;;  %4385 = vmatpush.bf16.msrb.mxu3 %v8724_v1  ;;  %v8681_v5 = vld [vmem:[#allocation3 + $0x10] sm:$0xf0]  ;;  %v4033_v44 = vor.u32 1.1754944e-38, %v4032_v50  ;;  %v8688_v39 = vor.u32 %v10058_v59, %v8687_v56  ;;  %vm4089_vm9 = vweird.f32 %v12339_v42  ;;  %v10118_v56 = vld [vmem:[#allocation3 + $0xf4] sm:$0xf0] }
 0x6ea   :  { %v4019_v21 = vsel %vm12356_vm8, %v4018_v25, %v4014_v58  ;;  %v4052_v49 = vsel %vm12386_vm15, %v12346_v17, %v4048_v16  ;;  %v4022_v12 = vmul.f32 %v12393_v22, %v12344_v63  ;;  %v8697_v17 = vld [vmem:[#allocation3 + $0x30] sm:$0xf0]  ;;  %v4086_v51 = vsub.f32 1.0, %v4085_v14  ;;  %v10056_v16 = vld [vmem:[#allocation3 + $0xc] sm:$0xf] }
 0x6eb   :  { %v12408_v23 = vpop.eup %10643  ;;  %v4057_v47 = vsel %vm12380_vm14, %v4056_v60, %v4052_v49  ;;  %v4116_v48 = vmul.f32 %v10640_v9, %v4019_v21  ;;  %v8696_v25 = vor.u32 %v10061_v31, %v8695_v32  ;;  %vm4027_vm2 = vweird.f32 %v12393_v22  ;;  %v8679_v60 = vld [vmem:[#allocation3] sm:$0xf] }
 0x6ec   :  { %v4114_v30 = vmul.f32 %v4057_v47, %v12276_v34  ;;  %v4023_v24 = vsub.f32 1.0, %v4022_v12  ;;  %v4060_v37 = vmul.f32 %v12408_v23, %v12362_v29  ;;  %v10646_v13 = vpop.eup %10645  ;;  %v8700_v19 = vor.u32 %v10059_v20, %v8697_v17  ;;  %vm4028_vm4 = vmor %vm4026_vm0, %vm4027_vm2  ;;  %4372 = vmatpush.bf16.msrb.mxu2 %v8704_v8 }
 0x6ed   :  { %v10648_v6 = vpop.eup %10647  ;;  %v12421_v28 = vadd.f32 1.0, %v10646_v13  ;;  %vm4065_vm3 = vweird.f32 %v12408_v23  ;;  %4344 = vmatpush.bf16.msrb.mxu0 %v8696_v25  ;;  %v4087_v9 = vmul.f32 %v12371_v54, %v4086_v51  ;;  %v8680_v2 = vor.u32 %v10057_v0, %v8679_v60  ;;  %4386 = vmatpush.bf16.msrb.mxu3 %v8708_v45  ;;  %v8925_v45 = vld [vmem:[#allocation3 + $0xe0] sm:$0xf] }
 0x6ee   :  { %v12417_v18 = vadd.f32 %v4116_v48, %v4114_v30  ;;  %v4061_v27 = vsub.f32 1.0, %v4060_v37  ;;  %v4024_v34 = vmul.f32 %v12393_v22, %v4023_v24  ;;  %4358 = vmatpush.bf16.msrb.mxu1 %v8700_v19  ;;  %v8684_v26 = vor.u32 %v10055_v43, %v8681_v5  ;;  %vm4066_vm6 = vmor %vm4064_vm1, %vm4065_vm3  ;;  %v10117_v43 = vld [vmem:[#allocation3 + $0xec] sm:$0xf0]  ;;  %v10115_v5 = vld [vmem:[#allocation3 + $0xe4] sm:$0xf] }
 0x6ef   :  { %10649 = vrcp.f32 %v12421_v28  ;;  %v4071_v63 = vor.u32 1.1754944e-38, %v4070_v4  ;;  %vm4069_vm7 = vcmp.eq.f32.partialorder %v4068_v33, 8.507059e+37  ;;  %v8692_v61 = vor.u32 %v10056_v16, %v8689_v40  ;;  %v8933_v33 = vld [vmem:[#allocation3 + $0xe8] sm:$0xf]  ;;  %v10116_v40 = vld [vmem:[#allocation3 + $0xec] sm:$0xf] }
 0x6f0   :  { %v4062_v15 = vmul.f32 %v12408_v23, %v4061_v27  ;;  %v4025_v57 = vadd.f32 %v12393_v22, %v4024_v34  ;;  %10651 = vtanh.f32 %v12417_v18  ;;  %v4088_v49 = vadd.f32 %v12371_v54, %v4087_v9  ;;  %4373 = vmatpush.bf16.msrb.mxu2 %v8688_v39  ;;  %v13700_v34 = vld [vmem:[#allocation60_spill] sm:$0xff] }
 0x6f1   :  { %4345 = vmatpush.bf16.msrb.mxu0 %v8680_v2  ;;  %vm4090_vm8 = vweird.f32 %v12371_v54  ;;  %v4095_v12 = vand.u32 2147483648, %v12339_v42  ;;  %4387 = vmatpush.bf16.msrb.mxu3 %v8692_v61  ;;  %v4093_v32 = vand.u32 2147483647, %v12339_v42  ;;  %v4110_v41 = vand.u32 2147483648, %v12421_v28  ;;  %v8909_v2 = vld [vmem:[#allocation3 + $0xc0] sm:$0xf] }
 0x6f2   :  { %v4029_v58 = vsel %vm4028_vm4, %v12393_v22, %v4025_v57  ;;  %v4063_v14 = vadd.f32 %v12408_v23, %v4062_v15  ;;  %4359 = vmatpush.bf16.msrb.mxu1 %v8684_v26  ;;  %vm4091_vm10 = vmor %vm4089_vm9, %vm4090_vm8  ;;  %v4108_v10 = vand.u32 2147483647, %v12421_v28  ;;  %vm4104_vm13 = vweird.f32 %v12421_v28  ;;  %v8927_v57 = vld [vmem:[#allocation3 + $0xf0] sm:$0xf0]  ;;  %v10113_v26 = vld [vmem:[#allocation3 + $0xcc] sm:$0xf0] }
 0x6f3   :  { %v4034_v36 = vsel %vm4031_vm5, %v4033_v44, %v4029_v58  ;;  %v4096_v48 = vor.u32 1.1754944e-38, %v4095_v12  ;;  %vm4094_vm11 = vcmp.eq.f32.partialorder %v4093_v32, 8.507059e+37  ;;  %v4111_v24 = vor.u32 1.1754944e-38, %v4110_v41  ;;  %v8935_v58 = vld [vmem:[#allocation3 + $0xf8] sm:$0xf0] }
 0x6f4   :  { %v4067_v55 = vsel %vm4066_vm6, %v12408_v23, %v4063_v14  ;;  %v4117_v22 = vmul.f32 %v10648_v6, %v4034_v36  ;;  %v4092_v23 = vsel %vm4091_vm10, %v12371_v54, %v4088_v49  ;;  %vm4109_vm15 = vcmp.eq.f32.partialorder %v4108_v10, 8.507059e+37  ;;  %v13699_v6 = vld [vmem:[#allocation59_spill] sm:$0xff]  ;;  %v13701_v36 = vld [vmem:[#allocation62_spill] sm:$0xff]  ;;  %v8917_v61 = vld [vmem:[#allocation3 + $0xc8] sm:$0xf] }
 0x6f5   :  { %v4072_v21 = vsel %vm4069_vm7, %v4071_v63, %v4067_v55  ;;  %v10650_v4 = vpop.eup %10649  ;;  %v4097_v42 = vsel %vm4094_vm11, %v4096_v48, %v4092_v23  ;;  %v465_v27 = vadd.f32 %v13699_v6, %v11344_v53  ;;  %v554_v60 = vadd.f32 %v13700_v34, %v11347_v7  ;;  %v10111_v63 = vld [vmem:[#allocation3 + $0xc4] sm:$0xf]  ;;  %v13702_v49 = vld [vmem:[#allocation63_spill] sm:$0xff] }
 0x6f6   :  { %v4115_v29 = vmul.f32 %v4072_v21, %v12310_v35  ;;  %v4100_v20 = vmul.f32 %v10650_v4, %v12421_v28  ;;  %v10652_v35 = vpop.eup %10651  ;;  %vm4105_vm12 = vweird.f32 %v10650_v4  ;;  %v8926_v15 = vor.u32 %v10117_v43, %v8925_v45  ;;  %v10114_v21 = vld [vmem:[#allocation3 + $0xd4] sm:$0xf0]  ;;  %v8877_v45 = vld [vmem:[#allocation3 + $0x80] sm:$0xf]  ;;  %v10105_v43 = vld [vmem:[#allocation3 + $0x8c] sm:$0xf0] }
 0x6f7   :  { %v4122_v30 = vmul.f32 %v10652_v35, %v4097_v42  ;;  %vm4106_vm14 = vmor %vm4104_vm13, %vm4105_vm12  ;;  %v8930_v44 = vor.u32 %v10115_v5, %v8927_v57  ;;  %v8934_v16 = vor.u32 %v10118_v56, %v8933_v33  ;;  %v8938_v14 = vor.u32 %v10116_v40, %v8935_v58  ;;  %v8919_v35 = vld [vmem:[#allocation3 + $0xd8] sm:$0xf0]  ;;  %v10110_v6 = vld [vmem:[#allocation3 + $0xb4] sm:$0xf0] }
 0x6f8   :  { %v12451_v31 = vadd.f32 %v4117_v22, %v4115_v29  ;;  %v4101_v47 = vsub.f32 1.0, %v4100_v20  ;;  %4742 = vmatpush.bf16.msra.mxu0 %v8926_v15  ;;  %v732_v39 = vadd.f32 %v13701_v36, %v11356_v11  ;;  %v8910_v55 = vor.u32 %v10113_v26, %v8909_v2  ;;  %v8911_v22 = vld [vmem:[#allocation3 + $0xd0] sm:$0xf0]  ;;  %v10103_v5 = vld [vmem:[#allocation3 + $0x84] sm:$0xf] }
 0x6f9   :  { %v4124_v3 = vpack.c.bf16 %v4122_v30, %v4122_v30  ;;  %4756 = vmatpush.bf16.msra.mxu1 %v8930_v44  ;;  %4770 = vmatpush.bf16.msra.mxu2 %v8934_v16  ;;  %v467_v29 = vadd.f32 %v13702_v49, %v11344_v53  ;;  %v8914_v20 = vor.u32 %v10111_v63, %v8911_v22  ;;  %v8879_v15 = vld [vmem:[#allocation3 + $0x90] sm:$0xf0]  ;;  %v13704_v57 = vld [vmem:[#allocation61_spill] sm:$0xff]  ;;  %v13705_v44 = vld [vmem:[#allocation66_spill] sm:$0xff] }
 0x6fa   :  { %10653 = vtanh.f32 %v12451_v31  ;;  %v4102_v17 = vmul.f32 %v10650_v4, %v4101_v47  ;;  %4784 = vmatpush.bf16.msra.mxu3 %v8938_v14  ;;  %v8918_v23 = vor.u32 %v10114_v21, %v8917_v61  ;;  %v10112_v47 = vld [vmem:[#allocation3 + $0xcc] sm:$0xf]  ;;  %v643_v33 = vadd.f32 %v13704_v57, %v11367_v46  ;;  %v8887_v2 = vld [vmem:[#allocation3 + $0x98] sm:$0xf0]  ;;  %v8861_v22 = vld [vmem:[#allocation3 + $0x60] sm:$0xf] }
 0x6fb   :  { %v4174_v38 = vunpack.c.l.b16 %v4124_v3  ;;  %v8922_v10 = vor.u32 %v10112_v47, %v8919_v35  ;;  %v8901_v3 = vld [vmem:[#allocation3 + $0xa8] sm:$0xf]  ;;  %v734_v16 = vadd.f32 %v13705_v44, %v11356_v11  ;;  %v8878_v58 = vor.u32 %v10105_v43, %v8877_v45  ;;  %v10104_v14 = vld [vmem:[#allocation3 + $0x8c] sm:$0xf]  ;;  %v10101_v61 = vld [vmem:[#allocation3 + $0x6c] sm:$0xf0] }
 0x6fc   :  { %v4103_v62 = vadd.f32 %v10650_v4, %v4102_v17  ;;  %4743 = vmatpush.bf16.msra.mxu0 %v8910_v55  ;;  %v8882_v36 = vor.u32 %v10103_v5, %v8879_v15  ;;  %v8890_v55 = vor.u32 %v10104_v14, %v8887_v2  ;;  %v10099_v21 = vld [vmem:[#allocation3 + $0x64] sm:$0xf]  ;;  %v10097_v45 = vld [vmem:[#allocation3 + $0x4c] sm:$0xf0] }
 0x6fd   :  { %4757 = vmatpush.bf16.msra.mxu1 %v8914_v20  ;;  %4771 = vmatpush.bf16.msra.mxu2 %v8918_v23 }
 0x6fe   :  { %v4107_v37 = vsel %vm4106_vm14, %v10650_v4, %v4103_v62  ;;  %v13703_v4 = vld [vmem:[#allocation64_spill] sm:$0xff]  ;;  %4785 = vmatpush.bf16.msra.mxu3 %v8922_v10 }
 0x6ff   :  { %v4112_v50 = vsel %vm4109_vm15, %v4111_v24, %v4107_v37  ;;  %v556_v12 = vadd.f32 %v13703_v4, %v11347_v7  ;;  %v10109_v24 = vld [vmem:[#allocation3 + $0xac] sm:$0xf0] }
 0x700   :  { %v10654_v54 = vpop.eup %10653 }
 0x701   :  { %v4123_v52 = vmul.f32 %v10654_v54, %v4112_v50  ;;  %v10107_v54 = vld [vmem:[#allocation3 + $0xa4] sm:$0xf] }
 0x703   :  { %v4125_v13 = vpack.c.bf16 %v4123_v52, %v4123_v52  ;;  %v10349_v51 = vpack.c.bf16 %v4123_v52, %v4122_v30  ;;  %v8893_v30 = vld [vmem:[#allocation3 + $0xa0] sm:$0xf]  ;;  %v8895_v52 = vld [vmem:[#allocation3 + $0xb0] sm:$0xf0] }
 0x704   :  { %v8894_v50 = vor.u32 %v10109_v24, %v8893_v30 }
 0x705   :  { %10350 = vst [vmem:[#allocation13 + $0x38] sm:$0xff] %v10349_v51   ;;  %v4175_v1 = vunpack.c.l.b16 %v4125_v13 }
 0x706   :  { %4744 = vmatpush.bf16.msra.mxu0 %v8894_v50 }
 0x707   :  { %v4176_v25 = vpack.c.b16 %v4175_v1, %v4174_v38 }
 0x709   :  { %4346 = vmatmul.bf16.vlgmr.msrb.gmra.mxu0 %v4176_v25  ;;  %4360 = vmatmul.bf16.vlgmr.msrb.gmra.mxu1 %v4176_v25 }
 0x70a   :  { %4374 = vmatmul.bf16.vlgmr.msrb.gmra.mxu2 %v4176_v25  ;;  %4388 = vmatmul.bf16.vlgmr.msrb.gmra.mxu3 %v4176_v25  ;;  %v8898_v25 = vor.u32 %v10107_v54, %v8895_v52  ;;  %v8839_v54 = vld [vmem:[#allocation3 + $0x38] sm:$0xf0] }
 0x70b   :  { %4745 = vmatpush.bf16.msra.mxu0 %v8878_v58 }
 0x70c   :  { %4758 = vmatpush.bf16.msra.mxu1 %v8898_v25  ;;  %v10102_v25 = vld [vmem:[#allocation3 + $0x74] sm:$0xf0] }
 0x710   :  { %4759 = vmatpush.bf16.msra.mxu1 %v8882_v36  ;;  %v10098_v36 = vld [vmem:[#allocation3 + $0x54] sm:$0xf0] }
 0x786   :  { %v4347_v0 = vpop.f32.mrf.mxu0  ;;  %v4361_v28 = vpop.f32.mrf.mxu1 }
 0x787   :  { %v4394_v19 = vadd.f32 %v4347_v0, %v465_v27  ;;  %v4395_v8 = vadd.f32 %v4361_v28, %v554_v60  ;;  %v8902_v60 = vor.u32 %v10110_v6, %v8901_v3  ;;  %v10108_v0 = vld [vmem:[#allocation3 + $0xac] sm:$0xf]  ;;  %v8903_v28 = vld [vmem:[#allocation3 + $0xb8] sm:$0xf0] }
 0x789   :  { %v8805_v59 = vmul.f32 -1.442695, %v4394_v19  ;;  %v8807_v9 = vmul.f32 -1.442695, %v4395_v8  ;;  %v8906_v8 = vor.u32 %v10108_v0, %v8903_v28  ;;  %4772 = vmatpush.bf16.msra.mxu2 %v8902_v60  ;;  %v10100_v60 = vld [vmem:[#allocation3 + $0x6c] sm:$0xf] }
 0x78a   :  { %v8871_v28 = vld [vmem:[#allocation3 + $0x78] sm:$0xf0] }
 0x78b   :  { %10655 = vpow2.f32 %v8805_v59  ;;  %4786 = vmatpush.bf16.msra.mxu3 %v8906_v8  ;;  %v8885_v59 = vld [vmem:[#allocation3 + $0x88] sm:$0xf]  ;;  %v8845_v8 = vld [vmem:[#allocation3 + $0x40] sm:$0xf] }
 0x78c   :  { %10657 = vpow2.f32 %v8807_v9  ;;  %v10106_v9 = vld [vmem:[#allocation3 + $0x94] sm:$0xf0] }
 0x78d   :  { %v4389_v32 = vpop.f32.mrf.mxu3  ;;  %v4375_v51 = vpop.f32.mrf.mxu2 }
 0x78e   :  { %v4397_v48 = vadd.f32 %v4389_v32, %v732_v39  ;;  %v4349_v41 = vpop.f32.mrf.mxu0  ;;  %v4363_v17 = vpop.f32.mrf.mxu1  ;;  %v4396_v63 = vadd.f32 %v4375_v51, %v643_v33  ;;  %v8886_v39 = vor.u32 %v10106_v9, %v8885_v59  ;;  %v8863_v32 = vld [vmem:[#allocation3 + $0x70] sm:$0xf0] }
 0x78f   :  { %v4398_v42 = vadd.f32 %v4349_v41, %v467_v29  ;;  %v4399_v62 = vadd.f32 %v4363_v17, %v556_v12  ;;  %v8862_v12 = vor.u32 %v10101_v61, %v8861_v22  ;;  %v8866_v35 = vor.u32 %v10099_v21, %v8863_v32  ;;  %v13706_v41 = vld [vmem:[#allocation65_spill] sm:$0xff]  ;;  %4787 = vmatpush.bf16.msra.mxu3 %v8890_v55  ;;  %v8847_v33 = vld [vmem:[#allocation3 + $0x50] sm:$0xf0]  ;;  %v8855_v55 = vld [vmem:[#allocation3 + $0x58] sm:$0xf0] }
 0x790   :  { %v8809_v37 = vmul.f32 -1.442695, %v4397_v48  ;;  %4773 = vmatpush.bf16.msra.mxu2 %v8886_v39  ;;  %v645_v17 = vadd.f32 %v13706_v41, %v11367_v46  ;;  %v10096_v39 = vld [vmem:[#allocation3 + $0x4c] sm:$0xf]  ;;  %v8837_v41 = vld [vmem:[#allocation3 + $0x28] sm:$0xf] }
 0x791   :  { %v10656_v13 = vpop.eup %10655  ;;  %v8806_v38 = vmul.f32 -1.442695, %v4398_v42  ;;  %v8808_v1 = vmul.f32 -1.442695, %v4399_v62  ;;  %4746 = vmatpush.bf16.msra.mxu0 %v8862_v12  ;;  %4760 = vmatpush.bf16.msra.mxu1 %v8866_v35  ;;  %v10091_v12 = vld [vmem:[#allocation3 + $0x24] sm:$0xf] }
 0x792   :  { %v10658_v27 = vpop.eup %10657  ;;  %v12469_v34 = vadd.f32 1.0, %v10656_v13  ;;  %10659 = vpow2.f32 %v8809_v37 }
 0x793   :  { %v12471_v19 = vadd.f32 1.0, %v10658_v27  ;;  %10661 = vpow2.f32 %v8806_v38 }
 0x794   :  { %10663 = vrcp.f32 %v12469_v34  ;;  %v4419_v40 = vand.u32 2147483647, %v12469_v34  ;;  %v4421_v23 = vand.u32 2147483648, %v12469_v34  ;;  %vm4415_vm4 = vweird.f32 %v12469_v34 }
 0x795   :  { %10665 = vrcp.f32 %v12471_v19  ;;  %v4391_v56 = vpop.f32.mrf.mxu3  ;;  %v4459_v42 = vand.u32 2147483648, %v12471_v19  ;;  %v4377_v62 = vpop.f32.mrf.mxu2  ;;  %v4457_v37 = vand.u32 2147483647, %v12471_v19  ;;  %vm4453_vm3 = vweird.f32 %v12471_v19 }
 0x796   :  { %10667 = vpow2.f32 %v8808_v1  ;;  %v4401_v4 = vadd.f32 %v4391_v56, %v734_v16  ;;  %vm12497_vm0 = vcmp.eq.f32.partialorder %v4419_v40, 8.507059e+37  ;;  %v4422_v51 = vor.u32 1.1754944e-38, %v4421_v23  ;;  %v8869_v1 = vld [vmem:[#allocation3 + $0x68] sm:$0xf] }
 0x797   :  { %v4400_v38 = vadd.f32 %v4377_v62, %v645_v17  ;;  %v4460_v6 = vor.u32 1.1754944e-38, %v4459_v42  ;;  %vm12521_vm6 = vcmp.eq.f32.partialorder %v4457_v37, 8.507059e+37  ;;  %v8853_v40 = vld [vmem:[#allocation3 + $0x48] sm:$0xf]  ;;  %v10094_v17 = vld [vmem:[#allocation3 + $0x34] sm:$0xf0] }
 0x798   :  { %v10660_v26 = vpop.eup %10659  ;;  %v8810_v3 = vmul.f32 -1.442695, %v4401_v4  ;;  %v10093_v4 = vld [vmem:[#allocation3 + $0x2c] sm:$0xf0] }
 0x799   :  { %v10662_v49 = vpop.eup %10661  ;;  %v12480_v29 = vadd.f32 1.0, %v10660_v26  ;;  %v8874_v26 = vor.u32 %v10100_v60, %v8871_v28  ;;  %v8838_v28 = vor.u32 %v10094_v17, %v8837_v41 }
 0x79a   :  { %v12482_v20 = vpop.eup %10663  ;;  %v12485_v47 = vadd.f32 1.0, %v10662_v49  ;;  %v8829_v49 = vld [vmem:[#allocation3 + $0x20] sm:$0xf] }
 0x79b   :  { %v12487_v48 = vpop.eup %10665  ;;  %v4411_v10 = vmul.f32 %v12482_v20, %v12469_v34  ;;  %10669 = vrcp.f32 %v12480_v29  ;;  %vm4416_vm1 = vweird.f32 %v12482_v20  ;;  %v10095_v34 = vld [vmem:[#allocation3 + $0x44] sm:$0xf]  ;;  %4788 = vmatpush.bf16.msra.mxu3 %v8874_v26 }
 0x79c   :  { %v10668_v30 = vpop.eup %10667  ;;  %v4449_v24 = vmul.f32 %v12487_v48, %v12471_v19  ;;  %10671 = vtanh.f32 %v4396_v63  ;;  %vm4454_vm2 = vweird.f32 %v12487_v48  ;;  %vm12517_vm5 = vmor %vm4415_vm4, %vm4416_vm1  ;;  %v8870_v19 = vor.u32 %v10102_v25, %v8869_v1 }
 0x79d   :  { %v4412_v50 = vsub.f32 1.0, %v4411_v10  ;;  %10673 = vrcp.f32 %v12485_v47  ;;  %v12503_v52 = vadd.f32 1.0, %v10668_v30  ;;  %vm12527_vm7 = vmor %vm4453_vm3, %vm4454_vm2  ;;  %v4434_v16 = vand.u32 2147483647, %v12485_v47 }
 0x79e   :  { %v4450_v13 = vsub.f32 1.0, %v4449_v24  ;;  %4774 = vmatpush.bf16.msra.mxu2 %v8870_v19  ;;  %v8846_v63 = vor.u32 %v10097_v45, %v8845_v8  ;;  %vm4430_vm8 = vweird.f32 %v12485_v47  ;;  %v8850_v35 = vor.u32 %v10095_v34, %v8847_v33  ;;  %v10092_v24 = vld [vmem:[#allocation3 + $0x2c] sm:$0xf]  ;;  %v10087_v45 = vld [vmem:[#allocation3 + $0x4] sm:$0xf] }
 0x79f   :  { %v4413_v27 = vmul.f32 %v12482_v20, %v4412_v50  ;;  %10675 = vrcp.f32 %v12503_v52  ;;  %v4474_v44 = vand.u32 2147483648, %v12503_v52  ;;  %vm4468_vm9 = vweird.f32 %v12503_v52  ;;  %v8821_v34 = vld [vmem:[#allocation3 + $0x8] sm:$0xf]  ;;  %v10090_v33 = vld [vmem:[#allocation3 + $0x14] sm:$0xf0] }
 0x7a0   :  { %v4451_v0 = vmul.f32 %v12487_v48, %v4450_v13  ;;  %10677 = vpow2.f32 %v8810_v3  ;;  %4747 = vmatpush.bf16.msra.mxu0 %v8846_v63  ;;  %v4436_v30 = vand.u32 2147483648, %v12485_v47  ;;  %4761 = vmatpush.bf16.msra.mxu1 %v8850_v35  ;;  %v8854_v3 = vor.u32 %v10098_v36, %v8853_v40  ;;  %v8823_v40 = vld [vmem:[#allocation3 + $0x18] sm:$0xf0] }
 0x7a1   :  { %v12512_v43 = vpop.eup %10669  ;;  %v4414_v5 = vadd.f32 %v12482_v20, %v4413_v27  ;;  %10679 = vtanh.f32 %v4400_v38  ;;  %v8858_v13 = vor.u32 %v10096_v39, %v8855_v55  ;;  %v10089_v27 = vld [vmem:[#allocation3 + $0xc] sm:$0xf0]  ;;  %v8842_v8 = vor.u32 %v10092_v24, %v8839_v54 }
 0x7a2   :  { %v10672_v56 = vpop.eup %10671  ;;  %v4452_v9 = vadd.f32 %v12487_v48, %v4451_v0  ;;  %v4489_v2 = vmul.f32 %v12512_v43, %v12480_v29  ;;  %4775 = vmatpush.bf16.msra.mxu2 %v8854_v3  ;;  %v4472_v19 = vand.u32 2147483647, %v12503_v52  ;;  %vm4435_vm13 = vcmp.eq.f32.partialorder %v4434_v16, 8.507059e+37 }
 0x7a3   :  { %v12534_v58 = vpop.eup %10673  ;;  %v4418_v14 = vsel %vm12517_vm5, %v12482_v20, %v4414_v5  ;;  %4789 = vmatpush.bf16.msra.mxu3 %v8858_v13  ;;  %v8815_v5 = vld [vmem:[#allocation3 + $0x10] sm:$0xf0]  ;;  %v4437_v59 = vor.u32 1.1754944e-38, %v4436_v30  ;;  %v8822_v36 = vor.u32 %v10090_v33, %v8821_v34  ;;  %vm4493_vm1 = vweird.f32 %v12480_v29  ;;  %v10150_v34 = vld [vmem:[#allocation3 + $0xf4] sm:$0xf0] }
 0x7a4   :  { %v4423_v22 = vsel %vm12497_vm0, %v4422_v51, %v4418_v14  ;;  %v4456_v61 = vsel %vm12527_vm7, %v12487_v48, %v4452_v9  ;;  %v4426_v21 = vmul.f32 %v12534_v58, %v12485_v47  ;;  %v8831_v48 = vld [vmem:[#allocation3 + $0x30] sm:$0xf0]  ;;  %v4490_v50 = vsub.f32 1.0, %v4489_v2  ;;  %v10088_v9 = vld [vmem:[#allocation3 + $0xc] sm:$0xf] }
 0x7a5   :  { %v12549_v32 = vpop.eup %10675  ;;  %v4461_v20 = vsel %vm12521_vm6, %v4460_v6, %v4456_v61  ;;  %v4520_v23 = vmul.f32 %v10672_v56, %v4423_v22  ;;  %v8830_v51 = vor.u32 %v10093_v4, %v8829_v49  ;;  %vm4431_vm10 = vweird.f32 %v12534_v58  ;;  %v8813_v6 = vld [vmem:[#allocation3] sm:$0xf] }
 0x7a6   :  { %v4518_v10 = vmul.f32 %v4461_v20, %v12417_v18  ;;  %v4427_v42 = vsub.f32 1.0, %v4426_v21  ;;  %v4464_v62 = vmul.f32 %v12549_v32, %v12503_v52  ;;  %v10678_v37 = vpop.eup %10677  ;;  %v8834_v0 = vor.u32 %v10091_v12, %v8831_v48  ;;  %vm4432_vm12 = vmor %vm4430_vm8, %vm4431_vm10  ;;  %4776 = vmatpush.bf16.msra.mxu2 %v8838_v28 }
 0x7a7   :  { %v10680_v38 = vpop.eup %10679  ;;  %v12562_v60 = vadd.f32 1.0, %v10678_v37  ;;  %vm4469_vm11 = vweird.f32 %v12549_v32  ;;  %4748 = vmatpush.bf16.msra.mxu0 %v8830_v51  ;;  %v4491_v56 = vmul.f32 %v12512_v43, %v4490_v50  ;;  %v8814_v26 = vor.u32 %v10089_v27, %v8813_v6  ;;  %4790 = vmatpush.bf16.msra.mxu3 %v8842_v8  ;;  %v9059_v8 = vld [vmem:[#allocation3 + $0xe0] sm:$0xf] }
 0x7a8   :  { %v12558_v1 = vadd.f32 %v4520_v23, %v4518_v10  ;;  %v4465_v25 = vsub.f32 1.0, %v4464_v62  ;;  %v4428_v18 = vmul.f32 %v12534_v58, %v4427_v42  ;;  %4762 = vmatpush.bf16.msra.mxu1 %v8834_v0  ;;  %v8818_v63 = vor.u32 %v10087_v45, %v8815_v5  ;;  %vm4470_vm14 = vmor %vm4468_vm9, %vm4469_vm11  ;;  %v10149_v45 = vld [vmem:[#allocation3 + $0xec] sm:$0xf0]  ;;  %v10147_v5 = vld [vmem:[#allocation3 + $0xe4] sm:$0xf] }
 0x7a9   :  { %10681 = vrcp.f32 %v12562_v60  ;;  %v4475_v47 = vor.u32 1.1754944e-38, %v4474_v44  ;;  %vm4473_vm15 = vcmp.eq.f32.partialorder %v4472_v19, 8.507059e+37  ;;  %v8826_v55 = vor.u32 %v10088_v9, %v8823_v40  ;;  %v9067_v19 = vld [vmem:[#allocation3 + $0xe8] sm:$0xf]  ;;  %v10148_v40 = vld [vmem:[#allocation3 + $0xec] sm:$0xf] }
 0x7aa   :  { %v4466_v15 = vmul.f32 %v12549_v32, %v4465_v25  ;;  %v4429_v57 = vadd.f32 %v12534_v58, %v4428_v18  ;;  %10683 = vtanh.f32 %v12558_v1  ;;  %v4492_v61 = vadd.f32 %v12512_v43, %v4491_v56  ;;  %4777 = vmatpush.bf16.msra.mxu2 %v8822_v36  ;;  %v13716_v18 = vld [vmem:[#allocation68_spill] sm:$0xff] }
 0x7ab   :  { %4749 = vmatpush.bf16.msra.mxu0 %v8814_v26  ;;  %vm4494_vm0 = vweird.f32 %v12512_v43  ;;  %v4499_v21 = vand.u32 2147483648, %v12480_v29  ;;  %4791 = vmatpush.bf16.msra.mxu3 %v8826_v55  ;;  %v4497_v49 = vand.u32 2147483647, %v12480_v29  ;;  %v4514_v35 = vand.u32 2147483648, %v12562_v60  ;;  %v9043_v26 = vld [vmem:[#allocation3 + $0xc0] sm:$0xf] }
 0x7ac   :  { %v4433_v14 = vsel %vm4432_vm12, %v12534_v58, %v4429_v57  ;;  %v4467_v2 = vadd.f32 %v12549_v32, %v4466_v15  ;;  %4763 = vmatpush.bf16.msra.mxu1 %v8818_v63  ;;  %vm4495_vm2 = vmor %vm4493_vm1, %vm4494_vm0  ;;  %v4512_v41 = vand.u32 2147483647, %v12562_v60  ;;  %vm4508_vm5 = vweird.f32 %v12562_v60  ;;  %v9061_v57 = vld [vmem:[#allocation3 + $0xf0] sm:$0xf0]  ;;  %v10145_v63 = vld [vmem:[#allocation3 + $0xcc] sm:$0xf0] }
 0x7ad   :  { %v4438_v16 = vsel %vm4435_vm13, %v4437_v59, %v4433_v14  ;;  %v4500_v23 = vor.u32 1.1754944e-38, %v4499_v21  ;;  %vm4498_vm3 = vcmp.eq.f32.partialorder %v4497_v49, 8.507059e+37  ;;  %v4515_v42 = vor.u32 1.1754944e-38, %v4514_v35  ;;  %v9069_v14 = vld [vmem:[#allocation3 + $0xf8] sm:$0xf0] }
 0x7ae   :  { %v4471_v39 = vsel %vm4470_vm14, %v12549_v32, %v4467_v2  ;;  %v4521_v58 = vmul.f32 %v10680_v38, %v4438_v16  ;;  %v4496_v32 = vsel %vm4495_vm2, %v12512_v43, %v4492_v61  ;;  %vm4513_vm7 = vcmp.eq.f32.partialorder %v4512_v41, 8.507059e+37  ;;  %v13715_v38 = vld [vmem:[#allocation67_spill] sm:$0xff]  ;;  %v13717_v16 = vld [vmem:[#allocation70_spill] sm:$0xff]  ;;  %v9051_v55 = vld [vmem:[#allocation3 + $0xc8] sm:$0xf] }
 0x7af   :  { %v4476_v22 = vsel %vm4473_vm15, %v4475_v47, %v4471_v39  ;;  %v10682_v44 = vpop.eup %10681  ;;  %v4501_v29 = vsel %vm4498_vm3, %v4500_v23, %v4496_v32  ;;  %v470_v25 = vadd.f32 %v13715_v38, %v11344_v53  ;;  %v559_v6 = vadd.f32 %v13716_v18, %v11347_v7  ;;  %v10143_v47 = vld [vmem:[#allocation3 + $0xc4] sm:$0xf]  ;;  %v13718_v61 = vld [vmem:[#allocation71_spill] sm:$0xff] }
 0x7b0   :  { %v4519_v52 = vmul.f32 %v4476_v22, %v12451_v31  ;;  %v4504_v12 = vmul.f32 %v10682_v44, %v12562_v60  ;;  %v10684_v31 = vpop.eup %10683  ;;  %vm4509_vm4 = vweird.f32 %v10682_v44  ;;  %v9060_v15 = vor.u32 %v10149_v45, %v9059_v8  ;;  %v10146_v22 = vld [vmem:[#allocation3 + $0xd4] sm:$0xf0]  ;;  %v9011_v8 = vld [vmem:[#allocation3 + $0x80] sm:$0xf]  ;;  %v10137_v45 = vld [vmem:[#allocation3 + $0x8c] sm:$0xf0] }
 0x7b1   :  { %v4526_v10 = vmul.f32 %v10684_v31, %v4501_v29  ;;  %vm4510_vm6 = vmor %vm4508_vm5, %vm4509_vm4  ;;  %v9064_v59 = vor.u32 %v10147_v5, %v9061_v57  ;;  %v9068_v9 = vor.u32 %v10150_v34, %v9067_v19  ;;  %v9072_v2 = vor.u32 %v10148_v40, %v9069_v14  ;;  %v9053_v31 = vld [vmem:[#allocation3 + $0xd8] sm:$0xf0]  ;;  %v10142_v38 = vld [vmem:[#allocation3 + $0xb4] sm:$0xf0] }
 0x7b2   :  { %v12592_v4 = vadd.f32 %v4521_v58, %v4519_v52  ;;  %v4505_v20 = vsub.f32 1.0, %v4504_v12  ;;  %5146 = vmatpush.bf16.msrb.mxu0 %v9060_v15  ;;  %v737_v36 = vadd.f32 %v13717_v16, %v11356_v11  ;;  %v9044_v39 = vor.u32 %v10145_v63, %v9043_v26  ;;  %v9045_v58 = vld [vmem:[#allocation3 + $0xd0] sm:$0xf0]  ;;  %v10135_v5 = vld [vmem:[#allocation3 + $0x84] sm:$0xf] }
 0x7b3   :  { %v4528_v54 = vpack.c.bf16 %v4526_v10, %v4526_v10  ;;  %5160 = vmatpush.bf16.msrb.mxu1 %v9064_v59  ;;  %5174 = vmatpush.bf16.msrb.mxu2 %v9068_v9  ;;  %v472_v52 = vadd.f32 %v13718_v61, %v11344_v53  ;;  %v9048_v12 = vor.u32 %v10143_v47, %v9045_v58  ;;  %v9013_v15 = vld [vmem:[#allocation3 + $0x90] sm:$0xf0]  ;;  %v13720_v57 = vld [vmem:[#allocation69_spill] sm:$0xff]  ;;  %v13721_v59 = vld [vmem:[#allocation74_spill] sm:$0xff] }
 0x7b4   :  { %10685 = vtanh.f32 %v12592_v4  ;;  %v4506_v48 = vmul.f32 %v10682_v44, %v4505_v20  ;;  %5188 = vmatpush.bf16.msrb.mxu3 %v9072_v2  ;;  %v9052_v32 = vor.u32 %v10146_v22, %v9051_v55  ;;  %v10144_v20 = vld [vmem:[#allocation3 + $0xcc] sm:$0xf]  ;;  %v648_v19 = vadd.f32 %v13720_v57, %v11367_v46  ;;  %v9021_v26 = vld [vmem:[#allocation3 + $0x98] sm:$0xf0]  ;;  %v8995_v58 = vld [vmem:[#allocation3 + $0x60] sm:$0xf] }
 0x7b5   :  { %v4578_v3 = vunpack.c.l.b16 %v4528_v54  ;;  %v9056_v41 = vor.u32 %v10144_v20, %v9053_v31  ;;  %v9035_v54 = vld [vmem:[#allocation3 + $0xa8] sm:$0xf]  ;;  %v739_v9 = vadd.f32 %v13721_v59, %v11356_v11  ;;  %v9012_v14 = vor.u32 %v10137_v45, %v9011_v8  ;;  %v10136_v2 = vld [vmem:[#allocation3 + $0x8c] sm:$0xf]  ;;  %v10133_v55 = vld [vmem:[#allocation3 + $0x6c] sm:$0xf0] }
 0x7b6   :  { %v4507_v17 = vadd.f32 %v10682_v44, %v4506_v48  ;;  %5147 = vmatpush.bf16.msrb.mxu0 %v9044_v39  ;;  %v9016_v16 = vor.u32 %v10135_v5, %v9013_v15  ;;  %v9024_v39 = vor.u32 %v10136_v2, %v9021_v26  ;;  %v10131_v22 = vld [vmem:[#allocation3 + $0x64] sm:$0xf]  ;;  %v10129_v8 = vld [vmem:[#allocation3 + $0x4c] sm:$0xf0] }
 0x7b7   :  { %5161 = vmatpush.bf16.msrb.mxu1 %v9048_v12  ;;  %5175 = vmatpush.bf16.msrb.mxu2 %v9052_v32 }
 0x7b8   :  { %v4511_v62 = vsel %vm4510_vm6, %v10682_v44, %v4507_v17  ;;  %v13719_v44 = vld [vmem:[#allocation72_spill] sm:$0xff]  ;;  %5189 = vmatpush.bf16.msrb.mxu3 %v9056_v41 }
 0x7b9   :  { %v4516_v30 = vsel %vm4513_vm7, %v4515_v42, %v4511_v62  ;;  %v561_v21 = vadd.f32 %v13719_v44, %v11347_v7  ;;  %v10141_v42 = vld [vmem:[#allocation3 + $0xac] sm:$0xf0] }
 0x7ba   :  { %v10686_v43 = vpop.eup %10685 }
 0x7bb   :  { %v4527_v24 = vmul.f32 %v10686_v43, %v4516_v30  ;;  %v10139_v43 = vld [vmem:[#allocation3 + $0xa4] sm:$0xf] }
 0x7bd   :  { %v4529_v37 = vpack.c.bf16 %v4527_v24, %v4527_v24  ;;  %v10354_v50 = vpack.c.bf16 %v4527_v24, %v4526_v10  ;;  %v9027_v10 = vld [vmem:[#allocation3 + $0xa0] sm:$0xf]  ;;  %v9029_v24 = vld [vmem:[#allocation3 + $0xb0] sm:$0xf0] }
 0x7be   :  { %v9028_v30 = vor.u32 %v10141_v42, %v9027_v10 }
 0x7bf   :  { %10355 = vst [vmem:[#allocation13 + $0x40] sm:$0xff] %v10354_v50   ;;  %v4579_v13 = vunpack.c.l.b16 %v4529_v37 }
 0x7c0   :  { %5148 = vmatpush.bf16.msrb.mxu0 %v9028_v30 }
 0x7c1   :  { %v4580_v51 = vpack.c.b16 %v4579_v13, %v4578_v3 }
 0x7c3   :  { %4750 = vmatmul.bf16.vlgmr.msra.gmra.mxu0 %v4580_v51  ;;  %4764 = vmatmul.bf16.vlgmr.msra.gmra.mxu1 %v4580_v51 }
 0x7c4   :  { %4778 = vmatmul.bf16.vlgmr.msra.gmra.mxu2 %v4580_v51  ;;  %4792 = vmatmul.bf16.vlgmr.msra.gmra.mxu3 %v4580_v51  ;;  %v9032_v51 = vor.u32 %v10139_v43, %v9029_v24  ;;  %v8973_v43 = vld [vmem:[#allocation3 + $0x38] sm:$0xf0] }
 0x7c5   :  { %5149 = vmatpush.bf16.msrb.mxu0 %v9012_v14 }
 0x7c6   :  { %5162 = vmatpush.bf16.msrb.mxu1 %v9032_v51  ;;  %v10134_v51 = vld [vmem:[#allocation3 + $0x74] sm:$0xf0] }
 0x7ca   :  { %5163 = vmatpush.bf16.msrb.mxu1 %v9016_v16  ;;  %v10130_v16 = vld [vmem:[#allocation3 + $0x54] sm:$0xf0] }
 0x840   :  { %v4751_v27 = vpop.f32.mrf.mxu0  ;;  %v4765_v60 = vpop.f32.mrf.mxu1 }
 0x841   :  { %v4798_v0 = vadd.f32 %v4751_v27, %v470_v25  ;;  %v4799_v28 = vadd.f32 %v4765_v60, %v559_v6  ;;  %v9036_v6 = vor.u32 %v10142_v38, %v9035_v54  ;;  %v10140_v27 = vld [vmem:[#allocation3 + $0xac] sm:$0xf]  ;;  %v9037_v60 = vld [vmem:[#allocation3 + $0xb8] sm:$0xf0] }
 0x843   :  { %v8939_v33 = vmul.f32 -1.442695, %v4798_v0  ;;  %v8941_v56 = vmul.f32 -1.442695, %v4799_v28  ;;  %v9040_v28 = vor.u32 %v10140_v27, %v9037_v60  ;;  %5176 = vmatpush.bf16.msrb.mxu2 %v9036_v6  ;;  %v10132_v6 = vld [vmem:[#allocation3 + $0x6c] sm:$0xf] }
 0x844   :  { %v9005_v60 = vld [vmem:[#allocation3 + $0x78] sm:$0xf0] }
 0x845   :  { %10687 = vpow2.f32 %v8939_v33  ;;  %5190 = vmatpush.bf16.msrb.mxu3 %v9040_v28  ;;  %v9019_v33 = vld [vmem:[#allocation3 + $0x88] sm:$0xf]  ;;  %v8979_v28 = vld [vmem:[#allocation3 + $0x40] sm:$0xf] }
 0x846   :  { %10689 = vpow2.f32 %v8941_v56  ;;  %v10138_v56 = vld [vmem:[#allocation3 + $0x94] sm:$0xf0] }
 0x847   :  { %v4793_v49 = vpop.f32.mrf.mxu3  ;;  %v4779_v50 = vpop.f32.mrf.mxu2 }
 0x848   :  { %v4801_v23 = vadd.f32 %v4793_v49, %v737_v36  ;;  %v4753_v35 = vpop.f32.mrf.mxu0  ;;  %v4767_v48 = vpop.f32.mrf.mxu1  ;;  %v4800_v47 = vadd.f32 %v4779_v50, %v648_v19  ;;  %v9020_v36 = vor.u32 %v10138_v56, %v9019_v33  ;;  %v8997_v49 = vld [vmem:[#allocation3 + $0x70] sm:$0xf0] }
 0x849   :  { %v4802_v29 = vadd.f32 %v4753_v35, %v472_v52  ;;  %v4803_v17 = vadd.f32 %v4767_v48, %v561_v21  ;;  %v8996_v21 = vor.u32 %v10133_v55, %v8995_v58  ;;  %v9000_v31 = vor.u32 %v10131_v22, %v8997_v49  ;;  %v13722_v35 = vld [vmem:[#allocation73_spill] sm:$0xff]  ;;  %5191 = vmatpush.bf16.msrb.mxu3 %v9024_v39  ;;  %v8981_v19 = vld [vmem:[#allocation3 + $0x50] sm:$0xf0]  ;;  %v8989_v39 = vld [vmem:[#allocation3 + $0x58] sm:$0xf0] }
 0x84a   :  { %v8943_v62 = vmul.f32 -1.442695, %v4801_v23  ;;  %5177 = vmatpush.bf16.msrb.mxu2 %v9020_v36  ;;  %v650_v48 = vadd.f32 %v13722_v35, %v11367_v46  ;;  %v10128_v36 = vld [vmem:[#allocation3 + $0x4c] sm:$0xf]  ;;  %v8971_v35 = vld [vmem:[#allocation3 + $0x28] sm:$0xf] }
 0x84b   :  { %v10688_v37 = vpop.eup %10687  ;;  %v8940_v3 = vmul.f32 -1.442695, %v4802_v29  ;;  %v8942_v13 = vmul.f32 -1.442695, %v4803_v17  ;;  %5150 = vmatpush.bf16.msrb.mxu0 %v8996_v21  ;;  %5164 = vmatpush.bf16.msrb.mxu1 %v9000_v31  ;;  %v10123_v21 = vld [vmem:[#allocation3 + $0x24] sm:$0xf] }
 0x84c   :  { %v10690_v25 = vpop.eup %10689  ;;  %v12610_v18 = vadd.f32 1.0, %v10688_v37  ;;  %10691 = vpow2.f32 %v8943_v62 }
 0x84d   :  { %v12612_v0 = vadd.f32 1.0, %v10690_v25  ;;  %10693 = vpow2.f32 %v8940_v3 }
 0x84e   :  { %10695 = vrcp.f32 %v12610_v18  ;;  %v4823_v40 = vand.u32 2147483647, %v12610_v18  ;;  %v4825_v32 = vand.u32 2147483648, %v12610_v18  ;;  %vm4819_vm12 = vweird.f32 %v12610_v18 }
 0x84f   :  { %10697 = vrcp.f32 %v12612_v0  ;;  %v4795_v34 = vpop.f32.mrf.mxu3  ;;  %v4863_v29 = vand.u32 2147483648, %v12612_v0  ;;  %v4781_v17 = vpop.f32.mrf.mxu2  ;;  %v4861_v62 = vand.u32 2147483647, %v12612_v0  ;;  %vm4857_vm11 = vweird.f32 %v12612_v0 }
 0x850   :  { %10699 = vpow2.f32 %v8942_v13  ;;  %v4805_v44 = vadd.f32 %v4795_v34, %v739_v9  ;;  %vm12638_vm8 = vcmp.eq.f32.partialorder %v4823_v40, 8.507059e+37  ;;  %v4826_v50 = vor.u32 1.1754944e-38, %v4825_v32  ;;  %v9003_v13 = vld [vmem:[#allocation3 + $0x68] sm:$0xf] }
 0x851   :  { %v4804_v3 = vadd.f32 %v4781_v17, %v650_v48  ;;  %v4864_v38 = vor.u32 1.1754944e-38, %v4863_v29  ;;  %vm12662_vm14 = vcmp.eq.f32.partialorder %v4861_v62, 8.507059e+37  ;;  %v8987_v40 = vld [vmem:[#allocation3 + $0x48] sm:$0xf]  ;;  %v10126_v48 = vld [vmem:[#allocation3 + $0x34] sm:$0xf0] }
 0x852   :  { %v10692_v63 = vpop.eup %10691  ;;  %v8944_v54 = vmul.f32 -1.442695, %v4805_v44  ;;  %v10125_v44 = vld [vmem:[#allocation3 + $0x2c] sm:$0xf0] }
 0x853   :  { %v10694_v61 = vpop.eup %10693  ;;  %v12621_v52 = vadd.f32 1.0, %v10692_v63  ;;  %v9008_v63 = vor.u32 %v10132_v6, %v9005_v60  ;;  %v8972_v60 = vor.u32 %v10126_v48, %v8971_v35 }
 0x854   :  { %v12623_v12 = vpop.eup %10695  ;;  %v12626_v20 = vadd.f32 1.0, %v10694_v61  ;;  %v8963_v61 = vld [vmem:[#allocation3 + $0x20] sm:$0xf] }
 0x855   :  { %v12628_v23 = vpop.eup %10697  ;;  %v4815_v41 = vmul.f32 %v12623_v12, %v12610_v18  ;;  %10701 = vrcp.f32 %v12621_v52  ;;  %vm4820_vm9 = vweird.f32 %v12623_v12  ;;  %v10127_v18 = vld [vmem:[#allocation3 + $0x44] sm:$0xf]  ;;  %5192 = vmatpush.bf16.msrb.mxu3 %v9008_v63 }
 0x856   :  { %v10700_v10 = vpop.eup %10699  ;;  %v4853_v42 = vmul.f32 %v12628_v23, %v12612_v0  ;;  %10703 = vtanh.f32 %v4800_v47  ;;  %vm4858_vm10 = vweird.f32 %v12628_v23  ;;  %vm12658_vm13 = vmor %vm4819_vm12, %vm4820_vm9  ;;  %v9004_v0 = vor.u32 %v10134_v51, %v9003_v13 }
 0x857   :  { %v4816_v30 = vsub.f32 1.0, %v4815_v41  ;;  %10705 = vrcp.f32 %v12626_v20  ;;  %v12644_v24 = vadd.f32 1.0, %v10700_v10  ;;  %vm12668_vm15 = vmor %vm4857_vm11, %vm4858_vm10  ;;  %v4838_v9 = vand.u32 2147483647, %v12626_v20 }
 0x858   :  { %v4854_v37 = vsub.f32 1.0, %v4853_v42  ;;  %5178 = vmatpush.bf16.msrb.mxu2 %v9004_v0  ;;  %v8980_v47 = vor.u32 %v10129_v8, %v8979_v28  ;;  %vm4834_vm0 = vweird.f32 %v12626_v20  ;;  %v8984_v31 = vor.u32 %v10127_v18, %v8981_v19  ;;  %v10124_v42 = vld [vmem:[#allocation3 + $0x2c] sm:$0xf]  ;;  %v10119_v8 = vld [vmem:[#allocation3 + $0x4] sm:$0xf] }
 0x859   :  { %v4817_v25 = vmul.f32 %v12623_v12, %v4816_v30  ;;  %10707 = vrcp.f32 %v12644_v24  ;;  %v4878_v59 = vand.u32 2147483648, %v12644_v24  ;;  %vm4872_vm1 = vweird.f32 %v12644_v24  ;;  %v8955_v18 = vld [vmem:[#allocation3 + $0x8] sm:$0xf]  ;;  %v10122_v19 = vld [vmem:[#allocation3 + $0x14] sm:$0xf0] }
 0x85a   :  { %v4855_v27 = vmul.f32 %v12628_v23, %v4854_v37  ;;  %10709 = vpow2.f32 %v8944_v54  ;;  %5151 = vmatpush.bf16.msrb.mxu0 %v8980_v47  ;;  %v4840_v10 = vand.u32 2147483648, %v12626_v20  ;;  %5165 = vmatpush.bf16.msrb.mxu1 %v8984_v31  ;;  %v8988_v54 = vor.u32 %v10130_v16, %v8987_v40  ;;  %v8957_v40 = vld [vmem:[#allocation3 + $0x18] sm:$0xf0] }
 0x85b   :  { %v12653_v45 = vpop.eup %10701  ;;  %v4818_v5 = vadd.f32 %v12623_v12, %v4817_v25  ;;  %10711 = vtanh.f32 %v4804_v3  ;;  %v8992_v37 = vor.u32 %v10128_v36, %v8989_v39  ;;  %v10121_v25 = vld [vmem:[#allocation3 + $0xc] sm:$0xf0]  ;;  %v8976_v28 = vor.u32 %v10124_v42, %v8973_v43 }
 0x85c   :  { %v10704_v34 = vpop.eup %10703  ;;  %v4856_v56 = vadd.f32 %v12628_v23, %v4855_v27  ;;  %v4893_v26 = vmul.f32 %v12653_v45, %v12621_v52  ;;  %5179 = vmatpush.bf16.msrb.mxu2 %v8988_v54  ;;  %v4876_v0 = vand.u32 2147483647, %v12644_v24  ;;  %vm4839_vm5 = vcmp.eq.f32.partialorder %v4838_v9, 8.507059e+37 }
 0x85d   :  { %v12675_v14 = vpop.eup %10705  ;;  %v4822_v2 = vsel %vm12658_vm13, %v12623_v12, %v4818_v5  ;;  %5193 = vmatpush.bf16.msrb.mxu3 %v8992_v37  ;;  %v8949_v5 = vld [vmem:[#allocation3 + $0x10] sm:$0xf0]  ;;  %v4841_v33 = vor.u32 1.1754944e-38, %v4840_v10  ;;  %v8956_v16 = vor.u32 %v10122_v19, %v8955_v18  ;;  %vm4897_vm9 = vweird.f32 %v12621_v52  ;;  %v10182_v18 = vld [vmem:[#allocation3 + $0xf4] sm:$0xf0] }
 0x85e   :  { %v4827_v58 = vsel %vm12638_vm8, %v4826_v50, %v4822_v2  ;;  %v4860_v55 = vsel %vm12668_vm15, %v12628_v23, %v4856_v56  ;;  %v4830_v22 = vmul.f32 %v12675_v14, %v12626_v20  ;;  %v8965_v23 = vld [vmem:[#allocation3 + $0x30] sm:$0xf0]  ;;  %v4894_v30 = vsub.f32 1.0, %v4893_v26  ;;  %v10120_v56 = vld [vmem:[#allocation3 + $0xc] sm:$0xf] }
 0x85f   :  { %v12690_v49 = vpop.eup %10707  ;;  %v4865_v12 = vsel %vm12662_vm14, %v4864_v38, %v4860_v55  ;;  %v4924_v32 = vmul.f32 %v10704_v34, %v4827_v58  ;;  %v8964_v50 = vor.u32 %v10125_v44, %v8963_v61  ;;  %vm4835_vm2 = vweird.f32 %v12675_v14  ;;  %v8947_v38 = vld [vmem:[#allocation3] sm:$0xf] }
 0x860   :  { %v4922_v41 = vmul.f32 %v4865_v12, %v12558_v1  ;;  %v4831_v29 = vsub.f32 1.0, %v4830_v22  ;;  %v4868_v17 = vmul.f32 %v12690_v49, %v12644_v24  ;;  %v10710_v62 = vpop.eup %10709  ;;  %v8968_v27 = vor.u32 %v10123_v21, %v8965_v23  ;;  %vm4836_vm4 = vmor %vm4834_vm0, %vm4835_vm2  ;;  %5180 = vmatpush.bf16.msrb.mxu2 %v8972_v60 }
 0x861   :  { %v10712_v3 = vpop.eup %10711  ;;  %v12703_v6 = vadd.f32 1.0, %v10710_v62  ;;  %vm4873_vm3 = vweird.f32 %v12690_v49  ;;  %5152 = vmatpush.bf16.msrb.mxu0 %v8964_v50  ;;  %v4895_v34 = vmul.f32 %v12653_v45, %v4894_v30  ;;  %v8948_v63 = vor.u32 %v10121_v25, %v8947_v38  ;;  %5194 = vmatpush.bf16.msrb.mxu3 %v8976_v28  ;;  %v9193_v28 = vld [vmem:[#allocation3 + $0xe0] sm:$0xf] }
 0x862   :  { %v12699_v13 = vadd.f32 %v4924_v32, %v4922_v41  ;;  %v4869_v51 = vsub.f32 1.0, %v4868_v17  ;;  %v4832_v1 = vmul.f32 %v12675_v14, %v4831_v29  ;;  %5166 = vmatpush.bf16.msrb.mxu1 %v8968_v27  ;;  %v8952_v47 = vor.u32 %v10119_v8, %v8949_v5  ;;  %vm4874_vm6 = vmor %vm4872_vm1, %vm4873_vm3  ;;  %v10181_v8 = vld [vmem:[#allocation3 + $0xec] sm:$0xf0]  ;;  %v10179_v5 = vld [vmem:[#allocation3 + $0xe4] sm:$0xf] }
 0x863   :  { %10713 = vrcp.f32 %v12703_v6  ;;  %v4879_v20 = vor.u32 1.1754944e-38, %v4878_v59  ;;  %vm4877_vm7 = vcmp.eq.f32.partialorder %v4876_v0, 8.507059e+37  ;;  %v8960_v39 = vor.u32 %v10120_v56, %v8957_v40  ;;  %v9201_v0 = vld [vmem:[#allocation3 + $0xe8] sm:$0xf]  ;;  %v10180_v40 = vld [vmem:[#allocation3 + $0xec] sm:$0xf] }
 0x864   :  { %v4870_v15 = vmul.f32 %v12690_v49, %v4869_v51  ;;  %v4833_v57 = vadd.f32 %v12675_v14, %v4832_v1  ;;  %10715 = vtanh.f32 %v12699_v13  ;;  %v4896_v55 = vadd.f32 %v12653_v45, %v4895_v34  ;;  %5181 = vmatpush.bf16.msrb.mxu2 %v8956_v16  ;;  %v13732_v1 = vld [vmem:[#allocation76_spill] sm:$0xff] }
 0x865   :  { %5153 = vmatpush.bf16.msrb.mxu0 %v8948_v63  ;;  %vm4898_vm8 = vweird.f32 %v12653_v45  ;;  %v4903_v22 = vand.u32 2147483648, %v12621_v52  ;;  %5195 = vmatpush.bf16.msrb.mxu3 %v8960_v39  ;;  %v4901_v61 = vand.u32 2147483647, %v12621_v52  ;;  %v4918_v31 = vand.u32 2147483648, %v12703_v6  ;;  %v9177_v63 = vld [vmem:[#allocation3 + $0xc0] sm:$0xf] }
 0x866   :  { %v4837_v2 = vsel %vm4836_vm4, %v12675_v14, %v4833_v57  ;;  %v4871_v26 = vadd.f32 %v12690_v49, %v4870_v15  ;;  %5167 = vmatpush.bf16.msrb.mxu1 %v8952_v47  ;;  %vm4899_vm10 = vmor %vm4897_vm9, %vm4898_vm8  ;;  %v4916_v35 = vand.u32 2147483647, %v12703_v6  ;;  %vm4912_vm13 = vweird.f32 %v12703_v6  ;;  %v9195_v57 = vld [vmem:[#allocation3 + $0xf0] sm:$0xf0]  ;;  %v10177_v47 = vld [vmem:[#allocation3 + $0xcc] sm:$0xf0] }
 0x867   :  { %v4842_v9 = vsel %vm4839_vm5, %v4841_v33, %v4837_v2  ;;  %v4904_v32 = vor.u32 1.1754944e-38, %v4903_v22  ;;  %vm4902_vm11 = vcmp.eq.f32.partialorder %v4901_v61, 8.507059e+37  ;;  %v4919_v29 = vor.u32 1.1754944e-38, %v4918_v31  ;;  %v9203_v2 = vld [vmem:[#allocation3 + $0xf8] sm:$0xf0] }
 0x868   :  { %v4875_v36 = vsel %vm4874_vm6, %v12690_v49, %v4871_v26  ;;  %v4925_v14 = vmul.f32 %v10712_v3, %v4842_v9  ;;  %v4900_v49 = vsel %vm4899_vm10, %v12653_v45, %v4896_v55  ;;  %vm4917_vm15 = vcmp.eq.f32.partialorder %v4916_v35, 8.507059e+37  ;;  %v13731_v3 = vld [vmem:[#allocation75_spill] sm:$0xff]  ;;  %v13733_v9 = vld [vmem:[#allocation78_spill] sm:$0xff]  ;;  %v9185_v39 = vld [vmem:[#allocation3 + $0xc8] sm:$0xf] }
 0x869   :  { %v4880_v58 = vsel %vm4877_vm7, %v4879_v20, %v4875_v36  ;;  %v10714_v59 = vpop.eup %10713  ;;  %v4905_v52 = vsel %vm4902_vm11, %v4904_v32, %v4900_v49  ;;  %v475_v51 = vadd.f32 %v13731_v3, %v11344_v53  ;;  %v564_v38 = vadd.f32 %v13732_v1, %v11347_v7  ;;  %v10175_v20 = vld [vmem:[#allocation3 + $0xc4] sm:$0xf]  ;;  %v13734_v55 = vld [vmem:[#allocation79_spill] sm:$0xff] }
 0x86a   :  { %v4923_v24 = vmul.f32 %v4880_v58, %v12592_v4  ;;  %v4908_v21 = vmul.f32 %v10714_v59, %v12703_v6  ;;  %v10716_v4 = vpop.eup %10715  ;;  %vm4913_vm12 = vweird.f32 %v10714_v59  ;;  %v9194_v15 = vor.u32 %v10181_v8, %v9193_v28  ;;  %v10178_v58 = vld [vmem:[#allocation3 + $0xd4] sm:$0xf0]  ;;  %v9145_v28 = vld [vmem:[#allocation3 + $0x80] sm:$0xf]  ;;  %v10169_v8 = vld [vmem:[#allocation3 + $0x8c] sm:$0xf0] }
 0x86b   :  { %v4930_v41 = vmul.f32 %v10716_v4, %v4905_v52  ;;  %vm4914_vm14 = vmor %vm4912_vm13, %vm4913_vm12  ;;  %v9198_v33 = vor.u32 %v10179_v5, %v9195_v57  ;;  %v9202_v56 = vor.u32 %v10182_v18, %v9201_v0  ;;  %v9206_v26 = vor.u32 %v10180_v40, %v9203_v2  ;;  %v9187_v4 = vld [vmem:[#allocation3 + $0xd8] sm:$0xf0]  ;;  %v10174_v3 = vld [vmem:[#allocation3 + $0xb4] sm:$0xf0] }
 0x86c   :  { %v12733_v44 = vadd.f32 %v4925_v14, %v4923_v24  ;;  %v4909_v12 = vsub.f32 1.0, %v4908_v21  ;;  %5550 = vmatpush.bf16.msra.mxu0 %v9194_v15  ;;  %v742_v16 = vadd.f32 %v13733_v9, %v11356_v11  ;;  %v9178_v36 = vor.u32 %v10177_v47, %v9177_v63  ;;  %v9179_v14 = vld [vmem:[#allocation3 + $0xd0] sm:$0xf0]  ;;  %v10167_v5 = vld [vmem:[#allocation3 + $0x84] sm:$0xf] }
 0x86d   :  { %v4932_v43 = vpack.c.bf16 %v4930_v41, %v4930_v41  ;;  %5564 = vmatpush.bf16.msra.mxu1 %v9198_v33  ;;  %5578 = vmatpush.bf16.msra.mxu2 %v9202_v56  ;;  %v477_v24 = vadd.f32 %v13734_v55, %v11344_v53  ;;  %v9182_v21 = vor.u32 %v10175_v20, %v9179_v14  ;;  %v9147_v15 = vld [vmem:[#allocation3 + $0x90] sm:$0xf0]  ;;  %v13736_v57 = vld [vmem:[#allocation77_spill] sm:$0xff]  ;;  %v13737_v33 = vld [vmem:[#allocation82_spill] sm:$0xff] }
 0x86e   :  { %10717 = vtanh.f32 %v12733_v44  ;;  %v4910_v23 = vmul.f32 %v10714_v59, %v4909_v12  ;;  %5592 = vmatpush.bf16.msra.mxu3 %v9206_v26  ;;  %v9186_v49 = vor.u32 %v10178_v58, %v9185_v39  ;;  %v10176_v12 = vld [vmem:[#allocation3 + $0xcc] sm:$0xf]  ;;  %v653_v0 = vadd.f32 %v13736_v57, %v11367_v46  ;;  %v9155_v63 = vld [vmem:[#allocation3 + $0x98] sm:$0xf0]  ;;  %v9129_v14 = vld [vmem:[#allocation3 + $0x60] sm:$0xf] }
 0x86f   :  { %v4982_v54 = vunpack.c.l.b16 %v4932_v43  ;;  %v9190_v35 = vor.u32 %v10176_v12, %v9187_v4  ;;  %v9169_v43 = vld [vmem:[#allocation3 + $0xa8] sm:$0xf]  ;;  %v744_v56 = vadd.f32 %v13737_v33, %v11356_v11  ;;  %v9146_v2 = vor.u32 %v10169_v8, %v9145_v28  ;;  %v10168_v26 = vld [vmem:[#allocation3 + $0x8c] sm:$0xf]  ;;  %v10165_v39 = vld [vmem:[#allocation3 + $0x6c] sm:$0xf0] }
 0x870   :  { %v4911_v48 = vadd.f32 %v10714_v59, %v4910_v23  ;;  %5551 = vmatpush.bf16.msra.mxu0 %v9178_v36  ;;  %v9150_v9 = vor.u32 %v10167_v5, %v9147_v15  ;;  %v9158_v36 = vor.u32 %v10168_v26, %v9155_v63  ;;  %v10163_v58 = vld [vmem:[#allocation3 + $0x64] sm:$0xf]  ;;  %v10161_v28 = vld [vmem:[#allocation3 + $0x4c] sm:$0xf0] }
 0x871   :  { %5565 = vmatpush.bf16.msra.mxu1 %v9182_v21  ;;  %5579 = vmatpush.bf16.msra.mxu2 %v9186_v49 }
 0x872   :  { %v4915_v17 = vsel %vm4914_vm14, %v10714_v59, %v4911_v48  ;;  %v13735_v59 = vld [vmem:[#allocation80_spill] sm:$0xff]  ;;  %5593 = vmatpush.bf16.msra.mxu3 %v9190_v35 }
 0x873   :  { %v4920_v10 = vsel %vm4917_vm15, %v4919_v29, %v4915_v17  ;;  %v566_v22 = vadd.f32 %v13735_v59, %v11347_v7  ;;  %v10173_v29 = vld [vmem:[#allocation3 + $0xac] sm:$0xf0] }
 0x874   :  { %v10718_v45 = vpop.eup %10717 }
 0x875   :  { %v4931_v42 = vmul.f32 %v10718_v45, %v4920_v10  ;;  %v10171_v45 = vld [vmem:[#allocation3 + $0xa4] sm:$0xf] }
 0x877   :  { %v4933_v62 = vpack.c.bf16 %v4931_v42, %v4931_v42  ;;  %v10359_v30 = vpack.c.bf16 %v4931_v42, %v4930_v41  ;;  %v9161_v41 = vld [vmem:[#allocation3 + $0xa0] sm:$0xf]  ;;  %v9163_v42 = vld [vmem:[#allocation3 + $0xb0] sm:$0xf0] }
 0x878   :  { %v9162_v10 = vor.u32 %v10173_v29, %v9161_v41 }
 0x879   :  { %10360 = vst [vmem:[#allocation13 + $0x48] sm:$0xff] %v10359_v30   ;;  %v4983_v37 = vunpack.c.l.b16 %v4933_v62 }
 0x87a   :  { %5552 = vmatpush.bf16.msra.mxu0 %v9162_v10 }
 0x87b   :  { %v4984_v50 = vpack.c.b16 %v4983_v37, %v4982_v54 }
 0x87d   :  { %5154 = vmatmul.bf16.vlgmr.msrb.gmra.mxu0 %v4984_v50  ;;  %5168 = vmatmul.bf16.vlgmr.msrb.gmra.mxu1 %v4984_v50 }
 0x87e   :  { %5182 = vmatmul.bf16.vlgmr.msrb.gmra.mxu2 %v4984_v50  ;;  %5196 = vmatmul.bf16.vlgmr.msrb.gmra.mxu3 %v4984_v50  ;;  %v9166_v50 = vor.u32 %v10171_v45, %v9163_v42  ;;  %v9107_v45 = vld [vmem:[#allocation3 + $0x38] sm:$0xf0] }
 0x87f   :  { %5553 = vmatpush.bf16.msra.mxu0 %v9146_v2 }
 0x880   :  { %5566 = vmatpush.bf16.msra.mxu1 %v9166_v50  ;;  %v10166_v50 = vld [vmem:[#allocation3 + $0x74] sm:$0xf0] }
 0x884   :  { %5567 = vmatpush.bf16.msra.mxu1 %v9150_v9  ;;  %v10162_v9 = vld [vmem:[#allocation3 + $0x54] sm:$0xf0] }
 0x8fa   :  { %v5155_v25 = vpop.f32.mrf.mxu0  ;;  %v5169_v6 = vpop.f32.mrf.mxu1 }
 0x8fb   :  { %v5202_v27 = vadd.f32 %v5155_v25, %v475_v51  ;;  %v5203_v60 = vadd.f32 %v5169_v6, %v564_v38  ;;  %v9170_v38 = vor.u32 %v10174_v3, %v9169_v43  ;;  %v10172_v25 = vld [vmem:[#allocation3 + $0xac] sm:$0xf]  ;;  %v9171_v6 = vld [vmem:[#allocation3 + $0xb8] sm:$0xf0] }
 0x8fd   :  { %v9073_v19 = vmul.f32 -1.442695, %v5202_v27  ;;  %v9075_v34 = vmul.f32 -1.442695, %v5203_v60  ;;  %v9174_v60 = vor.u32 %v10172_v25, %v9171_v6  ;;  %5580 = vmatpush.bf16.msra.mxu2 %v9170_v38  ;;  %v10164_v38 = vld [vmem:[#allocation3 + $0x6c] sm:$0xf] }
 0x8fe   :  { %v9139_v6 = vld [vmem:[#allocation3 + $0x78] sm:$0xf0] }
 0x8ff   :  { %10719 = vpow2.f32 %v9073_v19  ;;  %5594 = vmatpush.bf16.msra.mxu3 %v9174_v60  ;;  %v9153_v19 = vld [vmem:[#allocation3 + $0x88] sm:$0xf]  ;;  %v9113_v60 = vld [vmem:[#allocation3 + $0x40] sm:$0xf] }
 0x900   :  { %10721 = vpow2.f32 %v9075_v34  ;;  %v10170_v34 = vld [vmem:[#allocation3 + $0x94] sm:$0xf0] }
 0x901   :  { %v5197_v61 = vpop.f32.mrf.mxu3  ;;  %v5183_v30 = vpop.f32.mrf.mxu2 }
 0x902   :  { %v5205_v32 = vadd.f32 %v5197_v61, %v742_v16  ;;  %v5157_v31 = vpop.f32.mrf.mxu0  ;;  %v5171_v23 = vpop.f32.mrf.mxu1  ;;  %v5204_v20 = vadd.f32 %v5183_v30, %v653_v0  ;;  %v9154_v16 = vor.u32 %v10170_v34, %v9153_v19  ;;  %v9131_v61 = vld [vmem:[#allocation3 + $0x70] sm:$0xf0] }
 0x903   :  { %v5206_v52 = vadd.f32 %v5157_v31, %v477_v24  ;;  %v5207_v48 = vadd.f32 %v5171_v23, %v566_v22  ;;  %v9130_v22 = vor.u32 %v10165_v39, %v9129_v14  ;;  %v9134_v4 = vor.u32 %v10163_v58, %v9131_v61  ;;  %v13738_v31 = vld [vmem:[#allocation81_spill] sm:$0xff]  ;;  %5595 = vmatpush.bf16.msra.mxu3 %v9158_v36  ;;  %v9115_v0 = vld [vmem:[#allocation3 + $0x50] sm:$0xf0]  ;;  %v9123_v36 = vld [vmem:[#allocation3 + $0x58] sm:$0xf0] }
 0x904   :  { %v9077_v17 = vmul.f32 -1.442695, %v5205_v32  ;;  %5581 = vmatpush.bf16.msra.mxu2 %v9154_v16  ;;  %v655_v23 = vadd.f32 %v13738_v31, %v11367_v46  ;;  %v10160_v16 = vld [vmem:[#allocation3 + $0x4c] sm:$0xf]  ;;  %v9105_v31 = vld [vmem:[#allocation3 + $0x28] sm:$0xf] }
 0x905   :  { %v10720_v62 = vpop.eup %10719  ;;  %v9074_v54 = vmul.f32 -1.442695, %v5206_v52  ;;  %v9076_v37 = vmul.f32 -1.442695, %v5207_v48  ;;  %5554 = vmatpush.bf16.msra.mxu0 %v9130_v22  ;;  %5568 = vmatpush.bf16.msra.mxu1 %v9134_v4  ;;  %v10155_v22 = vld [vmem:[#allocation3 + $0x24] sm:$0xf] }
 0x906   :  { %v10722_v51 = vpop.eup %10721  ;;  %v12751_v1 = vadd.f32 1.0, %v10720_v62  ;;  %10723 = vpow2.f32 %v9077_v17 }
 0x907   :  { %v12753_v27 = vadd.f32 1.0, %v10722_v51  ;;  %10725 = vpow2.f32 %v9074_v54 }
 0x908   :  { %10727 = vrcp.f32 %v12751_v1  ;;  %v5227_v40 = vand.u32 2147483647, %v12751_v1  ;;  %v5229_v49 = vand.u32 2147483648, %v12751_v1  ;;  %vm5223_vm4 = vweird.f32 %v12751_v1 }
 0x909   :  { %10729 = vrcp.f32 %v12753_v27  ;;  %v5199_v18 = vpop.f32.mrf.mxu3  ;;  %v5267_v52 = vand.u32 2147483648, %v12753_v27  ;;  %v5185_v48 = vpop.f32.mrf.mxu2  ;;  %v5265_v17 = vand.u32 2147483647, %v12753_v27  ;;  %vm5261_vm3 = vweird.f32 %v12753_v27 }
 0x90a   :  { %10731 = vpow2.f32 %v9076_v37  ;;  %v5209_v59 = vadd.f32 %v5199_v18, %v744_v56  ;;  %vm12779_vm0 = vcmp.eq.f32.partialorder %v5227_v40, 8.507059e+37  ;;  %v5230_v30 = vor.u32 1.1754944e-38, %v5229_v49  ;;  %v9137_v37 = vld [vmem:[#allocation3 + $0x68] sm:$0xf] }
 0x90b   :  { %v5208_v54 = vadd.f32 %v5185_v48, %v655_v23  ;;  %v5268_v3 = vor.u32 1.1754944e-38, %v5267_v52  ;;  %vm12803_vm6 = vcmp.eq.f32.partialorder %v5265_v17, 8.507059e+37  ;;  %v9121_v40 = vld [vmem:[#allocation3 + $0x48] sm:$0xf]  ;;  %v10158_v23 = vld [vmem:[#allocation3 + $0x34] sm:$0xf0] }
 0x90c   :  { %v10724_v47 = vpop.eup %10723  ;;  %v9078_v43 = vmul.f32 -1.442695, %v5209_v59  ;;  %v10157_v59 = vld [vmem:[#allocation3 + $0x2c] sm:$0xf0] }
 0x90d   :  { %v10726_v55 = vpop.eup %10725  ;;  %v12762_v24 = vadd.f32 1.0, %v10724_v47  ;;  %v9142_v47 = vor.u32 %v10164_v38, %v9139_v6  ;;  %v9106_v6 = vor.u32 %v10158_v23, %v9105_v31 }
 0x90e   :  { %v12764_v21 = vpop.eup %10727  ;;  %v12767_v12 = vadd.f32 1.0, %v10726_v55  ;;  %v9097_v55 = vld [vmem:[#allocation3 + $0x20] sm:$0xf] }
 0x90f   :  { %v12769_v32 = vpop.eup %10729  ;;  %v5219_v35 = vmul.f32 %v12764_v21, %v12751_v1  ;;  %10733 = vrcp.f32 %v12762_v24  ;;  %vm5224_vm1 = vweird.f32 %v12764_v21  ;;  %v10159_v1 = vld [vmem:[#allocation3 + $0x44] sm:$0xf]  ;;  %5596 = vmatpush.bf16.msra.mxu3 %v9142_v47 }
 0x910   :  { %v10732_v41 = vpop.eup %10731  ;;  %v5257_v29 = vmul.f32 %v12769_v32, %v12753_v27  ;;  %10735 = vtanh.f32 %v5204_v20  ;;  %vm5262_vm2 = vweird.f32 %v12769_v32  ;;  %vm12799_vm5 = vmor %vm5223_vm4, %vm5224_vm1  ;;  %v9138_v27 = vor.u32 %v10166_v50, %v9137_v37 }
 0x911   :  { %v5220_v10 = vsub.f32 1.0, %v5219_v35  ;;  %10737 = vrcp.f32 %v12767_v12  ;;  %v12785_v42 = vadd.f32 1.0, %v10732_v41  ;;  %vm12809_vm7 = vmor %vm5261_vm3, %vm5262_vm2  ;;  %v5242_v56 = vand.u32 2147483647, %v12767_v12 }
 0x912   :  { %v5258_v62 = vsub.f32 1.0, %v5257_v29  ;;  %5582 = vmatpush.bf16.msra.mxu2 %v9138_v27  ;;  %v9114_v20 = vor.u32 %v10161_v28, %v9113_v60  ;;  %vm5238_vm8 = vweird.f32 %v12767_v12  ;;  %v9118_v4 = vor.u32 %v10159_v1, %v9115_v0  ;;  %v10156_v29 = vld [vmem:[#allocation3 + $0x2c] sm:$0xf]  ;;  %v10151_v28 = vld [vmem:[#allocation3 + $0x4] sm:$0xf] }
 0x913   :  { %v5221_v51 = vmul.f32 %v12764_v21, %v5220_v10  ;;  %10739 = vrcp.f32 %v12785_v42  ;;  %v5282_v33 = vand.u32 2147483648, %v12785_v42  ;;  %vm5276_vm9 = vweird.f32 %v12785_v42  ;;  %v9089_v1 = vld [vmem:[#allocation3 + $0x8] sm:$0xf]  ;;  %v10154_v0 = vld [vmem:[#allocation3 + $0x14] sm:$0xf0] }
 0x914   :  { %v5259_v25 = vmul.f32 %v12769_v32, %v5258_v62  ;;  %10741 = vpow2.f32 %v9078_v43  ;;  %5555 = vmatpush.bf16.msra.mxu0 %v9114_v20  ;;  %v5244_v41 = vand.u32 2147483648, %v12767_v12  ;;  %5569 = vmatpush.bf16.msra.mxu1 %v9118_v4  ;;  %v9122_v43 = vor.u32 %v10162_v9, %v9121_v40  ;;  %v9091_v40 = vld [vmem:[#allocation3 + $0x18] sm:$0xf0] }
 0x915   :  { %v12794_v8 = vpop.eup %10733  ;;  %v5222_v5 = vadd.f32 %v12764_v21, %v5221_v51  ;;  %10743 = vtanh.f32 %v5208_v54  ;;  %v9126_v62 = vor.u32 %v10160_v16, %v9123_v36  ;;  %v10153_v51 = vld [vmem:[#allocation3 + $0xc] sm:$0xf0]  ;;  %v9110_v60 = vor.u32 %v10156_v29, %v9107_v45 }
 0x916   :  { %v10736_v18 = vpop.eup %10735  ;;  %v5260_v34 = vadd.f32 %v12769_v32, %v5259_v25  ;;  %v5297_v63 = vmul.f32 %v12794_v8, %v12762_v24  ;;  %5583 = vmatpush.bf16.msra.mxu2 %v9122_v43  ;;  %v5280_v27 = vand.u32 2147483647, %v12785_v42  ;;  %vm5243_vm13 = vcmp.eq.f32.partialorder %v5242_v56, 8.507059e+37 }
 0x917   :  { %v12816_v2 = vpop.eup %10737  ;;  %v5226_v26 = vsel %vm12799_vm5, %v12764_v21, %v5222_v5  ;;  %5597 = vmatpush.bf16.msra.mxu3 %v9126_v62  ;;  %v9083_v5 = vld [vmem:[#allocation3 + $0x10] sm:$0xf0]  ;;  %v5245_v19 = vor.u32 1.1754944e-38, %v5244_v41  ;;  %v9090_v9 = vor.u32 %v10154_v0, %v9089_v1  ;;  %vm5301_vm1 = vweird.f32 %v12762_v24  ;;  %v10214_v1 = vld [vmem:[#allocation3 + $0xf4] sm:$0xf0] }
 0x918   :  { %v5231_v14 = vsel %vm12779_vm0, %v5230_v30, %v5226_v26  ;;  %v5264_v39 = vsel %vm12809_vm7, %v12769_v32, %v5260_v34  ;;  %v5234_v58 = vmul.f32 %v12816_v2, %v12767_v12  ;;  %v9099_v32 = vld [vmem:[#allocation3 + $0x30] sm:$0xf0]  ;;  %v5298_v10 = vsub.f32 1.0, %v5297_v63  ;;  %v10152_v34 = vld [vmem:[#allocation3 + $0xc] sm:$0xf] }
 0x919   :  { %v12831_v61 = vpop.eup %10739  ;;  %v5269_v21 = vsel %vm12803_vm6, %v5268_v3, %v5264_v39  ;;  %v5328_v49 = vmul.f32 %v10736_v18, %v5231_v14  ;;  %v9098_v30 = vor.u32 %v10157_v59, %v9097_v55  ;;  %vm5239_vm10 = vweird.f32 %v12816_v2  ;;  %v9081_v3 = vld [vmem:[#allocation3] sm:$0xf] }
 0x91a   :  { %v5326_v35 = vmul.f32 %v5269_v21, %v12699_v13  ;;  %v5235_v52 = vsub.f32 1.0, %v5234_v58  ;;  %v5272_v48 = vmul.f32 %v12831_v61, %v12785_v42  ;;  %v10742_v17 = vpop.eup %10741  ;;  %v9102_v25 = vor.u32 %v10155_v22, %v9099_v32  ;;  %vm5240_vm12 = vmor %vm5238_vm8, %vm5239_vm10  ;;  %5584 = vmatpush.bf16.msra.mxu2 %v9106_v6 }
 0x91b   :  { %v10744_v54 = vpop.eup %10743  ;;  %v12844_v38 = vadd.f32 1.0, %v10742_v17  ;;  %vm5277_vm11 = vweird.f32 %v12831_v61  ;;  %5556 = vmatpush.bf16.msra.mxu0 %v9098_v30  ;;  %v5299_v18 = vmul.f32 %v12794_v8, %v5298_v10  ;;  %v9082_v47 = vor.u32 %v10153_v51, %v9081_v3  ;;  %5598 = vmatpush.bf16.msra.mxu3 %v9110_v60  ;;  %v9327_v60 = vld [vmem:[#allocation3 + $0xe0] sm:$0xf] }
 0x91c   :  { %v12840_v37 = vadd.f32 %v5328_v49, %v5326_v35  ;;  %v5273_v50 = vsub.f32 1.0, %v5272_v48  ;;  %v5236_v13 = vmul.f32 %v12816_v2, %v5235_v52  ;;  %5570 = vmatpush.bf16.msra.mxu1 %v9102_v25  ;;  %v9086_v20 = vor.u32 %v10151_v28, %v9083_v5  ;;  %vm5278_vm14 = vmor %vm5276_vm9, %vm5277_vm11  ;;  %v10213_v28 = vld [vmem:[#allocation3 + $0xec] sm:$0xf0]  ;;  %v10211_v5 = vld [vmem:[#allocation3 + $0xe4] sm:$0xf] }
 0x91d   :  { %10745 = vrcp.f32 %v12844_v38  ;;  %v5283_v12 = vor.u32 1.1754944e-38, %v5282_v33  ;;  %vm5281_vm15 = vcmp.eq.f32.partialorder %v5280_v27, 8.507059e+37  ;;  %v9094_v36 = vor.u32 %v10152_v34, %v9091_v40  ;;  %v9335_v27 = vld [vmem:[#allocation3 + $0xe8] sm:$0xf]  ;;  %v10212_v40 = vld [vmem:[#allocation3 + $0xec] sm:$0xf] }
 0x91e   :  { %v5274_v15 = vmul.f32 %v12831_v61, %v5273_v50  ;;  %v5237_v57 = vadd.f32 %v12816_v2, %v5236_v13  ;;  %10747 = vtanh.f32 %v12840_v37  ;;  %v5300_v39 = vadd.f32 %v12794_v8, %v5299_v18  ;;  %5585 = vmatpush.bf16.msra.mxu2 %v9090_v9  ;;  %v13748_v13 = vld [vmem:[#allocation84_spill] sm:$0xff] }
 0x91f   :  { %5557 = vmatpush.bf16.msra.mxu0 %v9082_v47  ;;  %vm5302_vm0 = vweird.f32 %v12794_v8  ;;  %v5307_v58 = vand.u32 2147483648, %v12762_v24  ;;  %5599 = vmatpush.bf16.msra.mxu3 %v9094_v36  ;;  %v5305_v55 = vand.u32 2147483647, %v12762_v24  ;;  %v5322_v4 = vand.u32 2147483648, %v12844_v38  ;;  %v9311_v47 = vld [vmem:[#allocation3 + $0xc0] sm:$0xf] }
 0x920   :  { %v5241_v26 = vsel %vm5240_vm12, %v12816_v2, %v5237_v57  ;;  %v5275_v63 = vadd.f32 %v12831_v61, %v5274_v15  ;;  %5571 = vmatpush.bf16.msra.mxu1 %v9086_v20  ;;  %vm5303_vm2 = vmor %vm5301_vm1, %vm5302_vm0  ;;  %v5320_v31 = vand.u32 2147483647, %v12844_v38  ;;  %vm5316_vm5 = vweird.f32 %v12844_v38  ;;  %v9329_v57 = vld [vmem:[#allocation3 + $0xf0] sm:$0xf0]  ;;  %v10209_v20 = vld [vmem:[#allocation3 + $0xcc] sm:$0xf0] }
 0x921   :  { %v5246_v56 = vsel %vm5243_vm13, %v5245_v19, %v5241_v26  ;;  %v5308_v49 = vor.u32 1.1754944e-38, %v5307_v58  ;;  %vm5306_vm3 = vcmp.eq.f32.partialorder %v5305_v55, 8.507059e+37  ;;  %v5323_v52 = vor.u32 1.1754944e-38, %v5322_v4  ;;  %v9337_v26 = vld [vmem:[#allocation3 + $0xf8] sm:$0xf0] }
 0x922   :  { %v5279_v16 = vsel %vm5278_vm14, %v12831_v61, %v5275_v63  ;;  %v5329_v2 = vmul.f32 %v10744_v54, %v5246_v56  ;;  %v5304_v61 = vsel %vm5303_vm2, %v12794_v8, %v5300_v39  ;;  %vm5321_vm7 = vcmp.eq.f32.partialorder %v5320_v31, 8.507059e+37  ;;  %v13747_v54 = vld [vmem:[#allocation83_spill] sm:$0xff]  ;;  %v13749_v56 = vld [vmem:[#allocation86_spill] sm:$0xff]  ;;  %v9319_v36 = vld [vmem:[#allocation3 + $0xc8] sm:$0xf] }
 0x923   :  { %v5284_v14 = vsel %vm5281_vm15, %v5283_v12, %v5279_v16  ;;  %v10746_v33 = vpop.eup %10745  ;;  %v5309_v24 = vsel %vm5306_vm3, %v5308_v49, %v5304_v61  ;;  %v480_v50 = vadd.f32 %v13747_v54, %v11344_v53  ;;  %v569_v3 = vadd.f32 %v13748_v13, %v11347_v7  ;;  %v10207_v12 = vld [vmem:[#allocation3 + $0xc4] sm:$0xf]  ;;  %v13750_v39 = vld [vmem:[#allocation87_spill] sm:$0xff] }
 0x924   :  { %v5327_v42 = vmul.f32 %v5284_v14, %v12733_v44  ;;  %v5312_v22 = vmul.f32 %v10746_v33, %v12844_v38  ;;  %v10748_v44 = vpop.eup %10747  ;;  %vm5317_vm4 = vweird.f32 %v10746_v33  ;;  %v9328_v15 = vor.u32 %v10213_v28, %v9327_v60  ;;  %v10210_v14 = vld [vmem:[#allocation3 + $0xd4] sm:$0xf0]  ;;  %v9279_v60 = vld [vmem:[#allocation3 + $0x80] sm:$0xf]  ;;  %v10201_v28 = vld [vmem:[#allocation3 + $0x8c] sm:$0xf0] }
 0x925   :  { %v5334_v35 = vmul.f32 %v10748_v44, %v5309_v24  ;;  %vm5318_vm6 = vmor %vm5316_vm5, %vm5317_vm4  ;;  %v9332_v19 = vor.u32 %v10211_v5, %v9329_v57  ;;  %v9336_v34 = vor.u32 %v10214_v1, %v9335_v27  ;;  %v9340_v63 = vor.u32 %v10212_v40, %v9337_v26  ;;  %v9321_v44 = vld [vmem:[#allocation3 + $0xd8] sm:$0xf0]  ;;  %v10206_v54 = vld [vmem:[#allocation3 + $0xb4] sm:$0xf0] }
 0x926   :  { %v12874_v59 = vadd.f32 %v5329_v2, %v5327_v42  ;;  %v5313_v21 = vsub.f32 1.0, %v5312_v22  ;;  %5954 = vmatpush.bf16.msrb.mxu0 %v9328_v15  ;;  %v747_v9 = vadd.f32 %v13749_v56, %v11356_v11  ;;  %v9312_v16 = vor.u32 %v10209_v20, %v9311_v47  ;;  %v9313_v2 = vld [vmem:[#allocation3 + $0xd0] sm:$0xf0]  ;;  %v10199_v5 = vld [vmem:[#allocation3 + $0x84] sm:$0xf] }
 0x927   :  { %v5336_v45 = vpack.c.bf16 %v5334_v35, %v5334_v35  ;;  %5968 = vmatpush.bf16.msrb.mxu1 %v9332_v19  ;;  %5982 = vmatpush.bf16.msrb.mxu2 %v9336_v34  ;;  %v482_v42 = vadd.f32 %v13750_v39, %v11344_v53  ;;  %v9316_v22 = vor.u32 %v10207_v12, %v9313_v2  ;;  %v9281_v15 = vld [vmem:[#allocation3 + $0x90] sm:$0xf0]  ;;  %v13752_v57 = vld [vmem:[#allocation85_spill] sm:$0xff]  ;;  %v13753_v19 = vld [vmem:[#allocation90_spill] sm:$0xff] }
 0x928   :  { %10749 = vtanh.f32 %v12874_v59  ;;  %v5314_v32 = vmul.f32 %v10746_v33, %v5313_v21  ;;  %5996 = vmatpush.bf16.msrb.mxu3 %v9340_v63  ;;  %v9320_v61 = vor.u32 %v10210_v14, %v9319_v36  ;;  %v10208_v21 = vld [vmem:[#allocation3 + $0xcc] sm:$0xf]  ;;  %v658_v27 = vadd.f32 %v13752_v57, %v11367_v46  ;;  %v9289_v47 = vld [vmem:[#allocation3 + $0x98] sm:$0xf0]  ;;  %v9263_v2 = vld [vmem:[#allocation3 + $0x60] sm:$0xf] }
 0x929   :  { %v5386_v43 = vunpack.c.l.b16 %v5336_v45  ;;  %v9324_v31 = vor.u32 %v10208_v21, %v9321_v44  ;;  %v9303_v45 = vld [vmem:[#allocation3 + $0xa8] sm:$0xf]  ;;  %v749_v34 = vadd.f32 %v13753_v19, %v11356_v11  ;;  %v9280_v26 = vor.u32 %v10201_v28, %v9279_v60  ;;  %v10200_v63 = vld [vmem:[#allocation3 + $0x8c] sm:$0xf]  ;;  %v10197_v36 = vld [vmem:[#allocation3 + $0x6c] sm:$0xf0] }
 0x92a   :  { %v5315_v23 = vadd.f32 %v10746_v33, %v5314_v32  ;;  %5955 = vmatpush.bf16.msrb.mxu0 %v9312_v16  ;;  %v9284_v56 = vor.u32 %v10199_v5, %v9281_v15  ;;  %v9292_v16 = vor.u32 %v10200_v63, %v9289_v47  ;;  %v10195_v14 = vld [vmem:[#allocation3 + $0x64] sm:$0xf]  ;;  %v10193_v60 = vld [vmem:[#allocation3 + $0x4c] sm:$0xf0] }
 0x92b   :  { %5969 = vmatpush.bf16.msrb.mxu1 %v9316_v22  ;;  %5983 = vmatpush.bf16.msrb.mxu2 %v9320_v61 }
 0x92c   :  { %v5319_v48 = vsel %vm5318_vm6, %v10746_v33, %v5315_v23  ;;  %v13751_v33 = vld [vmem:[#allocation88_spill] sm:$0xff]  ;;  %5997 = vmatpush.bf16.msrb.mxu3 %v9324_v31 }
 0x92d   :  { %v5324_v41 = vsel %vm5321_vm7, %v5323_v52, %v5319_v48  ;;  %v571_v58 = vadd.f32 %v13751_v33, %v11347_v7  ;;  %v10205_v52 = vld [vmem:[#allocation3 + $0xac] sm:$0xf0] }
 0x92e   :  { %v10750_v8 = vpop.eup %10749 }
 0x92f   :  { %v5335_v29 = vmul.f32 %v10750_v8, %v5324_v41  ;;  %v10203_v8 = vld [vmem:[#allocation3 + $0xa4] sm:$0xf] }
 0x931   :  { %v5337_v17 = vpack.c.bf16 %v5335_v29, %v5335_v29  ;;  %v10364_v10 = vpack.c.bf16 %v5335_v29, %v5334_v35  ;;  %v9295_v35 = vld [vmem:[#allocation3 + $0xa0] sm:$0xf]  ;;  %v9297_v29 = vld [vmem:[#allocation3 + $0xb0] sm:$0xf0] }
 0x932   :  { %v9296_v41 = vor.u32 %v10205_v52, %v9295_v35 }
 0x933   :  { %10365 = vst [vmem:[#allocation13 + $0x50] sm:$0xff] %v10364_v10   ;;  %v5387_v62 = vunpack.c.l.b16 %v5337_v17 }
 0x934   :  { %5956 = vmatpush.bf16.msrb.mxu0 %v9296_v41 }
 0x935   :  { %v5388_v30 = vpack.c.b16 %v5387_v62, %v5386_v43 }
 0x937   :  { %5558 = vmatmul.bf16.vlgmr.msra.gmra.mxu0 %v5388_v30  ;;  %5572 = vmatmul.bf16.vlgmr.msra.gmra.mxu1 %v5388_v30 }
 0x938   :  { %5586 = vmatmul.bf16.vlgmr.msra.gmra.mxu2 %v5388_v30  ;;  %5600 = vmatmul.bf16.vlgmr.msra.gmra.mxu3 %v5388_v30  ;;  %v9300_v30 = vor.u32 %v10203_v8, %v9297_v29  ;;  %v9241_v8 = vld [vmem:[#allocation3 + $0x38] sm:$0xf0] }
 0x939   :  { %5957 = vmatpush.bf16.msrb.mxu0 %v9280_v26 }
 0x93a   :  { %5970 = vmatpush.bf16.msrb.mxu1 %v9300_v30  ;;  %v10198_v30 = vld [vmem:[#allocation3 + $0x74] sm:$0xf0] }
 0x93e   :  { %5971 = vmatpush.bf16.msrb.mxu1 %v9284_v56  ;;  %v10194_v56 = vld [vmem:[#allocation3 + $0x54] sm:$0xf0] }
 0x9b4   :  { %v5559_v51 = vpop.f32.mrf.mxu0  ;;  %v5573_v38 = vpop.f32.mrf.mxu1 }
 0x9b5   :  { %v5606_v25 = vadd.f32 %v5559_v51, %v480_v50  ;;  %v5607_v6 = vadd.f32 %v5573_v38, %v569_v3  ;;  %v9304_v3 = vor.u32 %v10206_v54, %v9303_v45  ;;  %v10204_v51 = vld [vmem:[#allocation3 + $0xac] sm:$0xf]  ;;  %v9305_v38 = vld [vmem:[#allocation3 + $0xb8] sm:$0xf0] }
 0x9b7   :  { %v9207_v0 = vmul.f32 -1.442695, %v5606_v25  ;;  %v9209_v18 = vmul.f32 -1.442695, %v5607_v6  ;;  %v9308_v6 = vor.u32 %v10204_v51, %v9305_v38  ;;  %5984 = vmatpush.bf16.msrb.mxu2 %v9304_v3  ;;  %v10196_v3 = vld [vmem:[#allocation3 + $0x6c] sm:$0xf] }
 0x9b8   :  { %v9273_v38 = vld [vmem:[#allocation3 + $0x78] sm:$0xf0] }
 0x9b9   :  { %10751 = vpow2.f32 %v9207_v0  ;;  %5998 = vmatpush.bf16.msrb.mxu3 %v9308_v6  ;;  %v9287_v0 = vld [vmem:[#allocation3 + $0x88] sm:$0xf]  ;;  %v9247_v6 = vld [vmem:[#allocation3 + $0x40] sm:$0xf] }
 0x9ba   :  { %10753 = vpow2.f32 %v9209_v18  ;;  %v10202_v18 = vld [vmem:[#allocation3 + $0x94] sm:$0xf0] }
 0x9bb   :  { %v5601_v55 = vpop.f32.mrf.mxu3  ;;  %v5587_v10 = vpop.f32.mrf.mxu2 }
 0x9bc   :  { %v5609_v49 = vadd.f32 %v5601_v55, %v747_v9  ;;  %v5561_v4 = vpop.f32.mrf.mxu0  ;;  %v5575_v32 = vpop.f32.mrf.mxu1  ;;  %v5608_v12 = vadd.f32 %v5587_v10, %v658_v27  ;;  %v9288_v9 = vor.u32 %v10202_v18, %v9287_v0  ;;  %v9265_v55 = vld [vmem:[#allocation3 + $0x70] sm:$0xf0] }
 0x9bd   :  { %v5610_v24 = vadd.f32 %v5561_v4, %v482_v42  ;;  %v5611_v23 = vadd.f32 %v5575_v32, %v571_v58  ;;  %v9264_v58 = vor.u32 %v10197_v36, %v9263_v2  ;;  %v9268_v44 = vor.u32 %v10195_v14, %v9265_v55  ;;  %v13754_v4 = vld [vmem:[#allocation89_spill] sm:$0xff]  ;;  %5999 = vmatpush.bf16.msrb.mxu3 %v9292_v16  ;;  %v9249_v27 = vld [vmem:[#allocation3 + $0x50] sm:$0xf0]  ;;  %v9257_v16 = vld [vmem:[#allocation3 + $0x58] sm:$0xf0] }
 0x9be   :  { %v9211_v48 = vmul.f32 -1.442695, %v5609_v49  ;;  %5985 = vmatpush.bf16.msrb.mxu2 %v9288_v9  ;;  %v660_v32 = vadd.f32 %v13754_v4, %v11367_v46  ;;  %v10192_v9 = vld [vmem:[#allocation3 + $0x4c] sm:$0xf]  ;;  %v9239_v4 = vld [vmem:[#allocation3 + $0x28] sm:$0xf] }
 0x9bf   :  { %v10752_v17 = vpop.eup %10751  ;;  %v9208_v43 = vmul.f32 -1.442695, %v5610_v24  ;;  %v9210_v62 = vmul.f32 -1.442695, %v5611_v23  ;;  %5958 = vmatpush.bf16.msrb.mxu0 %v9264_v58  ;;  %5972 = vmatpush.bf16.msrb.mxu1 %v9268_v44  ;;  %v10187_v58 = vld [vmem:[#allocation3 + $0x24] sm:$0xf] }
 0x9c0   :  { %v10754_v50 = vpop.eup %10753  ;;  %v12892_v13 = vadd.f32 1.0, %v10752_v17  ;;  %10755 = vpow2.f32 %v9211_v48 }
 0x9c1   :  { %v12894_v25 = vadd.f32 1.0, %v10754_v50  ;;  %10757 = vpow2.f32 %v9208_v43 }
 0x9c2   :  { %10759 = vrcp.f32 %v12892_v13  ;;  %v5631_v40 = vand.u32 2147483647, %v12892_v13  ;;  %v5633_v61 = vand.u32 2147483648, %v12892_v13  ;;  %vm5627_vm12 = vweird.f32 %v12892_v13 }
 0x9c3   :  { %10761 = vrcp.f32 %v12894_v25  ;;  %v5603_v1 = vpop.f32.mrf.mxu3  ;;  %v5671_v24 = vand.u32 2147483648, %v12894_v25  ;;  %v5589_v23 = vpop.f32.mrf.mxu2  ;;  %v5669_v48 = vand.u32 2147483647, %v12894_v25  ;;  %vm5665_vm11 = vweird.f32 %v12894_v25 }
 0x9c4   :  { %10763 = vpow2.f32 %v9210_v62  ;;  %v5613_v33 = vadd.f32 %v5603_v1, %v749_v34  ;;  %vm12920_vm8 = vcmp.eq.f32.partialorder %v5631_v40, 8.507059e+37  ;;  %v5634_v10 = vor.u32 1.1754944e-38, %v5633_v61  ;;  %v9271_v62 = vld [vmem:[#allocation3 + $0x68] sm:$0xf] }
 0x9c5   :  { %v5612_v43 = vadd.f32 %v5589_v23, %v660_v32  ;;  %v5672_v54 = vor.u32 1.1754944e-38, %v5671_v24  ;;  %vm12944_vm14 = vcmp.eq.f32.partialorder %v5669_v48, 8.507059e+37  ;;  %v9255_v40 = vld [vmem:[#allocation3 + $0x48] sm:$0xf]  ;;  %v10190_v32 = vld [vmem:[#allocation3 + $0x34] sm:$0xf0] }
 0x9c6   :  { %v10756_v20 = vpop.eup %10755  ;;  %v9212_v45 = vmul.f32 -1.442695, %v5613_v33  ;;  %v10189_v33 = vld [vmem:[#allocation3 + $0x2c] sm:$0xf0] }
 0x9c7   :  { %v10758_v39 = vpop.eup %10757  ;;  %v12903_v42 = vadd.f32 1.0, %v10756_v20  ;;  %v9276_v20 = vor.u32 %v10196_v3, %v9273_v38  ;;  %v9240_v38 = vor.u32 %v10190_v32, %v9239_v4 }
 0x9c8   :  { %v12905_v22 = vpop.eup %10759  ;;  %v12908_v21 = vadd.f32 1.0, %v10758_v39  ;;  %v9231_v39 = vld [vmem:[#allocation3 + $0x20] sm:$0xf] }
 0x9c9   :  { %v12910_v49 = vpop.eup %10761  ;;  %v5623_v31 = vmul.f32 %v12905_v22, %v12892_v13  ;;  %10765 = vrcp.f32 %v12903_v42  ;;  %vm5628_vm9 = vweird.f32 %v12905_v22  ;;  %v10191_v13 = vld [vmem:[#allocation3 + $0x44] sm:$0xf]  ;;  %6000 = vmatpush.bf16.msrb.mxu3 %v9276_v20 }
 0x9ca   :  { %v10764_v35 = vpop.eup %10763  ;;  %v5661_v52 = vmul.f32 %v12910_v49, %v12894_v25  ;;  %10767 = vtanh.f32 %v5608_v12  ;;  %vm5666_vm10 = vweird.f32 %v12910_v49  ;;  %vm12940_vm13 = vmor %vm5627_vm12, %vm5628_vm9  ;;  %v9272_v25 = vor.u32 %v10198_v30, %v9271_v62 }
 0x9cb   :  { %v5624_v41 = vsub.f32 1.0, %v5623_v31  ;;  %10769 = vrcp.f32 %v12908_v21  ;;  %v12926_v29 = vadd.f32 1.0, %v10764_v35  ;;  %vm12950_vm15 = vmor %vm5665_vm11, %vm5666_vm10  ;;  %v5646_v34 = vand.u32 2147483647, %v12908_v21 }
 0x9cc   :  { %v5662_v17 = vsub.f32 1.0, %v5661_v52  ;;  %5986 = vmatpush.bf16.msrb.mxu2 %v9272_v25  ;;  %v9248_v12 = vor.u32 %v10193_v60, %v9247_v6  ;;  %vm5642_vm0 = vweird.f32 %v12908_v21  ;;  %v9252_v44 = vor.u32 %v10191_v13, %v9249_v27  ;;  %v10188_v52 = vld [vmem:[#allocation3 + $0x2c] sm:$0xf]  ;;  %v10183_v60 = vld [vmem:[#allocation3 + $0x4] sm:$0xf] }
 0x9cd   :  { %v5625_v50 = vmul.f32 %v12905_v22, %v5624_v41  ;;  %10771 = vrcp.f32 %v12926_v29  ;;  %v5686_v19 = vand.u32 2147483648, %v12926_v29  ;;  %vm5680_vm1 = vweird.f32 %v12926_v29  ;;  %v9223_v13 = vld [vmem:[#allocation3 + $0x8] sm:$0xf]  ;;  %v10186_v27 = vld [vmem:[#allocation3 + $0x14] sm:$0xf0] }
 0x9ce   :  { %v5663_v51 = vmul.f32 %v12910_v49, %v5662_v17  ;;  %10773 = vpow2.f32 %v9212_v45  ;;  %5959 = vmatpush.bf16.msrb.mxu0 %v9248_v12  ;;  %v5648_v35 = vand.u32 2147483648, %v12908_v21  ;;  %5973 = vmatpush.bf16.msrb.mxu1 %v9252_v44  ;;  %v9256_v45 = vor.u32 %v10194_v56, %v9255_v40  ;;  %v9225_v40 = vld [vmem:[#allocation3 + $0x18] sm:$0xf0] }
 0x9cf   :  { %v12935_v28 = vpop.eup %10765  ;;  %v5626_v5 = vadd.f32 %v12905_v22, %v5625_v50  ;;  %10775 = vtanh.f32 %v5612_v43  ;;  %v9260_v17 = vor.u32 %v10192_v9, %v9257_v16  ;;  %v10185_v50 = vld [vmem:[#allocation3 + $0xc] sm:$0xf0]  ;;  %v9244_v6 = vor.u32 %v10188_v52, %v9241_v8 }
 0x9d0   :  { %v10768_v1 = vpop.eup %10767  ;;  %v5664_v18 = vadd.f32 %v12910_v49, %v5663_v51  ;;  %v5701_v47 = vmul.f32 %v12935_v28, %v12903_v42  ;;  %5987 = vmatpush.bf16.msrb.mxu2 %v9256_v45  ;;  %v5684_v25 = vand.u32 2147483647, %v12926_v29  ;;  %vm5647_vm5 = vcmp.eq.f32.partialorder %v5646_v34, 8.507059e+37 }
 0x9d1   :  { %v12957_v26 = vpop.eup %10769  ;;  %v5630_v63 = vsel %vm12940_vm13, %v12905_v22, %v5626_v5  ;;  %6001 = vmatpush.bf16.msrb.mxu3 %v9260_v17  ;;  %v9217_v5 = vld [vmem:[#allocation3 + $0x10] sm:$0xf0]  ;;  %v5649_v0 = vor.u32 1.1754944e-38, %v5648_v35  ;;  %v9224_v56 = vor.u32 %v10186_v27, %v9223_v13  ;;  %vm5705_vm9 = vweird.f32 %v12903_v42  ;;  %v10246_v13 = vld [vmem:[#allocation3 + $0xf4] sm:$0xf0] }
 0x9d2   :  { %v5635_v2 = vsel %vm12920_vm8, %v5634_v10, %v5630_v63  ;;  %v5668_v36 = vsel %vm12950_vm15, %v12910_v49, %v5664_v18  ;;  %v5638_v14 = vmul.f32 %v12957_v26, %v12908_v21  ;;  %v9233_v49 = vld [vmem:[#allocation3 + $0x30] sm:$0xf0]  ;;  %v5702_v41 = vsub.f32 1.0, %v5701_v47  ;;  %v10184_v18 = vld [vmem:[#allocation3 + $0xc] sm:$0xf] }
 0x9d3   :  { %v12972_v55 = vpop.eup %10771  ;;  %v5673_v22 = vsel %vm12944_vm14, %v5672_v54, %v5668_v36  ;;  %v5732_v61 = vmul.f32 %v10768_v1, %v5635_v2  ;;  %v9232_v10 = vor.u32 %v10189_v33, %v9231_v39  ;;  %vm5643_vm2 = vweird.f32 %v12957_v26  ;;  %v9215_v54 = vld [vmem:[#allocation3] sm:$0xf] }
 0x9d4   :  { %v5730_v31 = vmul.f32 %v5673_v22, %v12840_v37  ;;  %v5639_v24 = vsub.f32 1.0, %v5638_v14  ;;  %v5676_v23 = vmul.f32 %v12972_v55, %v12926_v29  ;;  %v10774_v48 = vpop.eup %10773  ;;  %v9236_v51 = vor.u32 %v10187_v58, %v9233_v49  ;;  %vm5644_vm4 = vmor %vm5642_vm0, %vm5643_vm2  ;;  %5988 = vmatpush.bf16.msrb.mxu2 %v9240_v38 }
 0x9d5   :  { %v10776_v43 = vpop.eup %10775  ;;  %v12985_v3 = vadd.f32 1.0, %v10774_v48  ;;  %vm5681_vm3 = vweird.f32 %v12972_v55  ;;  %5960 = vmatpush.bf16.msrb.mxu0 %v9232_v10  ;;  %v5703_v1 = vmul.f32 %v12935_v28, %v5702_v41  ;;  %v9216_v20 = vor.u32 %v10185_v50, %v9215_v54  ;;  %6002 = vmatpush.bf16.msrb.mxu3 %v9244_v6  ;;  %v9461_v6 = vld [vmem:[#allocation3 + $0xe0] sm:$0xf] }
 0x9d6   :  { %v12981_v62 = vadd.f32 %v5732_v61, %v5730_v31  ;;  %v5677_v30 = vsub.f32 1.0, %v5676_v23  ;;  %v5640_v37 = vmul.f32 %v12957_v26, %v5639_v24  ;;  %5974 = vmatpush.bf16.msrb.mxu1 %v9236_v51  ;;  %v9220_v12 = vor.u32 %v10183_v60, %v9217_v5  ;;  %vm5682_vm6 = vmor %vm5680_vm1, %vm5681_vm3  ;;  %v10245_v60 = vld [vmem:[#allocation3 + $0xec] sm:$0xf0]  ;;  %v10243_v5 = vld [vmem:[#allocation3 + $0xe4] sm:$0xf] }
 0x9d7   :  { %10777 = vrcp.f32 %v12985_v3  ;;  %v5687_v21 = vor.u32 1.1754944e-38, %v5686_v19  ;;  %vm5685_vm7 = vcmp.eq.f32.partialorder %v5684_v25, 8.507059e+37  ;;  %v9228_v16 = vor.u32 %v10184_v18, %v9225_v40  ;;  %v9469_v25 = vld [vmem:[#allocation3 + $0xe8] sm:$0xf]  ;;  %v10244_v40 = vld [vmem:[#allocation3 + $0xec] sm:$0xf] }
 0x9d8   :  { %v5678_v15 = vmul.f32 %v12972_v55, %v5677_v30  ;;  %v5641_v57 = vadd.f32 %v12957_v26, %v5640_v37  ;;  %10779 = vtanh.f32 %v12981_v62  ;;  %v5704_v36 = vadd.f32 %v12935_v28, %v5703_v1  ;;  %5989 = vmatpush.bf16.msrb.mxu2 %v9224_v56  ;;  %v13764_v37 = vld [vmem:[#allocation92_spill] sm:$0xff] }
 0x9d9   :  { %5961 = vmatpush.bf16.msrb.mxu0 %v9216_v20  ;;  %vm5706_vm8 = vweird.f32 %v12935_v28  ;;  %v5711_v14 = vand.u32 2147483648, %v12903_v42  ;;  %6003 = vmatpush.bf16.msrb.mxu3 %v9228_v16  ;;  %v5709_v39 = vand.u32 2147483647, %v12903_v42  ;;  %v5726_v44 = vand.u32 2147483648, %v12985_v3  ;;  %v9445_v20 = vld [vmem:[#allocation3 + $0xc0] sm:$0xf] }
 0x9da   :  { %v5645_v63 = vsel %vm5644_vm4, %v12957_v26, %v5641_v57  ;;  %v5679_v47 = vadd.f32 %v12972_v55, %v5678_v15  ;;  %5975 = vmatpush.bf16.msrb.mxu1 %v9220_v12  ;;  %vm5707_vm10 = vmor %vm5705_vm9, %vm5706_vm8  ;;  %v5724_v4 = vand.u32 2147483647, %v12985_v3  ;;  %vm5720_vm13 = vweird.f32 %v12985_v3  ;;  %v9463_v57 = vld [vmem:[#allocation3 + $0xf0] sm:$0xf0]  ;;  %v10241_v12 = vld [vmem:[#allocation3 + $0xcc] sm:$0xf0] }
 0x9db   :  { %v5650_v34 = vsel %vm5647_vm5, %v5649_v0, %v5645_v63  ;;  %v5712_v61 = vor.u32 1.1754944e-38, %v5711_v14  ;;  %vm5710_vm11 = vcmp.eq.f32.partialorder %v5709_v39, 8.507059e+37  ;;  %v5727_v24 = vor.u32 1.1754944e-38, %v5726_v44  ;;  %v9471_v63 = vld [vmem:[#allocation3 + $0xf8] sm:$0xf0] }
 0x9dc   :  { %v5683_v9 = vsel %vm5682_vm6, %v12972_v55, %v5679_v47  ;;  %v5733_v26 = vmul.f32 %v10776_v43, %v5650_v34  ;;  %v5708_v55 = vsel %vm5707_vm10, %v12935_v28, %v5704_v36  ;;  %vm5725_vm15 = vcmp.eq.f32.partialorder %v5724_v4, 8.507059e+37  ;;  %v13763_v43 = vld [vmem:[#allocation91_spill] sm:$0xff]  ;;  %v13765_v34 = vld [vmem:[#allocation94_spill] sm:$0xff]  ;;  %v9453_v16 = vld [vmem:[#allocation3 + $0xc8] sm:$0xf] }
 0x9dd   :  { %v5688_v2 = vsel %vm5685_vm7, %v5687_v21, %v5683_v9  ;;  %v10778_v19 = vpop.eup %10777  ;;  %v5713_v42 = vsel %vm5710_vm11, %v5712_v61, %v5708_v55  ;;  %v485_v30 = vadd.f32 %v13763_v43, %v11344_v53  ;;  %v574_v54 = vadd.f32 %v13764_v37, %v11347_v7  ;;  %v10239_v21 = vld [vmem:[#allocation3 + $0xc4] sm:$0xf]  ;;  %v13766_v36 = vld [vmem:[#allocation95_spill] sm:$0xff] }
 0x9de   :  { %v5731_v29 = vmul.f32 %v5688_v2, %v12874_v59  ;;  %v5716_v58 = vmul.f32 %v10778_v19, %v12985_v3  ;;  %v10780_v59 = vpop.eup %10779  ;;  %vm5721_vm12 = vweird.f32 %v10778_v19  ;;  %v9462_v15 = vor.u32 %v10245_v60, %v9461_v6  ;;  %v10242_v2 = vld [vmem:[#allocation3 + $0xd4] sm:$0xf0]  ;;  %v9413_v6 = vld [vmem:[#allocation3 + $0x80] sm:$0xf]  ;;  %v10233_v60 = vld [vmem:[#allocation3 + $0x8c] sm:$0xf0] }
 0x9df   :  { %v5738_v31 = vmul.f32 %v10780_v59, %v5713_v42  ;;  %vm5722_vm14 = vmor %vm5720_vm13, %vm5721_vm12  ;;  %v9466_v0 = vor.u32 %v10243_v5, %v9463_v57  ;;  %v9470_v18 = vor.u32 %v10246_v13, %v9469_v25  ;;  %v9474_v47 = vor.u32 %v10244_v40, %v9471_v63  ;;  %v9455_v59 = vld [vmem:[#allocation3 + $0xd8] sm:$0xf0]  ;;  %v10238_v43 = vld [vmem:[#allocation3 + $0xb4] sm:$0xf0] }
 0x9e0   :  { %v13015_v33 = vadd.f32 %v5733_v26, %v5731_v29  ;;  %v5717_v22 = vsub.f32 1.0, %v5716_v58  ;;  %6358 = vmatpush.bf16.msra.mxu0 %v9462_v15  ;;  %v752_v56 = vadd.f32 %v13765_v34, %v11356_v11  ;;  %v9446_v9 = vor.u32 %v10241_v12, %v9445_v20  ;;  %v9447_v26 = vld [vmem:[#allocation3 + $0xd0] sm:$0xf0]  ;;  %v10231_v5 = vld [vmem:[#allocation3 + $0x84] sm:$0xf] }
 0x9e1   :  { %v5740_v8 = vpack.c.bf16 %v5738_v31, %v5738_v31  ;;  %6372 = vmatpush.bf16.msra.mxu1 %v9466_v0  ;;  %6386 = vmatpush.bf16.msra.mxu2 %v9470_v18  ;;  %v487_v29 = vadd.f32 %v13766_v36, %v11344_v53  ;;  %v9450_v58 = vor.u32 %v10239_v21, %v9447_v26  ;;  %v9415_v15 = vld [vmem:[#allocation3 + $0x90] sm:$0xf0]  ;;  %v13768_v57 = vld [vmem:[#allocation93_spill] sm:$0xff]  ;;  %v13769_v0 = vld [vmem:[#allocation98_spill] sm:$0xff] }
 0x9e2   :  { %10781 = vtanh.f32 %v13015_v33  ;;  %v5718_v49 = vmul.f32 %v10778_v19, %v5717_v22  ;;  %6400 = vmatpush.bf16.msra.mxu3 %v9474_v47  ;;  %v9454_v55 = vor.u32 %v10242_v2, %v9453_v16  ;;  %v10240_v22 = vld [vmem:[#allocation3 + $0xcc] sm:$0xf]  ;;  %v663_v25 = vadd.f32 %v13768_v57, %v11367_v46  ;;  %v9423_v20 = vld [vmem:[#allocation3 + $0x98] sm:$0xf0]  ;;  %v9397_v26 = vld [vmem:[#allocation3 + $0x60] sm:$0xf] }
 0x9e3   :  { %v5790_v45 = vunpack.c.l.b16 %v5740_v8  ;;  %v9458_v4 = vor.u32 %v10240_v22, %v9455_v59  ;;  %v9437_v8 = vld [vmem:[#allocation3 + $0xa8] sm:$0xf]  ;;  %v754_v18 = vadd.f32 %v13769_v0, %v11356_v11  ;;  %v9414_v63 = vor.u32 %v10233_v60, %v9413_v6  ;;  %v10232_v47 = vld [vmem:[#allocation3 + $0x8c] sm:$0xf]  ;;  %v10229_v16 = vld [vmem:[#allocation3 + $0x6c] sm:$0xf0] }
 0x9e4   :  { %v5719_v32 = vadd.f32 %v10778_v19, %v5718_v49  ;;  %6359 = vmatpush.bf16.msra.mxu0 %v9446_v9  ;;  %v9418_v34 = vor.u32 %v10231_v5, %v9415_v15  ;;  %v9426_v9 = vor.u32 %v10232_v47, %v9423_v20  ;;  %v10227_v2 = vld [vmem:[#allocation3 + $0x64] sm:$0xf]  ;;  %v10225_v6 = vld [vmem:[#allocation3 + $0x4c] sm:$0xf0] }
 0x9e5   :  { %6373 = vmatpush.bf16.msra.mxu1 %v9450_v58  ;;  %6387 = vmatpush.bf16.msra.mxu2 %v9454_v55 }
 0x9e6   :  { %v5723_v23 = vsel %vm5722_vm14, %v10778_v19, %v5719_v32  ;;  %v13767_v19 = vld [vmem:[#allocation96_spill] sm:$0xff]  ;;  %6401 = vmatpush.bf16.msra.mxu3 %v9458_v4 }
 0x9e7   :  { %v5728_v35 = vsel %vm5725_vm15, %v5727_v24, %v5723_v23  ;;  %v576_v14 = vadd.f32 %v13767_v19, %v11347_v7  ;;  %v10237_v24 = vld [vmem:[#allocation3 + $0xac] sm:$0xf0] }
 0x9e8   :  { %v10782_v28 = vpop.eup %10781 }
 0x9e9   :  { %v5739_v52 = vmul.f32 %v10782_v28, %v5728_v35  ;;  %v10235_v28 = vld [vmem:[#allocation3 + $0xa4] sm:$0xf] }
 0x9eb   :  { %v5741_v48 = vpack.c.bf16 %v5739_v52, %v5739_v52  ;;  %v10369_v41 = vpack.c.bf16 %v5739_v52, %v5738_v31  ;;  %v9429_v31 = vld [vmem:[#allocation3 + $0xa0] sm:$0xf]  ;;  %v9431_v52 = vld [vmem:[#allocation3 + $0xb0] sm:$0xf0] }
 0x9ec   :  { %v9430_v35 = vor.u32 %v10237_v24, %v9429_v31 }
 0x9ed   :  { %10370 = vst [vmem:[#allocation13 + $0x58] sm:$0xff] %v10369_v41   ;;  %v5791_v17 = vunpack.c.l.b16 %v5741_v48 }
 0x9ee   :  { %6360 = vmatpush.bf16.msra.mxu0 %v9430_v35 }
 0x9ef   :  { %v5792_v10 = vpack.c.b16 %v5791_v17, %v5790_v45 }
 0x9f1   :  { %5962 = vmatmul.bf16.vlgmr.msrb.gmra.mxu0 %v5792_v10  ;;  %5976 = vmatmul.bf16.vlgmr.msrb.gmra.mxu1 %v5792_v10 }
 0x9f2   :  { %5990 = vmatmul.bf16.vlgmr.msrb.gmra.mxu2 %v5792_v10  ;;  %6004 = vmatmul.bf16.vlgmr.msrb.gmra.mxu3 %v5792_v10  ;;  %v9434_v10 = vor.u32 %v10235_v28, %v9431_v52  ;;  %v9375_v28 = vld [vmem:[#allocation3 + $0x38] sm:$0xf0] }
 0x9f3   :  { %6361 = vmatpush.bf16.msra.mxu0 %v9414_v63 }
 0x9f4   :  { %6374 = vmatpush.bf16.msra.mxu1 %v9434_v10  ;;  %v10230_v10 = vld [vmem:[#allocation3 + $0x74] sm:$0xf0] }
 0x9f8   :  { %6375 = vmatpush.bf16.msra.mxu1 %v9418_v34  ;;  %v10226_v34 = vld [vmem:[#allocation3 + $0x54] sm:$0xf0] }
 0xa6e   :  { %v5963_v50 = vpop.f32.mrf.mxu0  ;;  %v5977_v3 = vpop.f32.mrf.mxu1 }
 0xa6f   :  { %v6010_v51 = vadd.f32 %v5963_v50, %v485_v30  ;;  %v6011_v38 = vadd.f32 %v5977_v3, %v574_v54  ;;  %v9438_v54 = vor.u32 %v10238_v43, %v9437_v8  ;;  %v10236_v50 = vld [vmem:[#allocation3 + $0xac] sm:$0xf]  ;;  %v9439_v3 = vld [vmem:[#allocation3 + $0xb8] sm:$0xf0] }
 0xa71   :  { %v9341_v27 = vmul.f32 -1.442695, %v6010_v51  ;;  %v9343_v1 = vmul.f32 -1.442695, %v6011_v38  ;;  %v9442_v38 = vor.u32 %v10236_v50, %v9439_v3  ;;  %6388 = vmatpush.bf16.msra.mxu2 %v9438_v54  ;;  %v10228_v54 = vld [vmem:[#allocation3 + $0x6c] sm:$0xf] }
 0xa72   :  { %v9407_v3 = vld [vmem:[#allocation3 + $0x78] sm:$0xf0] }
 0xa73   :  { %10783 = vpow2.f32 %v9341_v27  ;;  %6402 = vmatpush.bf16.msra.mxu3 %v9442_v38  ;;  %v9421_v27 = vld [vmem:[#allocation3 + $0x88] sm:$0xf]  ;;  %v9381_v38 = vld [vmem:[#allocation3 + $0x40] sm:$0xf] }
 0xa74   :  { %10785 = vpow2.f32 %v9343_v1  ;;  %v10234_v1 = vld [vmem:[#allocation3 + $0x94] sm:$0xf0] }
 0xa75   :  { %v6005_v39 = vpop.f32.mrf.mxu3  ;;  %v5991_v41 = vpop.f32.mrf.mxu2 }
 0xa76   :  { %v6013_v61 = vadd.f32 %v6005_v39, %v752_v56  ;;  %v5965_v44 = vpop.f32.mrf.mxu0  ;;  %v5979_v49 = vpop.f32.mrf.mxu1  ;;  %v6012_v21 = vadd.f32 %v5991_v41, %v663_v25  ;;  %v9422_v56 = vor.u32 %v10234_v1, %v9421_v27  ;;  %v9399_v39 = vld [vmem:[#allocation3 + $0x70] sm:$0xf0] }
 0xa77   :  { %v6014_v42 = vadd.f32 %v5965_v44, %v487_v29  ;;  %v6015_v32 = vadd.f32 %v5979_v49, %v576_v14  ;;  %v9398_v14 = vor.u32 %v10229_v16, %v9397_v26  ;;  %v9402_v59 = vor.u32 %v10227_v2, %v9399_v39  ;;  %v13770_v44 = vld [vmem:[#allocation97_spill] sm:$0xff]  ;;  %6403 = vmatpush.bf16.msra.mxu3 %v9426_v9  ;;  %v9383_v25 = vld [vmem:[#allocation3 + $0x50] sm:$0xf0]  ;;  %v9391_v9 = vld [vmem:[#allocation3 + $0x58] sm:$0xf0] }
 0xa78   :  { %v9345_v23 = vmul.f32 -1.442695, %v6013_v61  ;;  %6389 = vmatpush.bf16.msra.mxu2 %v9422_v56  ;;  %v665_v49 = vadd.f32 %v13770_v44, %v11367_v46  ;;  %v10224_v56 = vld [vmem:[#allocation3 + $0x4c] sm:$0xf]  ;;  %v9373_v44 = vld [vmem:[#allocation3 + $0x28] sm:$0xf] }
 0xa79   :  { %v10784_v48 = vpop.eup %10783  ;;  %v9342_v45 = vmul.f32 -1.442695, %v6014_v42  ;;  %v9344_v17 = vmul.f32 -1.442695, %v6015_v32  ;;  %6362 = vmatpush.bf16.msra.mxu0 %v9398_v14  ;;  %6376 = vmatpush.bf16.msra.mxu1 %v9402_v59  ;;  %v10219_v14 = vld [vmem:[#allocation3 + $0x24] sm:$0xf] }
 0xa7a   :  { %v10786_v30 = vpop.eup %10785  ;;  %v13033_v37 = vadd.f32 1.0, %v10784_v48  ;;  %10787 = vpow2.f32 %v9345_v23 }
 0xa7b   :  { %v13035_v51 = vadd.f32 1.0, %v10786_v30  ;;  %10789 = vpow2.f32 %v9342_v45 }
 0xa7c   :  { %10791 = vrcp.f32 %v13033_v37  ;;  %v6035_v40 = vand.u32 2147483647, %v13033_v37  ;;  %v6037_v55 = vand.u32 2147483648, %v13033_v37  ;;  %vm6031_vm4 = vweird.f32 %v13033_v37 }
 0xa7d   :  { %10793 = vrcp.f32 %v13035_v51  ;;  %v6007_v13 = vpop.f32.mrf.mxu3  ;;  %v6075_v42 = vand.u32 2147483648, %v13035_v51  ;;  %v5993_v32 = vpop.f32.mrf.mxu2  ;;  %v6073_v23 = vand.u32 2147483647, %v13035_v51  ;;  %vm6069_vm3 = vweird.f32 %v13035_v51 }
 0xa7e   :  { %10795 = vpow2.f32 %v9344_v17  ;;  %v6017_v19 = vadd.f32 %v6007_v13, %v754_v18  ;;  %vm13061_vm0 = vcmp.eq.f32.partialorder %v6035_v40, 8.507059e+37  ;;  %v6038_v41 = vor.u32 1.1754944e-38, %v6037_v55  ;;  %v9405_v17 = vld [vmem:[#allocation3 + $0x68] sm:$0xf] }
 0xa7f   :  { %v6016_v45 = vadd.f32 %v5993_v32, %v665_v49  ;;  %v6076_v43 = vor.u32 1.1754944e-38, %v6075_v42  ;;  %vm13085_vm6 = vcmp.eq.f32.partialorder %v6073_v23, 8.507059e+37  ;;  %v9389_v40 = vld [vmem:[#allocation3 + $0x48] sm:$0xf]  ;;  %v10222_v49 = vld [vmem:[#allocation3 + $0x34] sm:$0xf0] }
 0xa80   :  { %v10788_v12 = vpop.eup %10787  ;;  %v9346_v8 = vmul.f32 -1.442695, %v6017_v19  ;;  %v10221_v19 = vld [vmem:[#allocation3 + $0x2c] sm:$0xf0] }
 0xa81   :  { %v10790_v36 = vpop.eup %10789  ;;  %v13044_v29 = vadd.f32 1.0, %v10788_v12  ;;  %v9410_v12 = vor.u32 %v10228_v54, %v9407_v3  ;;  %v9374_v3 = vor.u32 %v10222_v49, %v9373_v44 }
 0xa82   :  { %v13046_v58 = vpop.eup %10791  ;;  %v13049_v22 = vadd.f32 1.0, %v10790_v36  ;;  %v9365_v36 = vld [vmem:[#allocation3 + $0x20] sm:$0xf] }
 0xa83   :  { %v13051_v61 = vpop.eup %10793  ;;  %v6027_v4 = vmul.f32 %v13046_v58, %v13033_v37  ;;  %10797 = vrcp.f32 %v13044_v29  ;;  %vm6032_vm1 = vweird.f32 %v13046_v58  ;;  %v10223_v37 = vld [vmem:[#allocation3 + $0x44] sm:$0xf]  ;;  %6404 = vmatpush.bf16.msra.mxu3 %v9410_v12 }
 0xa84   :  { %v10796_v31 = vpop.eup %10795  ;;  %v6065_v24 = vmul.f32 %v13051_v61, %v13035_v51  ;;  %10799 = vtanh.f32 %v6012_v21  ;;  %vm6070_vm2 = vweird.f32 %v13051_v61  ;;  %vm13081_vm5 = vmor %vm6031_vm4, %vm6032_vm1  ;;  %v9406_v51 = vor.u32 %v10230_v10, %v9405_v17 }
 0xa85   :  { %v6028_v35 = vsub.f32 1.0, %v6027_v4  ;;  %10801 = vrcp.f32 %v13049_v22  ;;  %v13067_v52 = vadd.f32 1.0, %v10796_v31  ;;  %vm13091_vm7 = vmor %vm6069_vm3, %vm6070_vm2  ;;  %v6050_v18 = vand.u32 2147483647, %v13049_v22 }
 0xa86   :  { %v6066_v48 = vsub.f32 1.0, %v6065_v24  ;;  %6390 = vmatpush.bf16.msra.mxu2 %v9406_v51  ;;  %v9382_v21 = vor.u32 %v10225_v6, %v9381_v38  ;;  %vm6046_vm8 = vweird.f32 %v13049_v22  ;;  %v9386_v59 = vor.u32 %v10223_v37, %v9383_v25  ;;  %v10220_v24 = vld [vmem:[#allocation3 + $0x2c] sm:$0xf]  ;;  %v10215_v6 = vld [vmem:[#allocation3 + $0x4] sm:$0xf] }
 0xa87   :  { %v6029_v30 = vmul.f32 %v13046_v58, %v6028_v35  ;;  %10803 = vrcp.f32 %v13067_v52  ;;  %v6090_v0 = vand.u32 2147483648, %v13067_v52  ;;  %vm6084_vm9 = vweird.f32 %v13067_v52  ;;  %v9357_v37 = vld [vmem:[#allocation3 + $0x8] sm:$0xf]  ;;  %v10218_v25 = vld [vmem:[#allocation3 + $0x14] sm:$0xf0] }
 0xa88   :  { %v6067_v50 = vmul.f32 %v13051_v61, %v6066_v48  ;;  %10805 = vpow2.f32 %v9346_v8  ;;  %6363 = vmatpush.bf16.msra.mxu0 %v9382_v21  ;;  %v6052_v31 = vand.u32 2147483648, %v13049_v22  ;;  %6377 = vmatpush.bf16.msra.mxu1 %v9386_v59  ;;  %v9390_v8 = vor.u32 %v10226_v34, %v9389_v40  ;;  %v9359_v40 = vld [vmem:[#allocation3 + $0x18] sm:$0xf0] }
 0xa89   :  { %v13076_v60 = vpop.eup %10797  ;;  %v6030_v5 = vadd.f32 %v13046_v58, %v6029_v30  ;;  %10807 = vtanh.f32 %v6016_v45  ;;  %v9394_v48 = vor.u32 %v10224_v56, %v9391_v9  ;;  %v10217_v30 = vld [vmem:[#allocation3 + $0xc] sm:$0xf0]  ;;  %v9378_v38 = vor.u32 %v10220_v24, %v9375_v28 }
 0xa8a   :  { %v10800_v13 = vpop.eup %10799  ;;  %v6068_v1 = vadd.f32 %v13051_v61, %v6067_v50  ;;  %v6105_v20 = vmul.f32 %v13076_v60, %v13044_v29  ;;  %6391 = vmatpush.bf16.msra.mxu2 %v9390_v8  ;;  %v6088_v51 = vand.u32 2147483647, %v13067_v52  ;;  %vm6051_vm13 = vcmp.eq.f32.partialorder %v6050_v18, 8.507059e+37 }
 0xa8b   :  { %v13098_v63 = vpop.eup %10801  ;;  %v6034_v47 = vsel %vm13081_vm5, %v13046_v58, %v6030_v5  ;;  %6405 = vmatpush.bf16.msra.mxu3 %v9394_v48  ;;  %v9351_v5 = vld [vmem:[#allocation3 + $0x10] sm:$0xf0]  ;;  %v6053_v27 = vor.u32 1.1754944e-38, %v6052_v31  ;;  %v9358_v34 = vor.u32 %v10218_v25, %v9357_v37  ;;  %vm6109_vm1 = vweird.f32 %v13044_v29  ;;  %v10278_v37 = vld [vmem:[#allocation3 + $0xf4] sm:$0xf0] }
 0xa8c   :  { %v6039_v26 = vsel %vm13061_vm0, %v6038_v41, %v6034_v47  ;;  %v6072_v16 = vsel %vm13091_vm7, %v13051_v61, %v6068_v1  ;;  %v6042_v2 = vmul.f32 %v13098_v63, %v13049_v22  ;;  %v9367_v61 = vld [vmem:[#allocation3 + $0x30] sm:$0xf0]  ;;  %v6106_v35 = vsub.f32 1.0, %v6105_v20  ;;  %v10216_v1 = vld [vmem:[#allocation3 + $0xc] sm:$0xf] }
 0xa8d   :  { %v13113_v39 = vpop.eup %10803  ;;  %v6077_v58 = vsel %vm13085_vm6, %v6076_v43, %v6072_v16  ;;  %v6136_v55 = vmul.f32 %v10800_v13, %v6039_v26  ;;  %v9366_v41 = vor.u32 %v10221_v19, %v9365_v36  ;;  %vm6047_vm10 = vweird.f32 %v13098_v63  ;;  %v9349_v43 = vld [vmem:[#allocation3] sm:$0xf] }
 0xa8e   :  { %v6134_v4 = vmul.f32 %v6077_v58, %v12981_v62  ;;  %v6043_v42 = vsub.f32 1.0, %v6042_v2  ;;  %v6080_v32 = vmul.f32 %v13113_v39, %v13067_v52  ;;  %v10806_v23 = vpop.eup %10805  ;;  %v9370_v50 = vor.u32 %v10219_v14, %v9367_v61  ;;  %vm6048_vm12 = vmor %vm6046_vm8, %vm6047_vm10  ;;  %6392 = vmatpush.bf16.msra.mxu2 %v9374_v3 }
 0xa8f   :  { %v10808_v45 = vpop.eup %10807  ;;  %v13126_v54 = vadd.f32 1.0, %v10806_v23  ;;  %vm6085_vm11 = vweird.f32 %v13113_v39  ;;  %6364 = vmatpush.bf16.msra.mxu0 %v9366_v41  ;;  %v6107_v13 = vmul.f32 %v13076_v60, %v6106_v35  ;;  %v9350_v12 = vor.u32 %v10217_v30, %v9349_v43  ;;  %6406 = vmatpush.bf16.msra.mxu3 %v9378_v38  ;;  %v9595_v38 = vld [vmem:[#allocation3 + $0xe0] sm:$0xf] }
 0xa90   :  { %v13122_v17 = vadd.f32 %v6136_v55, %v6134_v4  ;;  %v6081_v10 = vsub.f32 1.0, %v6080_v32  ;;  %v6044_v62 = vmul.f32 %v13098_v63, %v6043_v42  ;;  %6378 = vmatpush.bf16.msra.mxu1 %v9370_v50  ;;  %v9354_v21 = vor.u32 %v10215_v6, %v9351_v5  ;;  %vm6086_vm14 = vmor %vm6084_vm9, %vm6085_vm11  ;;  %v10277_v6 = vld [vmem:[#allocation3 + $0xec] sm:$0xf0]  ;;  %v10275_v5 = vld [vmem:[#allocation3 + $0xe4] sm:$0xf] }
 0xa91   :  { %10809 = vrcp.f32 %v13126_v54  ;;  %v6091_v22 = vor.u32 1.1754944e-38, %v6090_v0  ;;  %vm6089_vm15 = vcmp.eq.f32.partialorder %v6088_v51, 8.507059e+37  ;;  %v9362_v9 = vor.u32 %v10216_v1, %v9359_v40  ;;  %v9603_v51 = vld [vmem:[#allocation3 + $0xe8] sm:$0xf]  ;;  %v10276_v40 = vld [vmem:[#allocation3 + $0xec] sm:$0xf] }
 0xa92   :  { %v6082_v15 = vmul.f32 %v13113_v39, %v6081_v10  ;;  %v6045_v57 = vadd.f32 %v13098_v63, %v6044_v62  ;;  %10811 = vtanh.f32 %v13122_v17  ;;  %v6108_v16 = vadd.f32 %v13076_v60, %v6107_v13  ;;  %6393 = vmatpush.bf16.msra.mxu2 %v9358_v34  ;;  %v13780_v62 = vld [vmem:[#allocation100_spill] sm:$0xff] }
 0xa93   :  { %6365 = vmatpush.bf16.msra.mxu0 %v9350_v12  ;;  %vm6110_vm0 = vweird.f32 %v13076_v60  ;;  %v6115_v2 = vand.u32 2147483648, %v13044_v29  ;;  %6407 = vmatpush.bf16.msra.mxu3 %v9362_v9  ;;  %v6113_v36 = vand.u32 2147483647, %v13044_v29  ;;  %v6130_v59 = vand.u32 2147483648, %v13126_v54  ;;  %v9579_v12 = vld [vmem:[#allocation3 + $0xc0] sm:$0xf] }
 0xa94   :  { %v6049_v47 = vsel %vm6048_vm12, %v13098_v63, %v6045_v57  ;;  %v6083_v20 = vadd.f32 %v13113_v39, %v6082_v15  ;;  %6379 = vmatpush.bf16.msra.mxu1 %v9354_v21  ;;  %vm6111_vm2 = vmor %vm6109_vm1, %vm6110_vm0  ;;  %v6128_v44 = vand.u32 2147483647, %v13126_v54  ;;  %vm6124_vm5 = vweird.f32 %v13126_v54  ;;  %v9597_v57 = vld [vmem:[#allocation3 + $0xf0] sm:$0xf0]  ;;  %v10273_v21 = vld [vmem:[#allocation3 + $0xcc] sm:$0xf0] }
 0xa95   :  { %v6054_v18 = vsel %vm6051_vm13, %v6053_v27, %v6049_v47  ;;  %v6116_v55 = vor.u32 1.1754944e-38, %v6115_v2  ;;  %vm6114_vm3 = vcmp.eq.f32.partialorder %v6113_v36, 8.507059e+37  ;;  %v6131_v42 = vor.u32 1.1754944e-38, %v6130_v59  ;;  %v9605_v47 = vld [vmem:[#allocation3 + $0xf8] sm:$0xf0] }
 0xa96   :  { %v6087_v56 = vsel %vm6086_vm14, %v13113_v39, %v6083_v20  ;;  %v6137_v63 = vmul.f32 %v10808_v45, %v6054_v18  ;;  %v6112_v39 = vsel %vm6111_vm2, %v13076_v60, %v6108_v16  ;;  %vm6129_vm7 = vcmp.eq.f32.partialorder %v6128_v44, 8.507059e+37  ;;  %v13779_v45 = vld [vmem:[#allocation99_spill] sm:$0xff]  ;;  %v13781_v18 = vld [vmem:[#allocation102_spill] sm:$0xff]  ;;  %v9587_v9 = vld [vmem:[#allocation3 + $0xc8] sm:$0xf] }
 0xa97   :  { %v6092_v26 = vsel %vm6089_vm15, %v6091_v22, %v6087_v56  ;;  %v10810_v0 = vpop.eup %10809  ;;  %v6117_v29 = vsel %vm6114_vm3, %v6116_v55, %v6112_v39  ;;  %v490_v10 = vadd.f32 %v13779_v45, %v11344_v53  ;;  %v579_v43 = vadd.f32 %v13780_v62, %v11347_v7  ;;  %v10271_v22 = vld [vmem:[#allocation3 + $0xc4] sm:$0xf]  ;;  %v13782_v16 = vld [vmem:[#allocation103_spill] sm:$0xff] }
 0xa98   :  { %v6135_v52 = vmul.f32 %v6092_v26, %v13015_v33  ;;  %v6120_v14 = vmul.f32 %v10810_v0, %v13126_v54  ;;  %v10812_v33 = vpop.eup %10811  ;;  %vm6125_vm4 = vweird.f32 %v10810_v0  ;;  %v9596_v15 = vor.u32 %v10277_v6, %v9595_v38  ;;  %v10274_v26 = vld [vmem:[#allocation3 + $0xd4] sm:$0xf0]  ;;  %v9547_v38 = vld [vmem:[#allocation3 + $0x80] sm:$0xf]  ;;  %v10265_v6 = vld [vmem:[#allocation3 + $0x8c] sm:$0xf0] }
 0xa99   :  { %v6142_v4 = vmul.f32 %v10812_v33, %v6117_v29  ;;  %vm6126_vm6 = vmor %vm6124_vm5, %vm6125_vm4  ;;  %v9600_v27 = vor.u32 %v10275_v5, %v9597_v57  ;;  %v9604_v1 = vor.u32 %v10278_v37, %v9603_v51  ;;  %v9608_v20 = vor.u32 %v10276_v40, %v9605_v47  ;;  %v9589_v33 = vld [vmem:[#allocation3 + $0xd8] sm:$0xf0]  ;;  %v10270_v45 = vld [vmem:[#allocation3 + $0xb4] sm:$0xf0] }
 0xa9a   :  { %v13156_v19 = vadd.f32 %v6137_v63, %v6135_v52  ;;  %v6121_v58 = vsub.f32 1.0, %v6120_v14  ;;  %6762 = vmatpush.bf16.msrb.mxu0 %v9596_v15  ;;  %v757_v34 = vadd.f32 %v13781_v18, %v11356_v11  ;;  %v9580_v56 = vor.u32 %v10273_v21, %v9579_v12  ;;  %v9581_v63 = vld [vmem:[#allocation3 + $0xd0] sm:$0xf0]  ;;  %v10263_v5 = vld [vmem:[#allocation3 + $0x84] sm:$0xf] }
 0xa9b   :  { %v6144_v28 = vpack.c.bf16 %v6142_v4, %v6142_v4  ;;  %6776 = vmatpush.bf16.msrb.mxu1 %v9600_v27  ;;  %6790 = vmatpush.bf16.msrb.mxu2 %v9604_v1  ;;  %v492_v52 = vadd.f32 %v13782_v16, %v11344_v53  ;;  %v9584_v14 = vor.u32 %v10271_v22, %v9581_v63  ;;  %v9549_v15 = vld [vmem:[#allocation3 + $0x90] sm:$0xf0]  ;;  %v13784_v57 = vld [vmem:[#allocation101_spill] sm:$0xff]  ;;  %v13785_v27 = vld [vmem:[#allocation106_spill] sm:$0xff] }
 0xa9c   :  { %10813 = vtanh.f32 %v13156_v19  ;;  %v6122_v61 = vmul.f32 %v10810_v0, %v6121_v58  ;;  %6804 = vmatpush.bf16.msrb.mxu3 %v9608_v20  ;;  %v9588_v39 = vor.u32 %v10274_v26, %v9587_v9  ;;  %v10272_v58 = vld [vmem:[#allocation3 + $0xcc] sm:$0xf]  ;;  %v668_v51 = vadd.f32 %v13784_v57, %v11367_v46  ;;  %v9557_v12 = vld [vmem:[#allocation3 + $0x98] sm:$0xf0]  ;;  %v9531_v63 = vld [vmem:[#allocation3 + $0x60] sm:$0xf] }
 0xa9d   :  { %v6194_v8 = vunpack.c.l.b16 %v6144_v28  ;;  %v9592_v44 = vor.u32 %v10272_v58, %v9589_v33  ;;  %v9571_v28 = vld [vmem:[#allocation3 + $0xa8] sm:$0xf]  ;;  %v759_v1 = vadd.f32 %v13785_v27, %v11356_v11  ;;  %v9548_v47 = vor.u32 %v10265_v6, %v9547_v38  ;;  %v10264_v20 = vld [vmem:[#allocation3 + $0x8c] sm:$0xf]  ;;  %v10261_v9 = vld [vmem:[#allocation3 + $0x6c] sm:$0xf0] }
 0xa9e   :  { %v6123_v49 = vadd.f32 %v10810_v0, %v6122_v61  ;;  %6763 = vmatpush.bf16.msrb.mxu0 %v9580_v56  ;;  %v9552_v18 = vor.u32 %v10263_v5, %v9549_v15  ;;  %v9560_v56 = vor.u32 %v10264_v20, %v9557_v12  ;;  %v10259_v26 = vld [vmem:[#allocation3 + $0x64] sm:$0xf]  ;;  %v10257_v38 = vld [vmem:[#allocation3 + $0x4c] sm:$0xf0] }
 0xa9f   :  { %6777 = vmatpush.bf16.msrb.mxu1 %v9584_v14  ;;  %6791 = vmatpush.bf16.msrb.mxu2 %v9588_v39 }
 0xaa0   :  { %v6127_v32 = vsel %vm6126_vm6, %v10810_v0, %v6123_v49  ;;  %v13783_v0 = vld [vmem:[#allocation104_spill] sm:$0xff]  ;;  %6805 = vmatpush.bf16.msrb.mxu3 %v9592_v44 }
 0xaa1   :  { %v6132_v31 = vsel %vm6129_vm7, %v6131_v42, %v6127_v32  ;;  %v581_v2 = vadd.f32 %v13783_v0, %v11347_v7  ;;  %v10269_v42 = vld [vmem:[#allocation3 + $0xac] sm:$0xf0] }
 0xaa2   :  { %v10814_v60 = vpop.eup %10813 }
 0xaa3   :  { %v6143_v24 = vmul.f32 %v10814_v60, %v6132_v31  ;;  %v10267_v60 = vld [vmem:[#allocation3 + $0xa4] sm:$0xf] }
 0xaa5   :  { %v6145_v23 = vpack.c.bf16 %v6143_v24, %v6143_v24  ;;  %v10374_v35 = vpack.c.bf16 %v6143_v24, %v6142_v4  ;;  %v9563_v4 = vld [vmem:[#allocation3 + $0xa0] sm:$0xf]  ;;  %v9565_v24 = vld [vmem:[#allocation3 + $0xb0] sm:$0xf0] }
 0xaa6   :  { %v9564_v31 = vor.u32 %v10269_v42, %v9563_v4 }
 0xaa7   :  { %10375 = vst [vmem:[#allocation13 + $0x60] sm:$0xff] %v10374_v35   ;;  %v6195_v48 = vunpack.c.l.b16 %v6145_v23 }
 0xaa8   :  { %6764 = vmatpush.bf16.msrb.mxu0 %v9564_v31 }
 0xaa9   :  { %v6196_v41 = vpack.c.b16 %v6195_v48, %v6194_v8 }
 0xaab   :  { %6366 = vmatmul.bf16.vlgmr.msra.gmra.mxu0 %v6196_v41  ;;  %6380 = vmatmul.bf16.vlgmr.msra.gmra.mxu1 %v6196_v41 }
 0xaac   :  { %6394 = vmatmul.bf16.vlgmr.msra.gmra.mxu2 %v6196_v41  ;;  %6408 = vmatmul.bf16.vlgmr.msra.gmra.mxu3 %v6196_v41  ;;  %v9568_v41 = vor.u32 %v10267_v60, %v9565_v24  ;;  %v9509_v60 = vld [vmem:[#allocation3 + $0x38] sm:$0xf0] }
 0xaad   :  { %6765 = vmatpush.bf16.msrb.mxu0 %v9548_v47 }
 0xaae   :  { %6778 = vmatpush.bf16.msrb.mxu1 %v9568_v41  ;;  %v10262_v41 = vld [vmem:[#allocation3 + $0x74] sm:$0xf0] }
 0xab2   :  { %6779 = vmatpush.bf16.msrb.mxu1 %v9552_v18  ;;  %v10258_v18 = vld [vmem:[#allocation3 + $0x54] sm:$0xf0] }
 0xb28   :  { %v6367_v30 = vpop.f32.mrf.mxu0  ;;  %v6381_v54 = vpop.f32.mrf.mxu1 }
 0xb29   :  { %v6414_v50 = vadd.f32 %v6367_v30, %v490_v10  ;;  %v6415_v3 = vadd.f32 %v6381_v54, %v579_v43  ;;  %v9572_v43 = vor.u32 %v10270_v45, %v9571_v28  ;;  %v10268_v30 = vld [vmem:[#allocation3 + $0xac] sm:$0xf]  ;;  %v9573_v54 = vld [vmem:[#allocation3 + $0xb8] sm:$0xf0] }
 0xb2b   :  { %v9475_v25 = vmul.f32 -1.442695, %v6414_v50  ;;  %v9477_v13 = vmul.f32 -1.442695, %v6415_v3  ;;  %v9576_v3 = vor.u32 %v10268_v30, %v9573_v54  ;;  %6792 = vmatpush.bf16.msrb.mxu2 %v9572_v43  ;;  %v10260_v43 = vld [vmem:[#allocation3 + $0x6c] sm:$0xf] }
 0xb2c   :  { %v9541_v54 = vld [vmem:[#allocation3 + $0x78] sm:$0xf0] }
 0xb2d   :  { %10815 = vpow2.f32 %v9475_v25  ;;  %6806 = vmatpush.bf16.msrb.mxu3 %v9576_v3  ;;  %v9555_v25 = vld [vmem:[#allocation3 + $0x88] sm:$0xf]  ;;  %v9515_v3 = vld [vmem:[#allocation3 + $0x40] sm:$0xf] }
 0xb2e   :  { %10817 = vpow2.f32 %v9477_v13  ;;  %v10266_v13 = vld [vmem:[#allocation3 + $0x94] sm:$0xf0] }
 0xb2f   :  { %v6409_v36 = vpop.f32.mrf.mxu3  ;;  %v6395_v35 = vpop.f32.mrf.mxu2 }
 0xb30   :  { %v6417_v55 = vadd.f32 %v6409_v36, %v757_v34  ;;  %v6369_v59 = vpop.f32.mrf.mxu0  ;;  %v6383_v61 = vpop.f32.mrf.mxu1  ;;  %v6416_v22 = vadd.f32 %v6395_v35, %v668_v51  ;;  %v9556_v34 = vor.u32 %v10266_v13, %v9555_v25  ;;  %v9533_v36 = vld [vmem:[#allocation3 + $0x70] sm:$0xf0] }
 0xb31   :  { %v6418_v29 = vadd.f32 %v6369_v59, %v492_v52  ;;  %v6419_v49 = vadd.f32 %v6383_v61, %v581_v2  ;;  %v9532_v2 = vor.u32 %v10261_v9, %v9531_v63  ;;  %v9536_v33 = vor.u32 %v10259_v26, %v9533_v36  ;;  %v13786_v59 = vld [vmem:[#allocation105_spill] sm:$0xff]  ;;  %6807 = vmatpush.bf16.msrb.mxu3 %v9560_v56  ;;  %v9517_v51 = vld [vmem:[#allocation3 + $0x50] sm:$0xf0]  ;;  %v9525_v56 = vld [vmem:[#allocation3 + $0x58] sm:$0xf0] }
 0xb32   :  { %v9479_v32 = vmul.f32 -1.442695, %v6417_v55  ;;  %6793 = vmatpush.bf16.msrb.mxu2 %v9556_v34  ;;  %v670_v61 = vadd.f32 %v13786_v59, %v11367_v46  ;;  %v10256_v34 = vld [vmem:[#allocation3 + $0x4c] sm:$0xf]  ;;  %v9507_v59 = vld [vmem:[#allocation3 + $0x28] sm:$0xf] }
 0xb33   :  { %v10816_v23 = vpop.eup %10815  ;;  %v9476_v8 = vmul.f32 -1.442695, %v6418_v29  ;;  %v9478_v48 = vmul.f32 -1.442695, %v6419_v49  ;;  %6766 = vmatpush.bf16.msrb.mxu0 %v9532_v2  ;;  %6780 = vmatpush.bf16.msrb.mxu1 %v9536_v33  ;;  %v10251_v2 = vld [vmem:[#allocation3 + $0x24] sm:$0xf] }
 0xb34   :  { %v10818_v10 = vpop.eup %10817  ;;  %v13174_v62 = vadd.f32 1.0, %v10816_v23  ;;  %10819 = vpow2.f32 %v9479_v32 }
 0xb35   :  { %v13176_v50 = vadd.f32 1.0, %v10818_v10  ;;  %10821 = vpow2.f32 %v9476_v8 }
 0xb36   :  { %10823 = vrcp.f32 %v13174_v62  ;;  %v6439_v40 = vand.u32 2147483647, %v13174_v62  ;;  %v6441_v39 = vand.u32 2147483648, %v13174_v62  ;;  %vm6435_vm12 = vweird.f32 %v13174_v62 }
 0xb37   :  { %10825 = vrcp.f32 %v13176_v50  ;;  %v6411_v37 = vpop.f32.mrf.mxu3  ;;  %v6479_v29 = vand.u32 2147483648, %v13176_v50  ;;  %v6397_v49 = vpop.f32.mrf.mxu2  ;;  %v6477_v32 = vand.u32 2147483647, %v13176_v50  ;;  %vm6473_vm11 = vweird.f32 %v13176_v50 }
 0xb38   :  { %10827 = vpow2.f32 %v9478_v48  ;;  %v6421_v0 = vadd.f32 %v6411_v37, %v759_v1  ;;  %vm13202_vm8 = vcmp.eq.f32.partialorder %v6439_v40, 8.507059e+37  ;;  %v6442_v35 = vor.u32 1.1754944e-38, %v6441_v39  ;;  %v9539_v48 = vld [vmem:[#allocation3 + $0x68] sm:$0xf] }
 0xb39   :  { %v6420_v8 = vadd.f32 %v6397_v49, %v670_v61  ;;  %v6480_v45 = vor.u32 1.1754944e-38, %v6479_v29  ;;  %vm13226_vm14 = vcmp.eq.f32.partialorder %v6477_v32, 8.507059e+37  ;;  %v9523_v40 = vld [vmem:[#allocation3 + $0x48] sm:$0xf]  ;;  %v10254_v61 = vld [vmem:[#allocation3 + $0x34] sm:$0xf0] }
 0xb3a   :  { %v10820_v21 = vpop.eup %10819  ;;  %v9480_v28 = vmul.f32 -1.442695, %v6421_v0  ;;  %v10253_v0 = vld [vmem:[#allocation3 + $0x2c] sm:$0xf0] }
 0xb3b   :  { %v10822_v16 = vpop.eup %10821  ;;  %v13185_v52 = vadd.f32 1.0, %v10820_v21  ;;  %v9544_v21 = vor.u32 %v10260_v43, %v9541_v54  ;;  %v9508_v54 = vor.u32 %v10254_v61, %v9507_v59 }
 0xb3c   :  { %v13187_v14 = vpop.eup %10823  ;;  %v13190_v58 = vadd.f32 1.0, %v10822_v16  ;;  %v9499_v16 = vld [vmem:[#allocation3 + $0x20] sm:$0xf] }
 0xb3d   :  { %v13192_v55 = vpop.eup %10825  ;;  %v6431_v44 = vmul.f32 %v13187_v14, %v13174_v62  ;;  %10829 = vrcp.f32 %v13185_v52  ;;  %vm6436_vm9 = vweird.f32 %v13187_v14  ;;  %v10255_v62 = vld [vmem:[#allocation3 + $0x44] sm:$0xf]  ;;  %6808 = vmatpush.bf16.msrb.mxu3 %v9544_v21 }
 0xb3e   :  { %v10828_v4 = vpop.eup %10827  ;;  %v6469_v42 = vmul.f32 %v13192_v55, %v13176_v50  ;;  %10831 = vtanh.f32 %v6416_v22  ;;  %vm6474_vm10 = vweird.f32 %v13192_v55  ;;  %vm13222_vm13 = vmor %vm6435_vm12, %vm6436_vm9  ;;  %v9540_v50 = vor.u32 %v10262_v41, %v9539_v48 }
 0xb3f   :  { %v6432_v31 = vsub.f32 1.0, %v6431_v44  ;;  %10833 = vrcp.f32 %v13190_v58  ;;  %v13208_v24 = vadd.f32 1.0, %v10828_v4  ;;  %vm13232_vm15 = vmor %vm6473_vm11, %vm6474_vm10  ;;  %v6454_v1 = vand.u32 2147483647, %v13190_v58 }
 0xb40   :  { %v6470_v23 = vsub.f32 1.0, %v6469_v42  ;;  %6794 = vmatpush.bf16.msrb.mxu2 %v9540_v50  ;;  %v9516_v22 = vor.u32 %v10257_v38, %v9515_v3  ;;  %vm6450_vm0 = vweird.f32 %v13190_v58  ;;  %v9520_v33 = vor.u32 %v10255_v62, %v9517_v51  ;;  %v10252_v42 = vld [vmem:[#allocation3 + $0x2c] sm:$0xf]  ;;  %v10247_v38 = vld [vmem:[#allocation3 + $0x4] sm:$0xf] }
 0xb41   :  { %v6433_v10 = vmul.f32 %v13187_v14, %v6432_v31  ;;  %10835 = vrcp.f32 %v13208_v24  ;;  %v6494_v27 = vand.u32 2147483648, %v13208_v24  ;;  %vm6488_vm1 = vweird.f32 %v13208_v24  ;;  %v9491_v62 = vld [vmem:[#allocation3 + $0x8] sm:$0xf]  ;;  %v10250_v51 = vld [vmem:[#allocation3 + $0x14] sm:$0xf0] }
 0xb42   :  { %v6471_v30 = vmul.f32 %v13192_v55, %v6470_v23  ;;  %10837 = vpow2.f32 %v9480_v28  ;;  %6767 = vmatpush.bf16.msrb.mxu0 %v9516_v22  ;;  %v6456_v4 = vand.u32 2147483648, %v13190_v58  ;;  %6781 = vmatpush.bf16.msrb.mxu1 %v9520_v33  ;;  %v9524_v28 = vor.u32 %v10258_v18, %v9523_v40  ;;  %v9493_v40 = vld [vmem:[#allocation3 + $0x18] sm:$0xf0] }
 0xb43   :  { %v13217_v6 = vpop.eup %10829  ;;  %v6434_v5 = vadd.f32 %v13187_v14, %v6433_v10  ;;  %10839 = vtanh.f32 %v6420_v8  ;;  %v9528_v23 = vor.u32 %v10256_v34, %v9525_v56  ;;  %v10249_v10 = vld [vmem:[#allocation3 + $0xc] sm:$0xf0]  ;;  %v9512_v3 = vor.u32 %v10252_v42, %v9509_v60 }
 0xb44   :  { %v10832_v37 = vpop.eup %10831  ;;  %v6472_v13 = vadd.f32 %v13192_v55, %v6471_v30  ;;  %v6509_v12 = vmul.f32 %v13217_v6, %v13185_v52  ;;  %6795 = vmatpush.bf16.msrb.mxu2 %v9524_v28  ;;  %v6492_v50 = vand.u32 2147483647, %v13208_v24  ;;  %vm6455_vm5 = vcmp.eq.f32.partialorder %v6454_v1, 8.507059e+37 }
 0xb45   :  { %v13239_v47 = vpop.eup %10833  ;;  %v6438_v20 = vsel %vm13222_vm13, %v13187_v14, %v6434_v5  ;;  %6809 = vmatpush.bf16.msrb.mxu3 %v9528_v23  ;;  %v9485_v5 = vld [vmem:[#allocation3 + $0x10] sm:$0xf0]  ;;  %v6457_v25 = vor.u32 1.1754944e-38, %v6456_v4  ;;  %v9492_v18 = vor.u32 %v10250_v51, %v9491_v62  ;;  %vm6513_vm9 = vweird.f32 %v13185_v52  ;;  %v10310_v62 = vld [vmem:[#allocation3 + $0xf4] sm:$0xf0] }
 0xb46   :  { %v6443_v63 = vsel %vm13202_vm8, %v6442_v35, %v6438_v20  ;;  %v6476_v9 = vsel %vm13232_vm15, %v13192_v55, %v6472_v13  ;;  %v6446_v26 = vmul.f32 %v13239_v47, %v13190_v58  ;;  %v9501_v55 = vld [vmem:[#allocation3 + $0x30] sm:$0xf0]  ;;  %v6510_v31 = vsub.f32 1.0, %v6509_v12  ;;  %v10248_v13 = vld [vmem:[#allocation3 + $0xc] sm:$0xf] }
 0xb47   :  { %v13254_v36 = vpop.eup %10835  ;;  %v6481_v14 = vsel %vm13226_vm14, %v6480_v45, %v6476_v9  ;;  %v6540_v39 = vmul.f32 %v10832_v37, %v6443_v63  ;;  %v9500_v35 = vor.u32 %v10253_v0, %v9499_v16  ;;  %vm6451_vm2 = vweird.f32 %v13239_v47  ;;  %v9483_v45 = vld [vmem:[#allocation3] sm:$0xf] }
 0xb48   :  { %v6538_v44 = vmul.f32 %v6481_v14, %v13122_v17  ;;  %v6447_v29 = vsub.f32 1.0, %v6446_v26  ;;  %v6484_v49 = vmul.f32 %v13254_v36, %v13208_v24  ;;  %v10838_v32 = vpop.eup %10837  ;;  %v9504_v30 = vor.u32 %v10251_v2, %v9501_v55  ;;  %vm6452_vm4 = vmor %vm6450_vm0, %vm6451_vm2  ;;  %6796 = vmatpush.bf16.msrb.mxu2 %v9508_v54 }
 0xb49   :  { %v10840_v8 = vpop.eup %10839  ;;  %v13267_v43 = vadd.f32 1.0, %v10838_v32  ;;  %vm6489_vm3 = vweird.f32 %v13254_v36  ;;  %6768 = vmatpush.bf16.msrb.mxu0 %v9500_v35  ;;  %v6511_v37 = vmul.f32 %v13217_v6, %v6510_v31  ;;  %v9484_v21 = vor.u32 %v10249_v10, %v9483_v45  ;;  %6810 = vmatpush.bf16.msrb.mxu3 %v9512_v3  ;;  %v9729_v3 = vld [vmem:[#allocation3 + $0xe0] sm:$0xf] }
 0xb4a   :  { %v13263_v48 = vadd.f32 %v6540_v39, %v6538_v44  ;;  %v6485_v41 = vsub.f32 1.0, %v6484_v49  ;;  %v6448_v17 = vmul.f32 %v13239_v47, %v6447_v29  ;;  %6782 = vmatpush.bf16.msrb.mxu1 %v9504_v30  ;;  %v9488_v22 = vor.u32 %v10247_v38, %v9485_v5  ;;  %vm6490_vm6 = vmor %vm6488_vm1, %vm6489_vm3  ;;  %v10309_v38 = vld [vmem:[#allocation3 + $0xec] sm:$0xf0]  ;;  %v10307_v5 = vld [vmem:[#allocation3 + $0xe4] sm:$0xf] }
 0xb4b   :  { %10841 = vrcp.f32 %v13267_v43  ;;  %v6495_v58 = vor.u32 1.1754944e-38, %v6494_v27  ;;  %vm6493_vm7 = vcmp.eq.f32.partialorder %v6492_v50, 8.507059e+37  ;;  %v9496_v56 = vor.u32 %v10248_v13, %v9493_v40  ;;  %v9737_v50 = vld [vmem:[#allocation3 + $0xe8] sm:$0xf]  ;;  %v10308_v40 = vld [vmem:[#allocation3 + $0xec] sm:$0xf] }
 0xb4c   :  { %v6486_v15 = vmul.f32 %v13254_v36, %v6485_v41  ;;  %v6449_v57 = vadd.f32 %v13239_v47, %v6448_v17  ;;  %10843 = vtanh.f32 %v13263_v48  ;;  %v6512_v9 = vadd.f32 %v13217_v6, %v6511_v37  ;;  %6797 = vmatpush.bf16.msrb.mxu2 %v9492_v18  ;;  %v13796_v17 = vld [vmem:[#allocation108_spill] sm:$0xff] }
 0xb4d   :  { %6769 = vmatpush.bf16.msrb.mxu0 %v9484_v21  ;;  %vm6514_vm8 = vweird.f32 %v13217_v6  ;;  %v6519_v26 = vand.u32 2147483648, %v13185_v52  ;;  %6811 = vmatpush.bf16.msrb.mxu3 %v9496_v56  ;;  %v6517_v16 = vand.u32 2147483647, %v13185_v52  ;;  %v6534_v33 = vand.u32 2147483648, %v13267_v43  ;;  %v9713_v21 = vld [vmem:[#allocation3 + $0xc0] sm:$0xf] }
 0xb4e   :  { %v6453_v20 = vsel %vm6452_vm4, %v13239_v47, %v6449_v57  ;;  %v6487_v12 = vadd.f32 %v13254_v36, %v6486_v15  ;;  %6783 = vmatpush.bf16.msrb.mxu1 %v9488_v22  ;;  %vm6515_vm10 = vmor %vm6513_vm9, %vm6514_vm8  ;;  %v6532_v59 = vand.u32 2147483647, %v13267_v43  ;;  %vm6528_vm13 = vweird.f32 %v13267_v43  ;;  %v9731_v57 = vld [vmem:[#allocation3 + $0xf0] sm:$0xf0]  ;;  %v10305_v22 = vld [vmem:[#allocation3 + $0xcc] sm:$0xf0] }
 0xb4f   :  { %v6458_v1 = vsel %vm6455_vm5, %v6457_v25, %v6453_v20  ;;  %v6520_v39 = vor.u32 1.1754944e-38, %v6519_v26  ;;  %vm6518_vm11 = vcmp.eq.f32.partialorder %v6517_v16, 8.507059e+37  ;;  %v6535_v29 = vor.u32 1.1754944e-38, %v6534_v33  ;;  %v9739_v20 = vld [vmem:[#allocation3 + $0xf8] sm:$0xf0] }
 0xb50   :  { %v6491_v34 = vsel %vm6490_vm6, %v13254_v36, %v6487_v12  ;;  %v6541_v47 = vmul.f32 %v10840_v8, %v6458_v1  ;;  %v6516_v36 = vsel %vm6515_vm10, %v13217_v6, %v6512_v9  ;;  %vm6533_vm15 = vcmp.eq.f32.partialorder %v6532_v59, 8.507059e+37  ;;  %v13795_v8 = vld [vmem:[#allocation107_spill] sm:$0xff]  ;;  %v13797_v1 = vld [vmem:[#allocation110_spill] sm:$0xff]  ;;  %v9721_v56 = vld [vmem:[#allocation3 + $0xc8] sm:$0xf] }
 0xb51   :  { %v6496_v63 = vsel %vm6493_vm7, %v6495_v58, %v6491_v34  ;;  %v10842_v27 = vpop.eup %10841  ;;  %v6521_v52 = vsel %vm6518_vm11, %v6520_v39, %v6516_v36  ;;  %v495_v41 = vadd.f32 %v13795_v8, %v11344_v53  ;;  %v584_v45 = vadd.f32 %v13796_v17, %v11347_v7  ;;  %v10303_v58 = vld [vmem:[#allocation3 + $0xc4] sm:$0xf]  ;;  %v13798_v9 = vld [vmem:[#allocation111_spill] sm:$0xff] }
 0xb52   :  { %v6539_v24 = vmul.f32 %v6496_v63, %v13156_v19  ;;  %v6524_v2 = vmul.f32 %v10842_v27, %v13267_v43  ;;  %v10844_v19 = vpop.eup %10843  ;;  %vm6529_vm12 = vweird.f32 %v10842_v27  ;;  %v9730_v15 = vor.u32 %v10309_v38, %v9729_v3  ;;  %v10306_v63 = vld [vmem:[#allocation3 + $0xd4] sm:$0xf0]  ;;  %v9681_v3 = vld [vmem:[#allocation3 + $0x80] sm:$0xf]  ;;  %v10297_v38 = vld [vmem:[#allocation3 + $0x8c] sm:$0xf0] }
 0xb53   :  { %v6546_v44 = vmul.f32 %v10844_v19, %v6521_v52  ;;  %vm6530_vm14 = vmor %vm6528_vm13, %vm6529_vm12  ;;  %v9734_v25 = vor.u32 %v10307_v5, %v9731_v57  ;;  %v9738_v13 = vor.u32 %v10310_v62, %v9737_v50  ;;  %v9742_v12 = vor.u32 %v10308_v40, %v9739_v20  ;;  %v9723_v19 = vld [vmem:[#allocation3 + $0xd8] sm:$0xf0]  ;;  %v10302_v8 = vld [vmem:[#allocation3 + $0xb4] sm:$0xf0] }
 0xb54   :  { %v13297_v0 = vadd.f32 %v6541_v47, %v6539_v24  ;;  %v6525_v14 = vsub.f32 1.0, %v6524_v2  ;;  %7166 = vmatpush.bf16.msra.mxu0 %v9730_v15  ;;  %v762_v18 = vadd.f32 %v13797_v1, %v11356_v11  ;;  %v9714_v34 = vor.u32 %v10305_v22, %v9713_v21  ;;  %v9715_v47 = vld [vmem:[#allocation3 + $0xd0] sm:$0xf0]  ;;  %v10295_v5 = vld [vmem:[#allocation3 + $0x84] sm:$0xf] }
 0xb55   :  { %v6548_v60 = vpack.c.bf16 %v6546_v44, %v6546_v44  ;;  %7180 = vmatpush.bf16.msra.mxu1 %v9734_v25  ;;  %7194 = vmatpush.bf16.msra.mxu2 %v9738_v13  ;;  %v497_v24 = vadd.f32 %v13798_v9, %v11344_v53  ;;  %v9718_v2 = vor.u32 %v10303_v58, %v9715_v47  ;;  %v9683_v15 = vld [vmem:[#allocation3 + $0x90] sm:$0xf0]  ;;  %v13800_v57 = vld [vmem:[#allocation109_spill] sm:$0xff]  ;;  %v13801_v25 = vld [vmem:[#allocation114_spill] sm:$0xff] }
 0xb56   :  { %10845 = vtanh.f32 %v13297_v0  ;;  %v6526_v55 = vmul.f32 %v10842_v27, %v6525_v14  ;;  %7208 = vmatpush.bf16.msra.mxu3 %v9742_v12  ;;  %v9722_v36 = vor.u32 %v10306_v63, %v9721_v56  ;;  %v10304_v14 = vld [vmem:[#allocation3 + $0xcc] sm:$0xf]  ;;  %v673_v50 = vadd.f32 %v13800_v57, %v11367_v46  ;;  %v9691_v21 = vld [vmem:[#allocation3 + $0x98] sm:$0xf0]  ;;  %v9665_v47 = vld [vmem:[#allocation3 + $0x60] sm:$0xf] }
 0xb57   :  { %v6598_v28 = vunpack.c.l.b16 %v6548_v60  ;;  %v9726_v59 = vor.u32 %v10304_v14, %v9723_v19  ;;  %v9705_v60 = vld [vmem:[#allocation3 + $0xa8] sm:$0xf]  ;;  %v764_v13 = vadd.f32 %v13801_v25, %v11356_v11  ;;  %v9682_v20 = vor.u32 %v10297_v38, %v9681_v3  ;;  %v10296_v12 = vld [vmem:[#allocation3 + $0x8c] sm:$0xf]  ;;  %v10293_v56 = vld [vmem:[#allocation3 + $0x6c] sm:$0xf0] }
 0xb58   :  { %v6527_v61 = vadd.f32 %v10842_v27, %v6526_v55  ;;  %7167 = vmatpush.bf16.msra.mxu0 %v9714_v34  ;;  %v9686_v1 = vor.u32 %v10295_v5, %v9683_v15  ;;  %v9694_v34 = vor.u32 %v10296_v12, %v9691_v21  ;;  %v10291_v63 = vld [vmem:[#allocation3 + $0x64] sm:$0xf]  ;;  %v10289_v3 = vld [vmem:[#allocation3 + $0x4c] sm:$0xf0] }
 0xb59   :  { %7181 = vmatpush.bf16.msra.mxu1 %v9718_v2  ;;  %7195 = vmatpush.bf16.msra.mxu2 %v9722_v36 }
 0xb5a   :  { %v6531_v49 = vsel %vm6530_vm14, %v10842_v27, %v6527_v61  ;;  %v13799_v27 = vld [vmem:[#allocation112_spill] sm:$0xff]  ;;  %7209 = vmatpush.bf16.msra.mxu3 %v9726_v59 }
 0xb5b   :  { %v6536_v4 = vsel %vm6533_vm15, %v6535_v29, %v6531_v49  ;;  %v586_v26 = vadd.f32 %v13799_v27, %v11347_v7  ;;  %v10301_v29 = vld [vmem:[#allocation3 + $0xac] sm:$0xf0] }
 0xb5c   :  { %v10846_v6 = vpop.eup %10845 }
 0xb5d   :  { %v6547_v42 = vmul.f32 %v10846_v6, %v6536_v4  ;;  %v10299_v6 = vld [vmem:[#allocation3 + $0xa4] sm:$0xf] }
 0xb5f   :  { %v6549_v32 = vpack.c.bf16 %v6547_v42, %v6547_v42  ;;  %v10379_v31 = vpack.c.bf16 %v6547_v42, %v6546_v44  ;;  %v9697_v44 = vld [vmem:[#allocation3 + $0xa0] sm:$0xf]  ;;  %v9699_v42 = vld [vmem:[#allocation3 + $0xb0] sm:$0xf0] }
 0xb60   :  { %v9698_v4 = vor.u32 %v10301_v29, %v9697_v44 }
 0xb61   :  { %10380 = vst [vmem:[#allocation13 + $0x68] sm:$0xff] %v10379_v31   ;;  %v6599_v23 = vunpack.c.l.b16 %v6549_v32 }
 0xb62   :  { %7168 = vmatpush.bf16.msra.mxu0 %v9698_v4 }
 0xb63   :  { %v6600_v35 = vpack.c.b16 %v6599_v23, %v6598_v28 }
 0xb65   :  { %6770 = vmatmul.bf16.vlgmr.msrb.gmra.mxu0 %v6600_v35  ;;  %6784 = vmatmul.bf16.vlgmr.msrb.gmra.mxu1 %v6600_v35 }
 0xb66   :  { %6798 = vmatmul.bf16.vlgmr.msrb.gmra.mxu2 %v6600_v35  ;;  %6812 = vmatmul.bf16.vlgmr.msrb.gmra.mxu3 %v6600_v35  ;;  %v9702_v35 = vor.u32 %v10299_v6, %v9699_v42  ;;  %v9643_v6 = vld [vmem:[#allocation3 + $0x38] sm:$0xf0] }
 0xb67   :  { %7169 = vmatpush.bf16.msra.mxu0 %v9682_v20 }
 0xb68   :  { %7182 = vmatpush.bf16.msra.mxu1 %v9702_v35  ;;  %v10294_v35 = vld [vmem:[#allocation3 + $0x74] sm:$0xf0] }
 0xb6c   :  { %7183 = vmatpush.bf16.msra.mxu1 %v9686_v1  ;;  %v10290_v1 = vld [vmem:[#allocation3 + $0x54] sm:$0xf0] }
 0xbe2   :  { %v6771_v10 = vpop.f32.mrf.mxu0  ;;  %v6785_v43 = vpop.f32.mrf.mxu1 }
 0xbe3   :  { %v6818_v30 = vadd.f32 %v6771_v10, %v495_v41  ;;  %v6819_v54 = vadd.f32 %v6785_v43, %v584_v45  ;;  %v9706_v45 = vor.u32 %v10302_v8, %v9705_v60  ;;  %v10300_v10 = vld [vmem:[#allocation3 + $0xac] sm:$0xf]  ;;  %v9707_v43 = vld [vmem:[#allocation3 + $0xb8] sm:$0xf0] }
 0xbe5   :  { %v9609_v51 = vmul.f32 -1.442695, %v6818_v30  ;;  %v9611_v37 = vmul.f32 -1.442695, %v6819_v54  ;;  %v9710_v54 = vor.u32 %v10300_v10, %v9707_v43  ;;  %7196 = vmatpush.bf16.msra.mxu2 %v9706_v45  ;;  %v10292_v45 = vld [vmem:[#allocation3 + $0x6c] sm:$0xf] }
 0xbe6   :  { %v9675_v43 = vld [vmem:[#allocation3 + $0x78] sm:$0xf0] }
 0xbe7   :  { %10847 = vpow2.f32 %v9609_v51  ;;  %7210 = vmatpush.bf16.msra.mxu3 %v9710_v54  ;;  %v9689_v51 = vld [vmem:[#allocation3 + $0x88] sm:$0xf]  ;;  %v9649_v54 = vld [vmem:[#allocation3 + $0x40] sm:$0xf] }
 0xbe8   :  { %10849 = vpow2.f32 %v9611_v37  ;;  %v10298_v37 = vld [vmem:[#allocation3 + $0x94] sm:$0xf0] }
 0xbe9   :  { %v6813_v16 = vpop.f32.mrf.mxu3  ;;  %v6799_v31 = vpop.f32.mrf.mxu2 }
 0xbea   :  { %v6821_v39 = vadd.f32 %v6813_v16, %v762_v18  ;;  %v6773_v33 = vpop.f32.mrf.mxu0  ;;  %v6787_v55 = vpop.f32.mrf.mxu1  ;;  %v6820_v58 = vadd.f32 %v6799_v31, %v673_v50  ;;  %v9690_v18 = vor.u32 %v10298_v37, %v9689_v51  ;;  %v9667_v16 = vld [vmem:[#allocation3 + $0x70] sm:$0xf0] }
 0xbeb   :  { %v6822_v52 = vadd.f32 %v6773_v33, %v497_v24  ;;  %v6823_v61 = vadd.f32 %v6787_v55, %v586_v26  ;;  %v9666_v26 = vor.u32 %v10293_v56, %v9665_v47  ;;  %v9670_v19 = vor.u32 %v10291_v63, %v9667_v16  ;;  %v13802_v33 = vld [vmem:[#allocation113_spill] sm:$0xff]  ;;  %7211 = vmatpush.bf16.msra.mxu3 %v9694_v34  ;;  %v9651_v50 = vld [vmem:[#allocation3 + $0x50] sm:$0xf0]  ;;  %v9659_v34 = vld [vmem:[#allocation3 + $0x58] sm:$0xf0] }
 0xbec   :  { %v9613_v49 = vmul.f32 -1.442695, %v6821_v39  ;;  %7197 = vmatpush.bf16.msra.mxu2 %v9690_v18  ;;  %v675_v55 = vadd.f32 %v13802_v33, %v11367_v46  ;;  %v10288_v18 = vld [vmem:[#allocation3 + $0x4c] sm:$0xf]  ;;  %v9641_v33 = vld [vmem:[#allocation3 + $0x28] sm:$0xf] }
 0xbed   :  { %v10848_v32 = vpop.eup %10847  ;;  %v9610_v28 = vmul.f32 -1.442695, %v6822_v52  ;;  %v9612_v23 = vmul.f32 -1.442695, %v6823_v61  ;;  %7170 = vmatpush.bf16.msra.mxu0 %v9666_v26  ;;  %7184 = vmatpush.bf16.msra.mxu1 %v9670_v19  ;;  %v10283_v26 = vld [vmem:[#allocation3 + $0x24] sm:$0xf] }
 0xbee   :  { %v10850_v41 = vpop.eup %10849  ;;  %v13315_v17 = vadd.f32 1.0, %v10848_v32  ;;  %10851 = vpow2.f32 %v9613_v49 }
 0xbef   :  { %v13317_v30 = vadd.f32 1.0, %v10850_v41  ;;  %10853 = vpow2.f32 %v9610_v28 }
 0xbf0   :  { %10855 = vrcp.f32 %v13315_v17  ;;  %v6843_v40 = vand.u32 2147483647, %v13315_v17  ;;  %v6845_v36 = vand.u32 2147483648, %v13315_v17  ;;  %vm6839_vm4 = vweird.f32 %v13315_v17 }
 0xbf1   :  { %10857 = vrcp.f32 %v13317_v30  ;;  %v6815_v62 = vpop.f32.mrf.mxu3  ;;  %v6883_v52 = vand.u32 2147483648, %v13317_v30  ;;  %v6801_v61 = vpop.f32.mrf.mxu2  ;;  %v6881_v49 = vand.u32 2147483647, %v13317_v30  ;;  %vm6877_vm3 = vweird.f32 %v13317_v30 }
 0xbf2   :  { %10859 = vpow2.f32 %v9612_v23  ;;  %v6825_v27 = vadd.f32 %v6815_v62, %v764_v13  ;;  %vm13343_vm0 = vcmp.eq.f32.partialorder %v6843_v40, 8.507059e+37  ;;  %v6846_v31 = vor.u32 1.1754944e-38, %v6845_v36  ;;  %v9673_v23 = vld [vmem:[#allocation3 + $0x68] sm:$0xf] }
 0xbf3   :  { %v6824_v28 = vadd.f32 %v6801_v61, %v675_v55  ;;  %v6884_v8 = vor.u32 1.1754944e-38, %v6883_v52  ;;  %vm13367_vm6 = vcmp.eq.f32.partialorder %v6881_v49, 8.507059e+37  ;;  %v9657_v40 = vld [vmem:[#allocation3 + $0x48] sm:$0xf]  ;;  %v10286_v55 = vld [vmem:[#allocation3 + $0x34] sm:$0xf0] }
 0xbf4   :  { %v10852_v22 = vpop.eup %10851  ;;  %v9614_v60 = vmul.f32 -1.442695, %v6825_v27  ;;  %v10285_v27 = vld [vmem:[#allocation3 + $0x2c] sm:$0xf0] }
 0xbf5   :  { %v10854_v9 = vpop.eup %10853  ;;  %v13326_v24 = vadd.f32 1.0, %v10852_v22  ;;  %v9678_v22 = vor.u32 %v10292_v45, %v9675_v43  ;;  %v9642_v43 = vor.u32 %v10286_v55, %v9641_v33 }
 0xbf6   :  { %v13328_v2 = vpop.eup %10855  ;;  %v13331_v14 = vadd.f32 1.0, %v10854_v9  ;;  %v9633_v9 = vld [vmem:[#allocation3 + $0x20] sm:$0xf] }
 0xbf7   :  { %v13333_v39 = vpop.eup %10857  ;;  %v6835_v59 = vmul.f32 %v13328_v2, %v13315_v17  ;;  %10861 = vrcp.f32 %v13326_v24  ;;  %vm6840_vm1 = vweird.f32 %v13328_v2  ;;  %v10287_v17 = vld [vmem:[#allocation3 + $0x44] sm:$0xf]  ;;  %7212 = vmatpush.bf16.msra.mxu3 %v9678_v22 }
 0xbf8   :  { %v10860_v44 = vpop.eup %10859  ;;  %v6873_v29 = vmul.f32 %v13333_v39, %v13317_v30  ;;  %10863 = vtanh.f32 %v6820_v58  ;;  %vm6878_vm2 = vweird.f32 %v13333_v39  ;;  %vm13363_vm5 = vmor %vm6839_vm4, %vm6840_vm1  ;;  %v9674_v30 = vor.u32 %v10294_v35, %v9673_v23 }
 0xbf9   :  { %v6836_v4 = vsub.f32 1.0, %v6835_v59  ;;  %10865 = vrcp.f32 %v13331_v14  ;;  %v13349_v42 = vadd.f32 1.0, %v10860_v44  ;;  %vm13373_vm7 = vmor %vm6877_vm3, %vm6878_vm2  ;;  %v6858_v13 = vand.u32 2147483647, %v13331_v14 }
 0xbfa   :  { %v6874_v32 = vsub.f32 1.0, %v6873_v29  ;;  %7198 = vmatpush.bf16.msra.mxu2 %v9674_v30  ;;  %v9650_v58 = vor.u32 %v10289_v3, %v9649_v54  ;;  %vm6854_vm8 = vweird.f32 %v13331_v14  ;;  %v9654_v19 = vor.u32 %v10287_v17, %v9651_v50  ;;  %v10284_v29 = vld [vmem:[#allocation3 + $0x2c] sm:$0xf]  ;;  %v10279_v3 = vld [vmem:[#allocation3 + $0x4] sm:$0xf] }
 0xbfb   :  { %v6837_v41 = vmul.f32 %v13328_v2, %v6836_v4  ;;  %10867 = vrcp.f32 %v13349_v42  ;;  %v6898_v25 = vand.u32 2147483648, %v13349_v42  ;;  %vm6892_vm9 = vweird.f32 %v13349_v42  ;;  %v9625_v17 = vld [vmem:[#allocation3 + $0x8] sm:$0xf]  ;;  %v10282_v50 = vld [vmem:[#allocation3 + $0x14] sm:$0xf0] }
 0xbfc   :  { %v6875_v10 = vmul.f32 %v13333_v39, %v6874_v32  ;;  %10869 = vpow2.f32 %v9614_v60  ;;  %7171 = vmatpush.bf16.msra.mxu0 %v9650_v58  ;;  %v6860_v44 = vand.u32 2147483648, %v13331_v14  ;;  %7185 = vmatpush.bf16.msra.mxu1 %v9654_v19  ;;  %v9658_v60 = vor.u32 %v10290_v1, %v9657_v40  ;;  %v9627_v40 = vld [vmem:[#allocation3 + $0x18] sm:$0xf0] }
 0xbfd   :  { %v13358_v38 = vpop.eup %10861  ;;  %v6838_v5 = vadd.f32 %v13328_v2, %v6837_v41  ;;  %10871 = vtanh.f32 %v6824_v28  ;;  %v9662_v32 = vor.u32 %v10288_v18, %v9659_v34  ;;  %v10281_v41 = vld [vmem:[#allocation3 + $0xc] sm:$0xf0]  ;;  %v9646_v54 = vor.u32 %v10284_v29, %v9643_v6 }
 0xbfe   :  { %v10864_v62 = vpop.eup %10863  ;;  %v6876_v37 = vadd.f32 %v13333_v39, %v6875_v10  ;;  %v6913_v21 = vmul.f32 %v13358_v38, %v13326_v24  ;;  %7199 = vmatpush.bf16.msra.mxu2 %v9658_v60  ;;  %v6896_v30 = vand.u32 2147483647, %v13349_v42  ;;  %vm6859_vm13 = vcmp.eq.f32.partialorder %v6858_v13, 8.507059e+37 }
 0xbff   :  { %v13380_v20 = vpop.eup %10865  ;;  %v6842_v12 = vsel %vm13363_vm5, %v13328_v2, %v6838_v5  ;;  %7213 = vmatpush.bf16.msra.mxu3 %v9662_v32  ;;  %v9619_v5 = vld [vmem:[#allocation3 + $0x10] sm:$0xf0]  ;;  %v6861_v51 = vor.u32 1.1754944e-38, %v6860_v44  ;;  %v9626_v1 = vor.u32 %v10282_v50, %v9625_v17  ;;  %vm6917_vm1 = vweird.f32 %v13326_v24  ;;  %v13815_v17 = vld [vmem:[#allocation120_spill] sm:$0xff] }
 0xc00   :  { %v6847_v47 = vsel %vm13343_vm0, %v6846_v31, %v6842_v12  ;;  %v6880_v56 = vsel %vm13373_vm7, %v13333_v39, %v6876_v37  ;;  %v6850_v63 = vmul.f32 %v13380_v20, %v13331_v14  ;;  %v9635_v39 = vld [vmem:[#allocation3 + $0x30] sm:$0xf0]  ;;  %v6914_v4 = vsub.f32 1.0, %v6913_v21  ;;  %v10280_v37 = vld [vmem:[#allocation3 + $0xc] sm:$0xf] }
 0xc01   :  { %v13395_v16 = vpop.eup %10867  ;;  %v6885_v2 = vsel %vm13367_vm6, %v6884_v8, %v6880_v56  ;;  %v6944_v36 = vmul.f32 %v10864_v62, %v6847_v47  ;;  %v9634_v31 = vor.u32 %v10285_v27, %v9633_v9  ;;  %vm6855_vm10 = vweird.f32 %v13380_v20  ;;  %v9617_v8 = vld [vmem:[#allocation3] sm:$0xf] }
 0xc02   :  { %v6942_v59 = vmul.f32 %v6885_v2, %v13263_v48  ;;  %v6851_v52 = vsub.f32 1.0, %v6850_v63  ;;  %v6888_v61 = vmul.f32 %v13395_v16, %v13349_v42  ;;  %v10870_v49 = vpop.eup %10869  ;;  %v9638_v10 = vor.u32 %v10283_v26, %v9635_v39  ;;  %vm6856_vm12 = vmor %vm6854_vm8, %vm6855_vm10  ;;  %7200 = vmatpush.bf16.msra.mxu2 %v9642_v43 }
 0xc03   :  { %v10872_v28 = vpop.eup %10871  ;;  %v13408_v45 = vadd.f32 1.0, %v10870_v49  ;;  %vm6893_vm11 = vweird.f32 %v13395_v16  ;;  %7172 = vmatpush.bf16.msra.mxu0 %v9634_v31  ;;  %v6915_v62 = vmul.f32 %v13358_v38, %v6914_v4  ;;  %v9618_v22 = vor.u32 %v10281_v41, %v9617_v8  ;;  %7214 = vmatpush.bf16.msra.mxu3 %v9646_v54 }
 0xc04   :  { %v13404_v23 = vadd.f32 %v6944_v36, %v6942_v59  ;;  %v6889_v35 = vsub.f32 1.0, %v6888_v61  ;;  %v6852_v48 = vmul.f32 %v13380_v20, %v6851_v52  ;;  %7186 = vmatpush.bf16.msra.mxu1 %v9638_v10  ;;  %v9622_v58 = vor.u32 %v10279_v3, %v9619_v5  ;;  %vm6894_vm14 = vmor %vm6892_vm9, %vm6893_vm11  ;;  %v13813_v5 = vld [vmem:[#allocation117_spill] sm:$0xff] }
 0xc05   :  { %10873 = vrcp.f32 %v13408_v45  ;;  %v6899_v14 = vor.u32 1.1754944e-38, %v6898_v25  ;;  %vm6897_vm15 = vcmp.eq.f32.partialorder %v6896_v30, 8.507059e+37  ;;  %v9630_v34 = vor.u32 %v10280_v37, %v9627_v40 }
 0xc06   :  { %v6890_v15 = vmul.f32 %v13395_v16, %v6889_v35  ;;  %v6853_v57 = vadd.f32 %v13380_v20, %v6852_v48  ;;  %10875 = vtanh.f32 %v13404_v23  ;;  %v6916_v56 = vadd.f32 %v13358_v38, %v6915_v62  ;;  %7201 = vmatpush.bf16.msra.mxu2 %v9626_v1  ;;  %v13812_v48 = vld [vmem:[#allocation116_spill] sm:$0xff] }
 0xc07   :  { %7173 = vmatpush.bf16.msra.mxu0 %v9618_v22  ;;  %vm6918_vm0 = vweird.f32 %v13358_v38  ;;  %v6923_v63 = vand.u32 2147483648, %v13326_v24  ;;  %7215 = vmatpush.bf16.msra.mxu3 %v9630_v34  ;;  %v6921_v9 = vand.u32 2147483647, %v13326_v24  ;;  %v6938_v19 = vand.u32 2147483648, %v13408_v45 }
 0xc08   :  { %v6857_v12 = vsel %vm6856_vm12, %v13380_v20, %v6853_v57  ;;  %v6891_v21 = vadd.f32 %v13395_v16, %v6890_v15  ;;  %7187 = vmatpush.bf16.msra.mxu1 %v9622_v58  ;;  %vm6919_vm2 = vmor %vm6917_vm1, %vm6918_vm0  ;;  %v6936_v33 = vand.u32 2147483647, %v13408_v45  ;;  %vm6932_vm5 = vweird.f32 %v13408_v45  ;;  %v13814_v57 = vld [vmem:[#allocation118_spill] sm:$0xff] }
 0xc09   :  { %v6862_v13 = vsel %vm6859_vm13, %v6861_v51, %v6857_v12  ;;  %v6924_v36 = vor.u32 1.1754944e-38, %v6923_v63  ;;  %vm6922_vm3 = vcmp.eq.f32.partialorder %v6921_v9, 8.507059e+37  ;;  %v6939_v52 = vor.u32 1.1754944e-38, %v6938_v19 }
 0xc0a   :  { %v6895_v18 = vsel %vm6894_vm14, %v13395_v16, %v6891_v21  ;;  %v6945_v20 = vmul.f32 %v10872_v28, %v6862_v13  ;;  %v6920_v16 = vsel %vm6919_vm2, %v13358_v38, %v6916_v56  ;;  %vm6937_vm7 = vcmp.eq.f32.partialorder %v6936_v33, 8.507059e+37  ;;  %v13811_v28 = vld [vmem:[#allocation115_spill] sm:$0xff]  ;;  %v13817_v56 = vld [vmem:[#allocation121_spill] sm:$0xff]  ;;  %v13818_v33 = vld [vmem:[#allocation122_spill] sm:$0xff] }
 0xc0b   :  { %v6900_v47 = vsel %vm6897_vm15, %v6899_v14, %v6895_v18  ;;  %v10874_v25 = vpop.eup %10873  ;;  %v6925_v24 = vsel %vm6922_vm3, %v6924_v36, %v6920_v16  ;;  %v500_v35 = vadd.f32 %v13811_v28, %v11344_v53  ;;  %v589_v8 = vadd.f32 %v13812_v48, %v11347_v7 }
 0xc0c   :  { %v6943_v42 = vmul.f32 %v6900_v47, %v13297_v0  ;;  %v6928_v26 = vmul.f32 %v10874_v25, %v13408_v45  ;;  %v10876_v0 = vpop.eup %10875  ;;  %vm6933_vm4 = vweird.f32 %v10874_v25  ;;  %v767_v15 = vadd.f32 %v13813_v5, %v11356_v11 }
 0xc0d   :  { %v6950_v59 = vmul.f32 %v10876_v0, %v6925_v24  ;;  %vm6934_vm6 = vmor %vm6932_vm5, %vm6933_vm4  ;;  %v502_v30 = vadd.f32 %v13814_v57, %v11344_v53  ;;  %v591_v50 = vadd.f32 %v13815_v17, %v11347_v7  ;;  %v13816_v7 = vld [vmem:[#allocation119_spill] sm:$0xff]  ;;  %v680_v24 = vadd.f32 %v13818_v33, %v11367_v46 }
 0xc0e   :  { %v13438_v27 = vadd.f32 %v6945_v20, %v6943_v42  ;;  %v6929_v2 = vsub.f32 1.0, %v6928_v26  ;;  %v678_v34 = vadd.f32 %v13816_v7, %v11367_v46  ;;  %v769_v42 = vadd.f32 %v13817_v56, %v11356_v11 }
 0xc0f   :  { %v6952_v6 = vpack.c.bf16 %v6950_v59, %v6950_v59 }
 0xc10   :  { %10877 = vtanh.f32 %v13438_v27  ;;  %v6930_v39 = vmul.f32 %v10874_v25, %v6929_v2 }
 0xc11   :  { %v7002_v60 = vunpack.c.l.b16 %v6952_v6 }
 0xc12   :  { %v6931_v55 = vadd.f32 %v10874_v25, %v6930_v39 }
 0xc14   :  { %v6935_v61 = vsel %vm6934_vm6, %v10874_v25, %v6931_v55 }
 0xc15   :  { %v6940_v44 = vsel %vm6937_vm7, %v6939_v52, %v6935_v61 }
 0xc16   :  { %v10878_v38 = vpop.eup %10877 }
 0xc17   :  { %v6951_v29 = vmul.f32 %v10878_v38, %v6940_v44 }
 0xc19   :  { %v6953_v49 = vpack.c.bf16 %v6951_v29, %v6951_v29  ;;  %v10384_v4 = vpack.c.bf16 %v6951_v29, %v6950_v59 }
 0xc1b   :  { %10385 = vst [vmem:[#allocation13 + $0x70] sm:$0xff] %v10384_v4   ;;  %v7003_v32 = vunpack.c.l.b16 %v6953_v49 }
 0xc1d   :  { %v7004_v31 = vpack.c.b16 %v7003_v32, %v7002_v60 }
 0xc1f   :  { %7174 = vmatmul.bf16.vlgmr.msra.gmra.mxu0 %v7004_v31  ;;  %7188 = vmatmul.bf16.vlgmr.msra.gmra.mxu1 %v7004_v31 }
 0xc20   :  { %7202 = vmatmul.bf16.vlgmr.msra.gmra.mxu2 %v7004_v31  ;;  %7216 = vmatmul.bf16.vlgmr.msra.gmra.mxu3 %v7004_v31 }
 0xc9c   :  { %v7175_v41 = vpop.f32.mrf.mxu0  ;;  %v7189_v45 = vpop.f32.mrf.mxu1 }
 0xc9d   :  { %v7222_v10 = vadd.f32 %v7175_v41, %v500_v35  ;;  %v7223_v43 = vadd.f32 %v7189_v45, %v589_v8 }
 0xc9f   :  { %v9743_v54 = vmul.f32 -1.442695, %v7222_v10  ;;  %v9745_v3 = vmul.f32 -1.442695, %v7223_v43 }
 0xca1   :  { %10879 = vpow2.f32 %v9743_v54 }
 0xca2   :  { %10881 = vpow2.f32 %v9745_v3 }
 0xca3   :  { %v7217_v62 = vpop.f32.mrf.mxu3  ;;  %v7203_v53 = vpop.f32.mrf.mxu2 }
 0xca4   :  { %v7225_v51 = vadd.f32 %v7217_v62, %v767_v15  ;;  %v7177_v37 = vpop.f32.mrf.mxu0  ;;  %v7191_v40 = vpop.f32.mrf.mxu1  ;;  %v7224_v63 = vadd.f32 %v7203_v53, %v678_v34 }
 0xca5   :  { %v7226_v12 = vadd.f32 %v7177_v37, %v502_v30  ;;  %v7227_v21 = vadd.f32 %v7191_v40, %v591_v50 }
 0xca6   :  { %v9747_v22 = vmul.f32 -1.442695, %v7225_v51 }
 0xca7   :  { %v10880_v58 = vpop.eup %10879  ;;  %v9744_v14 = vmul.f32 -1.442695, %v7226_v12  ;;  %v9746_v18 = vmul.f32 -1.442695, %v7227_v21 }
 0xca8   :  { %v10882_v13 = vpop.eup %10881  ;;  %v7236_v1 = vadd.f32 1.0, %v10880_v58  ;;  %10883 = vpow2.f32 %v9747_v22 }
 0xca9   :  { %v7274_v20 = vadd.f32 1.0, %v10882_v13  ;;  %10885 = vpow2.f32 %v9744_v14 }
 0xcaa   :  { %10887 = vrcp.f32 %v7236_v1  ;;  %v7247_v44 = vand.u32 2147483647, %v7236_v1  ;;  %v7249_v29 = vand.u32 2147483648, %v7236_v1  ;;  %vm7243_vm10 = vweird.f32 %v7236_v1 }
 0xcab   :  { %10889 = vrcp.f32 %v7274_v20  ;;  %v7219_v47 = vpop.f32.mrf.mxu3  ;;  %v7287_v61 = vand.u32 2147483648, %v7274_v20  ;;  %v7205_v6 = vpop.f32.mrf.mxu2  ;;  %v7285_v4 = vand.u32 2147483647, %v7274_v20  ;;  %vm7281_vm11 = vweird.f32 %v7274_v20 }
 0xcac   :  { %10891 = vpow2.f32 %v9746_v18  ;;  %v7229_v16 = vadd.f32 %v7219_v47, %v769_v42  ;;  %v7228_v31 = vadd.f32 %v7205_v6, %v680_v24  ;;  %v7250_v35 = vor.u32 1.1754944e-38, %v7249_v29 }
 0xcad   :  { %v7288_v45 = vor.u32 1.1754944e-38, %v7287_v61  ;;  %vm7248_vm14 = vcmp.eq.f32.partialorder %v7247_v44, 8.507059e+37  ;;  %vm7286_vm15 = vcmp.eq.f32.partialorder %v7285_v4, 8.507059e+37 }
 0xcae   :  { %v10884_v25 = vpop.eup %10883  ;;  %v9748_v52 = vmul.f32 -1.442695, %v7229_v16 }
 0xcaf   :  { %v10886_v9 = vpop.eup %10885  ;;  %v13460_v26 = vadd.f32 1.0, %v10884_v25 }
 0xcb0   :  { %v10888_v2 = vpop.eup %10887  ;;  %v13462_v0 = vadd.f32 1.0, %v10886_v9 }
 0xcb1   :  { %v10890_v36 = vpop.eup %10889  ;;  %v7239_v19 = vmul.f32 %v10888_v2, %v7236_v1  ;;  %10893 = vrcp.f32 %v13460_v26  ;;  %vm7244_vm8 = vweird.f32 %v10888_v2  ;;  %v7327_v17 = vand.u32 2147483648, %v13460_v26 }
 0xcb2   :  { %v10892_v39 = vpop.eup %10891  ;;  %v7277_v55 = vmul.f32 %v10890_v36, %v7274_v20  ;;  %10895 = vtanh.f32 %v7224_v63  ;;  %vm7282_vm9 = vweird.f32 %v10890_v36  ;;  %vm7245_vm12 = vmor %vm7243_vm10, %vm7244_vm8  ;;  %vm7258_vm0 = vweird.f32 %v13462_v0 }
 0xcb3   :  { %v7240_v11 = vsub.f32 1.0, %v7239_v19  ;;  %10897 = vrcp.f32 %v13462_v0  ;;  %v13468_v59 = vadd.f32 1.0, %v10892_v39  ;;  %vm7283_vm13 = vmor %vm7281_vm11, %vm7282_vm9  ;;  %v7262_v21 = vand.u32 2147483647, %v13462_v0 }
 0xcb4   :  { %v7278_v38 = vsub.f32 1.0, %v7277_v55  ;;  %v7264_v22 = vand.u32 2147483648, %v13462_v0  ;;  %vm7321_vm4 = vweird.f32 %v13460_v26  ;;  %v7325_v34 = vand.u32 2147483647, %v13460_v26 }
 0xcb5   :  { %v7241_v49 = vmul.f32 %v10888_v2, %v7240_v11  ;;  %10899 = vrcp.f32 %v13468_v59  ;;  %v7302_v12 = vand.u32 2147483648, %v13468_v59  ;;  %v7300_v1 = vand.u32 2147483647, %v13468_v59 }
 0xcb6   :  { %v7279_v60 = vmul.f32 %v10890_v36, %v7278_v38  ;;  %10901 = vpow2.f32 %v9748_v52  ;;  %v7265_v47 = vor.u32 1.1754944e-38, %v7264_v22  ;;  %vm7296_vm7 = vweird.f32 %v13468_v59 }
 0xcb7   :  { %v13471_v46 = vpop.eup %10893  ;;  %v7242_v32 = vadd.f32 %v10888_v2, %v7241_v49  ;;  %10903 = vtanh.f32 %v7228_v31  ;;  %vm7263_vm8 = vcmp.eq.f32.partialorder %v7262_v21, 8.507059e+37  ;;  %v7303_v9 = vor.u32 1.1754944e-38, %v7302_v12 }
 0xcb8   :  { %v10896_v28 = vpop.eup %10895  ;;  %v7280_v48 = vadd.f32 %v10890_v36, %v7279_v60  ;;  %v7317_v8 = vmul.f32 %v13471_v46, %v13460_v26  ;;  %vm7322_vm2 = vweird.f32 %v13471_v46  ;;  %v7328_v16 = vor.u32 1.1754944e-38, %v7327_v17 }
 0xcb9   :  { %v10898_v41 = vpop.eup %10897  ;;  %v7246_v10 = vsel %vm7245_vm12, %v10888_v2, %v7242_v32  ;;  %vm13491_vm6 = vmor %vm7321_vm4, %vm7322_vm2  ;;  %vm7301_vm10 = vcmp.eq.f32.partialorder %v7300_v1, 8.507059e+37  ;;  %vm7326_vm11 = vcmp.eq.f32.partialorder %v7325_v34, 8.507059e+37 }
 0xcba   :  { %v7251_v43 = vsel %vm7248_vm14, %v7250_v35, %v7246_v10  ;;  %v7284_v54 = vsel %vm7283_vm13, %v10890_v36, %v7280_v48  ;;  %v7318_v3 = vsub.f32 1.0, %v7317_v8  ;;  %v7254_v5 = vmul.f32 %v10898_v41, %v13462_v0 }
 0xcbb   :  { %v10900_v15 = vpop.eup %10899  ;;  %v7289_v57 = vsel %vm7286_vm15, %v7288_v45, %v7284_v54  ;;  %v7348_v30 = vmul.f32 %v10896_v28, %v7251_v43  ;;  %vm7259_vm1 = vweird.f32 %v10898_v41 }
 0xcbc   :  { %v7346_v50 = vmul.f32 %v7289_v57, %v13404_v23  ;;  %v7319_v62 = vmul.f32 %v13471_v46, %v7318_v3  ;;  %v7255_v51 = vsub.f32 1.0, %v7254_v5  ;;  %v7292_v37 = vmul.f32 %v10900_v15, %v13468_v59  ;;  %v10902_v40 = vpop.eup %10901  ;;  %vm7260_vm5 = vmor %vm7258_vm0, %vm7259_vm1 }
 0xcbd   :  { %v7315_v18 = vadd.f32 1.0, %v10902_v40  ;;  %vm7297_vm3 = vweird.f32 %v10900_v15  ;;  %v10904_v7 = vpop.eup %10903 }
 0xcbe   :  { %v7350_v58 = vadd.f32 %v7348_v30, %v7346_v50  ;;  %v7293_v14 = vsub.f32 1.0, %v7292_v37  ;;  %v7256_v13 = vmul.f32 %v10898_v41, %v7255_v51  ;;  %v7320_v23 = vadd.f32 %v13471_v46, %v7319_v62  ;;  %vm7298_vm9 = vmor %vm7296_vm7, %vm7297_vm3 }
 0xcbf   :  { %v7342_v38 = vand.u32 2147483648, %v7315_v18  ;;  %v7340_v44 = vand.u32 2147483647, %v7315_v18  ;;  %vm7336_vm13 = vweird.f32 %v7315_v18 }
 0xcc0   :  { %10905 = vtanh.f32 %v7350_v58  ;;  %v7294_v20 = vmul.f32 %v10900_v15, %v7293_v14  ;;  %v7257_v53 = vadd.f32 %v10898_v41, %v7256_v13  ;;  %v7324_v63 = vsel %vm13491_vm6, %v13471_v46, %v7320_v23 }
 0xcc1   :  { %10907 = vrcp.f32 %v7315_v18  ;;  %v7329_v39 = vsel %vm7326_vm11, %v7328_v16, %v7324_v63  ;;  %v7343_v6 = vor.u32 1.1754944e-38, %v7342_v38  ;;  %vm7341_vm15 = vcmp.eq.f32.partialorder %v7340_v44, 8.507059e+37 }
 0xcc2   :  { %v7261_v42 = vsel %vm7260_vm5, %v10898_v41, %v7257_v53  ;;  %v7295_v25 = vadd.f32 %v10900_v15, %v7294_v20 }
 0xcc3   :  { %v7266_v26 = vsel %vm7263_vm8, %v7265_v47, %v7261_v42 }
 0xcc4   :  { %v7299_v2 = vsel %vm7298_vm9, %v10900_v15, %v7295_v25  ;;  %v7349_v0 = vmul.f32 %v10904_v7, %v7266_v26 }
 0xcc5   :  { %v7304_v36 = vsel %vm7301_vm10, %v7303_v9, %v7299_v2 }
 0xcc6   :  { %v10906_v19 = vpop.eup %10905  ;;  %v7347_v33 = vmul.f32 %v7304_v36, %v13438_v27 }
 0xcc7   :  { %v10908_v24 = vpop.eup %10907  ;;  %v7354_v55 = vmul.f32 %v10906_v19, %v7329_v39 }
 0xcc8   :  { %v7351_v11 = vadd.f32 %v7349_v0, %v7347_v33  ;;  %v7332_v59 = vmul.f32 %v10908_v24, %v7315_v18  ;;  %vm7337_vm12 = vweird.f32 %v10908_v24 }
 0xcc9   :  { %vm7338_vm14 = vmor %vm7336_vm13, %vm7337_vm12 }
 0xcca   :  { %10909 = vtanh.f32 %v7351_v11  ;;  %v7333_v52 = vsub.f32 1.0, %v7332_v59 }
 0xccc   :  { %v7334_v61 = vmul.f32 %v10908_v24, %v7333_v52 }
 0xcce   :  { %v7335_v29 = vadd.f32 %v10908_v24, %v7334_v61 }
 0xcd0   :  { %v10910_v49 = vpop.eup %10909  ;;  %v7339_v4 = vsel %vm7338_vm14, %v10908_v24, %v7335_v29 }
 0xcd1   :  { %v7344_v60 = vsel %vm7341_vm15, %v7343_v6, %v7339_v4 }
 0xcd2   :  { %v7355_v27 = vmul.f32 %v10910_v49, %v7344_v60 }
 0xcd4   :  { %v10389_v46 = vpack.c.bf16 %v7355_v27, %v7354_v55 }
 0xcd6   :  { %10390 = vst [vmem:[#allocation13 + $0x78] sm:$0xff] %v10389_v46  }
 0xcd7   :  { %7377 = dma.vmem_to_hbm [thread:$0]  %s7370_s3, 2048, %s7372_s11, [#allocation10], %s11042_s23, %s11042_s23, %s11043_s24  }
 0xcd8   :  { %11039 = dma.done.wait [#allocation10], 2048  }
 0xcd9   :  { %11040 = vsyncadd [#allocation10], 4294965248 }
 0xcda   :  { %7382 = vsyncpa [#allocation9], 1 }
 0xcdb   :  { %7383 = vsyncpa [#allocation12], 1 }
 0xcdc   :  { %7384 = vsyncpa [#allocation10], 1 }
 0xcdd   :  { %7385 = vsyncmov [#allocation7] }
 0xce0   :  { %s7386_s12 = vpop.sfrf %7385 }
 0xce1   :  { %p9749_p0 = scmp.ne.s32.totalorder %s7386_s12, 0 }
 0xce3   :  { %7390 = shalt.err (%p9749_p0)  }
 0xce4   :  { %7392 = vsyncmov [#allocation7 + $0x1] }
 0xce7   :  { %s7393_s4 = vpop.sfrf %7392 }
 0xce8   :  { %p9750_p1 = scmp.ne.s32.totalorder %s7393_s4, 0 }
 0xcea   :  { %7397 = shalt.err (%p9750_p1)  }

</bundles_post_ra>
